<compile_context>
chip_gen: v7x
topology: tpu7x:2x2x1
jax: 0.10.0
libtpu: 0.0.40
codegen_flags: <defaults>
</compile_context>

<pallas_src>
import math
import jax
import jax.numpy as jnp
from jax.experimental import pallas as pl
from jax.experimental.pallas import tpu as pltpu

# ---------------- small synthetic config (consistent with the module) ----------------
VOCAB_SIZE = 100
ANSWER_SIZE = 10
VISUAL_DIM = 16
COORD_DIM = 4
HIDDEN = 32          # BertConfig.hidden_size (small synthetic config)
N_HEAD = 4
HEAD_DIM = HIDDEN // N_HEAD
PRE_LAYERS = 2
STACKING = 2
NUM_REGIONS = 16     # intermediate_dim
MAX_POS = 64
WORD_EMB_DIM = 300
TOKENS_PER_STEP = 8  # program tokens per step; prog_proj maps 300 -> HIDDEN//8, view -> HIDDEN
PAD = 0
LN_EPS = 1e-12
NEG = -1e9
SCALE = 1.0 / math.sqrt(HEAD_DIM)

# stacked attention-layer indexing: [ques_enc..., vis_enc..., exec_cross, exec_self, post...]
NL = 2 * PRE_LAYERS + 2 + STACKING
L_QENC = 0
L_VENC = PRE_LAYERS
L_XCROSS = 2 * PRE_LAYERS
L_XSELF = L_XCROSS + 1
L_POST = L_XSELF + 1


# ---------------------------- the fused kernel ----------------------------
def _fused_kernel(idx_ref,                                           # scalar prefetch (SMEM)
                  qemb_ref, qka_ref, qmc_ref, visbox_ref, vmc_ref,
                  progf_ref, pmc_ref, trans_ref, act_ref,
                  wq_ref, bq_ref, wkv_ref, bkv_ref, wo_ref, bo_ref, lg_ref, lb_ref,
                  qlng_ref, qlnb_ref, vbw_ref, vbbp_ref, pw_ref, pb_ref,
                  iw_ref, ib_ref, prw_ref, prb_ref,
                  prelog_ref, logits_ref):
    f32 = jnp.float32
    b = pl.program_id(0)

    def layernorm(x, g, beta):
        mu = jnp.mean(x, axis=-1, keepdims=True)
        var = jnp.mean(jnp.square(x - mu), axis=-1, keepdims=True)
        return (x - mu) * jax.lax.rsqrt(var + LN_EPS) * g + beta

    # ---- per-query-length head constants (built once per length, iota + compares only) ----
    _consts = {}

    def head_consts(lq):
        if lq in _consts:
            return _consts[lq]
        rows = N_HEAD * lq
        ra = jax.lax.broadcasted_iota(jnp.int32, (rows, 1), 0)          # expanded row id a
        hid = (ra >= lq).astype(jnp.int32)                              # head id = a // lq
        for h in range(2, N_HEAD):
            hid = hid + (ra >= h * lq).astype(jnp.int32)
        rid = ra - hid * lq                                             # query id = a % lq
        colh = jax.lax.broadcasted_iota(jnp.int32, (1, HIDDEN), 1)
        cid = (colh >= HEAD_DIM).astype(jnp.int32)                      # feature head id
        for h in range(2, N_HEAD):
            cid = cid + (colh >= h * HEAD_DIM).astype(jnp.int32)
        hm = (hid == cid).astype(f32)                                   # (rows, H) head mask
        qcol = jax.lax.broadcasted_iota(jnp.int32, (rows, lq), 1)
        e_mat = (rid == qcol).astype(f32)                               # (rows, lq) expand
        ib_ = jax.lax.broadcasted_iota(jnp.int32, (lq, 1), 0)
        acol = jax.lax.broadcasted_iota(jnp.int32, (lq, rows), 1)
        hid_r = (acol >= lq).astype(jnp.int32)
        for h in range(2, N_HEAD):
            hid_r = hid_r + (acol >= h * lq).astype(jnp.int32)
        et_mat = ((acol - hid_r * lq) == ib_).astype(f32)               # (lq, rows) collapse
        _consts[lq] = (e_mat, et_mat, hm)
        return _consts[lq]

    # ---- one Bert attention layer (attention + dense + residual + LayerNorm) ----
    def attn(l, x, kv, key_add=None, attn_add=None):
        lq = x.shape[0]
        e_mat, et_mat, hm = head_consts(lq)
        q = jnp.dot(x, wq_ref[l], preferred_element_type=f32) + bq_ref[l]        # (lq, H)
        kvp = jnp.dot(kv, wkv_ref[l], preferred_element_type=f32) + bkv_ref[l]   # (lk, 2H)
        k = kvp[:, :HIDDEN]
        v = kvp[:, HIDDEN:]
        # all heads at once: rows of q_big are (head, query) pairs, head-major
        q_big = jnp.dot(e_mat, q, preferred_element_type=f32) * hm               # (nh*lq, H)
        s = jax.lax.dot_general(q_big, k, (((1,), (1,)), ((), ())),
                                preferred_element_type=f32) * SCALE              # (nh*lq, lk)
        if key_add is not None:
            s = s + key_add                                   # (1, lk) additive key mask
        if attn_add is not None:
            # (lq, lk) additive mask shared by all heads -> expand to head-major rows
            s = s + jnp.dot(e_mat, attn_add, preferred_element_type=f32)
        s = s - jnp.max(s, axis=-1, keepdims=True)
        e = jnp.exp(s)
        p_attn = e * pl.reciprocal(jnp.sum(e, axis=-1, keepdims=True), approx=True)
        ctx_big = jnp.dot(p_attn, v, preferred_element_type=f32)                 # (nh*lq, H)
        ctx = jnp.dot(et_mat, ctx_big * hm, preferred_element_type=f32)          # (lq, H)
        out = jnp.dot(ctx, wo_ref[l], preferred_element_type=f32) + bo_ref[l]
        return layernorm(out + x, lg_ref[l], lb_ref[l])

    # ---- question embeddings (word + pos + tok computed in wrapper) + LayerNorm ----
    ques = layernorm(qemb_ref[0], qlng_ref[...], qlnb_ref[...])                  # (Lq, H)
    q_keyadd = qka_ref[0]                                                        # (1, Lq)
    qmask_col = qmc_ref[0]                                                       # (Lq, 1)

    # ---- question self-attention encoder ----
    for l in range(PRE_LAYERS):
        ques = attn(L_QENC + l, ques, ques, key_add=q_keyadd)
        ques = ques * qmask_col

    # ---- visual features: fused vis/coordinate projection + (bias + positional emb) ----
    vis = (jnp.dot(visbox_ref[0], vbw_ref[...], preferred_element_type=jnp.float32)
           + vbbp_ref[...])                                                      # (Nv, H)
    vmask_col = vmc_ref[0]                                                       # (Nv, 1)

    # ---- visual cross-attention encoder (keys/values = question) ----
    for l in range(PRE_LAYERS):
        vis = attn(L_VENC + l, vis, ques, key_add=q_keyadd)
        vis = vis * vmask_col

    # ---- program start encoding: block-diagonal projection, lane-dense output ----
    enc = (jnp.dot(progf_ref[0], pw_ref[...], preferred_element_type=jnp.float32)
           + pb_ref[...])                                                        # (P, H)
    pmask_col = pmc_ref[0]                                                       # (P, 1)

    # ---- soft-logic execution steps ----
    n_steps = trans_ref.shape[1]
    for d in range(n_steps):
        last = enc
        enc = attn(L_XCROSS, enc, vis)                                  # no mask (as in ref)
        enc = attn(L_XSELF, enc, enc, attn_add=trans_ref[0, d])         # (P, P) additive
        enc = enc * pmask_col
        a = act_ref[0, d]                                               # (P, 1)
        enc = a * enc + (1.0 - a) * last

    # ---- post cross-attention stack ----
    for l in range(STACKING):
        enc = attn(L_POST + l, enc, vis)

    # ---- heads ----
    prelog_ref[0] = (jnp.dot(enc, iw_ref[...], preferred_element_type=jnp.float32)
                     + ib_ref[...]).astype(prelog_ref.dtype)
    # gather enc[index[b]] via a one-hot matmul (no dynamic sublane slice)
    idx = idx_ref[b]
    onehot = (jax.lax.broadcasted_iota(jnp.int32, (1, enc.shape[0]), 1) == idx).astype(jnp.float32)
    lang = jnp.dot(onehot, enc, preferred_element_type=jnp.float32)              # (1, H)
    logits_ref[0] = (jnp.dot(lang, prw_ref[...], preferred_element_type=jnp.float32)
                     + prb_ref[...]).astype(logits_ref.dtype)


# ---------------------------- parameters ----------------------------
def _dense(key, din, dout, scale=0.02):
    w = jax.random.normal(key, (din, dout), jnp.float32) * scale
    b = jnp.zeros((dout,), jnp.float32)
    return w, b


def _attn_params(key, h):
    ks = jax.random.split(key, 4)
    wq, bq = _dense(ks[0], h, h)
    wk, bk = _dense(ks[1], h, h)
    wv, bv = _dense(ks[2], h, h)
    wo, bo = _dense(ks[3], h, h)
    return dict(wq=wq, bq=bq, wk=wk, bk=bk, wv=wv, bv=bv, wo=wo, bo=bo,
                ln_g=jnp.ones((h,), jnp.float32), ln_b=jnp.zeros((h,), jnp.float32))


def init_params(key):
    keys = iter(jax.random.split(key, 64))
    H = HIDDEN
    p = {}
    # BertEmbeddings for questions
    p["qbe_word"] = jax.random.normal(next(keys), (VOCAB_SIZE, H), jnp.float32) * 0.02
    p["qbe_pos"] = jax.random.normal(next(keys), (MAX_POS, H), jnp.float32) * 0.02
    p["qbe_tok"] = jax.random.normal(next(keys), (2, H), jnp.float32) * 0.02
    p["qbe_ln_g"] = jnp.ones((1, H), jnp.float32)
    p["qbe_ln_b"] = jnp.zeros((1, H), jnp.float32)
    # 300-d word embedding (padding_idx=PAD zeroed) used for the program
    emb300 = jax.random.normal(next(keys), (VOCAB_SIZE, WORD_EMB_DIM), jnp.float32) * 0.02
    p["emb300"] = emb300.at[PAD].set(0.0)
    # program projection 300 -> H//8, laid out as a block-diagonal (T*300, H) weight so the
    # in-kernel output is lane-dense (width H instead of 4).
    prog_w, prog_b = _dense(next(keys), WORD_EMB_DIM, H // TOKENS_PER_STEP)
    dh_out = H // TOKENS_PER_STEP
    wblock = jnp.zeros((TOKENS_PER_STEP * WORD_EMB_DIM, H), jnp.float32)
    for t in range(TOKENS_PER_STEP):
        wblock = wblock.at[t * WORD_EMB_DIM:(t + 1) * WORD_EMB_DIM,
                           t * dh_out:(t + 1) * dh_out].set(prog_w)
    p["prog_wblock"] = wblock
    p["prog_bfull"] = jnp.tile(prog_b, TOKENS_PER_STEP).reshape(1, H)
    # fused visual + coordinate projection
    vis_w, vis_b = _dense(next(keys), VISUAL_DIM, H)
    coord_w, coord_b = _dense(next(keys), COORD_DIM, H)
    p["visbox_w"] = jnp.concatenate([vis_w, coord_w], axis=0)        # (VD+CD, H)
    p["visbox_b"] = (vis_b + coord_b).reshape(1, H)
    p["pos_emb"] = jax.random.normal(next(keys), (NUM_REGIONS, H), jnp.float32) * 0.02
    # all attention layers stacked per weight kind
    layers = ([_attn_params(next(keys), H) for _ in range(PRE_LAYERS)]      # ques_enc
              + [_attn_params(next(keys), H) for _ in range(PRE_LAYERS)]    # vis_enc
              + [_attn_params(next(keys), H)]                               # exec_cross
              + [_attn_params(next(keys), H)]                               # exec_self
              + [_attn_params(next(keys), H) for _ in range(STACKING)])     # post
    p["WQ"] = jnp.stack([l["wq"] for l in layers])                                   # (NL,H,H)
    p["BQ"] = jnp.stack([l["bq"].reshape(1, H) for l in layers])                     # (NL,1,H)
    p["WKV"] = jnp.stack([jnp.concatenate([l["wk"], l["wv"]], axis=1) for l in layers])   # (NL,H,2H)
    p["BKV"] = jnp.stack([jnp.concatenate([l["bk"], l["bv"]]).reshape(1, 2 * H) for l in layers])
    p["WO"] = jnp.stack([l["wo"] for l in layers])
    p["BO"] = jnp.stack([l["bo"].reshape(1, H) for l in layers])
    p["LG"] = jnp.stack([l["ln_g"].reshape(1, H) for l in layers])
    p["LB"] = jnp.stack([l["ln_b"].reshape(1, H) for l in layers])
    idx_w, idx_b = _dense(next(keys), H, NUM_REGIONS)
    p["idx_w"], p["idx_b"] = idx_w, idx_b.reshape(1, NUM_REGIONS)
    proj_w, proj_b = _dense(next(keys), H, ANSWER_SIZE)
    p["proj_w"], p["proj_b"] = proj_w, proj_b.reshape(1, ANSWER_SIZE)
    return p


# ---------------------------- forward pass ----------------------------
def _batch_spec(*tail):
    n = len(tail)
    zeros = (0,) * n
    return pl.BlockSpec((1,) + tuple(tail), lambda i, *_: (i,) + zeros)


def _full_spec(shape):
    zeros = (0,) * len(shape)
    return pl.BlockSpec(tuple(shape), lambda i, *_: zeros)


def soft_logic_transformer_forward(p, ques, ques_masks, program, program_masks,
                                   transition_masks, activate_masks,
                                   vis_feat, box_feat, vis_mask, index):
    B, Lq = ques.shape
    Nv = vis_feat.shape[1]
    P = program.shape[1]
    D = transition_masks.shape[1]
    H = HIDDEN
    f32 = jnp.float32

    # ---- thin XLA prep: embedding-table gathers + tiny mask arithmetic (fused by XLA) ----
    # TODO(synk): embedding gathers stay in XLA; a data-dependent row gather of a table has
    # no clean BlockSpec expression at this tiny size.
    qemb = (p["qbe_word"][ques] + p["qbe_pos"][:Lq][None, :, :]
            + p["qbe_tok"][0][None, None, :]).astype(f32)                         # (B,Lq,H)
    prog_flat = p["emb300"][program].reshape(B, P, TOKENS_PER_STEP * WORD_EMB_DIM).astype(f32)
    visbox = jnp.concatenate([vis_feat, box_feat], axis=-1).astype(f32)           # (B,Nv,VD+CD)

    qm = ques_masks.astype(f32)
    q_keyadd = ((1.0 - qm) * NEG)[:, None, :]                                     # (B,1,Lq)
    qmask_col = qm[:, :, None]                                                    # (B,Lq,1)
    vmask_col = vis_mask.astype(f32)[:, :, None]                                  # (B,Nv,1)
    pmask_col = program_masks.astype(f32)[:, :, None]                             # (B,P,1)
    trans_add = (1.0 - transition_masks.astype(f32)) * NEG                        # (B,D,P,P)
    act_col = activate_masks.astype(f32)[..., None]                               # (B,D,P,1)
    idx_flat = index.reshape(B).astype(jnp.int32)
    visbox_b_pose = (p["visbox_b"] + p["pos_emb"][:Nv]).astype(f32)               # (Nv,H)

    in_specs = [
        _batch_spec(Lq, H),                              # qemb
        _batch_spec(1, Lq),                              # q_keyadd
        _batch_spec(Lq, 1),                              # qmask_col
        _batch_spec(Nv, VISUAL_DIM + COORD_DIM),         # visbox
        _batch_spec(Nv, 1),                              # vmask_col
        _batch_spec(P, TOKENS_PER_STEP * WORD_EMB_DIM),  # prog_flat
        _batch_spec(P, 1),                               # pmask_col
        _batch_spec(D, P, P),                            # trans_add (expanded in-kernel)
        _batch_spec(D, P, 1),                            # act_col
        _full_spec(p["WQ"].shape), _full_spec(p["BQ"].shape),
        _full_spec(p["WKV"].shape), _full_spec(p["BKV"].shape),
        _full_spec(p["WO"].shape), _full_spec(p["BO"].shape),
        _full_spec(p["LG"].shape), _full_spec(p["LB"].shape),
        _full_spec(p["qbe_ln_g"].shape), _full_spec(p["qbe_ln_b"].shape),
        _full_spec(p["visbox_w"].shape), _full_spec(visbox_b_pose.shape),
        _full_spec(p["prog_wblock"].shape), _full_spec(p["prog_bfull"].shape),
        _full_spec(p["idx_w"].shape), _full_spec(p["idx_b"].shape),
        _full_spec(p["proj_w"].shape), _full_spec(p["proj_b"].shape),
    ]
    out_specs = [_batch_spec(P, NUM_REGIONS), _batch_spec(1, ANSWER_SIZE)]

    grid_spec = pltpu.PrefetchScalarGridSpec(
        num_scalar_prefetch=1,
        grid=(B,),
        in_specs=in_specs,
        out_specs=out_specs,
    )

    pre_logits, logits3 = pl.pallas_call(
        _fused_kernel,
        out_shape=(jax.ShapeDtypeStruct((B, P, NUM_REGIONS), f32),
                   jax.ShapeDtypeStruct((B, 1, ANSWER_SIZE), f32)),
        grid_spec=grid_spec,
        compiler_params=pltpu.CompilerParams(dimension_semantics=("parallel",)),
    )(idx_flat,
      qemb, q_keyadd, qmask_col, visbox, vmask_col,
      prog_flat, pmask_col, trans_add, act_col,
      p["WQ"], p["BQ"], p["WKV"], p["BKV"], p["WO"], p["BO"], p["LG"], p["LB"],
      p["qbe_ln_g"], p["qbe_ln_b"], p["visbox_w"], visbox_b_pose,
      p["prog_wblock"], p["prog_bfull"], p["idx_w"], p["idx_b"],
      p["proj_w"], p["proj_b"])

    return pre_logits, logits3.reshape(B, ANSWER_SIZE)


# ---------------------------- demo ----------------------------
if __name__ == "__main__":
    key = jax.random.PRNGKey(0)
    pkey, dkey = jax.random.split(key)
    params = init_params(pkey)

    B, Lq, Nv, P, D = 2, 8, 8, 6, 3
    ks = jax.random.split(dkey, 10)
    ques = jax.random.randint(ks[0], (B, Lq), 1, VOCAB_SIZE)
    ques_masks = jnp.ones((B, Lq), jnp.float32).at[:, 6:].set(0.0)
    program = jax.random.randint(ks[1], (B, P, TOKENS_PER_STEP), 0, VOCAB_SIZE)
    program_masks = jnp.ones((B, P), jnp.float32).at[:, 5:].set(0.0)
    transition_masks = (jax.random.uniform(ks[2], (B, D, P, P)) > 0.3).astype(jnp.float32)
    transition_masks = jnp.maximum(transition_masks, jnp.eye(P, dtype=jnp.float32)[None, None])
    activate_masks = (jax.random.uniform(ks[3], (B, D, P)) > 0.5).astype(jnp.float32)
    vis_feat = jax.random.normal(ks[4], (B, Nv, VISUAL_DIM), jnp.float32)
    box_feat = jax.random.normal(ks[5], (B, Nv, COORD_DIM), jnp.float32)
    vis_mask = jnp.ones((B, Nv), jnp.float32)
    index = jnp.array([[4], [2]], jnp.int32)

    fwd = jax.jit(soft_logic_transformer_forward)
    pre_logits, logits = fwd(params, ques, ques_masks, program, program_masks,
                             transition_masks, activate_masks,
                             vis_feat, box_feat, vis_mask, index)
    jax.block_until_ready((pre_logits, logits))
    assert pre_logits.shape == (B, P, NUM_REGIONS)
    assert logits.shape == (B, ANSWER_SIZE)
    assert bool(jnp.all(jnp.isfinite(pre_logits))) and bool(jnp.all(jnp.isfinite(logits)))
    print("KERNEL_OK")
</pallas_src>

<mosaic_0001>
module attributes {stable_mosaic.version = 11 : i64} {
  func.func @_fused_kernel(%arg0: i32, %arg1: memref<2xi32, #tpu.memory_space<smem>>, %arg2: memref<1x8x32xf32, #tpu.memory_space<vmem>>, %arg3: memref<1x1x8xf32, #tpu.memory_space<vmem>>, %arg4: memref<1x8x1xf32, #tpu.memory_space<vmem>>, %arg5: memref<1x8x20xf32, #tpu.memory_space<vmem>>, %arg6: memref<1x8x1xf32, #tpu.memory_space<vmem>>, %arg7: memref<1x6x2400xf32, #tpu.memory_space<vmem>>, %arg8: memref<1x6x1xf32, #tpu.memory_space<vmem>>, %arg9: memref<1x3x6x6xf32, #tpu.memory_space<vmem>>, %arg10: memref<1x3x6x1xf32, #tpu.memory_space<vmem>>, %arg11: memref<8x32x32xf32, #tpu.memory_space<vmem>>, %arg12: memref<8x1x32xf32, #tpu.memory_space<vmem>>, %arg13: memref<8x32x64xf32, #tpu.memory_space<vmem>>, %arg14: memref<8x1x64xf32, #tpu.memory_space<vmem>>, %arg15: memref<8x32x32xf32, #tpu.memory_space<vmem>>, %arg16: memref<8x1x32xf32, #tpu.memory_space<vmem>>, %arg17: memref<8x1x32xf32, #tpu.memory_space<vmem>>, %arg18: memref<8x1x32xf32, #tpu.memory_space<vmem>>, %arg19: memref<1x32xf32, #tpu.memory_space<vmem>>, %arg20: memref<1x32xf32, #tpu.memory_space<vmem>>, %arg21: memref<20x32xf32, #tpu.memory_space<vmem>>, %arg22: memref<8x32xf32, #tpu.memory_space<vmem>>, %arg23: memref<2400x32xf32, #tpu.memory_space<vmem>>, %arg24: memref<1x32xf32, #tpu.memory_space<vmem>>, %arg25: memref<32x16xf32, #tpu.memory_space<vmem>>, %arg26: memref<1x16xf32, #tpu.memory_space<vmem>>, %arg27: memref<32x10xf32, #tpu.memory_space<vmem>>, %arg28: memref<1x10xf32, #tpu.memory_space<vmem>>, %arg29: memref<1x6x16xf32, #tpu.memory_space<vmem>>, %arg30: memref<1x1x10xf32, #tpu.memory_space<vmem>>) attributes {dimension_semantics = [#tpu.dimension_semantics<parallel>], iteration_bounds = array<i64: 2>, scalar_prefetch = 1 : i64, scratch_operands = 0 : i64, tpu.core_type = #tpu.core_type<tc>, window_params = [{transform_indices = @transform_0, window_bounds = array<i64: 1, 8, 32>}, {transform_indices = @transform_1, window_bounds = array<i64: 1, 1, 8>}, {transform_indices = @transform_2, window_bounds = array<i64: 1, 8, 1>}, {transform_indices = @transform_3, window_bounds = array<i64: 1, 8, 20>}, {transform_indices = @transform_4, window_bounds = array<i64: 1, 8, 1>}, {transform_indices = @transform_5, window_bounds = array<i64: 1, 6, 2400>}, {transform_indices = @transform_6, window_bounds = array<i64: 1, 6, 1>}, {transform_indices = @transform_7, window_bounds = array<i64: 1, 3, 6, 6>}, {transform_indices = @transform_8, window_bounds = array<i64: 1, 3, 6, 1>}, {pipeline_mode = #tpu.pipeline_mode<synchronous>, transform_indices = @transform_9, window_bounds = array<i64: 8, 32, 32>}, {pipeline_mode = #tpu.pipeline_mode<synchronous>, transform_indices = @transform_10, window_bounds = array<i64: 8, 1, 32>}, {pipeline_mode = #tpu.pipeline_mode<synchronous>, transform_indices = @transform_11, window_bounds = array<i64: 8, 32, 64>}, {pipeline_mode = #tpu.pipeline_mode<synchronous>, transform_indices = @transform_12, window_bounds = array<i64: 8, 1, 64>}, {pipeline_mode = #tpu.pipeline_mode<synchronous>, transform_indices = @transform_13, window_bounds = array<i64: 8, 32, 32>}, {pipeline_mode = #tpu.pipeline_mode<synchronous>, transform_indices = @transform_14, window_bounds = array<i64: 8, 1, 32>}, {pipeline_mode = #tpu.pipeline_mode<synchronous>, transform_indices = @transform_15, window_bounds = array<i64: 8, 1, 32>}, {pipeline_mode = #tpu.pipeline_mode<synchronous>, transform_indices = @transform_16, window_bounds = array<i64: 8, 1, 32>}, {pipeline_mode = #tpu.pipeline_mode<synchronous>, transform_indices = @transform_17, window_bounds = array<i64: 1, 32>}, {pipeline_mode = #tpu.pipeline_mode<synchronous>, transform_indices = @transform_18, window_bounds = array<i64: 1, 32>}, {pipeline_mode = #tpu.pipeline_mode<synchronous>, transform_indices = @transform_19, window_bounds = array<i64: 20, 32>}, {pipeline_mode = #tpu.pipeline_mode<synchronous>, transform_indices = @transform_20, window_bounds = array<i64: 8, 32>}, {pipeline_mode = #tpu.pipeline_mode<synchronous>, transform_indices = @transform_21, window_bounds = array<i64: 2400, 32>}, {pipeline_mode = #tpu.pipeline_mode<synchronous>, transform_indices = @transform_22, window_bounds = array<i64: 1, 32>}, {pipeline_mode = #tpu.pipeline_mode<synchronous>, transform_indices = @transform_23, window_bounds = array<i64: 32, 16>}, {pipeline_mode = #tpu.pipeline_mode<synchronous>, transform_indices = @transform_24, window_bounds = array<i64: 1, 16>}, {pipeline_mode = #tpu.pipeline_mode<synchronous>, transform_indices = @transform_25, window_bounds = array<i64: 32, 10>}, {pipeline_mode = #tpu.pipeline_mode<synchronous>, transform_indices = @transform_26, window_bounds = array<i64: 1, 10>}, {transform_indices = @transform_27, window_bounds = array<i64: 1, 6, 16>}, {transform_indices = @transform_28, window_bounds = array<i64: 1, 1, 10>}]} {
    %c0 = arith.constant 0 : index
    %c0_0 = arith.constant 0 : index
    %c0_1 = arith.constant 0 : index
    %0 = vector.load %arg2[%c0, %c0_0, %c0_1] : memref<1x8x32xf32, #tpu.memory_space<vmem>>, vector<1x8x32xf32>
    %1 = vector.shape_cast %0 : vector<1x8x32xf32> to vector<8x32xf32>
    %c0_2 = arith.constant 0 : index
    %c0_3 = arith.constant 0 : index
    %2 = vector.load %arg19[%c0_2, %c0_3] : memref<1x32xf32, #tpu.memory_space<vmem>>, vector<1x32xf32>
    %c0_4 = arith.constant 0 : index
    %c0_5 = arith.constant 0 : index
    %3 = vector.load %arg20[%c0_4, %c0_5] : memref<1x32xf32, #tpu.memory_space<vmem>>, vector<1x32xf32>
    %cst = arith.constant dense<0.000000e+00> : vector<8xf32>
    %4 = vector.multi_reduction <add>, %1, %cst [1] : vector<8x32xf32> to vector<8xf32>
    %5 = vector.shape_cast %4 : vector<8xf32> to vector<8x1xf32>
    %cst_6 = arith.constant 3.200000e+01 : f32
    %6 = vector.broadcast %cst_6 : f32 to vector<8x1xf32>
    %7 = arith.divf %5, %6 : vector<8x1xf32>
    %8 = vector.broadcast %7 : vector<8x1xf32> to vector<8x32xf32>
    %9 = arith.subf %1, %8 : vector<8x32xf32>
    %10 = arith.mulf %9, %9 : vector<8x32xf32>
    %cst_7 = arith.constant dense<0.000000e+00> : vector<8xf32>
    %11 = vector.multi_reduction <add>, %10, %cst_7 [1] : vector<8x32xf32> to vector<8xf32>
    %12 = vector.shape_cast %11 : vector<8xf32> to vector<8x1xf32>
    %cst_8 = arith.constant 3.200000e+01 : f32
    %13 = vector.broadcast %cst_8 : f32 to vector<8x1xf32>
    %14 = arith.divf %12, %13 : vector<8x1xf32>
    %15 = vector.broadcast %7 : vector<8x1xf32> to vector<8x32xf32>
    %16 = arith.subf %1, %15 : vector<8x32xf32>
    %cst_9 = arith.constant 9.99999996E-13 : f32
    %17 = vector.broadcast %cst_9 : f32 to vector<8x1xf32>
    %18 = arith.addf %14, %17 : vector<8x1xf32>
    %19 = math.rsqrt %18 : vector<8x1xf32>
    %20 = vector.broadcast %19 : vector<8x1xf32> to vector<8x32xf32>
    %21 = arith.mulf %16, %20 : vector<8x32xf32>
    %22 = vector.broadcast %2 : vector<1x32xf32> to vector<8x32xf32>
    %23 = arith.mulf %21, %22 : vector<8x32xf32>
    %24 = vector.broadcast %3 : vector<1x32xf32> to vector<8x32xf32>
    %25 = arith.addf %23, %24 : vector<8x32xf32>
    %c0_10 = arith.constant 0 : index
    %c0_11 = arith.constant 0 : index
    %c0_12 = arith.constant 0 : index
    %26 = vector.load %arg3[%c0_10, %c0_11, %c0_12] : memref<1x1x8xf32, #tpu.memory_space<vmem>>, vector<1x1x8xf32>
    %27 = vector.shape_cast %26 : vector<1x1x8xf32> to vector<1x8xf32>
    %c0_13 = arith.constant 0 : index
    %c0_14 = arith.constant 0 : index
    %c0_15 = arith.constant 0 : index
    %28 = vector.load %arg4[%c0_13, %c0_14, %c0_15] : memref<1x8x1xf32, #tpu.memory_space<vmem>>, vector<1x8x1xf32>
    %29 = vector.shape_cast %28 : vector<1x8x1xf32> to vector<8x1xf32>
    %30 = tpu.iota {dimensions = array<i32: 0>} : vector<32x1xi32>
    %c8_i32 = arith.constant 8 : i32
    %31 = vector.broadcast %c8_i32 : i32 to vector<32x1xi32>
    %32 = arith.cmpi sge, %30, %31 : vector<32x1xi32>
    %33 = arith.extui %32 : vector<32x1xi1> to vector<32x1xi32>
    %c16_i32 = arith.constant 16 : i32
    %34 = vector.broadcast %c16_i32 : i32 to vector<32x1xi32>
    %35 = arith.cmpi sge, %30, %34 : vector<32x1xi32>
    %36 = arith.extui %35 : vector<32x1xi1> to vector<32x1xi32>
    %37 = arith.addi %33, %36 : vector<32x1xi32>
    %c24_i32 = arith.constant 24 : i32
    %38 = vector.broadcast %c24_i32 : i32 to vector<32x1xi32>
    %39 = arith.cmpi sge, %30, %38 : vector<32x1xi32>
    %40 = arith.extui %39 : vector<32x1xi1> to vector<32x1xi32>
    %41 = arith.addi %37, %40 : vector<32x1xi32>
    %c8_i32_16 = arith.constant 8 : i32
    %42 = vector.broadcast %c8_i32_16 : i32 to vector<32x1xi32>
    %43 = arith.muli %41, %42 : vector<32x1xi32>
    %44 = arith.subi %30, %43 : vector<32x1xi32>
    %45 = tpu.iota {dimensions = array<i32: 1>} : vector<1x32xi32>
    %c8_i32_17 = arith.constant 8 : i32
    %46 = vector.broadcast %c8_i32_17 : i32 to vector<1x32xi32>
    %47 = arith.cmpi sge, %45, %46 : vector<1x32xi32>
    %48 = arith.extui %47 : vector<1x32xi1> to vector<1x32xi32>
    %c16_i32_18 = arith.constant 16 : i32
    %49 = vector.broadcast %c16_i32_18 : i32 to vector<1x32xi32>
    %50 = arith.cmpi sge, %45, %49 : vector<1x32xi32>
    %51 = arith.extui %50 : vector<1x32xi1> to vector<1x32xi32>
    %52 = arith.addi %48, %51 : vector<1x32xi32>
    %c24_i32_19 = arith.constant 24 : i32
    %53 = vector.broadcast %c24_i32_19 : i32 to vector<1x32xi32>
    %54 = arith.cmpi sge, %45, %53 : vector<1x32xi32>
    %55 = arith.extui %54 : vector<1x32xi1> to vector<1x32xi32>
    %56 = arith.addi %52, %55 : vector<1x32xi32>
    %57 = vector.broadcast %41 : vector<32x1xi32> to vector<32x32xi32>
    %58 = vector.broadcast %56 : vector<1x32xi32> to vector<32x32xi32>
    %59 = arith.cmpi eq, %57, %58 : vector<32x32xi32>
    %60 = arith.extui %59 : vector<32x32xi1> to vector<32x32xi32>
    %61 = arith.sitofp %60 : vector<32x32xi32> to vector<32x32xf32>
    %62 = tpu.iota {dimensions = array<i32: 1>} : vector<32x8xi32>
    %63 = vector.broadcast %44 : vector<32x1xi32> to vector<32x8xi32>
    %64 = arith.cmpi eq, %63, %62 : vector<32x8xi32>
    %65 = arith.extui %64 : vector<32x8xi1> to vector<32x8xi32>
    %66 = arith.sitofp %65 : vector<32x8xi32> to vector<32x8xf32>
    %67 = tpu.iota {dimensions = array<i32: 0>} : vector<8x1xi32>
    %68 = tpu.iota {dimensions = array<i32: 1>} : vector<8x32xi32>
    %c8_i32_20 = arith.constant 8 : i32
    %69 = vector.broadcast %c8_i32_20 : i32 to vector<8x32xi32>
    %70 = arith.cmpi sge, %68, %69 : vector<8x32xi32>
    %71 = arith.extui %70 : vector<8x32xi1> to vector<8x32xi32>
    %c16_i32_21 = arith.constant 16 : i32
    %72 = vector.broadcast %c16_i32_21 : i32 to vector<8x32xi32>
    %73 = arith.cmpi sge, %68, %72 : vector<8x32xi32>
    %74 = arith.extui %73 : vector<8x32xi1> to vector<8x32xi32>
    %75 = arith.addi %71, %74 : vector<8x32xi32>
    %c24_i32_22 = arith.constant 24 : i32
    %76 = vector.broadcast %c24_i32_22 : i32 to vector<8x32xi32>
    %77 = arith.cmpi sge, %68, %76 : vector<8x32xi32>
    %78 = arith.extui %77 : vector<8x32xi1> to vector<8x32xi32>
    %79 = arith.addi %75, %78 : vector<8x32xi32>
    %c8_i32_23 = arith.constant 8 : i32
    %80 = vector.broadcast %c8_i32_23 : i32 to vector<8x32xi32>
    %81 = arith.muli %79, %80 : vector<8x32xi32>
    %82 = arith.subi %68, %81 : vector<8x32xi32>
    %83 = vector.broadcast %67 : vector<8x1xi32> to vector<8x32xi32>
    %84 = arith.cmpi eq, %82, %83 : vector<8x32xi32>
    %85 = arith.extui %84 : vector<8x32xi1> to vector<8x32xi32>
    %86 = arith.sitofp %85 : vector<8x32xi32> to vector<8x32xf32>
    %c0_24 = arith.constant 0 : index
    %c0_25 = arith.constant 0 : index
    %c0_26 = arith.constant 0 : index
    %87 = vector.load %arg11[%c0_24, %c0_25, %c0_26] : memref<8x32x32xf32, #tpu.memory_space<vmem>>, vector<1x32x32xf32>
    %88 = vector.shape_cast %87 : vector<1x32x32xf32> to vector<32x32xf32>
    %cst_27 = arith.constant dense<0.000000e+00> : vector<8x32xf32>
    %89 = tpu.matmul %25, %88, %cst_27 {dimension_numbers = #tpu.dot_dimension_numbers<[1], [0], [0], [1], [0, 0, 1, 1], [], []>} : vector<8x32xf32>, vector<32x32xf32>, vector<8x32xf32> -> vector<8x32xf32>
    %c0_28 = arith.constant 0 : index
    %c0_29 = arith.constant 0 : index
    %c0_30 = arith.constant 0 : index
    %90 = vector.load %arg12[%c0_28, %c0_29, %c0_30] : memref<8x1x32xf32, #tpu.memory_space<vmem>>, vector<1x1x32xf32>
    %91 = vector.shape_cast %90 : vector<1x1x32xf32> to vector<1x32xf32>
    %92 = vector.broadcast %91 : vector<1x32xf32> to vector<8x32xf32>
    %93 = arith.addf %89, %92 : vector<8x32xf32>
    %c0_31 = arith.constant 0 : index
    %c0_32 = arith.constant 0 : index
    %c0_33 = arith.constant 0 : index
    %94 = vector.load %arg13[%c0_31, %c0_32, %c0_33] : memref<8x32x64xf32, #tpu.memory_space<vmem>>, vector<1x32x64xf32>
    %95 = vector.shape_cast %94 : vector<1x32x64xf32> to vector<32x64xf32>
    %cst_34 = arith.constant dense<0.000000e+00> : vector<8x64xf32>
    %96 = tpu.matmul %25, %95, %cst_34 {dimension_numbers = #tpu.dot_dimension_numbers<[1], [0], [0], [1], [0, 0, 1, 1], [], []>} : vector<8x32xf32>, vector<32x64xf32>, vector<8x64xf32> -> vector<8x64xf32>
    %c0_35 = arith.constant 0 : index
    %c0_36 = arith.constant 0 : index
    %c0_37 = arith.constant 0 : index
    %97 = vector.load %arg14[%c0_35, %c0_36, %c0_37] : memref<8x1x64xf32, #tpu.memory_space<vmem>>, vector<1x1x64xf32>
    %98 = vector.shape_cast %97 : vector<1x1x64xf32> to vector<1x64xf32>
    %99 = vector.broadcast %98 : vector<1x64xf32> to vector<8x64xf32>
    %100 = arith.addf %96, %99 : vector<8x64xf32>
    %101 = vector.extract_strided_slice %100 {offsets = [0, 0], sizes = [8, 32], strides = [1, 1]} : vector<8x64xf32> to vector<8x32xf32>
    %102 = vector.extract_strided_slice %100 {offsets = [0, 32], sizes = [8, 32], strides = [1, 1]} : vector<8x64xf32> to vector<8x32xf32>
    %cst_38 = arith.constant dense<0.000000e+00> : vector<32x32xf32>
    %103 = tpu.matmul %66, %93, %cst_38 {dimension_numbers = #tpu.dot_dimension_numbers<[1], [0], [0], [1], [0, 0, 1, 1], [], []>} : vector<32x8xf32>, vector<8x32xf32>, vector<32x32xf32> -> vector<32x32xf32>
    %104 = arith.mulf %103, %61 : vector<32x32xf32>
    %cst_39 = arith.constant dense<0.000000e+00> : vector<32x8xf32>
    %105 = tpu.matmul %104, %101, %cst_39 {dimension_numbers = #tpu.dot_dimension_numbers<[1], [1], [0], [0], [0, 0, 1, 0], [], []>} : vector<32x32xf32>, vector<8x32xf32>, vector<32x8xf32> -> vector<32x8xf32>
    %cst_40 = arith.constant 0.353553385 : f32
    %106 = vector.broadcast %cst_40 : f32 to vector<32x8xf32>
    %107 = arith.mulf %105, %106 : vector<32x8xf32>
    %108 = vector.broadcast %27 : vector<1x8xf32> to vector<32x8xf32>
    %109 = arith.addf %107, %108 : vector<32x8xf32>
    %cst_41 = arith.constant dense<0xFF800000> : vector<32xf32>
    %110 = vector.multi_reduction <maximumf>, %109, %cst_41 [1] : vector<32x8xf32> to vector<32xf32>
    %111 = vector.shape_cast %110 : vector<32xf32> to vector<32x1xf32>
    %112 = vector.broadcast %111 : vector<32x1xf32> to vector<32x8xf32>
    %113 = arith.subf %109, %112 : vector<32x8xf32>
    %114 = math.exp %113 : vector<32x8xf32>
    %cst_42 = arith.constant dense<0.000000e+00> : vector<32xf32>
    %115 = vector.multi_reduction <add>, %114, %cst_42 [1] : vector<32x8xf32> to vector<32xf32>
    %116 = vector.shape_cast %115 : vector<32xf32> to vector<32x1xf32>
    %117 = tpu.reciprocal %116 {approx = true} : vector<32x1xf32> -> vector<32x1xf32>
    %118 = vector.broadcast %117 : vector<32x1xf32> to vector<32x8xf32>
    %119 = arith.mulf %114, %118 : vector<32x8xf32>
    %cst_43 = arith.constant dense<0.000000e+00> : vector<32x32xf32>
    %120 = tpu.matmul %119, %102, %cst_43 {dimension_numbers = #tpu.dot_dimension_numbers<[1], [0], [0], [1], [0, 0, 1, 1], [], []>} : vector<32x8xf32>, vector<8x32xf32>, vector<32x32xf32> -> vector<32x32xf32>
    %121 = arith.mulf %120, %61 : vector<32x32xf32>
    %cst_44 = arith.constant dense<0.000000e+00> : vector<8x32xf32>
    %122 = tpu.matmul %86, %121, %cst_44 {dimension_numbers = #tpu.dot_dimension_numbers<[1], [0], [0], [1], [0, 0, 1, 1], [], []>} : vector<8x32xf32>, vector<32x32xf32>, vector<8x32xf32> -> vector<8x32xf32>
    %c0_45 = arith.constant 0 : index
    %c0_46 = arith.constant 0 : index
    %c0_47 = arith.constant 0 : index
    %123 = vector.load %arg15[%c0_45, %c0_46, %c0_47] : memref<8x32x32xf32, #tpu.memory_space<vmem>>, vector<1x32x32xf32>
    %124 = vector.shape_cast %123 : vector<1x32x32xf32> to vector<32x32xf32>
    %cst_48 = arith.constant dense<0.000000e+00> : vector<8x32xf32>
    %125 = tpu.matmul %122, %124, %cst_48 {dimension_numbers = #tpu.dot_dimension_numbers<[1], [0], [0], [1], [0, 0, 1, 1], [], []>} : vector<8x32xf32>, vector<32x32xf32>, vector<8x32xf32> -> vector<8x32xf32>
    %c0_49 = arith.constant 0 : index
    %c0_50 = arith.constant 0 : index
    %c0_51 = arith.constant 0 : index
    %126 = vector.load %arg16[%c0_49, %c0_50, %c0_51] : memref<8x1x32xf32, #tpu.memory_space<vmem>>, vector<1x1x32xf32>
    %127 = vector.shape_cast %126 : vector<1x1x32xf32> to vector<1x32xf32>
    %128 = vector.broadcast %127 : vector<1x32xf32> to vector<8x32xf32>
    %129 = arith.addf %125, %128 : vector<8x32xf32>
    %130 = arith.addf %129, %25 : vector<8x32xf32>
    %c0_52 = arith.constant 0 : index
    %c0_53 = arith.constant 0 : index
    %c0_54 = arith.constant 0 : index
    %131 = vector.load %arg17[%c0_52, %c0_53, %c0_54] : memref<8x1x32xf32, #tpu.memory_space<vmem>>, vector<1x1x32xf32>
    %132 = vector.shape_cast %131 : vector<1x1x32xf32> to vector<1x32xf32>
    %c0_55 = arith.constant 0 : index
    %c0_56 = arith.constant 0 : index
    %c0_57 = arith.constant 0 : index
    %133 = vector.load %arg18[%c0_55, %c0_56, %c0_57] : memref<8x1x32xf32, #tpu.memory_space<vmem>>, vector<1x1x32xf32>
    %134 = vector.shape_cast %133 : vector<1x1x32xf32> to vector<1x32xf32>
    %cst_58 = arith.constant dense<0.000000e+00> : vector<8xf32>
    %135 = vector.multi_reduction <add>, %130, %cst_58 [1] : vector<8x32xf32> to vector<8xf32>
    %136 = vector.shape_cast %135 : vector<8xf32> to vector<8x1xf32>
    %cst_59 = arith.constant 3.200000e+01 : f32
    %137 = vector.broadcast %cst_59 : f32 to vector<8x1xf32>
    %138 = arith.divf %136, %137 : vector<8x1xf32>
    %139 = vector.broadcast %138 : vector<8x1xf32> to vector<8x32xf32>
    %140 = arith.subf %130, %139 : vector<8x32xf32>
    %141 = arith.mulf %140, %140 : vector<8x32xf32>
    %cst_60 = arith.constant dense<0.000000e+00> : vector<8xf32>
    %142 = vector.multi_reduction <add>, %141, %cst_60 [1] : vector<8x32xf32> to vector<8xf32>
    %143 = vector.shape_cast %142 : vector<8xf32> to vector<8x1xf32>
    %cst_61 = arith.constant 3.200000e+01 : f32
    %144 = vector.broadcast %cst_61 : f32 to vector<8x1xf32>
    %145 = arith.divf %143, %144 : vector<8x1xf32>
    %146 = vector.broadcast %138 : vector<8x1xf32> to vector<8x32xf32>
    %147 = arith.subf %130, %146 : vector<8x32xf32>
    %cst_62 = arith.constant 9.99999996E-13 : f32
    %148 = vector.broadcast %cst_62 : f32 to vector<8x1xf32>
    %149 = arith.addf %145, %148 : vector<8x1xf32>
    %150 = math.rsqrt %149 : vector<8x1xf32>
    %151 = vector.broadcast %150 : vector<8x1xf32> to vector<8x32xf32>
    %152 = arith.mulf %147, %151 : vector<8x32xf32>
    %153 = vector.broadcast %132 : vector<1x32xf32> to vector<8x32xf32>
    %154 = arith.mulf %152, %153 : vector<8x32xf32>
    %155 = vector.broadcast %134 : vector<1x32xf32> to vector<8x32xf32>
    %156 = arith.addf %154, %155 : vector<8x32xf32>
    %157 = vector.broadcast %29 : vector<8x1xf32> to vector<8x32xf32>
    %158 = arith.mulf %156, %157 : vector<8x32xf32>
    %c1 = arith.constant 1 : index
    %c0_63 = arith.constant 0 : index
    %c0_64 = arith.constant 0 : index
    %159 = vector.load %arg11[%c1, %c0_63, %c0_64] : memref<8x32x32xf32, #tpu.memory_space<vmem>>, vector<1x32x32xf32>
    %160 = vector.shape_cast %159 : vector<1x32x32xf32> to vector<32x32xf32>
    %cst_65 = arith.constant dense<0.000000e+00> : vector<8x32xf32>
    %161 = tpu.matmul %158, %160, %cst_65 {dimension_numbers = #tpu.dot_dimension_numbers<[1], [0], [0], [1], [0, 0, 1, 1], [], []>} : vector<8x32xf32>, vector<32x32xf32>, vector<8x32xf32> -> vector<8x32xf32>
    %c1_66 = arith.constant 1 : index
    %c0_67 = arith.constant 0 : index
    %c0_68 = arith.constant 0 : index
    %162 = vector.load %arg12[%c1_66, %c0_67, %c0_68] : memref<8x1x32xf32, #tpu.memory_space<vmem>>, vector<1x1x32xf32>
    %163 = vector.shape_cast %162 : vector<1x1x32xf32> to vector<1x32xf32>
    %164 = vector.broadcast %163 : vector<1x32xf32> to vector<8x32xf32>
    %165 = arith.addf %161, %164 : vector<8x32xf32>
    %c1_69 = arith.constant 1 : index
    %c0_70 = arith.constant 0 : index
    %c0_71 = arith.constant 0 : index
    %166 = vector.load %arg13[%c1_69, %c0_70, %c0_71] : memref<8x32x64xf32, #tpu.memory_space<vmem>>, vector<1x32x64xf32>
    %167 = vector.shape_cast %166 : vector<1x32x64xf32> to vector<32x64xf32>
    %cst_72 = arith.constant dense<0.000000e+00> : vector<8x64xf32>
    %168 = tpu.matmul %158, %167, %cst_72 {dimension_numbers = #tpu.dot_dimension_numbers<[1], [0], [0], [1], [0, 0, 1, 1], [], []>} : vector<8x32xf32>, vector<32x64xf32>, vector<8x64xf32> -> vector<8x64xf32>
    %c1_73 = arith.constant 1 : index
    %c0_74 = arith.constant 0 : index
    %c0_75 = arith.constant 0 : index
    %169 = vector.load %arg14[%c1_73, %c0_74, %c0_75] : memref<8x1x64xf32, #tpu.memory_space<vmem>>, vector<1x1x64xf32>
    %170 = vector.shape_cast %169 : vector<1x1x64xf32> to vector<1x64xf32>
    %171 = vector.broadcast %170 : vector<1x64xf32> to vector<8x64xf32>
    %172 = arith.addf %168, %171 : vector<8x64xf32>
    %173 = vector.extract_strided_slice %172 {offsets = [0, 0], sizes = [8, 32], strides = [1, 1]} : vector<8x64xf32> to vector<8x32xf32>
    %174 = vector.extract_strided_slice %172 {offsets = [0, 32], sizes = [8, 32], strides = [1, 1]} : vector<8x64xf32> to vector<8x32xf32>
    %cst_76 = arith.constant dense<0.000000e+00> : vector<32x32xf32>
    %175 = tpu.matmul %66, %165, %cst_76 {dimension_numbers = #tpu.dot_dimension_numbers<[1], [0], [0], [1], [0, 0, 1, 1], [], []>} : vector<32x8xf32>, vector<8x32xf32>, vector<32x32xf32> -> vector<32x32xf32>
    %176 = arith.mulf %175, %61 : vector<32x32xf32>
    %cst_77 = arith.constant dense<0.000000e+00> : vector<32x8xf32>
    %177 = tpu.matmul %176, %173, %cst_77 {dimension_numbers = #tpu.dot_dimension_numbers<[1], [1], [0], [0], [0, 0, 1, 0], [], []>} : vector<32x32xf32>, vector<8x32xf32>, vector<32x8xf32> -> vector<32x8xf32>
    %cst_78 = arith.constant 0.353553385 : f32
    %178 = vector.broadcast %cst_78 : f32 to vector<32x8xf32>
    %179 = arith.mulf %177, %178 : vector<32x8xf32>
    %180 = vector.broadcast %27 : vector<1x8xf32> to vector<32x8xf32>
    %181 = arith.addf %179, %180 : vector<32x8xf32>
    %cst_79 = arith.constant dense<0xFF800000> : vector<32xf32>
    %182 = vector.multi_reduction <maximumf>, %181, %cst_79 [1] : vector<32x8xf32> to vector<32xf32>
    %183 = vector.shape_cast %182 : vector<32xf32> to vector<32x1xf32>
    %184 = vector.broadcast %183 : vector<32x1xf32> to vector<32x8xf32>
    %185 = arith.subf %181, %184 : vector<32x8xf32>
    %186 = math.exp %185 : vector<32x8xf32>
    %cst_80 = arith.constant dense<0.000000e+00> : vector<32xf32>
    %187 = vector.multi_reduction <add>, %186, %cst_80 [1] : vector<32x8xf32> to vector<32xf32>
    %188 = vector.shape_cast %187 : vector<32xf32> to vector<32x1xf32>
    %189 = tpu.reciprocal %188 {approx = true} : vector<32x1xf32> -> vector<32x1xf32>
    %190 = vector.broadcast %189 : vector<32x1xf32> to vector<32x8xf32>
    %191 = arith.mulf %186, %190 : vector<32x8xf32>
    %cst_81 = arith.constant dense<0.000000e+00> : vector<32x32xf32>
    %192 = tpu.matmul %191, %174, %cst_81 {dimension_numbers = #tpu.dot_dimension_numbers<[1], [0], [0], [1], [0, 0, 1, 1], [], []>} : vector<32x8xf32>, vector<8x32xf32>, vector<32x32xf32> -> vector<32x32xf32>
    %193 = arith.mulf %192, %61 : vector<32x32xf32>
    %cst_82 = arith.constant dense<0.000000e+00> : vector<8x32xf32>
    %194 = tpu.matmul %86, %193, %cst_82 {dimension_numbers = #tpu.dot_dimension_numbers<[1], [0], [0], [1], [0, 0, 1, 1], [], []>} : vector<8x32xf32>, vector<32x32xf32>, vector<8x32xf32> -> vector<8x32xf32>
    %c1_83 = arith.constant 1 : index
    %c0_84 = arith.constant 0 : index
    %c0_85 = arith.constant 0 : index
    %195 = vector.load %arg15[%c1_83, %c0_84, %c0_85] : memref<8x32x32xf32, #tpu.memory_space<vmem>>, vector<1x32x32xf32>
    %196 = vector.shape_cast %195 : vector<1x32x32xf32> to vector<32x32xf32>
    %cst_86 = arith.constant dense<0.000000e+00> : vector<8x32xf32>
    %197 = tpu.matmul %194, %196, %cst_86 {dimension_numbers = #tpu.dot_dimension_numbers<[1], [0], [0], [1], [0, 0, 1, 1], [], []>} : vector<8x32xf32>, vector<32x32xf32>, vector<8x32xf32> -> vector<8x32xf32>
    %c1_87 = arith.constant 1 : index
    %c0_88 = arith.constant 0 : index
    %c0_89 = arith.constant 0 : index
    %198 = vector.load %arg16[%c1_87, %c0_88, %c0_89] : memref<8x1x32xf32, #tpu.memory_space<vmem>>, vector<1x1x32xf32>
    %199 = vector.shape_cast %198 : vector<1x1x32xf32> to vector<1x32xf32>
    %200 = vector.broadcast %199 : vector<1x32xf32> to vector<8x32xf32>
    %201 = arith.addf %197, %200 : vector<8x32xf32>
    %202 = arith.addf %201, %158 : vector<8x32xf32>
    %c1_90 = arith.constant 1 : index
    %c0_91 = arith.constant 0 : index
    %c0_92 = arith.constant 0 : index
    %203 = vector.load %arg17[%c1_90, %c0_91, %c0_92] : memref<8x1x32xf32, #tpu.memory_space<vmem>>, vector<1x1x32xf32>
    %204 = vector.shape_cast %203 : vector<1x1x32xf32> to vector<1x32xf32>
    %c1_93 = arith.constant 1 : index
    %c0_94 = arith.constant 0 : index
    %c0_95 = arith.constant 0 : index
    %205 = vector.load %arg18[%c1_93, %c0_94, %c0_95] : memref<8x1x32xf32, #tpu.memory_space<vmem>>, vector<1x1x32xf32>
    %206 = vector.shape_cast %205 : vector<1x1x32xf32> to vector<1x32xf32>
    %cst_96 = arith.constant dense<0.000000e+00> : vector<8xf32>
    %207 = vector.multi_reduction <add>, %202, %cst_96 [1] : vector<8x32xf32> to vector<8xf32>
    %208 = vector.shape_cast %207 : vector<8xf32> to vector<8x1xf32>
    %cst_97 = arith.constant 3.200000e+01 : f32
    %209 = vector.broadcast %cst_97 : f32 to vector<8x1xf32>
    %210 = arith.divf %208, %209 : vector<8x1xf32>
    %211 = vector.broadcast %210 : vector<8x1xf32> to vector<8x32xf32>
    %212 = arith.subf %202, %211 : vector<8x32xf32>
    %213 = arith.mulf %212, %212 : vector<8x32xf32>
    %cst_98 = arith.constant dense<0.000000e+00> : vector<8xf32>
    %214 = vector.multi_reduction <add>, %213, %cst_98 [1] : vector<8x32xf32> to vector<8xf32>
    %215 = vector.shape_cast %214 : vector<8xf32> to vector<8x1xf32>
    %cst_99 = arith.constant 3.200000e+01 : f32
    %216 = vector.broadcast %cst_99 : f32 to vector<8x1xf32>
    %217 = arith.divf %215, %216 : vector<8x1xf32>
    %218 = vector.broadcast %210 : vector<8x1xf32> to vector<8x32xf32>
    %219 = arith.subf %202, %218 : vector<8x32xf32>
    %cst_100 = arith.constant 9.99999996E-13 : f32
    %220 = vector.broadcast %cst_100 : f32 to vector<8x1xf32>
    %221 = arith.addf %217, %220 : vector<8x1xf32>
    %222 = math.rsqrt %221 : vector<8x1xf32>
    %223 = vector.broadcast %222 : vector<8x1xf32> to vector<8x32xf32>
    %224 = arith.mulf %219, %223 : vector<8x32xf32>
    %225 = vector.broadcast %204 : vector<1x32xf32> to vector<8x32xf32>
    %226 = arith.mulf %224, %225 : vector<8x32xf32>
    %227 = vector.broadcast %206 : vector<1x32xf32> to vector<8x32xf32>
    %228 = arith.addf %226, %227 : vector<8x32xf32>
    %229 = vector.broadcast %29 : vector<8x1xf32> to vector<8x32xf32>
    %230 = arith.mulf %228, %229 : vector<8x32xf32>
    %c0_101 = arith.constant 0 : index
    %c0_102 = arith.constant 0 : index
    %c0_103 = arith.constant 0 : index
    %231 = vector.load %arg5[%c0_101, %c0_102, %c0_103] : memref<1x8x20xf32, #tpu.memory_space<vmem>>, vector<1x8x20xf32>
    %232 = vector.shape_cast %231 : vector<1x8x20xf32> to vector<8x20xf32>
    %c0_104 = arith.constant 0 : index
    %c0_105 = arith.constant 0 : index
    %233 = vector.load %arg21[%c0_104, %c0_105] : memref<20x32xf32, #tpu.memory_space<vmem>>, vector<20x32xf32>
    %cst_106 = arith.constant dense<0.000000e+00> : vector<8x32xf32>
    %234 = tpu.matmul %232, %233, %cst_106 {dimension_numbers = #tpu.dot_dimension_numbers<[1], [0], [0], [1], [0, 0, 1, 1], [], []>} : vector<8x20xf32>, vector<20x32xf32>, vector<8x32xf32> -> vector<8x32xf32>
    %c0_107 = arith.constant 0 : index
    %c0_108 = arith.constant 0 : index
    %235 = vector.load %arg22[%c0_107, %c0_108] : memref<8x32xf32, #tpu.memory_space<vmem>>, vector<8x32xf32>
    %236 = arith.addf %234, %235 : vector<8x32xf32>
    %c0_109 = arith.constant 0 : index
    %c0_110 = arith.constant 0 : index
    %c0_111 = arith.constant 0 : index
    %237 = vector.load %arg6[%c0_109, %c0_110, %c0_111] : memref<1x8x1xf32, #tpu.memory_space<vmem>>, vector<1x8x1xf32>
    %238 = vector.shape_cast %237 : vector<1x8x1xf32> to vector<8x1xf32>
    %c2 = arith.constant 2 : index
    %c0_112 = arith.constant 0 : index
    %c0_113 = arith.constant 0 : index
    %239 = vector.load %arg11[%c2, %c0_112, %c0_113] : memref<8x32x32xf32, #tpu.memory_space<vmem>>, vector<1x32x32xf32>
    %240 = vector.shape_cast %239 : vector<1x32x32xf32> to vector<32x32xf32>
    %cst_114 = arith.constant dense<0.000000e+00> : vector<8x32xf32>
    %241 = tpu.matmul %236, %240, %cst_114 {dimension_numbers = #tpu.dot_dimension_numbers<[1], [0], [0], [1], [0, 0, 1, 1], [], []>} : vector<8x32xf32>, vector<32x32xf32>, vector<8x32xf32> -> vector<8x32xf32>
    %c2_115 = arith.constant 2 : index
    %c0_116 = arith.constant 0 : index
    %c0_117 = arith.constant 0 : index
    %242 = vector.load %arg12[%c2_115, %c0_116, %c0_117] : memref<8x1x32xf32, #tpu.memory_space<vmem>>, vector<1x1x32xf32>
    %243 = vector.shape_cast %242 : vector<1x1x32xf32> to vector<1x32xf32>
    %244 = vector.broadcast %243 : vector<1x32xf32> to vector<8x32xf32>
    %245 = arith.addf %241, %244 : vector<8x32xf32>
    %c2_118 = arith.constant 2 : index
    %c0_119 = arith.constant 0 : index
    %c0_120 = arith.constant 0 : index
    %246 = vector.load %arg13[%c2_118, %c0_119, %c0_120] : memref<8x32x64xf32, #tpu.memory_space<vmem>>, vector<1x32x64xf32>
    %247 = vector.shape_cast %246 : vector<1x32x64xf32> to vector<32x64xf32>
    %cst_121 = arith.constant dense<0.000000e+00> : vector<8x64xf32>
    %248 = tpu.matmul %230, %247, %cst_121 {dimension_numbers = #tpu.dot_dimension_numbers<[1], [0], [0], [1], [0, 0, 1, 1], [], []>} : vector<8x32xf32>, vector<32x64xf32>, vector<8x64xf32> -> vector<8x64xf32>
    %c2_122 = arith.constant 2 : index
    %c0_123 = arith.constant 0 : index
    %c0_124 = arith.constant 0 : index
    %249 = vector.load %arg14[%c2_122, %c0_123, %c0_124] : memref<8x1x64xf32, #tpu.memory_space<vmem>>, vector<1x1x64xf32>
    %250 = vector.shape_cast %249 : vector<1x1x64xf32> to vector<1x64xf32>
    %251 = vector.broadcast %250 : vector<1x64xf32> to vector<8x64xf32>
    %252 = arith.addf %248, %251 : vector<8x64xf32>
    %253 = vector.extract_strided_slice %252 {offsets = [0, 0], sizes = [8, 32], strides = [1, 1]} : vector<8x64xf32> to vector<8x32xf32>
    %254 = vector.extract_strided_slice %252 {offsets = [0, 32], sizes = [8, 32], strides = [1, 1]} : vector<8x64xf32> to vector<8x32xf32>
    %cst_125 = arith.constant dense<0.000000e+00> : vector<32x32xf32>
    %255 = tpu.matmul %66, %245, %cst_125 {dimension_numbers = #tpu.dot_dimension_numbers<[1], [0], [0], [1], [0, 0, 1, 1], [], []>} : vector<32x8xf32>, vector<8x32xf32>, vector<32x32xf32> -> vector<32x32xf32>
    %256 = arith.mulf %255, %61 : vector<32x32xf32>
    %cst_126 = arith.constant dense<0.000000e+00> : vector<32x8xf32>
    %257 = tpu.matmul %256, %253, %cst_126 {dimension_numbers = #tpu.dot_dimension_numbers<[1], [1], [0], [0], [0, 0, 1, 0], [], []>} : vector<32x32xf32>, vector<8x32xf32>, vector<32x8xf32> -> vector<32x8xf32>
    %cst_127 = arith.constant 0.353553385 : f32
    %258 = vector.broadcast %cst_127 : f32 to vector<32x8xf32>
    %259 = arith.mulf %257, %258 : vector<32x8xf32>
    %260 = vector.broadcast %27 : vector<1x8xf32> to vector<32x8xf32>
    %261 = arith.addf %259, %260 : vector<32x8xf32>
    %cst_128 = arith.constant dense<0xFF800000> : vector<32xf32>
    %262 = vector.multi_reduction <maximumf>, %261, %cst_128 [1] : vector<32x8xf32> to vector<32xf32>
    %263 = vector.shape_cast %262 : vector<32xf32> to vector<32x1xf32>
    %264 = vector.broadcast %263 : vector<32x1xf32> to vector<32x8xf32>
    %265 = arith.subf %261, %264 : vector<32x8xf32>
    %266 = math.exp %265 : vector<32x8xf32>
    %cst_129 = arith.constant dense<0.000000e+00> : vector<32xf32>
    %267 = vector.multi_reduction <add>, %266, %cst_129 [1] : vector<32x8xf32> to vector<32xf32>
    %268 = vector.shape_cast %267 : vector<32xf32> to vector<32x1xf32>
    %269 = tpu.reciprocal %268 {approx = true} : vector<32x1xf32> -> vector<32x1xf32>
    %270 = vector.broadcast %269 : vector<32x1xf32> to vector<32x8xf32>
    %271 = arith.mulf %266, %270 : vector<32x8xf32>
    %cst_130 = arith.constant dense<0.000000e+00> : vector<32x32xf32>
    %272 = tpu.matmul %271, %254, %cst_130 {dimension_numbers = #tpu.dot_dimension_numbers<[1], [0], [0], [1], [0, 0, 1, 1], [], []>} : vector<32x8xf32>, vector<8x32xf32>, vector<32x32xf32> -> vector<32x32xf32>
    %273 = arith.mulf %272, %61 : vector<32x32xf32>
    %cst_131 = arith.constant dense<0.000000e+00> : vector<8x32xf32>
    %274 = tpu.matmul %86, %273, %cst_131 {dimension_numbers = #tpu.dot_dimension_numbers<[1], [0], [0], [1], [0, 0, 1, 1], [], []>} : vector<8x32xf32>, vector<32x32xf32>, vector<8x32xf32> -> vector<8x32xf32>
    %c2_132 = arith.constant 2 : index
    %c0_133 = arith.constant 0 : index
    %c0_134 = arith.constant 0 : index
    %275 = vector.load %arg15[%c2_132, %c0_133, %c0_134] : memref<8x32x32xf32, #tpu.memory_space<vmem>>, vector<1x32x32xf32>
    %276 = vector.shape_cast %275 : vector<1x32x32xf32> to vector<32x32xf32>
    %cst_135 = arith.constant dense<0.000000e+00> : vector<8x32xf32>
    %277 = tpu.matmul %274, %276, %cst_135 {dimension_numbers = #tpu.dot_dimension_numbers<[1], [0], [0], [1], [0, 0, 1, 1], [], []>} : vector<8x32xf32>, vector<32x32xf32>, vector<8x32xf32> -> vector<8x32xf32>
    %c2_136 = arith.constant 2 : index
    %c0_137 = arith.constant 0 : index
    %c0_138 = arith.constant 0 : index
    %278 = vector.load %arg16[%c2_136, %c0_137, %c0_138] : memref<8x1x32xf32, #tpu.memory_space<vmem>>, vector<1x1x32xf32>
    %279 = vector.shape_cast %278 : vector<1x1x32xf32> to vector<1x32xf32>
    %280 = vector.broadcast %279 : vector<1x32xf32> to vector<8x32xf32>
    %281 = arith.addf %277, %280 : vector<8x32xf32>
    %282 = arith.addf %281, %236 : vector<8x32xf32>
    %c2_139 = arith.constant 2 : index
    %c0_140 = arith.constant 0 : index
    %c0_141 = arith.constant 0 : index
    %283 = vector.load %arg17[%c2_139, %c0_140, %c0_141] : memref<8x1x32xf32, #tpu.memory_space<vmem>>, vector<1x1x32xf32>
    %284 = vector.shape_cast %283 : vector<1x1x32xf32> to vector<1x32xf32>
    %c2_142 = arith.constant 2 : index
    %c0_143 = arith.constant 0 : index
    %c0_144 = arith.constant 0 : index
    %285 = vector.load %arg18[%c2_142, %c0_143, %c0_144] : memref<8x1x32xf32, #tpu.memory_space<vmem>>, vector<1x1x32xf32>
    %286 = vector.shape_cast %285 : vector<1x1x32xf32> to vector<1x32xf32>
    %cst_145 = arith.constant dense<0.000000e+00> : vector<8xf32>
    %287 = vector.multi_reduction <add>, %282, %cst_145 [1] : vector<8x32xf32> to vector<8xf32>
    %288 = vector.shape_cast %287 : vector<8xf32> to vector<8x1xf32>
    %cst_146 = arith.constant 3.200000e+01 : f32
    %289 = vector.broadcast %cst_146 : f32 to vector<8x1xf32>
    %290 = arith.divf %288, %289 : vector<8x1xf32>
    %291 = vector.broadcast %290 : vector<8x1xf32> to vector<8x32xf32>
    %292 = arith.subf %282, %291 : vector<8x32xf32>
    %293 = arith.mulf %292, %292 : vector<8x32xf32>
    %cst_147 = arith.constant dense<0.000000e+00> : vector<8xf32>
    %294 = vector.multi_reduction <add>, %293, %cst_147 [1] : vector<8x32xf32> to vector<8xf32>
    %295 = vector.shape_cast %294 : vector<8xf32> to vector<8x1xf32>
    %cst_148 = arith.constant 3.200000e+01 : f32
    %296 = vector.broadcast %cst_148 : f32 to vector<8x1xf32>
    %297 = arith.divf %295, %296 : vector<8x1xf32>
    %298 = vector.broadcast %290 : vector<8x1xf32> to vector<8x32xf32>
    %299 = arith.subf %282, %298 : vector<8x32xf32>
    %cst_149 = arith.constant 9.99999996E-13 : f32
    %300 = vector.broadcast %cst_149 : f32 to vector<8x1xf32>
    %301 = arith.addf %297, %300 : vector<8x1xf32>
    %302 = math.rsqrt %301 : vector<8x1xf32>
    %303 = vector.broadcast %302 : vector<8x1xf32> to vector<8x32xf32>
    %304 = arith.mulf %299, %303 : vector<8x32xf32>
    %305 = vector.broadcast %284 : vector<1x32xf32> to vector<8x32xf32>
    %306 = arith.mulf %304, %305 : vector<8x32xf32>
    %307 = vector.broadcast %286 : vector<1x32xf32> to vector<8x32xf32>
    %308 = arith.addf %306, %307 : vector<8x32xf32>
    %309 = vector.broadcast %238 : vector<8x1xf32> to vector<8x32xf32>
    %310 = arith.mulf %308, %309 : vector<8x32xf32>
    %c3 = arith.constant 3 : index
    %c0_150 = arith.constant 0 : index
    %c0_151 = arith.constant 0 : index
    %311 = vector.load %arg11[%c3, %c0_150, %c0_151] : memref<8x32x32xf32, #tpu.memory_space<vmem>>, vector<1x32x32xf32>
    %312 = vector.shape_cast %311 : vector<1x32x32xf32> to vector<32x32xf32>
    %cst_152 = arith.constant dense<0.000000e+00> : vector<8x32xf32>
    %313 = tpu.matmul %310, %312, %cst_152 {dimension_numbers = #tpu.dot_dimension_numbers<[1], [0], [0], [1], [0, 0, 1, 1], [], []>} : vector<8x32xf32>, vector<32x32xf32>, vector<8x32xf32> -> vector<8x32xf32>
    %c3_153 = arith.constant 3 : index
    %c0_154 = arith.constant 0 : index
    %c0_155 = arith.constant 0 : index
    %314 = vector.load %arg12[%c3_153, %c0_154, %c0_155] : memref<8x1x32xf32, #tpu.memory_space<vmem>>, vector<1x1x32xf32>
    %315 = vector.shape_cast %314 : vector<1x1x32xf32> to vector<1x32xf32>
    %316 = vector.broadcast %315 : vector<1x32xf32> to vector<8x32xf32>
    %317 = arith.addf %313, %316 : vector<8x32xf32>
    %c3_156 = arith.constant 3 : index
    %c0_157 = arith.constant 0 : index
    %c0_158 = arith.constant 0 : index
    %318 = vector.load %arg13[%c3_156, %c0_157, %c0_158] : memref<8x32x64xf32, #tpu.memory_space<vmem>>, vector<1x32x64xf32>
    %319 = vector.shape_cast %318 : vector<1x32x64xf32> to vector<32x64xf32>
    %cst_159 = arith.constant dense<0.000000e+00> : vector<8x64xf32>
    %320 = tpu.matmul %230, %319, %cst_159 {dimension_numbers = #tpu.dot_dimension_numbers<[1], [0], [0], [1], [0, 0, 1, 1], [], []>} : vector<8x32xf32>, vector<32x64xf32>, vector<8x64xf32> -> vector<8x64xf32>
    %c3_160 = arith.constant 3 : index
    %c0_161 = arith.constant 0 : index
    %c0_162 = arith.constant 0 : index
    %321 = vector.load %arg14[%c3_160, %c0_161, %c0_162] : memref<8x1x64xf32, #tpu.memory_space<vmem>>, vector<1x1x64xf32>
    %322 = vector.shape_cast %321 : vector<1x1x64xf32> to vector<1x64xf32>
    %323 = vector.broadcast %322 : vector<1x64xf32> to vector<8x64xf32>
    %324 = arith.addf %320, %323 : vector<8x64xf32>
    %325 = vector.extract_strided_slice %324 {offsets = [0, 0], sizes = [8, 32], strides = [1, 1]} : vector<8x64xf32> to vector<8x32xf32>
    %326 = vector.extract_strided_slice %324 {offsets = [0, 32], sizes = [8, 32], strides = [1, 1]} : vector<8x64xf32> to vector<8x32xf32>
    %cst_163 = arith.constant dense<0.000000e+00> : vector<32x32xf32>
    %327 = tpu.matmul %66, %317, %cst_163 {dimension_numbers = #tpu.dot_dimension_numbers<[1], [0], [0], [1], [0, 0, 1, 1], [], []>} : vector<32x8xf32>, vector<8x32xf32>, vector<32x32xf32> -> vector<32x32xf32>
    %328 = arith.mulf %327, %61 : vector<32x32xf32>
    %cst_164 = arith.constant dense<0.000000e+00> : vector<32x8xf32>
    %329 = tpu.matmul %328, %325, %cst_164 {dimension_numbers = #tpu.dot_dimension_numbers<[1], [1], [0], [0], [0, 0, 1, 0], [], []>} : vector<32x32xf32>, vector<8x32xf32>, vector<32x8xf32> -> vector<32x8xf32>
    %cst_165 = arith.constant 0.353553385 : f32
    %330 = vector.broadcast %cst_165 : f32 to vector<32x8xf32>
    %331 = arith.mulf %329, %330 : vector<32x8xf32>
    %332 = vector.broadcast %27 : vector<1x8xf32> to vector<32x8xf32>
    %333 = arith.addf %331, %332 : vector<32x8xf32>
    %cst_166 = arith.constant dense<0xFF800000> : vector<32xf32>
    %334 = vector.multi_reduction <maximumf>, %333, %cst_166 [1] : vector<32x8xf32> to vector<32xf32>
    %335 = vector.shape_cast %334 : vector<32xf32> to vector<32x1xf32>
    %336 = vector.broadcast %335 : vector<32x1xf32> to vector<32x8xf32>
    %337 = arith.subf %333, %336 : vector<32x8xf32>
    %338 = math.exp %337 : vector<32x8xf32>
    %cst_167 = arith.constant dense<0.000000e+00> : vector<32xf32>
    %339 = vector.multi_reduction <add>, %338, %cst_167 [1] : vector<32x8xf32> to vector<32xf32>
    %340 = vector.shape_cast %339 : vector<32xf32> to vector<32x1xf32>
    %341 = tpu.reciprocal %340 {approx = true} : vector<32x1xf32> -> vector<32x1xf32>
    %342 = vector.broadcast %341 : vector<32x1xf32> to vector<32x8xf32>
    %343 = arith.mulf %338, %342 : vector<32x8xf32>
    %cst_168 = arith.constant dense<0.000000e+00> : vector<32x32xf32>
    %344 = tpu.matmul %343, %326, %cst_168 {dimension_numbers = #tpu.dot_dimension_numbers<[1], [0], [0], [1], [0, 0, 1, 1], [], []>} : vector<32x8xf32>, vector<8x32xf32>, vector<32x32xf32> -> vector<32x32xf32>
    %345 = arith.mulf %344, %61 : vector<32x32xf32>
    %cst_169 = arith.constant dense<0.000000e+00> : vector<8x32xf32>
    %346 = tpu.matmul %86, %345, %cst_169 {dimension_numbers = #tpu.dot_dimension_numbers<[1], [0], [0], [1], [0, 0, 1, 1], [], []>} : vector<8x32xf32>, vector<32x32xf32>, vector<8x32xf32> -> vector<8x32xf32>
    %c3_170 = arith.constant 3 : index
    %c0_171 = arith.constant 0 : index
    %c0_172 = arith.constant 0 : index
    %347 = vector.load %arg15[%c3_170, %c0_171, %c0_172] : memref<8x32x32xf32, #tpu.memory_space<vmem>>, vector<1x32x32xf32>
    %348 = vector.shape_cast %347 : vector<1x32x32xf32> to vector<32x32xf32>
    %cst_173 = arith.constant dense<0.000000e+00> : vector<8x32xf32>
    %349 = tpu.matmul %346, %348, %cst_173 {dimension_numbers = #tpu.dot_dimension_numbers<[1], [0], [0], [1], [0, 0, 1, 1], [], []>} : vector<8x32xf32>, vector<32x32xf32>, vector<8x32xf32> -> vector<8x32xf32>
    %c3_174 = arith.constant 3 : index
    %c0_175 = arith.constant 0 : index
    %c0_176 = arith.constant 0 : index
    %350 = vector.load %arg16[%c3_174, %c0_175, %c0_176] : memref<8x1x32xf32, #tpu.memory_space<vmem>>, vector<1x1x32xf32>
    %351 = vector.shape_cast %350 : vector<1x1x32xf32> to vector<1x32xf32>
    %352 = vector.broadcast %351 : vector<1x32xf32> to vector<8x32xf32>
    %353 = arith.addf %349, %352 : vector<8x32xf32>
    %354 = arith.addf %353, %310 : vector<8x32xf32>
    %c3_177 = arith.constant 3 : index
    %c0_178 = arith.constant 0 : index
    %c0_179 = arith.constant 0 : index
    %355 = vector.load %arg17[%c3_177, %c0_178, %c0_179] : memref<8x1x32xf32, #tpu.memory_space<vmem>>, vector<1x1x32xf32>
    %356 = vector.shape_cast %355 : vector<1x1x32xf32> to vector<1x32xf32>
    %c3_180 = arith.constant 3 : index
    %c0_181 = arith.constant 0 : index
    %c0_182 = arith.constant 0 : index
    %357 = vector.load %arg18[%c3_180, %c0_181, %c0_182] : memref<8x1x32xf32, #tpu.memory_space<vmem>>, vector<1x1x32xf32>
    %358 = vector.shape_cast %357 : vector<1x1x32xf32> to vector<1x32xf32>
    %cst_183 = arith.constant dense<0.000000e+00> : vector<8xf32>
    %359 = vector.multi_reduction <add>, %354, %cst_183 [1] : vector<8x32xf32> to vector<8xf32>
    %360 = vector.shape_cast %359 : vector<8xf32> to vector<8x1xf32>
    %cst_184 = arith.constant 3.200000e+01 : f32
    %361 = vector.broadcast %cst_184 : f32 to vector<8x1xf32>
    %362 = arith.divf %360, %361 : vector<8x1xf32>
    %363 = vector.broadcast %362 : vector<8x1xf32> to vector<8x32xf32>
    %364 = arith.subf %354, %363 : vector<8x32xf32>
    %365 = arith.mulf %364, %364 : vector<8x32xf32>
    %cst_185 = arith.constant dense<0.000000e+00> : vector<8xf32>
    %366 = vector.multi_reduction <add>, %365, %cst_185 [1] : vector<8x32xf32> to vector<8xf32>
    %367 = vector.shape_cast %366 : vector<8xf32> to vector<8x1xf32>
    %cst_186 = arith.constant 3.200000e+01 : f32
    %368 = vector.broadcast %cst_186 : f32 to vector<8x1xf32>
    %369 = arith.divf %367, %368 : vector<8x1xf32>
    %370 = vector.broadcast %362 : vector<8x1xf32> to vector<8x32xf32>
    %371 = arith.subf %354, %370 : vector<8x32xf32>
    %cst_187 = arith.constant 9.99999996E-13 : f32
    %372 = vector.broadcast %cst_187 : f32 to vector<8x1xf32>
    %373 = arith.addf %369, %372 : vector<8x1xf32>
    %374 = math.rsqrt %373 : vector<8x1xf32>
    %375 = vector.broadcast %374 : vector<8x1xf32> to vector<8x32xf32>
    %376 = arith.mulf %371, %375 : vector<8x32xf32>
    %377 = vector.broadcast %356 : vector<1x32xf32> to vector<8x32xf32>
    %378 = arith.mulf %376, %377 : vector<8x32xf32>
    %379 = vector.broadcast %358 : vector<1x32xf32> to vector<8x32xf32>
    %380 = arith.addf %378, %379 : vector<8x32xf32>
    %381 = vector.broadcast %238 : vector<8x1xf32> to vector<8x32xf32>
    %382 = arith.mulf %380, %381 : vector<8x32xf32>
    %c0_188 = arith.constant 0 : index
    %c0_189 = arith.constant 0 : index
    %c0_190 = arith.constant 0 : index
    %383 = vector.load %arg7[%c0_188, %c0_189, %c0_190] : memref<1x6x2400xf32, #tpu.memory_space<vmem>>, vector<1x6x2400xf32>
    %384 = vector.shape_cast %383 : vector<1x6x2400xf32> to vector<6x2400xf32>
    %c0_191 = arith.constant 0 : index
    %c0_192 = arith.constant 0 : index
    %385 = vector.load %arg23[%c0_191, %c0_192] : memref<2400x32xf32, #tpu.memory_space<vmem>>, vector<2400x32xf32>
    %cst_193 = arith.constant dense<0.000000e+00> : vector<6x32xf32>
    %386 = tpu.matmul %384, %385, %cst_193 {dimension_numbers = #tpu.dot_dimension_numbers<[1], [0], [0], [1], [0, 0, 1, 1], [], []>} : vector<6x2400xf32>, vector<2400x32xf32>, vector<6x32xf32> -> vector<6x32xf32>
    %c0_194 = arith.constant 0 : index
    %c0_195 = arith.constant 0 : index
    %387 = vector.load %arg24[%c0_194, %c0_195] : memref<1x32xf32, #tpu.memory_space<vmem>>, vector<1x32xf32>
    %388 = vector.broadcast %387 : vector<1x32xf32> to vector<6x32xf32>
    %389 = arith.addf %386, %388 : vector<6x32xf32>
    %c0_196 = arith.constant 0 : index
    %c0_197 = arith.constant 0 : index
    %c0_198 = arith.constant 0 : index
    %390 = vector.load %arg8[%c0_196, %c0_197, %c0_198] : memref<1x6x1xf32, #tpu.memory_space<vmem>>, vector<1x6x1xf32>
    %391 = vector.shape_cast %390 : vector<1x6x1xf32> to vector<6x1xf32>
    %392 = tpu.iota {dimensions = array<i32: 0>} : vector<24x1xi32>
    %c6_i32 = arith.constant 6 : i32
    %393 = vector.broadcast %c6_i32 : i32 to vector<24x1xi32>
    %394 = arith.cmpi sge, %392, %393 : vector<24x1xi32>
    %395 = arith.extui %394 : vector<24x1xi1> to vector<24x1xi32>
    %c12_i32 = arith.constant 12 : i32
    %396 = vector.broadcast %c12_i32 : i32 to vector<24x1xi32>
    %397 = arith.cmpi sge, %392, %396 : vector<24x1xi32>
    %398 = arith.extui %397 : vector<24x1xi1> to vector<24x1xi32>
    %399 = arith.addi %395, %398 : vector<24x1xi32>
    %c18_i32 = arith.constant 18 : i32
    %400 = vector.broadcast %c18_i32 : i32 to vector<24x1xi32>
    %401 = arith.cmpi sge, %392, %400 : vector<24x1xi32>
    %402 = arith.extui %401 : vector<24x1xi1> to vector<24x1xi32>
    %403 = arith.addi %399, %402 : vector<24x1xi32>
    %c6_i32_199 = arith.constant 6 : i32
    %404 = vector.broadcast %c6_i32_199 : i32 to vector<24x1xi32>
    %405 = arith.muli %403, %404 : vector<24x1xi32>
    %406 = arith.subi %392, %405 : vector<24x1xi32>
    %407 = tpu.iota {dimensions = array<i32: 1>} : vector<1x32xi32>
    %c8_i32_200 = arith.constant 8 : i32
    %408 = vector.broadcast %c8_i32_200 : i32 to vector<1x32xi32>
    %409 = arith.cmpi sge, %407, %408 : vector<1x32xi32>
    %410 = arith.extui %409 : vector<1x32xi1> to vector<1x32xi32>
    %c16_i32_201 = arith.constant 16 : i32
    %411 = vector.broadcast %c16_i32_201 : i32 to vector<1x32xi32>
    %412 = arith.cmpi sge, %407, %411 : vector<1x32xi32>
    %413 = arith.extui %412 : vector<1x32xi1> to vector<1x32xi32>
    %414 = arith.addi %410, %413 : vector<1x32xi32>
    %c24_i32_202 = arith.constant 24 : i32
    %415 = vector.broadcast %c24_i32_202 : i32 to vector<1x32xi32>
    %416 = arith.cmpi sge, %407, %415 : vector<1x32xi32>
    %417 = arith.extui %416 : vector<1x32xi1> to vector<1x32xi32>
    %418 = arith.addi %414, %417 : vector<1x32xi32>
    %419 = vector.broadcast %403 : vector<24x1xi32> to vector<24x32xi32>
    %420 = vector.broadcast %418 : vector<1x32xi32> to vector<24x32xi32>
    %421 = arith.cmpi eq, %419, %420 : vector<24x32xi32>
    %422 = arith.extui %421 : vector<24x32xi1> to vector<24x32xi32>
    %423 = arith.sitofp %422 : vector<24x32xi32> to vector<24x32xf32>
    %424 = tpu.iota {dimensions = array<i32: 1>} : vector<24x6xi32>
    %425 = vector.broadcast %406 : vector<24x1xi32> to vector<24x6xi32>
    %426 = arith.cmpi eq, %425, %424 : vector<24x6xi32>
    %427 = arith.extui %426 : vector<24x6xi1> to vector<24x6xi32>
    %428 = arith.sitofp %427 : vector<24x6xi32> to vector<24x6xf32>
    %429 = tpu.iota {dimensions = array<i32: 0>} : vector<6x1xi32>
    %430 = tpu.iota {dimensions = array<i32: 1>} : vector<6x24xi32>
    %c6_i32_203 = arith.constant 6 : i32
    %431 = vector.broadcast %c6_i32_203 : i32 to vector<6x24xi32>
    %432 = arith.cmpi sge, %430, %431 : vector<6x24xi32>
    %433 = arith.extui %432 : vector<6x24xi1> to vector<6x24xi32>
    %c12_i32_204 = arith.constant 12 : i32
    %434 = vector.broadcast %c12_i32_204 : i32 to vector<6x24xi32>
    %435 = arith.cmpi sge, %430, %434 : vector<6x24xi32>
    %436 = arith.extui %435 : vector<6x24xi1> to vector<6x24xi32>
    %437 = arith.addi %433, %436 : vector<6x24xi32>
    %c18_i32_205 = arith.constant 18 : i32
    %438 = vector.broadcast %c18_i32_205 : i32 to vector<6x24xi32>
    %439 = arith.cmpi sge, %430, %438 : vector<6x24xi32>
    %440 = arith.extui %439 : vector<6x24xi1> to vector<6x24xi32>
    %441 = arith.addi %437, %440 : vector<6x24xi32>
    %c6_i32_206 = arith.constant 6 : i32
    %442 = vector.broadcast %c6_i32_206 : i32 to vector<6x24xi32>
    %443 = arith.muli %441, %442 : vector<6x24xi32>
    %444 = arith.subi %430, %443 : vector<6x24xi32>
    %445 = vector.broadcast %429 : vector<6x1xi32> to vector<6x24xi32>
    %446 = arith.cmpi eq, %444, %445 : vector<6x24xi32>
    %447 = arith.extui %446 : vector<6x24xi1> to vector<6x24xi32>
    %448 = arith.sitofp %447 : vector<6x24xi32> to vector<6x24xf32>
    %c4 = arith.constant 4 : index
    %c0_207 = arith.constant 0 : index
    %c0_208 = arith.constant 0 : index
    %449 = vector.load %arg11[%c4, %c0_207, %c0_208] : memref<8x32x32xf32, #tpu.memory_space<vmem>>, vector<1x32x32xf32>
    %450 = vector.shape_cast %449 : vector<1x32x32xf32> to vector<32x32xf32>
    %cst_209 = arith.constant dense<0.000000e+00> : vector<6x32xf32>
    %451 = tpu.matmul %389, %450, %cst_209 {dimension_numbers = #tpu.dot_dimension_numbers<[1], [0], [0], [1], [0, 0, 1, 1], [], []>} : vector<6x32xf32>, vector<32x32xf32>, vector<6x32xf32> -> vector<6x32xf32>
    %c4_210 = arith.constant 4 : index
    %c0_211 = arith.constant 0 : index
    %c0_212 = arith.constant 0 : index
    %452 = vector.load %arg12[%c4_210, %c0_211, %c0_212] : memref<8x1x32xf32, #tpu.memory_space<vmem>>, vector<1x1x32xf32>
    %453 = vector.shape_cast %452 : vector<1x1x32xf32> to vector<1x32xf32>
    %454 = vector.broadcast %453 : vector<1x32xf32> to vector<6x32xf32>
    %455 = arith.addf %451, %454 : vector<6x32xf32>
    %c4_213 = arith.constant 4 : index
    %c0_214 = arith.constant 0 : index
    %c0_215 = arith.constant 0 : index
    %456 = vector.load %arg13[%c4_213, %c0_214, %c0_215] : memref<8x32x64xf32, #tpu.memory_space<vmem>>, vector<1x32x64xf32>
    %457 = vector.shape_cast %456 : vector<1x32x64xf32> to vector<32x64xf32>
    %cst_216 = arith.constant dense<0.000000e+00> : vector<8x64xf32>
    %458 = tpu.matmul %382, %457, %cst_216 {dimension_numbers = #tpu.dot_dimension_numbers<[1], [0], [0], [1], [0, 0, 1, 1], [], []>} : vector<8x32xf32>, vector<32x64xf32>, vector<8x64xf32> -> vector<8x64xf32>
    %c4_217 = arith.constant 4 : index
    %c0_218 = arith.constant 0 : index
    %c0_219 = arith.constant 0 : index
    %459 = vector.load %arg14[%c4_217, %c0_218, %c0_219] : memref<8x1x64xf32, #tpu.memory_space<vmem>>, vector<1x1x64xf32>
    %460 = vector.shape_cast %459 : vector<1x1x64xf32> to vector<1x64xf32>
    %461 = vector.broadcast %460 : vector<1x64xf32> to vector<8x64xf32>
    %462 = arith.addf %458, %461 : vector<8x64xf32>
    %463 = vector.extract_strided_slice %462 {offsets = [0, 0], sizes = [8, 32], strides = [1, 1]} : vector<8x64xf32> to vector<8x32xf32>
    %464 = vector.extract_strided_slice %462 {offsets = [0, 32], sizes = [8, 32], strides = [1, 1]} : vector<8x64xf32> to vector<8x32xf32>
    %cst_220 = arith.constant dense<0.000000e+00> : vector<24x32xf32>
    %465 = tpu.matmul %428, %455, %cst_220 {dimension_numbers = #tpu.dot_dimension_numbers<[1], [0], [0], [1], [0, 0, 1, 1], [], []>} : vector<24x6xf32>, vector<6x32xf32>, vector<24x32xf32> -> vector<24x32xf32>
    %466 = arith.mulf %465, %423 : vector<24x32xf32>
    %cst_221 = arith.constant dense<0.000000e+00> : vector<24x8xf32>
    %467 = tpu.matmul %466, %463, %cst_221 {dimension_numbers = #tpu.dot_dimension_numbers<[1], [1], [0], [0], [0, 0, 1, 0], [], []>} : vector<24x32xf32>, vector<8x32xf32>, vector<24x8xf32> -> vector<24x8xf32>
    %cst_222 = arith.constant 0.353553385 : f32
    %468 = vector.broadcast %cst_222 : f32 to vector<24x8xf32>
    %469 = arith.mulf %467, %468 : vector<24x8xf32>
    %cst_223 = arith.constant dense<0xFF800000> : vector<24xf32>
    %470 = vector.multi_reduction <maximumf>, %469, %cst_223 [1] : vector<24x8xf32> to vector<24xf32>
    %471 = vector.shape_cast %470 : vector<24xf32> to vector<24x1xf32>
    %472 = vector.broadcast %471 : vector<24x1xf32> to vector<24x8xf32>
    %473 = arith.subf %469, %472 : vector<24x8xf32>
    %474 = math.exp %473 : vector<24x8xf32>
    %cst_224 = arith.constant dense<0.000000e+00> : vector<24xf32>
    %475 = vector.multi_reduction <add>, %474, %cst_224 [1] : vector<24x8xf32> to vector<24xf32>
    %476 = vector.shape_cast %475 : vector<24xf32> to vector<24x1xf32>
    %477 = tpu.reciprocal %476 {approx = true} : vector<24x1xf32> -> vector<24x1xf32>
    %478 = vector.broadcast %477 : vector<24x1xf32> to vector<24x8xf32>
    %479 = arith.mulf %474, %478 : vector<24x8xf32>
    %cst_225 = arith.constant dense<0.000000e+00> : vector<24x32xf32>
    %480 = tpu.matmul %479, %464, %cst_225 {dimension_numbers = #tpu.dot_dimension_numbers<[1], [0], [0], [1], [0, 0, 1, 1], [], []>} : vector<24x8xf32>, vector<8x32xf32>, vector<24x32xf32> -> vector<24x32xf32>
    %481 = arith.mulf %480, %423 : vector<24x32xf32>
    %cst_226 = arith.constant dense<0.000000e+00> : vector<6x32xf32>
    %482 = tpu.matmul %448, %481, %cst_226 {dimension_numbers = #tpu.dot_dimension_numbers<[1], [0], [0], [1], [0, 0, 1, 1], [], []>} : vector<6x24xf32>, vector<24x32xf32>, vector<6x32xf32> -> vector<6x32xf32>
    %c4_227 = arith.constant 4 : index
    %c0_228 = arith.constant 0 : index
    %c0_229 = arith.constant 0 : index
    %483 = vector.load %arg15[%c4_227, %c0_228, %c0_229] : memref<8x32x32xf32, #tpu.memory_space<vmem>>, vector<1x32x32xf32>
    %484 = vector.shape_cast %483 : vector<1x32x32xf32> to vector<32x32xf32>
    %cst_230 = arith.constant dense<0.000000e+00> : vector<6x32xf32>
    %485 = tpu.matmul %482, %484, %cst_230 {dimension_numbers = #tpu.dot_dimension_numbers<[1], [0], [0], [1], [0, 0, 1, 1], [], []>} : vector<6x32xf32>, vector<32x32xf32>, vector<6x32xf32> -> vector<6x32xf32>
    %c4_231 = arith.constant 4 : index
    %c0_232 = arith.constant 0 : index
    %c0_233 = arith.constant 0 : index
    %486 = vector.load %arg16[%c4_231, %c0_232, %c0_233] : memref<8x1x32xf32, #tpu.memory_space<vmem>>, vector<1x1x32xf32>
    %487 = vector.shape_cast %486 : vector<1x1x32xf32> to vector<1x32xf32>
    %488 = vector.broadcast %487 : vector<1x32xf32> to vector<6x32xf32>
    %489 = arith.addf %485, %488 : vector<6x32xf32>
    %490 = arith.addf %489, %389 : vector<6x32xf32>
    %c4_234 = arith.constant 4 : index
    %c0_235 = arith.constant 0 : index
    %c0_236 = arith.constant 0 : index
    %491 = vector.load %arg17[%c4_234, %c0_235, %c0_236] : memref<8x1x32xf32, #tpu.memory_space<vmem>>, vector<1x1x32xf32>
    %492 = vector.shape_cast %491 : vector<1x1x32xf32> to vector<1x32xf32>
    %c4_237 = arith.constant 4 : index
    %c0_238 = arith.constant 0 : index
    %c0_239 = arith.constant 0 : index
    %493 = vector.load %arg18[%c4_237, %c0_238, %c0_239] : memref<8x1x32xf32, #tpu.memory_space<vmem>>, vector<1x1x32xf32>
    %494 = vector.shape_cast %493 : vector<1x1x32xf32> to vector<1x32xf32>
    %cst_240 = arith.constant dense<0.000000e+00> : vector<6xf32>
    %495 = vector.multi_reduction <add>, %490, %cst_240 [1] : vector<6x32xf32> to vector<6xf32>
    %496 = vector.shape_cast %495 : vector<6xf32> to vector<6x1xf32>
    %cst_241 = arith.constant 3.200000e+01 : f32
    %497 = vector.broadcast %cst_241 : f32 to vector<6x1xf32>
    %498 = arith.divf %496, %497 : vector<6x1xf32>
    %499 = vector.broadcast %498 : vector<6x1xf32> to vector<6x32xf32>
    %500 = arith.subf %490, %499 : vector<6x32xf32>
    %501 = arith.mulf %500, %500 : vector<6x32xf32>
    %cst_242 = arith.constant dense<0.000000e+00> : vector<6xf32>
    %502 = vector.multi_reduction <add>, %501, %cst_242 [1] : vector<6x32xf32> to vector<6xf32>
    %503 = vector.shape_cast %502 : vector<6xf32> to vector<6x1xf32>
    %cst_243 = arith.constant 3.200000e+01 : f32
    %504 = vector.broadcast %cst_243 : f32 to vector<6x1xf32>
    %505 = arith.divf %503, %504 : vector<6x1xf32>
    %506 = vector.broadcast %498 : vector<6x1xf32> to vector<6x32xf32>
    %507 = arith.subf %490, %506 : vector<6x32xf32>
    %cst_244 = arith.constant 9.99999996E-13 : f32
    %508 = vector.broadcast %cst_244 : f32 to vector<6x1xf32>
    %509 = arith.addf %505, %508 : vector<6x1xf32>
    %510 = math.rsqrt %509 : vector<6x1xf32>
    %511 = vector.broadcast %510 : vector<6x1xf32> to vector<6x32xf32>
    %512 = arith.mulf %507, %511 : vector<6x32xf32>
    %513 = vector.broadcast %492 : vector<1x32xf32> to vector<6x32xf32>
    %514 = arith.mulf %512, %513 : vector<6x32xf32>
    %515 = vector.broadcast %494 : vector<1x32xf32> to vector<6x32xf32>
    %516 = arith.addf %514, %515 : vector<6x32xf32>
    %c0_245 = arith.constant 0 : index
    %c0_246 = arith.constant 0 : index
    %c0_247 = arith.constant 0 : index
    %c0_248 = arith.constant 0 : index
    %517 = vector.load %arg9[%c0_245, %c0_246, %c0_247, %c0_248] : memref<1x3x6x6xf32, #tpu.memory_space<vmem>>, vector<1x1x6x6xf32>
    %518 = vector.shape_cast %517 : vector<1x1x6x6xf32> to vector<6x6xf32>
    %c5 = arith.constant 5 : index
    %c0_249 = arith.constant 0 : index
    %c0_250 = arith.constant 0 : index
    %519 = vector.load %arg11[%c5, %c0_249, %c0_250] : memref<8x32x32xf32, #tpu.memory_space<vmem>>, vector<1x32x32xf32>
    %520 = vector.shape_cast %519 : vector<1x32x32xf32> to vector<32x32xf32>
    %cst_251 = arith.constant dense<0.000000e+00> : vector<6x32xf32>
    %521 = tpu.matmul %516, %520, %cst_251 {dimension_numbers = #tpu.dot_dimension_numbers<[1], [0], [0], [1], [0, 0, 1, 1], [], []>} : vector<6x32xf32>, vector<32x32xf32>, vector<6x32xf32> -> vector<6x32xf32>
    %c5_252 = arith.constant 5 : index
    %c0_253 = arith.constant 0 : index
    %c0_254 = arith.constant 0 : index
    %522 = vector.load %arg12[%c5_252, %c0_253, %c0_254] : memref<8x1x32xf32, #tpu.memory_space<vmem>>, vector<1x1x32xf32>
    %523 = vector.shape_cast %522 : vector<1x1x32xf32> to vector<1x32xf32>
    %524 = vector.broadcast %523 : vector<1x32xf32> to vector<6x32xf32>
    %525 = arith.addf %521, %524 : vector<6x32xf32>
    %c5_255 = arith.constant 5 : index
    %c0_256 = arith.constant 0 : index
    %c0_257 = arith.constant 0 : index
    %526 = vector.load %arg13[%c5_255, %c0_256, %c0_257] : memref<8x32x64xf32, #tpu.memory_space<vmem>>, vector<1x32x64xf32>
    %527 = vector.shape_cast %526 : vector<1x32x64xf32> to vector<32x64xf32>
    %cst_258 = arith.constant dense<0.000000e+00> : vector<6x64xf32>
    %528 = tpu.matmul %516, %527, %cst_258 {dimension_numbers = #tpu.dot_dimension_numbers<[1], [0], [0], [1], [0, 0, 1, 1], [], []>} : vector<6x32xf32>, vector<32x64xf32>, vector<6x64xf32> -> vector<6x64xf32>
    %c5_259 = arith.constant 5 : index
    %c0_260 = arith.constant 0 : index
    %c0_261 = arith.constant 0 : index
    %529 = vector.load %arg14[%c5_259, %c0_260, %c0_261] : memref<8x1x64xf32, #tpu.memory_space<vmem>>, vector<1x1x64xf32>
    %530 = vector.shape_cast %529 : vector<1x1x64xf32> to vector<1x64xf32>
    %531 = vector.broadcast %530 : vector<1x64xf32> to vector<6x64xf32>
    %532 = arith.addf %528, %531 : vector<6x64xf32>
    %533 = vector.extract_strided_slice %532 {offsets = [0, 0], sizes = [6, 32], strides = [1, 1]} : vector<6x64xf32> to vector<6x32xf32>
    %534 = vector.extract_strided_slice %532 {offsets = [0, 32], sizes = [6, 32], strides = [1, 1]} : vector<6x64xf32> to vector<6x32xf32>
    %cst_262 = arith.constant dense<0.000000e+00> : vector<24x32xf32>
    %535 = tpu.matmul %428, %525, %cst_262 {dimension_numbers = #tpu.dot_dimension_numbers<[1], [0], [0], [1], [0, 0, 1, 1], [], []>} : vector<24x6xf32>, vector<6x32xf32>, vector<24x32xf32> -> vector<24x32xf32>
    %536 = arith.mulf %535, %423 : vector<24x32xf32>
    %cst_263 = arith.constant dense<0.000000e+00> : vector<24x6xf32>
    %537 = tpu.matmul %536, %533, %cst_263 {dimension_numbers = #tpu.dot_dimension_numbers<[1], [1], [0], [0], [0, 0, 1, 0], [], []>} : vector<24x32xf32>, vector<6x32xf32>, vector<24x6xf32> -> vector<24x6xf32>
    %cst_264 = arith.constant 0.353553385 : f32
    %538 = vector.broadcast %cst_264 : f32 to vector<24x6xf32>
    %539 = arith.mulf %537, %538 : vector<24x6xf32>
    %cst_265 = arith.constant dense<0.000000e+00> : vector<24x6xf32>
    %540 = tpu.matmul %428, %518, %cst_265 {dimension_numbers = #tpu.dot_dimension_numbers<[1], [0], [0], [1], [0, 0, 1, 1], [], []>} : vector<24x6xf32>, vector<6x6xf32>, vector<24x6xf32> -> vector<24x6xf32>
    %541 = arith.addf %539, %540 : vector<24x6xf32>
    %cst_266 = arith.constant dense<0xFF800000> : vector<24xf32>
    %542 = vector.multi_reduction <maximumf>, %541, %cst_266 [1] : vector<24x6xf32> to vector<24xf32>
    %543 = vector.shape_cast %542 : vector<24xf32> to vector<24x1xf32>
    %544 = vector.broadcast %543 : vector<24x1xf32> to vector<24x6xf32>
    %545 = arith.subf %541, %544 : vector<24x6xf32>
    %546 = math.exp %545 : vector<24x6xf32>
    %cst_267 = arith.constant dense<0.000000e+00> : vector<24xf32>
    %547 = vector.multi_reduction <add>, %546, %cst_267 [1] : vector<24x6xf32> to vector<24xf32>
    %548 = vector.shape_cast %547 : vector<24xf32> to vector<24x1xf32>
    %549 = tpu.reciprocal %548 {approx = true} : vector<24x1xf32> -> vector<24x1xf32>
    %550 = vector.broadcast %549 : vector<24x1xf32> to vector<24x6xf32>
    %551 = arith.mulf %546, %550 : vector<24x6xf32>
    %cst_268 = arith.constant dense<0.000000e+00> : vector<24x32xf32>
    %552 = tpu.matmul %551, %534, %cst_268 {dimension_numbers = #tpu.dot_dimension_numbers<[1], [0], [0], [1], [0, 0, 1, 1], [], []>} : vector<24x6xf32>, vector<6x32xf32>, vector<24x32xf32> -> vector<24x32xf32>
    %553 = arith.mulf %552, %423 : vector<24x32xf32>
    %cst_269 = arith.constant dense<0.000000e+00> : vector<6x32xf32>
    %554 = tpu.matmul %448, %553, %cst_269 {dimension_numbers = #tpu.dot_dimension_numbers<[1], [0], [0], [1], [0, 0, 1, 1], [], []>} : vector<6x24xf32>, vector<24x32xf32>, vector<6x32xf32> -> vector<6x32xf32>
    %c5_270 = arith.constant 5 : index
    %c0_271 = arith.constant 0 : index
    %c0_272 = arith.constant 0 : index
    %555 = vector.load %arg15[%c5_270, %c0_271, %c0_272] : memref<8x32x32xf32, #tpu.memory_space<vmem>>, vector<1x32x32xf32>
    %556 = vector.shape_cast %555 : vector<1x32x32xf32> to vector<32x32xf32>
    %cst_273 = arith.constant dense<0.000000e+00> : vector<6x32xf32>
    %557 = tpu.matmul %554, %556, %cst_273 {dimension_numbers = #tpu.dot_dimension_numbers<[1], [0], [0], [1], [0, 0, 1, 1], [], []>} : vector<6x32xf32>, vector<32x32xf32>, vector<6x32xf32> -> vector<6x32xf32>
    %c5_274 = arith.constant 5 : index
    %c0_275 = arith.constant 0 : index
    %c0_276 = arith.constant 0 : index
    %558 = vector.load %arg16[%c5_274, %c0_275, %c0_276] : memref<8x1x32xf32, #tpu.memory_space<vmem>>, vector<1x1x32xf32>
    %559 = vector.shape_cast %558 : vector<1x1x32xf32> to vector<1x32xf32>
    %560 = vector.broadcast %559 : vector<1x32xf32> to vector<6x32xf32>
    %561 = arith.addf %557, %560 : vector<6x32xf32>
    %562 = arith.addf %561, %516 : vector<6x32xf32>
    %c5_277 = arith.constant 5 : index
    %c0_278 = arith.constant 0 : index
    %c0_279 = arith.constant 0 : index
    %563 = vector.load %arg17[%c5_277, %c0_278, %c0_279] : memref<8x1x32xf32, #tpu.memory_space<vmem>>, vector<1x1x32xf32>
    %564 = vector.shape_cast %563 : vector<1x1x32xf32> to vector<1x32xf32>
    %c5_280 = arith.constant 5 : index
    %c0_281 = arith.constant 0 : index
    %c0_282 = arith.constant 0 : index
    %565 = vector.load %arg18[%c5_280, %c0_281, %c0_282] : memref<8x1x32xf32, #tpu.memory_space<vmem>>, vector<1x1x32xf32>
    %566 = vector.shape_cast %565 : vector<1x1x32xf32> to vector<1x32xf32>
    %cst_283 = arith.constant dense<0.000000e+00> : vector<6xf32>
    %567 = vector.multi_reduction <add>, %562, %cst_283 [1] : vector<6x32xf32> to vector<6xf32>
    %568 = vector.shape_cast %567 : vector<6xf32> to vector<6x1xf32>
    %cst_284 = arith.constant 3.200000e+01 : f32
    %569 = vector.broadcast %cst_284 : f32 to vector<6x1xf32>
    %570 = arith.divf %568, %569 : vector<6x1xf32>
    %571 = vector.broadcast %570 : vector<6x1xf32> to vector<6x32xf32>
    %572 = arith.subf %562, %571 : vector<6x32xf32>
    %573 = arith.mulf %572, %572 : vector<6x32xf32>
    %cst_285 = arith.constant dense<0.000000e+00> : vector<6xf32>
    %574 = vector.multi_reduction <add>, %573, %cst_285 [1] : vector<6x32xf32> to vector<6xf32>
    %575 = vector.shape_cast %574 : vector<6xf32> to vector<6x1xf32>
    %cst_286 = arith.constant 3.200000e+01 : f32
    %576 = vector.broadcast %cst_286 : f32 to vector<6x1xf32>
    %577 = arith.divf %575, %576 : vector<6x1xf32>
    %578 = vector.broadcast %570 : vector<6x1xf32> to vector<6x32xf32>
    %579 = arith.subf %562, %578 : vector<6x32xf32>
    %cst_287 = arith.constant 9.99999996E-13 : f32
    %580 = vector.broadcast %cst_287 : f32 to vector<6x1xf32>
    %581 = arith.addf %577, %580 : vector<6x1xf32>
    %582 = math.rsqrt %581 : vector<6x1xf32>
    %583 = vector.broadcast %582 : vector<6x1xf32> to vector<6x32xf32>
    %584 = arith.mulf %579, %583 : vector<6x32xf32>
    %585 = vector.broadcast %564 : vector<1x32xf32> to vector<6x32xf32>
    %586 = arith.mulf %584, %585 : vector<6x32xf32>
    %587 = vector.broadcast %566 : vector<1x32xf32> to vector<6x32xf32>
    %588 = arith.addf %586, %587 : vector<6x32xf32>
    %589 = vector.broadcast %391 : vector<6x1xf32> to vector<6x32xf32>
    %590 = arith.mulf %588, %589 : vector<6x32xf32>
    %c0_288 = arith.constant 0 : index
    %c0_289 = arith.constant 0 : index
    %c0_290 = arith.constant 0 : index
    %c0_291 = arith.constant 0 : index
    %591 = vector.load %arg10[%c0_288, %c0_289, %c0_290, %c0_291] : memref<1x3x6x1xf32, #tpu.memory_space<vmem>>, vector<1x1x6x1xf32>
    %592 = vector.shape_cast %591 : vector<1x1x6x1xf32> to vector<6x1xf32>
    %593 = vector.broadcast %592 : vector<6x1xf32> to vector<6x32xf32>
    %594 = arith.mulf %593, %590 : vector<6x32xf32>
    %cst_292 = arith.constant 1.000000e+00 : f32
    %595 = vector.broadcast %cst_292 : f32 to vector<6x1xf32>
    %596 = arith.subf %595, %592 : vector<6x1xf32>
    %597 = vector.broadcast %596 : vector<6x1xf32> to vector<6x32xf32>
    %598 = arith.mulf %597, %389 : vector<6x32xf32>
    %599 = arith.addf %594, %598 : vector<6x32xf32>
    %c4_293 = arith.constant 4 : index
    %c0_294 = arith.constant 0 : index
    %c0_295 = arith.constant 0 : index
    %600 = vector.load %arg11[%c4_293, %c0_294, %c0_295] : memref<8x32x32xf32, #tpu.memory_space<vmem>>, vector<1x32x32xf32>
    %601 = vector.shape_cast %600 : vector<1x32x32xf32> to vector<32x32xf32>
    %cst_296 = arith.constant dense<0.000000e+00> : vector<6x32xf32>
    %602 = tpu.matmul %599, %601, %cst_296 {dimension_numbers = #tpu.dot_dimension_numbers<[1], [0], [0], [1], [0, 0, 1, 1], [], []>} : vector<6x32xf32>, vector<32x32xf32>, vector<6x32xf32> -> vector<6x32xf32>
    %c4_297 = arith.constant 4 : index
    %c0_298 = arith.constant 0 : index
    %c0_299 = arith.constant 0 : index
    %603 = vector.load %arg12[%c4_297, %c0_298, %c0_299] : memref<8x1x32xf32, #tpu.memory_space<vmem>>, vector<1x1x32xf32>
    %604 = vector.shape_cast %603 : vector<1x1x32xf32> to vector<1x32xf32>
    %605 = vector.broadcast %604 : vector<1x32xf32> to vector<6x32xf32>
    %606 = arith.addf %602, %605 : vector<6x32xf32>
    %c4_300 = arith.constant 4 : index
    %c0_301 = arith.constant 0 : index
    %c0_302 = arith.constant 0 : index
    %607 = vector.load %arg13[%c4_300, %c0_301, %c0_302] : memref<8x32x64xf32, #tpu.memory_space<vmem>>, vector<1x32x64xf32>
    %608 = vector.shape_cast %607 : vector<1x32x64xf32> to vector<32x64xf32>
    %cst_303 = arith.constant dense<0.000000e+00> : vector<8x64xf32>
    %609 = tpu.matmul %382, %608, %cst_303 {dimension_numbers = #tpu.dot_dimension_numbers<[1], [0], [0], [1], [0, 0, 1, 1], [], []>} : vector<8x32xf32>, vector<32x64xf32>, vector<8x64xf32> -> vector<8x64xf32>
    %c4_304 = arith.constant 4 : index
    %c0_305 = arith.constant 0 : index
    %c0_306 = arith.constant 0 : index
    %610 = vector.load %arg14[%c4_304, %c0_305, %c0_306] : memref<8x1x64xf32, #tpu.memory_space<vmem>>, vector<1x1x64xf32>
    %611 = vector.shape_cast %610 : vector<1x1x64xf32> to vector<1x64xf32>
    %612 = vector.broadcast %611 : vector<1x64xf32> to vector<8x64xf32>
    %613 = arith.addf %609, %612 : vector<8x64xf32>
    %614 = vector.extract_strided_slice %613 {offsets = [0, 0], sizes = [8, 32], strides = [1, 1]} : vector<8x64xf32> to vector<8x32xf32>
    %615 = vector.extract_strided_slice %613 {offsets = [0, 32], sizes = [8, 32], strides = [1, 1]} : vector<8x64xf32> to vector<8x32xf32>
    %cst_307 = arith.constant dense<0.000000e+00> : vector<24x32xf32>
    %616 = tpu.matmul %428, %606, %cst_307 {dimension_numbers = #tpu.dot_dimension_numbers<[1], [0], [0], [1], [0, 0, 1, 1], [], []>} : vector<24x6xf32>, vector<6x32xf32>, vector<24x32xf32> -> vector<24x32xf32>
    %617 = arith.mulf %616, %423 : vector<24x32xf32>
    %cst_308 = arith.constant dense<0.000000e+00> : vector<24x8xf32>
    %618 = tpu.matmul %617, %614, %cst_308 {dimension_numbers = #tpu.dot_dimension_numbers<[1], [1], [0], [0], [0, 0, 1, 0], [], []>} : vector<24x32xf32>, vector<8x32xf32>, vector<24x8xf32> -> vector<24x8xf32>
    %cst_309 = arith.constant 0.353553385 : f32
    %619 = vector.broadcast %cst_309 : f32 to vector<24x8xf32>
    %620 = arith.mulf %618, %619 : vector<24x8xf32>
    %cst_310 = arith.constant dense<0xFF800000> : vector<24xf32>
    %621 = vector.multi_reduction <maximumf>, %620, %cst_310 [1] : vector<24x8xf32> to vector<24xf32>
    %622 = vector.shape_cast %621 : vector<24xf32> to vector<24x1xf32>
    %623 = vector.broadcast %622 : vector<24x1xf32> to vector<24x8xf32>
    %624 = arith.subf %620, %623 : vector<24x8xf32>
    %625 = math.exp %624 : vector<24x8xf32>
    %cst_311 = arith.constant dense<0.000000e+00> : vector<24xf32>
    %626 = vector.multi_reduction <add>, %625, %cst_311 [1] : vector<24x8xf32> to vector<24xf32>
    %627 = vector.shape_cast %626 : vector<24xf32> to vector<24x1xf32>
    %628 = tpu.reciprocal %627 {approx = true} : vector<24x1xf32> -> vector<24x1xf32>
    %629 = vector.broadcast %628 : vector<24x1xf32> to vector<24x8xf32>
    %630 = arith.mulf %625, %629 : vector<24x8xf32>
    %cst_312 = arith.constant dense<0.000000e+00> : vector<24x32xf32>
    %631 = tpu.matmul %630, %615, %cst_312 {dimension_numbers = #tpu.dot_dimension_numbers<[1], [0], [0], [1], [0, 0, 1, 1], [], []>} : vector<24x8xf32>, vector<8x32xf32>, vector<24x32xf32> -> vector<24x32xf32>
    %632 = arith.mulf %631, %423 : vector<24x32xf32>
    %cst_313 = arith.constant dense<0.000000e+00> : vector<6x32xf32>
    %633 = tpu.matmul %448, %632, %cst_313 {dimension_numbers = #tpu.dot_dimension_numbers<[1], [0], [0], [1], [0, 0, 1, 1], [], []>} : vector<6x24xf32>, vector<24x32xf32>, vector<6x32xf32> -> vector<6x32xf32>
    %c4_314 = arith.constant 4 : index
    %c0_315 = arith.constant 0 : index
    %c0_316 = arith.constant 0 : index
    %634 = vector.load %arg15[%c4_314, %c0_315, %c0_316] : memref<8x32x32xf32, #tpu.memory_space<vmem>>, vector<1x32x32xf32>
    %635 = vector.shape_cast %634 : vector<1x32x32xf32> to vector<32x32xf32>
    %cst_317 = arith.constant dense<0.000000e+00> : vector<6x32xf32>
    %636 = tpu.matmul %633, %635, %cst_317 {dimension_numbers = #tpu.dot_dimension_numbers<[1], [0], [0], [1], [0, 0, 1, 1], [], []>} : vector<6x32xf32>, vector<32x32xf32>, vector<6x32xf32> -> vector<6x32xf32>
    %c4_318 = arith.constant 4 : index
    %c0_319 = arith.constant 0 : index
    %c0_320 = arith.constant 0 : index
    %637 = vector.load %arg16[%c4_318, %c0_319, %c0_320] : memref<8x1x32xf32, #tpu.memory_space<vmem>>, vector<1x1x32xf32>
    %638 = vector.shape_cast %637 : vector<1x1x32xf32> to vector<1x32xf32>
    %639 = vector.broadcast %638 : vector<1x32xf32> to vector<6x32xf32>
    %640 = arith.addf %636, %639 : vector<6x32xf32>
    %641 = arith.addf %640, %599 : vector<6x32xf32>
    %c4_321 = arith.constant 4 : index
    %c0_322 = arith.constant 0 : index
    %c0_323 = arith.constant 0 : index
    %642 = vector.load %arg17[%c4_321, %c0_322, %c0_323] : memref<8x1x32xf32, #tpu.memory_space<vmem>>, vector<1x1x32xf32>
    %643 = vector.shape_cast %642 : vector<1x1x32xf32> to vector<1x32xf32>
    %c4_324 = arith.constant 4 : index
    %c0_325 = arith.constant 0 : index
    %c0_326 = arith.constant 0 : index
    %644 = vector.load %arg18[%c4_324, %c0_325, %c0_326] : memref<8x1x32xf32, #tpu.memory_space<vmem>>, vector<1x1x32xf32>
    %645 = vector.shape_cast %644 : vector<1x1x32xf32> to vector<1x32xf32>
    %cst_327 = arith.constant dense<0.000000e+00> : vector<6xf32>
    %646 = vector.multi_reduction <add>, %641, %cst_327 [1] : vector<6x32xf32> to vector<6xf32>
    %647 = vector.shape_cast %646 : vector<6xf32> to vector<6x1xf32>
    %cst_328 = arith.constant 3.200000e+01 : f32
    %648 = vector.broadcast %cst_328 : f32 to vector<6x1xf32>
    %649 = arith.divf %647, %648 : vector<6x1xf32>
    %650 = vector.broadcast %649 : vector<6x1xf32> to vector<6x32xf32>
    %651 = arith.subf %641, %650 : vector<6x32xf32>
    %652 = arith.mulf %651, %651 : vector<6x32xf32>
    %cst_329 = arith.constant dense<0.000000e+00> : vector<6xf32>
    %653 = vector.multi_reduction <add>, %652, %cst_329 [1] : vector<6x32xf32> to vector<6xf32>
    %654 = vector.shape_cast %653 : vector<6xf32> to vector<6x1xf32>
    %cst_330 = arith.constant 3.200000e+01 : f32
    %655 = vector.broadcast %cst_330 : f32 to vector<6x1xf32>
    %656 = arith.divf %654, %655 : vector<6x1xf32>
    %657 = vector.broadcast %649 : vector<6x1xf32> to vector<6x32xf32>
    %658 = arith.subf %641, %657 : vector<6x32xf32>
    %cst_331 = arith.constant 9.99999996E-13 : f32
    %659 = vector.broadcast %cst_331 : f32 to vector<6x1xf32>
    %660 = arith.addf %656, %659 : vector<6x1xf32>
    %661 = math.rsqrt %660 : vector<6x1xf32>
    %662 = vector.broadcast %661 : vector<6x1xf32> to vector<6x32xf32>
    %663 = arith.mulf %658, %662 : vector<6x32xf32>
    %664 = vector.broadcast %643 : vector<1x32xf32> to vector<6x32xf32>
    %665 = arith.mulf %663, %664 : vector<6x32xf32>
    %666 = vector.broadcast %645 : vector<1x32xf32> to vector<6x32xf32>
    %667 = arith.addf %665, %666 : vector<6x32xf32>
    %c0_332 = arith.constant 0 : index
    %c1_333 = arith.constant 1 : index
    %c0_334 = arith.constant 0 : index
    %c0_335 = arith.constant 0 : index
    %668 = vector.load %arg9[%c0_332, %c1_333, %c0_334, %c0_335] : memref<1x3x6x6xf32, #tpu.memory_space<vmem>>, vector<1x1x6x6xf32>
    %669 = vector.shape_cast %668 : vector<1x1x6x6xf32> to vector<6x6xf32>
    %c5_336 = arith.constant 5 : index
    %c0_337 = arith.constant 0 : index
    %c0_338 = arith.constant 0 : index
    %670 = vector.load %arg11[%c5_336, %c0_337, %c0_338] : memref<8x32x32xf32, #tpu.memory_space<vmem>>, vector<1x32x32xf32>
    %671 = vector.shape_cast %670 : vector<1x32x32xf32> to vector<32x32xf32>
    %cst_339 = arith.constant dense<0.000000e+00> : vector<6x32xf32>
    %672 = tpu.matmul %667, %671, %cst_339 {dimension_numbers = #tpu.dot_dimension_numbers<[1], [0], [0], [1], [0, 0, 1, 1], [], []>} : vector<6x32xf32>, vector<32x32xf32>, vector<6x32xf32> -> vector<6x32xf32>
    %c5_340 = arith.constant 5 : index
    %c0_341 = arith.constant 0 : index
    %c0_342 = arith.constant 0 : index
    %673 = vector.load %arg12[%c5_340, %c0_341, %c0_342] : memref<8x1x32xf32, #tpu.memory_space<vmem>>, vector<1x1x32xf32>
    %674 = vector.shape_cast %673 : vector<1x1x32xf32> to vector<1x32xf32>
    %675 = vector.broadcast %674 : vector<1x32xf32> to vector<6x32xf32>
    %676 = arith.addf %672, %675 : vector<6x32xf32>
    %c5_343 = arith.constant 5 : index
    %c0_344 = arith.constant 0 : index
    %c0_345 = arith.constant 0 : index
    %677 = vector.load %arg13[%c5_343, %c0_344, %c0_345] : memref<8x32x64xf32, #tpu.memory_space<vmem>>, vector<1x32x64xf32>
    %678 = vector.shape_cast %677 : vector<1x32x64xf32> to vector<32x64xf32>
    %cst_346 = arith.constant dense<0.000000e+00> : vector<6x64xf32>
    %679 = tpu.matmul %667, %678, %cst_346 {dimension_numbers = #tpu.dot_dimension_numbers<[1], [0], [0], [1], [0, 0, 1, 1], [], []>} : vector<6x32xf32>, vector<32x64xf32>, vector<6x64xf32> -> vector<6x64xf32>
    %c5_347 = arith.constant 5 : index
    %c0_348 = arith.constant 0 : index
    %c0_349 = arith.constant 0 : index
    %680 = vector.load %arg14[%c5_347, %c0_348, %c0_349] : memref<8x1x64xf32, #tpu.memory_space<vmem>>, vector<1x1x64xf32>
    %681 = vector.shape_cast %680 : vector<1x1x64xf32> to vector<1x64xf32>
    %682 = vector.broadcast %681 : vector<1x64xf32> to vector<6x64xf32>
    %683 = arith.addf %679, %682 : vector<6x64xf32>
    %684 = vector.extract_strided_slice %683 {offsets = [0, 0], sizes = [6, 32], strides = [1, 1]} : vector<6x64xf32> to vector<6x32xf32>
    %685 = vector.extract_strided_slice %683 {offsets = [0, 32], sizes = [6, 32], strides = [1, 1]} : vector<6x64xf32> to vector<6x32xf32>
    %cst_350 = arith.constant dense<0.000000e+00> : vector<24x32xf32>
    %686 = tpu.matmul %428, %676, %cst_350 {dimension_numbers = #tpu.dot_dimension_numbers<[1], [0], [0], [1], [0, 0, 1, 1], [], []>} : vector<24x6xf32>, vector<6x32xf32>, vector<24x32xf32> -> vector<24x32xf32>
    %687 = arith.mulf %686, %423 : vector<24x32xf32>
    %cst_351 = arith.constant dense<0.000000e+00> : vector<24x6xf32>
    %688 = tpu.matmul %687, %684, %cst_351 {dimension_numbers = #tpu.dot_dimension_numbers<[1], [1], [0], [0], [0, 0, 1, 0], [], []>} : vector<24x32xf32>, vector<6x32xf32>, vector<24x6xf32> -> vector<24x6xf32>
    %cst_352 = arith.constant 0.353553385 : f32
    %689 = vector.broadcast %cst_352 : f32 to vector<24x6xf32>
    %690 = arith.mulf %688, %689 : vector<24x6xf32>
    %cst_353 = arith.constant dense<0.000000e+00> : vector<24x6xf32>
    %691 = tpu.matmul %428, %669, %cst_353 {dimension_numbers = #tpu.dot_dimension_numbers<[1], [0], [0], [1], [0, 0, 1, 1], [], []>} : vector<24x6xf32>, vector<6x6xf32>, vector<24x6xf32> -> vector<24x6xf32>
    %692 = arith.addf %690, %691 : vector<24x6xf32>
    %cst_354 = arith.constant dense<0xFF800000> : vector<24xf32>
    %693 = vector.multi_reduction <maximumf>, %692, %cst_354 [1] : vector<24x6xf32> to vector<24xf32>
    %694 = vector.shape_cast %693 : vector<24xf32> to vector<24x1xf32>
    %695 = vector.broadcast %694 : vector<24x1xf32> to vector<24x6xf32>
    %696 = arith.subf %692, %695 : vector<24x6xf32>
    %697 = math.exp %696 : vector<24x6xf32>
    %cst_355 = arith.constant dense<0.000000e+00> : vector<24xf32>
    %698 = vector.multi_reduction <add>, %697, %cst_355 [1] : vector<24x6xf32> to vector<24xf32>
    %699 = vector.shape_cast %698 : vector<24xf32> to vector<24x1xf32>
    %700 = tpu.reciprocal %699 {approx = true} : vector<24x1xf32> -> vector<24x1xf32>
    %701 = vector.broadcast %700 : vector<24x1xf32> to vector<24x6xf32>
    %702 = arith.mulf %697, %701 : vector<24x6xf32>
    %cst_356 = arith.constant dense<0.000000e+00> : vector<24x32xf32>
    %703 = tpu.matmul %702, %685, %cst_356 {dimension_numbers = #tpu.dot_dimension_numbers<[1], [0], [0], [1], [0, 0, 1, 1], [], []>} : vector<24x6xf32>, vector<6x32xf32>, vector<24x32xf32> -> vector<24x32xf32>
    %704 = arith.mulf %703, %423 : vector<24x32xf32>
    %cst_357 = arith.constant dense<0.000000e+00> : vector<6x32xf32>
    %705 = tpu.matmul %448, %704, %cst_357 {dimension_numbers = #tpu.dot_dimension_numbers<[1], [0], [0], [1], [0, 0, 1, 1], [], []>} : vector<6x24xf32>, vector<24x32xf32>, vector<6x32xf32> -> vector<6x32xf32>
    %c5_358 = arith.constant 5 : index
    %c0_359 = arith.constant 0 : index
    %c0_360 = arith.constant 0 : index
    %706 = vector.load %arg15[%c5_358, %c0_359, %c0_360] : memref<8x32x32xf32, #tpu.memory_space<vmem>>, vector<1x32x32xf32>
    %707 = vector.shape_cast %706 : vector<1x32x32xf32> to vector<32x32xf32>
    %cst_361 = arith.constant dense<0.000000e+00> : vector<6x32xf32>
    %708 = tpu.matmul %705, %707, %cst_361 {dimension_numbers = #tpu.dot_dimension_numbers<[1], [0], [0], [1], [0, 0, 1, 1], [], []>} : vector<6x32xf32>, vector<32x32xf32>, vector<6x32xf32> -> vector<6x32xf32>
    %c5_362 = arith.constant 5 : index
    %c0_363 = arith.constant 0 : index
    %c0_364 = arith.constant 0 : index
    %709 = vector.load %arg16[%c5_362, %c0_363, %c0_364] : memref<8x1x32xf32, #tpu.memory_space<vmem>>, vector<1x1x32xf32>
    %710 = vector.shape_cast %709 : vector<1x1x32xf32> to vector<1x32xf32>
    %711 = vector.broadcast %710 : vector<1x32xf32> to vector<6x32xf32>
    %712 = arith.addf %708, %711 : vector<6x32xf32>
    %713 = arith.addf %712, %667 : vector<6x32xf32>
    %c5_365 = arith.constant 5 : index
    %c0_366 = arith.constant 0 : index
    %c0_367 = arith.constant 0 : index
    %714 = vector.load %arg17[%c5_365, %c0_366, %c0_367] : memref<8x1x32xf32, #tpu.memory_space<vmem>>, vector<1x1x32xf32>
    %715 = vector.shape_cast %714 : vector<1x1x32xf32> to vector<1x32xf32>
    %c5_368 = arith.constant 5 : index
    %c0_369 = arith.constant 0 : index
    %c0_370 = arith.constant 0 : index
    %716 = vector.load %arg18[%c5_368, %c0_369, %c0_370] : memref<8x1x32xf32, #tpu.memory_space<vmem>>, vector<1x1x32xf32>
    %717 = vector.shape_cast %716 : vector<1x1x32xf32> to vector<1x32xf32>
    %cst_371 = arith.constant dense<0.000000e+00> : vector<6xf32>
    %718 = vector.multi_reduction <add>, %713, %cst_371 [1] : vector<6x32xf32> to vector<6xf32>
    %719 = vector.shape_cast %718 : vector<6xf32> to vector<6x1xf32>
    %cst_372 = arith.constant 3.200000e+01 : f32
    %720 = vector.broadcast %cst_372 : f32 to vector<6x1xf32>
    %721 = arith.divf %719, %720 : vector<6x1xf32>
    %722 = vector.broadcast %721 : vector<6x1xf32> to vector<6x32xf32>
    %723 = arith.subf %713, %722 : vector<6x32xf32>
    %724 = arith.mulf %723, %723 : vector<6x32xf32>
    %cst_373 = arith.constant dense<0.000000e+00> : vector<6xf32>
    %725 = vector.multi_reduction <add>, %724, %cst_373 [1] : vector<6x32xf32> to vector<6xf32>
    %726 = vector.shape_cast %725 : vector<6xf32> to vector<6x1xf32>
    %cst_374 = arith.constant 3.200000e+01 : f32
    %727 = vector.broadcast %cst_374 : f32 to vector<6x1xf32>
    %728 = arith.divf %726, %727 : vector<6x1xf32>
    %729 = vector.broadcast %721 : vector<6x1xf32> to vector<6x32xf32>
    %730 = arith.subf %713, %729 : vector<6x32xf32>
    %cst_375 = arith.constant 9.99999996E-13 : f32
    %731 = vector.broadcast %cst_375 : f32 to vector<6x1xf32>
    %732 = arith.addf %728, %731 : vector<6x1xf32>
    %733 = math.rsqrt %732 : vector<6x1xf32>
    %734 = vector.broadcast %733 : vector<6x1xf32> to vector<6x32xf32>
    %735 = arith.mulf %730, %734 : vector<6x32xf32>
    %736 = vector.broadcast %715 : vector<1x32xf32> to vector<6x32xf32>
    %737 = arith.mulf %735, %736 : vector<6x32xf32>
    %738 = vector.broadcast %717 : vector<1x32xf32> to vector<6x32xf32>
    %739 = arith.addf %737, %738 : vector<6x32xf32>
    %740 = vector.broadcast %391 : vector<6x1xf32> to vector<6x32xf32>
    %741 = arith.mulf %739, %740 : vector<6x32xf32>
    %c0_376 = arith.constant 0 : index
    %c1_377 = arith.constant 1 : index
    %c0_378 = arith.constant 0 : index
    %c0_379 = arith.constant 0 : index
    %742 = vector.load %arg10[%c0_376, %c1_377, %c0_378, %c0_379] : memref<1x3x6x1xf32, #tpu.memory_space<vmem>>, vector<1x1x6x1xf32>
    %743 = vector.shape_cast %742 : vector<1x1x6x1xf32> to vector<6x1xf32>
    %744 = vector.broadcast %743 : vector<6x1xf32> to vector<6x32xf32>
    %745 = arith.mulf %744, %741 : vector<6x32xf32>
    %cst_380 = arith.constant 1.000000e+00 : f32
    %746 = vector.broadcast %cst_380 : f32 to vector<6x1xf32>
    %747 = arith.subf %746, %743 : vector<6x1xf32>
    %748 = vector.broadcast %747 : vector<6x1xf32> to vector<6x32xf32>
    %749 = arith.mulf %748, %599 : vector<6x32xf32>
    %750 = arith.addf %745, %749 : vector<6x32xf32>
    %c4_381 = arith.constant 4 : index
    %c0_382 = arith.constant 0 : index
    %c0_383 = arith.constant 0 : index
    %751 = vector.load %arg11[%c4_381, %c0_382, %c0_383] : memref<8x32x32xf32, #tpu.memory_space<vmem>>, vector<1x32x32xf32>
    %752 = vector.shape_cast %751 : vector<1x32x32xf32> to vector<32x32xf32>
    %cst_384 = arith.constant dense<0.000000e+00> : vector<6x32xf32>
    %753 = tpu.matmul %750, %752, %cst_384 {dimension_numbers = #tpu.dot_dimension_numbers<[1], [0], [0], [1], [0, 0, 1, 1], [], []>} : vector<6x32xf32>, vector<32x32xf32>, vector<6x32xf32> -> vector<6x32xf32>
    %c4_385 = arith.constant 4 : index
    %c0_386 = arith.constant 0 : index
    %c0_387 = arith.constant 0 : index
    %754 = vector.load %arg12[%c4_385, %c0_386, %c0_387] : memref<8x1x32xf32, #tpu.memory_space<vmem>>, vector<1x1x32xf32>
    %755 = vector.shape_cast %754 : vector<1x1x32xf32> to vector<1x32xf32>
    %756 = vector.broadcast %755 : vector<1x32xf32> to vector<6x32xf32>
    %757 = arith.addf %753, %756 : vector<6x32xf32>
    %c4_388 = arith.constant 4 : index
    %c0_389 = arith.constant 0 : index
    %c0_390 = arith.constant 0 : index
    %758 = vector.load %arg13[%c4_388, %c0_389, %c0_390] : memref<8x32x64xf32, #tpu.memory_space<vmem>>, vector<1x32x64xf32>
    %759 = vector.shape_cast %758 : vector<1x32x64xf32> to vector<32x64xf32>
    %cst_391 = arith.constant dense<0.000000e+00> : vector<8x64xf32>
    %760 = tpu.matmul %382, %759, %cst_391 {dimension_numbers = #tpu.dot_dimension_numbers<[1], [0], [0], [1], [0, 0, 1, 1], [], []>} : vector<8x32xf32>, vector<32x64xf32>, vector<8x64xf32> -> vector<8x64xf32>
    %c4_392 = arith.constant 4 : index
    %c0_393 = arith.constant 0 : index
    %c0_394 = arith.constant 0 : index
    %761 = vector.load %arg14[%c4_392, %c0_393, %c0_394] : memref<8x1x64xf32, #tpu.memory_space<vmem>>, vector<1x1x64xf32>
    %762 = vector.shape_cast %761 : vector<1x1x64xf32> to vector<1x64xf32>
    %763 = vector.broadcast %762 : vector<1x64xf32> to vector<8x64xf32>
    %764 = arith.addf %760, %763 : vector<8x64xf32>
    %765 = vector.extract_strided_slice %764 {offsets = [0, 0], sizes = [8, 32], strides = [1, 1]} : vector<8x64xf32> to vector<8x32xf32>
    %766 = vector.extract_strided_slice %764 {offsets = [0, 32], sizes = [8, 32], strides = [1, 1]} : vector<8x64xf32> to vector<8x32xf32>
    %cst_395 = arith.constant dense<0.000000e+00> : vector<24x32xf32>
    %767 = tpu.matmul %428, %757, %cst_395 {dimension_numbers = #tpu.dot_dimension_numbers<[1], [0], [0], [1], [0, 0, 1, 1], [], []>} : vector<24x6xf32>, vector<6x32xf32>, vector<24x32xf32> -> vector<24x32xf32>
    %768 = arith.mulf %767, %423 : vector<24x32xf32>
    %cst_396 = arith.constant dense<0.000000e+00> : vector<24x8xf32>
    %769 = tpu.matmul %768, %765, %cst_396 {dimension_numbers = #tpu.dot_dimension_numbers<[1], [1], [0], [0], [0, 0, 1, 0], [], []>} : vector<24x32xf32>, vector<8x32xf32>, vector<24x8xf32> -> vector<24x8xf32>
    %cst_397 = arith.constant 0.353553385 : f32
    %770 = vector.broadcast %cst_397 : f32 to vector<24x8xf32>
    %771 = arith.mulf %769, %770 : vector<24x8xf32>
    %cst_398 = arith.constant dense<0xFF800000> : vector<24xf32>
    %772 = vector.multi_reduction <maximumf>, %771, %cst_398 [1] : vector<24x8xf32> to vector<24xf32>
    %773 = vector.shape_cast %772 : vector<24xf32> to vector<24x1xf32>
    %774 = vector.broadcast %773 : vector<24x1xf32> to vector<24x8xf32>
    %775 = arith.subf %771, %774 : vector<24x8xf32>
    %776 = math.exp %775 : vector<24x8xf32>
    %cst_399 = arith.constant dense<0.000000e+00> : vector<24xf32>
    %777 = vector.multi_reduction <add>, %776, %cst_399 [1] : vector<24x8xf32> to vector<24xf32>
    %778 = vector.shape_cast %777 : vector<24xf32> to vector<24x1xf32>
    %779 = tpu.reciprocal %778 {approx = true} : vector<24x1xf32> -> vector<24x1xf32>
    %780 = vector.broadcast %779 : vector<24x1xf32> to vector<24x8xf32>
    %781 = arith.mulf %776, %780 : vector<24x8xf32>
    %cst_400 = arith.constant dense<0.000000e+00> : vector<24x32xf32>
    %782 = tpu.matmul %781, %766, %cst_400 {dimension_numbers = #tpu.dot_dimension_numbers<[1], [0], [0], [1], [0, 0, 1, 1], [], []>} : vector<24x8xf32>, vector<8x32xf32>, vector<24x32xf32> -> vector<24x32xf32>
    %783 = arith.mulf %782, %423 : vector<24x32xf32>
    %cst_401 = arith.constant dense<0.000000e+00> : vector<6x32xf32>
    %784 = tpu.matmul %448, %783, %cst_401 {dimension_numbers = #tpu.dot_dimension_numbers<[1], [0], [0], [1], [0, 0, 1, 1], [], []>} : vector<6x24xf32>, vector<24x32xf32>, vector<6x32xf32> -> vector<6x32xf32>
    %c4_402 = arith.constant 4 : index
    %c0_403 = arith.constant 0 : index
    %c0_404 = arith.constant 0 : index
    %785 = vector.load %arg15[%c4_402, %c0_403, %c0_404] : memref<8x32x32xf32, #tpu.memory_space<vmem>>, vector<1x32x32xf32>
    %786 = vector.shape_cast %785 : vector<1x32x32xf32> to vector<32x32xf32>
    %cst_405 = arith.constant dense<0.000000e+00> : vector<6x32xf32>
    %787 = tpu.matmul %784, %786, %cst_405 {dimension_numbers = #tpu.dot_dimension_numbers<[1], [0], [0], [1], [0, 0, 1, 1], [], []>} : vector<6x32xf32>, vector<32x32xf32>, vector<6x32xf32> -> vector<6x32xf32>
    %c4_406 = arith.constant 4 : index
    %c0_407 = arith.constant 0 : index
    %c0_408 = arith.constant 0 : index
    %788 = vector.load %arg16[%c4_406, %c0_407, %c0_408] : memref<8x1x32xf32, #tpu.memory_space<vmem>>, vector<1x1x32xf32>
    %789 = vector.shape_cast %788 : vector<1x1x32xf32> to vector<1x32xf32>
    %790 = vector.broadcast %789 : vector<1x32xf32> to vector<6x32xf32>
    %791 = arith.addf %787, %790 : vector<6x32xf32>
    %792 = arith.addf %791, %750 : vector<6x32xf32>
    %c4_409 = arith.constant 4 : index
    %c0_410 = arith.constant 0 : index
    %c0_411 = arith.constant 0 : index
    %793 = vector.load %arg17[%c4_409, %c0_410, %c0_411] : memref<8x1x32xf32, #tpu.memory_space<vmem>>, vector<1x1x32xf32>
    %794 = vector.shape_cast %793 : vector<1x1x32xf32> to vector<1x32xf32>
    %c4_412 = arith.constant 4 : index
    %c0_413 = arith.constant 0 : index
    %c0_414 = arith.constant 0 : index
    %795 = vector.load %arg18[%c4_412, %c0_413, %c0_414] : memref<8x1x32xf32, #tpu.memory_space<vmem>>, vector<1x1x32xf32>
    %796 = vector.shape_cast %795 : vector<1x1x32xf32> to vector<1x32xf32>
    %cst_415 = arith.constant dense<0.000000e+00> : vector<6xf32>
    %797 = vector.multi_reduction <add>, %792, %cst_415 [1] : vector<6x32xf32> to vector<6xf32>
    %798 = vector.shape_cast %797 : vector<6xf32> to vector<6x1xf32>
    %cst_416 = arith.constant 3.200000e+01 : f32
    %799 = vector.broadcast %cst_416 : f32 to vector<6x1xf32>
    %800 = arith.divf %798, %799 : vector<6x1xf32>
    %801 = vector.broadcast %800 : vector<6x1xf32> to vector<6x32xf32>
    %802 = arith.subf %792, %801 : vector<6x32xf32>
    %803 = arith.mulf %802, %802 : vector<6x32xf32>
    %cst_417 = arith.constant dense<0.000000e+00> : vector<6xf32>
    %804 = vector.multi_reduction <add>, %803, %cst_417 [1] : vector<6x32xf32> to vector<6xf32>
    %805 = vector.shape_cast %804 : vector<6xf32> to vector<6x1xf32>
    %cst_418 = arith.constant 3.200000e+01 : f32
    %806 = vector.broadcast %cst_418 : f32 to vector<6x1xf32>
    %807 = arith.divf %805, %806 : vector<6x1xf32>
    %808 = vector.broadcast %800 : vector<6x1xf32> to vector<6x32xf32>
    %809 = arith.subf %792, %808 : vector<6x32xf32>
    %cst_419 = arith.constant 9.99999996E-13 : f32
    %810 = vector.broadcast %cst_419 : f32 to vector<6x1xf32>
    %811 = arith.addf %807, %810 : vector<6x1xf32>
    %812 = math.rsqrt %811 : vector<6x1xf32>
    %813 = vector.broadcast %812 : vector<6x1xf32> to vector<6x32xf32>
    %814 = arith.mulf %809, %813 : vector<6x32xf32>
    %815 = vector.broadcast %794 : vector<1x32xf32> to vector<6x32xf32>
    %816 = arith.mulf %814, %815 : vector<6x32xf32>
    %817 = vector.broadcast %796 : vector<1x32xf32> to vector<6x32xf32>
    %818 = arith.addf %816, %817 : vector<6x32xf32>
    %c0_420 = arith.constant 0 : index
    %c2_421 = arith.constant 2 : index
    %c0_422 = arith.constant 0 : index
    %c0_423 = arith.constant 0 : index
    %819 = vector.load %arg9[%c0_420, %c2_421, %c0_422, %c0_423] : memref<1x3x6x6xf32, #tpu.memory_space<vmem>>, vector<1x1x6x6xf32>
    %820 = vector.shape_cast %819 : vector<1x1x6x6xf32> to vector<6x6xf32>
    %c5_424 = arith.constant 5 : index
    %c0_425 = arith.constant 0 : index
    %c0_426 = arith.constant 0 : index
    %821 = vector.load %arg11[%c5_424, %c0_425, %c0_426] : memref<8x32x32xf32, #tpu.memory_space<vmem>>, vector<1x32x32xf32>
    %822 = vector.shape_cast %821 : vector<1x32x32xf32> to vector<32x32xf32>
    %cst_427 = arith.constant dense<0.000000e+00> : vector<6x32xf32>
    %823 = tpu.matmul %818, %822, %cst_427 {dimension_numbers = #tpu.dot_dimension_numbers<[1], [0], [0], [1], [0, 0, 1, 1], [], []>} : vector<6x32xf32>, vector<32x32xf32>, vector<6x32xf32> -> vector<6x32xf32>
    %c5_428 = arith.constant 5 : index
    %c0_429 = arith.constant 0 : index
    %c0_430 = arith.constant 0 : index
    %824 = vector.load %arg12[%c5_428, %c0_429, %c0_430] : memref<8x1x32xf32, #tpu.memory_space<vmem>>, vector<1x1x32xf32>
    %825 = vector.shape_cast %824 : vector<1x1x32xf32> to vector<1x32xf32>
    %826 = vector.broadcast %825 : vector<1x32xf32> to vector<6x32xf32>
    %827 = arith.addf %823, %826 : vector<6x32xf32>
    %c5_431 = arith.constant 5 : index
    %c0_432 = arith.constant 0 : index
    %c0_433 = arith.constant 0 : index
    %828 = vector.load %arg13[%c5_431, %c0_432, %c0_433] : memref<8x32x64xf32, #tpu.memory_space<vmem>>, vector<1x32x64xf32>
    %829 = vector.shape_cast %828 : vector<1x32x64xf32> to vector<32x64xf32>
    %cst_434 = arith.constant dense<0.000000e+00> : vector<6x64xf32>
    %830 = tpu.matmul %818, %829, %cst_434 {dimension_numbers = #tpu.dot_dimension_numbers<[1], [0], [0], [1], [0, 0, 1, 1], [], []>} : vector<6x32xf32>, vector<32x64xf32>, vector<6x64xf32> -> vector<6x64xf32>
    %c5_435 = arith.constant 5 : index
    %c0_436 = arith.constant 0 : index
    %c0_437 = arith.constant 0 : index
    %831 = vector.load %arg14[%c5_435, %c0_436, %c0_437] : memref<8x1x64xf32, #tpu.memory_space<vmem>>, vector<1x1x64xf32>
    %832 = vector.shape_cast %831 : vector<1x1x64xf32> to vector<1x64xf32>
    %833 = vector.broadcast %832 : vector<1x64xf32> to vector<6x64xf32>
    %834 = arith.addf %830, %833 : vector<6x64xf32>
    %835 = vector.extract_strided_slice %834 {offsets = [0, 0], sizes = [6, 32], strides = [1, 1]} : vector<6x64xf32> to vector<6x32xf32>
    %836 = vector.extract_strided_slice %834 {offsets = [0, 32], sizes = [6, 32], strides = [1, 1]} : vector<6x64xf32> to vector<6x32xf32>
    %cst_438 = arith.constant dense<0.000000e+00> : vector<24x32xf32>
    %837 = tpu.matmul %428, %827, %cst_438 {dimension_numbers = #tpu.dot_dimension_numbers<[1], [0], [0], [1], [0, 0, 1, 1], [], []>} : vector<24x6xf32>, vector<6x32xf32>, vector<24x32xf32> -> vector<24x32xf32>
    %838 = arith.mulf %837, %423 : vector<24x32xf32>
    %cst_439 = arith.constant dense<0.000000e+00> : vector<24x6xf32>
    %839 = tpu.matmul %838, %835, %cst_439 {dimension_numbers = #tpu.dot_dimension_numbers<[1], [1], [0], [0], [0, 0, 1, 0], [], []>} : vector<24x32xf32>, vector<6x32xf32>, vector<24x6xf32> -> vector<24x6xf32>
    %cst_440 = arith.constant 0.353553385 : f32
    %840 = vector.broadcast %cst_440 : f32 to vector<24x6xf32>
    %841 = arith.mulf %839, %840 : vector<24x6xf32>
    %cst_441 = arith.constant dense<0.000000e+00> : vector<24x6xf32>
    %842 = tpu.matmul %428, %820, %cst_441 {dimension_numbers = #tpu.dot_dimension_numbers<[1], [0], [0], [1], [0, 0, 1, 1], [], []>} : vector<24x6xf32>, vector<6x6xf32>, vector<24x6xf32> -> vector<24x6xf32>
    %843 = arith.addf %841, %842 : vector<24x6xf32>
    %cst_442 = arith.constant dense<0xFF800000> : vector<24xf32>
    %844 = vector.multi_reduction <maximumf>, %843, %cst_442 [1] : vector<24x6xf32> to vector<24xf32>
    %845 = vector.shape_cast %844 : vector<24xf32> to vector<24x1xf32>
    %846 = vector.broadcast %845 : vector<24x1xf32> to vector<24x6xf32>
    %847 = arith.subf %843, %846 : vector<24x6xf32>
    %848 = math.exp %847 : vector<24x6xf32>
    %cst_443 = arith.constant dense<0.000000e+00> : vector<24xf32>
    %849 = vector.multi_reduction <add>, %848, %cst_443 [1] : vector<24x6xf32> to vector<24xf32>
    %850 = vector.shape_cast %849 : vector<24xf32> to vector<24x1xf32>
    %851 = tpu.reciprocal %850 {approx = true} : vector<24x1xf32> -> vector<24x1xf32>
    %852 = vector.broadcast %851 : vector<24x1xf32> to vector<24x6xf32>
    %853 = arith.mulf %848, %852 : vector<24x6xf32>
    %cst_444 = arith.constant dense<0.000000e+00> : vector<24x32xf32>
    %854 = tpu.matmul %853, %836, %cst_444 {dimension_numbers = #tpu.dot_dimension_numbers<[1], [0], [0], [1], [0, 0, 1, 1], [], []>} : vector<24x6xf32>, vector<6x32xf32>, vector<24x32xf32> -> vector<24x32xf32>
    %855 = arith.mulf %854, %423 : vector<24x32xf32>
    %cst_445 = arith.constant dense<0.000000e+00> : vector<6x32xf32>
    %856 = tpu.matmul %448, %855, %cst_445 {dimension_numbers = #tpu.dot_dimension_numbers<[1], [0], [0], [1], [0, 0, 1, 1], [], []>} : vector<6x24xf32>, vector<24x32xf32>, vector<6x32xf32> -> vector<6x32xf32>
    %c5_446 = arith.constant 5 : index
    %c0_447 = arith.constant 0 : index
    %c0_448 = arith.constant 0 : index
    %857 = vector.load %arg15[%c5_446, %c0_447, %c0_448] : memref<8x32x32xf32, #tpu.memory_space<vmem>>, vector<1x32x32xf32>
    %858 = vector.shape_cast %857 : vector<1x32x32xf32> to vector<32x32xf32>
    %cst_449 = arith.constant dense<0.000000e+00> : vector<6x32xf32>
    %859 = tpu.matmul %856, %858, %cst_449 {dimension_numbers = #tpu.dot_dimension_numbers<[1], [0], [0], [1], [0, 0, 1, 1], [], []>} : vector<6x32xf32>, vector<32x32xf32>, vector<6x32xf32> -> vector<6x32xf32>
    %c5_450 = arith.constant 5 : index
    %c0_451 = arith.constant 0 : index
    %c0_452 = arith.constant 0 : index
    %860 = vector.load %arg16[%c5_450, %c0_451, %c0_452] : memref<8x1x32xf32, #tpu.memory_space<vmem>>, vector<1x1x32xf32>
    %861 = vector.shape_cast %860 : vector<1x1x32xf32> to vector<1x32xf32>
    %862 = vector.broadcast %861 : vector<1x32xf32> to vector<6x32xf32>
    %863 = arith.addf %859, %862 : vector<6x32xf32>
    %864 = arith.addf %863, %818 : vector<6x32xf32>
    %c5_453 = arith.constant 5 : index
    %c0_454 = arith.constant 0 : index
    %c0_455 = arith.constant 0 : index
    %865 = vector.load %arg17[%c5_453, %c0_454, %c0_455] : memref<8x1x32xf32, #tpu.memory_space<vmem>>, vector<1x1x32xf32>
    %866 = vector.shape_cast %865 : vector<1x1x32xf32> to vector<1x32xf32>
    %c5_456 = arith.constant 5 : index
    %c0_457 = arith.constant 0 : index
    %c0_458 = arith.constant 0 : index
    %867 = vector.load %arg18[%c5_456, %c0_457, %c0_458] : memref<8x1x32xf32, #tpu.memory_space<vmem>>, vector<1x1x32xf32>
    %868 = vector.shape_cast %867 : vector<1x1x32xf32> to vector<1x32xf32>
    %cst_459 = arith.constant dense<0.000000e+00> : vector<6xf32>
    %869 = vector.multi_reduction <add>, %864, %cst_459 [1] : vector<6x32xf32> to vector<6xf32>
    %870 = vector.shape_cast %869 : vector<6xf32> to vector<6x1xf32>
    %cst_460 = arith.constant 3.200000e+01 : f32
    %871 = vector.broadcast %cst_460 : f32 to vector<6x1xf32>
    %872 = arith.divf %870, %871 : vector<6x1xf32>
    %873 = vector.broadcast %872 : vector<6x1xf32> to vector<6x32xf32>
    %874 = arith.subf %864, %873 : vector<6x32xf32>
    %875 = arith.mulf %874, %874 : vector<6x32xf32>
    %cst_461 = arith.constant dense<0.000000e+00> : vector<6xf32>
    %876 = vector.multi_reduction <add>, %875, %cst_461 [1] : vector<6x32xf32> to vector<6xf32>
    %877 = vector.shape_cast %876 : vector<6xf32> to vector<6x1xf32>
    %cst_462 = arith.constant 3.200000e+01 : f32
    %878 = vector.broadcast %cst_462 : f32 to vector<6x1xf32>
    %879 = arith.divf %877, %878 : vector<6x1xf32>
    %880 = vector.broadcast %872 : vector<6x1xf32> to vector<6x32xf32>
    %881 = arith.subf %864, %880 : vector<6x32xf32>
    %cst_463 = arith.constant 9.99999996E-13 : f32
    %882 = vector.broadcast %cst_463 : f32 to vector<6x1xf32>
    %883 = arith.addf %879, %882 : vector<6x1xf32>
    %884 = math.rsqrt %883 : vector<6x1xf32>
    %885 = vector.broadcast %884 : vector<6x1xf32> to vector<6x32xf32>
    %886 = arith.mulf %881, %885 : vector<6x32xf32>
    %887 = vector.broadcast %866 : vector<1x32xf32> to vector<6x32xf32>
    %888 = arith.mulf %886, %887 : vector<6x32xf32>
    %889 = vector.broadcast %868 : vector<1x32xf32> to vector<6x32xf32>
    %890 = arith.addf %888, %889 : vector<6x32xf32>
    %891 = vector.broadcast %391 : vector<6x1xf32> to vector<6x32xf32>
    %892 = arith.mulf %890, %891 : vector<6x32xf32>
    %c0_464 = arith.constant 0 : index
    %c2_465 = arith.constant 2 : index
    %c0_466 = arith.constant 0 : index
    %c0_467 = arith.constant 0 : index
    %893 = vector.load %arg10[%c0_464, %c2_465, %c0_466, %c0_467] : memref<1x3x6x1xf32, #tpu.memory_space<vmem>>, vector<1x1x6x1xf32>
    %894 = vector.shape_cast %893 : vector<1x1x6x1xf32> to vector<6x1xf32>
    %895 = vector.broadcast %894 : vector<6x1xf32> to vector<6x32xf32>
    %896 = arith.mulf %895, %892 : vector<6x32xf32>
    %cst_468 = arith.constant 1.000000e+00 : f32
    %897 = vector.broadcast %cst_468 : f32 to vector<6x1xf32>
    %898 = arith.subf %897, %894 : vector<6x1xf32>
    %899 = vector.broadcast %898 : vector<6x1xf32> to vector<6x32xf32>
    %900 = arith.mulf %899, %750 : vector<6x32xf32>
    %901 = arith.addf %896, %900 : vector<6x32xf32>
    %c6 = arith.constant 6 : index
    %c0_469 = arith.constant 0 : index
    %c0_470 = arith.constant 0 : index
    %902 = vector.load %arg11[%c6, %c0_469, %c0_470] : memref<8x32x32xf32, #tpu.memory_space<vmem>>, vector<1x32x32xf32>
    %903 = vector.shape_cast %902 : vector<1x32x32xf32> to vector<32x32xf32>
    %cst_471 = arith.constant dense<0.000000e+00> : vector<6x32xf32>
    %904 = tpu.matmul %901, %903, %cst_471 {dimension_numbers = #tpu.dot_dimension_numbers<[1], [0], [0], [1], [0, 0, 1, 1], [], []>} : vector<6x32xf32>, vector<32x32xf32>, vector<6x32xf32> -> vector<6x32xf32>
    %c6_472 = arith.constant 6 : index
    %c0_473 = arith.constant 0 : index
    %c0_474 = arith.constant 0 : index
    %905 = vector.load %arg12[%c6_472, %c0_473, %c0_474] : memref<8x1x32xf32, #tpu.memory_space<vmem>>, vector<1x1x32xf32>
    %906 = vector.shape_cast %905 : vector<1x1x32xf32> to vector<1x32xf32>
    %907 = vector.broadcast %906 : vector<1x32xf32> to vector<6x32xf32>
    %908 = arith.addf %904, %907 : vector<6x32xf32>
    %c6_475 = arith.constant 6 : index
    %c0_476 = arith.constant 0 : index
    %c0_477 = arith.constant 0 : index
    %909 = vector.load %arg13[%c6_475, %c0_476, %c0_477] : memref<8x32x64xf32, #tpu.memory_space<vmem>>, vector<1x32x64xf32>
    %910 = vector.shape_cast %909 : vector<1x32x64xf32> to vector<32x64xf32>
    %cst_478 = arith.constant dense<0.000000e+00> : vector<8x64xf32>
    %911 = tpu.matmul %382, %910, %cst_478 {dimension_numbers = #tpu.dot_dimension_numbers<[1], [0], [0], [1], [0, 0, 1, 1], [], []>} : vector<8x32xf32>, vector<32x64xf32>, vector<8x64xf32> -> vector<8x64xf32>
    %c6_479 = arith.constant 6 : index
    %c0_480 = arith.constant 0 : index
    %c0_481 = arith.constant 0 : index
    %912 = vector.load %arg14[%c6_479, %c0_480, %c0_481] : memref<8x1x64xf32, #tpu.memory_space<vmem>>, vector<1x1x64xf32>
    %913 = vector.shape_cast %912 : vector<1x1x64xf32> to vector<1x64xf32>
    %914 = vector.broadcast %913 : vector<1x64xf32> to vector<8x64xf32>
    %915 = arith.addf %911, %914 : vector<8x64xf32>
    %916 = vector.extract_strided_slice %915 {offsets = [0, 0], sizes = [8, 32], strides = [1, 1]} : vector<8x64xf32> to vector<8x32xf32>
    %917 = vector.extract_strided_slice %915 {offsets = [0, 32], sizes = [8, 32], strides = [1, 1]} : vector<8x64xf32> to vector<8x32xf32>
    %cst_482 = arith.constant dense<0.000000e+00> : vector<24x32xf32>
    %918 = tpu.matmul %428, %908, %cst_482 {dimension_numbers = #tpu.dot_dimension_numbers<[1], [0], [0], [1], [0, 0, 1, 1], [], []>} : vector<24x6xf32>, vector<6x32xf32>, vector<24x32xf32> -> vector<24x32xf32>
    %919 = arith.mulf %918, %423 : vector<24x32xf32>
    %cst_483 = arith.constant dense<0.000000e+00> : vector<24x8xf32>
    %920 = tpu.matmul %919, %916, %cst_483 {dimension_numbers = #tpu.dot_dimension_numbers<[1], [1], [0], [0], [0, 0, 1, 0], [], []>} : vector<24x32xf32>, vector<8x32xf32>, vector<24x8xf32> -> vector<24x8xf32>
    %cst_484 = arith.constant 0.353553385 : f32
    %921 = vector.broadcast %cst_484 : f32 to vector<24x8xf32>
    %922 = arith.mulf %920, %921 : vector<24x8xf32>
    %cst_485 = arith.constant dense<0xFF800000> : vector<24xf32>
    %923 = vector.multi_reduction <maximumf>, %922, %cst_485 [1] : vector<24x8xf32> to vector<24xf32>
    %924 = vector.shape_cast %923 : vector<24xf32> to vector<24x1xf32>
    %925 = vector.broadcast %924 : vector<24x1xf32> to vector<24x8xf32>
    %926 = arith.subf %922, %925 : vector<24x8xf32>
    %927 = math.exp %926 : vector<24x8xf32>
    %cst_486 = arith.constant dense<0.000000e+00> : vector<24xf32>
    %928 = vector.multi_reduction <add>, %927, %cst_486 [1] : vector<24x8xf32> to vector<24xf32>
    %929 = vector.shape_cast %928 : vector<24xf32> to vector<24x1xf32>
    %930 = tpu.reciprocal %929 {approx = true} : vector<24x1xf32> -> vector<24x1xf32>
    %931 = vector.broadcast %930 : vector<24x1xf32> to vector<24x8xf32>
    %932 = arith.mulf %927, %931 : vector<24x8xf32>
    %cst_487 = arith.constant dense<0.000000e+00> : vector<24x32xf32>
    %933 = tpu.matmul %932, %917, %cst_487 {dimension_numbers = #tpu.dot_dimension_numbers<[1], [0], [0], [1], [0, 0, 1, 1], [], []>} : vector<24x8xf32>, vector<8x32xf32>, vector<24x32xf32> -> vector<24x32xf32>
    %934 = arith.mulf %933, %423 : vector<24x32xf32>
    %cst_488 = arith.constant dense<0.000000e+00> : vector<6x32xf32>
    %935 = tpu.matmul %448, %934, %cst_488 {dimension_numbers = #tpu.dot_dimension_numbers<[1], [0], [0], [1], [0, 0, 1, 1], [], []>} : vector<6x24xf32>, vector<24x32xf32>, vector<6x32xf32> -> vector<6x32xf32>
    %c6_489 = arith.constant 6 : index
    %c0_490 = arith.constant 0 : index
    %c0_491 = arith.constant 0 : index
    %936 = vector.load %arg15[%c6_489, %c0_490, %c0_491] : memref<8x32x32xf32, #tpu.memory_space<vmem>>, vector<1x32x32xf32>
    %937 = vector.shape_cast %936 : vector<1x32x32xf32> to vector<32x32xf32>
    %cst_492 = arith.constant dense<0.000000e+00> : vector<6x32xf32>
    %938 = tpu.matmul %935, %937, %cst_492 {dimension_numbers = #tpu.dot_dimension_numbers<[1], [0], [0], [1], [0, 0, 1, 1], [], []>} : vector<6x32xf32>, vector<32x32xf32>, vector<6x32xf32> -> vector<6x32xf32>
    %c6_493 = arith.constant 6 : index
    %c0_494 = arith.constant 0 : index
    %c0_495 = arith.constant 0 : index
    %939 = vector.load %arg16[%c6_493, %c0_494, %c0_495] : memref<8x1x32xf32, #tpu.memory_space<vmem>>, vector<1x1x32xf32>
    %940 = vector.shape_cast %939 : vector<1x1x32xf32> to vector<1x32xf32>
    %941 = vector.broadcast %940 : vector<1x32xf32> to vector<6x32xf32>
    %942 = arith.addf %938, %941 : vector<6x32xf32>
    %943 = arith.addf %942, %901 : vector<6x32xf32>
    %c6_496 = arith.constant 6 : index
    %c0_497 = arith.constant 0 : index
    %c0_498 = arith.constant 0 : index
    %944 = vector.load %arg17[%c6_496, %c0_497, %c0_498] : memref<8x1x32xf32, #tpu.memory_space<vmem>>, vector<1x1x32xf32>
    %945 = vector.shape_cast %944 : vector<1x1x32xf32> to vector<1x32xf32>
    %c6_499 = arith.constant 6 : index
    %c0_500 = arith.constant 0 : index
    %c0_501 = arith.constant 0 : index
    %946 = vector.load %arg18[%c6_499, %c0_500, %c0_501] : memref<8x1x32xf32, #tpu.memory_space<vmem>>, vector<1x1x32xf32>
    %947 = vector.shape_cast %946 : vector<1x1x32xf32> to vector<1x32xf32>
    %cst_502 = arith.constant dense<0.000000e+00> : vector<6xf32>
    %948 = vector.multi_reduction <add>, %943, %cst_502 [1] : vector<6x32xf32> to vector<6xf32>
    %949 = vector.shape_cast %948 : vector<6xf32> to vector<6x1xf32>
    %cst_503 = arith.constant 3.200000e+01 : f32
    %950 = vector.broadcast %cst_503 : f32 to vector<6x1xf32>
    %951 = arith.divf %949, %950 : vector<6x1xf32>
    %952 = vector.broadcast %951 : vector<6x1xf32> to vector<6x32xf32>
    %953 = arith.subf %943, %952 : vector<6x32xf32>
    %954 = arith.mulf %953, %953 : vector<6x32xf32>
    %cst_504 = arith.constant dense<0.000000e+00> : vector<6xf32>
    %955 = vector.multi_reduction <add>, %954, %cst_504 [1] : vector<6x32xf32> to vector<6xf32>
    %956 = vector.shape_cast %955 : vector<6xf32> to vector<6x1xf32>
    %cst_505 = arith.constant 3.200000e+01 : f32
    %957 = vector.broadcast %cst_505 : f32 to vector<6x1xf32>
    %958 = arith.divf %956, %957 : vector<6x1xf32>
    %959 = vector.broadcast %951 : vector<6x1xf32> to vector<6x32xf32>
    %960 = arith.subf %943, %959 : vector<6x32xf32>
    %cst_506 = arith.constant 9.99999996E-13 : f32
    %961 = vector.broadcast %cst_506 : f32 to vector<6x1xf32>
    %962 = arith.addf %958, %961 : vector<6x1xf32>
    %963 = math.rsqrt %962 : vector<6x1xf32>
    %964 = vector.broadcast %963 : vector<6x1xf32> to vector<6x32xf32>
    %965 = arith.mulf %960, %964 : vector<6x32xf32>
    %966 = vector.broadcast %945 : vector<1x32xf32> to vector<6x32xf32>
    %967 = arith.mulf %965, %966 : vector<6x32xf32>
    %968 = vector.broadcast %947 : vector<1x32xf32> to vector<6x32xf32>
    %969 = arith.addf %967, %968 : vector<6x32xf32>
    %c7 = arith.constant 7 : index
    %c0_507 = arith.constant 0 : index
    %c0_508 = arith.constant 0 : index
    %970 = vector.load %arg11[%c7, %c0_507, %c0_508] : memref<8x32x32xf32, #tpu.memory_space<vmem>>, vector<1x32x32xf32>
    %971 = vector.shape_cast %970 : vector<1x32x32xf32> to vector<32x32xf32>
    %cst_509 = arith.constant dense<0.000000e+00> : vector<6x32xf32>
    %972 = tpu.matmul %969, %971, %cst_509 {dimension_numbers = #tpu.dot_dimension_numbers<[1], [0], [0], [1], [0, 0, 1, 1], [], []>} : vector<6x32xf32>, vector<32x32xf32>, vector<6x32xf32> -> vector<6x32xf32>
    %c7_510 = arith.constant 7 : index
    %c0_511 = arith.constant 0 : index
    %c0_512 = arith.constant 0 : index
    %973 = vector.load %arg12[%c7_510, %c0_511, %c0_512] : memref<8x1x32xf32, #tpu.memory_space<vmem>>, vector<1x1x32xf32>
    %974 = vector.shape_cast %973 : vector<1x1x32xf32> to vector<1x32xf32>
    %975 = vector.broadcast %974 : vector<1x32xf32> to vector<6x32xf32>
    %976 = arith.addf %972, %975 : vector<6x32xf32>
    %c7_513 = arith.constant 7 : index
    %c0_514 = arith.constant 0 : index
    %c0_515 = arith.constant 0 : index
    %977 = vector.load %arg13[%c7_513, %c0_514, %c0_515] : memref<8x32x64xf32, #tpu.memory_space<vmem>>, vector<1x32x64xf32>
    %978 = vector.shape_cast %977 : vector<1x32x64xf32> to vector<32x64xf32>
    %cst_516 = arith.constant dense<0.000000e+00> : vector<8x64xf32>
    %979 = tpu.matmul %382, %978, %cst_516 {dimension_numbers = #tpu.dot_dimension_numbers<[1], [0], [0], [1], [0, 0, 1, 1], [], []>} : vector<8x32xf32>, vector<32x64xf32>, vector<8x64xf32> -> vector<8x64xf32>
    %c7_517 = arith.constant 7 : index
    %c0_518 = arith.constant 0 : index
    %c0_519 = arith.constant 0 : index
    %980 = vector.load %arg14[%c7_517, %c0_518, %c0_519] : memref<8x1x64xf32, #tpu.memory_space<vmem>>, vector<1x1x64xf32>
    %981 = vector.shape_cast %980 : vector<1x1x64xf32> to vector<1x64xf32>
    %982 = vector.broadcast %981 : vector<1x64xf32> to vector<8x64xf32>
    %983 = arith.addf %979, %982 : vector<8x64xf32>
    %984 = vector.extract_strided_slice %983 {offsets = [0, 0], sizes = [8, 32], strides = [1, 1]} : vector<8x64xf32> to vector<8x32xf32>
    %985 = vector.extract_strided_slice %983 {offsets = [0, 32], sizes = [8, 32], strides = [1, 1]} : vector<8x64xf32> to vector<8x32xf32>
    %cst_520 = arith.constant dense<0.000000e+00> : vector<24x32xf32>
    %986 = tpu.matmul %428, %976, %cst_520 {dimension_numbers = #tpu.dot_dimension_numbers<[1], [0], [0], [1], [0, 0, 1, 1], [], []>} : vector<24x6xf32>, vector<6x32xf32>, vector<24x32xf32> -> vector<24x32xf32>
    %987 = arith.mulf %986, %423 : vector<24x32xf32>
    %cst_521 = arith.constant dense<0.000000e+00> : vector<24x8xf32>
    %988 = tpu.matmul %987, %984, %cst_521 {dimension_numbers = #tpu.dot_dimension_numbers<[1], [1], [0], [0], [0, 0, 1, 0], [], []>} : vector<24x32xf32>, vector<8x32xf32>, vector<24x8xf32> -> vector<24x8xf32>
    %cst_522 = arith.constant 0.353553385 : f32
    %989 = vector.broadcast %cst_522 : f32 to vector<24x8xf32>
    %990 = arith.mulf %988, %989 : vector<24x8xf32>
    %cst_523 = arith.constant dense<0xFF800000> : vector<24xf32>
    %991 = vector.multi_reduction <maximumf>, %990, %cst_523 [1] : vector<24x8xf32> to vector<24xf32>
    %992 = vector.shape_cast %991 : vector<24xf32> to vector<24x1xf32>
    %993 = vector.broadcast %992 : vector<24x1xf32> to vector<24x8xf32>
    %994 = arith.subf %990, %993 : vector<24x8xf32>
    %995 = math.exp %994 : vector<24x8xf32>
    %cst_524 = arith.constant dense<0.000000e+00> : vector<24xf32>
    %996 = vector.multi_reduction <add>, %995, %cst_524 [1] : vector<24x8xf32> to vector<24xf32>
    %997 = vector.shape_cast %996 : vector<24xf32> to vector<24x1xf32>
    %998 = tpu.reciprocal %997 {approx = true} : vector<24x1xf32> -> vector<24x1xf32>
    %999 = vector.broadcast %998 : vector<24x1xf32> to vector<24x8xf32>
    %1000 = arith.mulf %995, %999 : vector<24x8xf32>
    %cst_525 = arith.constant dense<0.000000e+00> : vector<24x32xf32>
    %1001 = tpu.matmul %1000, %985, %cst_525 {dimension_numbers = #tpu.dot_dimension_numbers<[1], [0], [0], [1], [0, 0, 1, 1], [], []>} : vector<24x8xf32>, vector<8x32xf32>, vector<24x32xf32> -> vector<24x32xf32>
    %1002 = arith.mulf %1001, %423 : vector<24x32xf32>
    %cst_526 = arith.constant dense<0.000000e+00> : vector<6x32xf32>
    %1003 = tpu.matmul %448, %1002, %cst_526 {dimension_numbers = #tpu.dot_dimension_numbers<[1], [0], [0], [1], [0, 0, 1, 1], [], []>} : vector<6x24xf32>, vector<24x32xf32>, vector<6x32xf32> -> vector<6x32xf32>
    %c7_527 = arith.constant 7 : index
    %c0_528 = arith.constant 0 : index
    %c0_529 = arith.constant 0 : index
    %1004 = vector.load %arg15[%c7_527, %c0_528, %c0_529] : memref<8x32x32xf32, #tpu.memory_space<vmem>>, vector<1x32x32xf32>
    %1005 = vector.shape_cast %1004 : vector<1x32x32xf32> to vector<32x32xf32>
    %cst_530 = arith.constant dense<0.000000e+00> : vector<6x32xf32>
    %1006 = tpu.matmul %1003, %1005, %cst_530 {dimension_numbers = #tpu.dot_dimension_numbers<[1], [0], [0], [1], [0, 0, 1, 1], [], []>} : vector<6x32xf32>, vector<32x32xf32>, vector<6x32xf32> -> vector<6x32xf32>
    %c7_531 = arith.constant 7 : index
    %c0_532 = arith.constant 0 : index
    %c0_533 = arith.constant 0 : index
    %1007 = vector.load %arg16[%c7_531, %c0_532, %c0_533] : memref<8x1x32xf32, #tpu.memory_space<vmem>>, vector<1x1x32xf32>
    %1008 = vector.shape_cast %1007 : vector<1x1x32xf32> to vector<1x32xf32>
    %1009 = vector.broadcast %1008 : vector<1x32xf32> to vector<6x32xf32>
    %1010 = arith.addf %1006, %1009 : vector<6x32xf32>
    %1011 = arith.addf %1010, %969 : vector<6x32xf32>
    %c7_534 = arith.constant 7 : index
    %c0_535 = arith.constant 0 : index
    %c0_536 = arith.constant 0 : index
    %1012 = vector.load %arg17[%c7_534, %c0_535, %c0_536] : memref<8x1x32xf32, #tpu.memory_space<vmem>>, vector<1x1x32xf32>
    %1013 = vector.shape_cast %1012 : vector<1x1x32xf32> to vector<1x32xf32>
    %c7_537 = arith.constant 7 : index
    %c0_538 = arith.constant 0 : index
    %c0_539 = arith.constant 0 : index
    %1014 = vector.load %arg18[%c7_537, %c0_538, %c0_539] : memref<8x1x32xf32, #tpu.memory_space<vmem>>, vector<1x1x32xf32>
    %1015 = vector.shape_cast %1014 : vector<1x1x32xf32> to vector<1x32xf32>
    %cst_540 = arith.constant dense<0.000000e+00> : vector<6xf32>
    %1016 = vector.multi_reduction <add>, %1011, %cst_540 [1] : vector<6x32xf32> to vector<6xf32>
    %1017 = vector.shape_cast %1016 : vector<6xf32> to vector<6x1xf32>
    %cst_541 = arith.constant 3.200000e+01 : f32
    %1018 = vector.broadcast %cst_541 : f32 to vector<6x1xf32>
    %1019 = arith.divf %1017, %1018 : vector<6x1xf32>
    %1020 = vector.broadcast %1019 : vector<6x1xf32> to vector<6x32xf32>
    %1021 = arith.subf %1011, %1020 : vector<6x32xf32>
    %1022 = arith.mulf %1021, %1021 : vector<6x32xf32>
    %cst_542 = arith.constant dense<0.000000e+00> : vector<6xf32>
    %1023 = vector.multi_reduction <add>, %1022, %cst_542 [1] : vector<6x32xf32> to vector<6xf32>
    %1024 = vector.shape_cast %1023 : vector<6xf32> to vector<6x1xf32>
    %cst_543 = arith.constant 3.200000e+01 : f32
    %1025 = vector.broadcast %cst_543 : f32 to vector<6x1xf32>
    %1026 = arith.divf %1024, %1025 : vector<6x1xf32>
    %1027 = vector.broadcast %1019 : vector<6x1xf32> to vector<6x32xf32>
    %1028 = arith.subf %1011, %1027 : vector<6x32xf32>
    %cst_544 = arith.constant 9.99999996E-13 : f32
    %1029 = vector.broadcast %cst_544 : f32 to vector<6x1xf32>
    %1030 = arith.addf %1026, %1029 : vector<6x1xf32>
    %1031 = math.rsqrt %1030 : vector<6x1xf32>
    %1032 = vector.broadcast %1031 : vector<6x1xf32> to vector<6x32xf32>
    %1033 = arith.mulf %1028, %1032 : vector<6x32xf32>
    %1034 = vector.broadcast %1013 : vector<1x32xf32> to vector<6x32xf32>
    %1035 = arith.mulf %1033, %1034 : vector<6x32xf32>
    %1036 = vector.broadcast %1015 : vector<1x32xf32> to vector<6x32xf32>
    %1037 = arith.addf %1035, %1036 : vector<6x32xf32>
    %c0_545 = arith.constant 0 : index
    %c0_546 = arith.constant 0 : index
    %1038 = vector.load %arg25[%c0_545, %c0_546] : memref<32x16xf32, #tpu.memory_space<vmem>>, vector<32x16xf32>
    %cst_547 = arith.constant dense<0.000000e+00> : vector<6x16xf32>
    %1039 = tpu.matmul %1037, %1038, %cst_547 {dimension_numbers = #tpu.dot_dimension_numbers<[1], [0], [0], [1], [0, 0, 1, 1], [], []>} : vector<6x32xf32>, vector<32x16xf32>, vector<6x16xf32> -> vector<6x16xf32>
    %c0_548 = arith.constant 0 : index
    %c0_549 = arith.constant 0 : index
    %1040 = vector.load %arg26[%c0_548, %c0_549] : memref<1x16xf32, #tpu.memory_space<vmem>>, vector<1x16xf32>
    %1041 = vector.broadcast %1040 : vector<1x16xf32> to vector<6x16xf32>
    %1042 = arith.addf %1039, %1041 : vector<6x16xf32>
    %c0_550 = arith.constant 0 : index
    %c0_551 = arith.constant 0 : index
    %c0_552 = arith.constant 0 : index
    %1043 = vector.load %arg29[%c0_550, %c0_551, %c0_552] : memref<1x6x16xf32, #tpu.memory_space<vmem>>, vector<1x6x16xf32>
    %1044 = vector.shape_cast %1043 : vector<1x6x16xf32> to vector<6x16xf32>
    %1045 = vector.shape_cast %1042 : vector<6x16xf32> to vector<1x6x16xf32>
    tpu.vector_store %arg29[%c0_550, %c0_551, %c0_552], %1045 {strides = array<i32>} : memref<1x6x16xf32, #tpu.memory_space<vmem>>, vector<1x6x16xf32>,
    %1046 = arith.index_cast %arg0 : i32 to index
    %1047 = memref.load %arg1[%1046] : memref<2xi32, #tpu.memory_space<smem>>
    %1048 = tpu.iota {dimensions = array<i32: 1>} : vector<1x6xi32>
    %1049 = vector.broadcast %1047 : i32 to vector<1x6xi32>
    %1050 = arith.cmpi eq, %1048, %1049 : vector<1x6xi32>
    %1051 = arith.extui %1050 : vector<1x6xi1> to vector<1x6xi32>
    %1052 = arith.sitofp %1051 : vector<1x6xi32> to vector<1x6xf32>
    %cst_553 = arith.constant dense<0.000000e+00> : vector<1x32xf32>
    %1053 = tpu.matmul %1052, %1037, %cst_553 {dimension_numbers = #tpu.dot_dimension_numbers<[1], [0], [0], [1], [0, 0, 1, 1], [], []>} : vector<1x6xf32>, vector<6x32xf32>, vector<1x32xf32> -> vector<1x32xf32>
    %c0_554 = arith.constant 0 : index
    %c0_555 = arith.constant 0 : index
    %1054 = vector.load %arg27[%c0_554, %c0_555] : memref<32x10xf32, #tpu.memory_space<vmem>>, vector<32x10xf32>
    %cst_556 = arith.constant dense<0.000000e+00> : vector<1x10xf32>
    %1055 = tpu.matmul %1053, %1054, %cst_556 {dimension_numbers = #tpu.dot_dimension_numbers<[1], [0], [0], [1], [0, 0, 1, 1], [], []>} : vector<1x32xf32>, vector<32x10xf32>, vector<1x10xf32> -> vector<1x10xf32>
    %c0_557 = arith.constant 0 : index
    %c0_558 = arith.constant 0 : index
    %1056 = vector.load %arg28[%c0_557, %c0_558] : memref<1x10xf32, #tpu.memory_space<vmem>>, vector<1x10xf32>
    %1057 = arith.addf %1055, %1056 : vector<1x10xf32>
    %c0_559 = arith.constant 0 : index
    %c0_560 = arith.constant 0 : index
    %c0_561 = arith.constant 0 : index
    %1058 = vector.load %arg30[%c0_559, %c0_560, %c0_561] : memref<1x1x10xf32, #tpu.memory_space<vmem>>, vector<1x1x10xf32>
    %1059 = vector.shape_cast %1058 : vector<1x1x10xf32> to vector<1x10xf32>
    %1060 = vector.shape_cast %1057 : vector<1x10xf32> to vector<1x1x10xf32>
    tpu.vector_store %arg30[%c0_559, %c0_560, %c0_561], %1060 {strides = array<i32>} : memref<1x1x10xf32, #tpu.memory_space<vmem>>, vector<1x1x10xf32>,
    return
  }
  func.func @transform_0(%arg0: i32, %arg1: memref<2xi32, #tpu.memory_space<smem>>) -> (i32, i32, i32) {
    %c0_i32 = arith.constant 0 : i32
    %c0_i32_0 = arith.constant 0 : i32
    %c0_i32_1 = arith.constant 0 : i32
    return %arg0, %c0_i32, %c0_i32_0 : i32, i32, i32
  }
  func.func @transform_1(%arg0: i32, %arg1: memref<2xi32, #tpu.memory_space<smem>>) -> (i32, i32, i32) {
    %c0_i32 = arith.constant 0 : i32
    %c0_i32_0 = arith.constant 0 : i32
    %c0_i32_1 = arith.constant 0 : i32
    return %arg0, %c0_i32, %c0_i32_0 : i32, i32, i32
  }
  func.func @transform_2(%arg0: i32, %arg1: memref<2xi32, #tpu.memory_space<smem>>) -> (i32, i32, i32) {
    %c0_i32 = arith.constant 0 : i32
    %c0_i32_0 = arith.constant 0 : i32
    %c0_i32_1 = arith.constant 0 : i32
    return %arg0, %c0_i32, %c0_i32_0 : i32, i32, i32
  }
  func.func @transform_3(%arg0: i32, %arg1: memref<2xi32, #tpu.memory_space<smem>>) -> (i32, i32, i32) {
    %c0_i32 = arith.constant 0 : i32
    %c0_i32_0 = arith.constant 0 : i32
    %c0_i32_1 = arith.constant 0 : i32
    return %arg0, %c0_i32, %c0_i32_0 : i32, i32, i32
  }
  func.func @transform_4(%arg0: i32, %arg1: memref<2xi32, #tpu.memory_space<smem>>) -> (i32, i32, i32) {
    %c0_i32 = arith.constant 0 : i32
    %c0_i32_0 = arith.constant 0 : i32
    %c0_i32_1 = arith.constant 0 : i32
    return %arg0, %c0_i32, %c0_i32_0 : i32, i32, i32
  }
  func.func @transform_5(%arg0: i32, %arg1: memref<2xi32, #tpu.memory_space<smem>>) -> (i32, i32, i32) {
    %c0_i32 = arith.constant 0 : i32
    %c0_i32_0 = arith.constant 0 : i32
    %c0_i32_1 = arith.constant 0 : i32
    return %arg0, %c0_i32, %c0_i32_0 : i32, i32, i32
  }
  func.func @transform_6(%arg0: i32, %arg1: memref<2xi32, #tpu.memory_space<smem>>) -> (i32, i32, i32) {
    %c0_i32 = arith.constant 0 : i32
    %c0_i32_0 = arith.constant 0 : i32
    %c0_i32_1 = arith.constant 0 : i32
    return %arg0, %c0_i32, %c0_i32_0 : i32, i32, i32
  }
  func.func @transform_7(%arg0: i32, %arg1: memref<2xi32, #tpu.memory_space<smem>>) -> (i32, i32, i32, i32) {
    %c0_i32 = arith.constant 0 : i32
    %c0_i32_0 = arith.constant 0 : i32
    %c0_i32_1 = arith.constant 0 : i32
    %c0_i32_2 = arith.constant 0 : i32
    return %arg0, %c0_i32, %c0_i32_0, %c0_i32_1 : i32, i32, i32, i32
  }
  func.func @transform_8(%arg0: i32, %arg1: memref<2xi32, #tpu.memory_space<smem>>) -> (i32, i32, i32, i32) {
    %c0_i32 = arith.constant 0 : i32
    %c0_i32_0 = arith.constant 0 : i32
    %c0_i32_1 = arith.constant 0 : i32
    %c0_i32_2 = arith.constant 0 : i32
    return %arg0, %c0_i32, %c0_i32_0, %c0_i32_1 : i32, i32, i32, i32
  }
  func.func @transform_9(%arg0: i32, %arg1: memref<2xi32, #tpu.memory_space<smem>>) -> (i32, i32, i32) {
    %c0_i32 = arith.constant 0 : i32
    %c0_i32_0 = arith.constant 0 : i32
    %c0_i32_1 = arith.constant 0 : i32
    %c0_i32_2 = arith.constant 0 : i32
    return %c0_i32, %c0_i32_0, %c0_i32_1 : i32, i32, i32
  }
  func.func @transform_10(%arg0: i32, %arg1: memref<2xi32, #tpu.memory_space<smem>>) -> (i32, i32, i32) {
    %c0_i32 = arith.constant 0 : i32
    %c0_i32_0 = arith.constant 0 : i32
    %c0_i32_1 = arith.constant 0 : i32
    %c0_i32_2 = arith.constant 0 : i32
    return %c0_i32, %c0_i32_0, %c0_i32_1 : i32, i32, i32
  }
  func.func @transform_11(%arg0: i32, %arg1: memref<2xi32, #tpu.memory_space<smem>>) -> (i32, i32, i32) {
    %c0_i32 = arith.constant 0 : i32
    %c0_i32_0 = arith.constant 0 : i32
    %c0_i32_1 = arith.constant 0 : i32
    %c0_i32_2 = arith.constant 0 : i32
    return %c0_i32, %c0_i32_0, %c0_i32_1 : i32, i32, i32
  }
  func.func @transform_12(%arg0: i32, %arg1: memref<2xi32, #tpu.memory_space<smem>>) -> (i32, i32, i32) {
    %c0_i32 = arith.constant 0 : i32
    %c0_i32_0 = arith.constant 0 : i32
    %c0_i32_1 = arith.constant 0 : i32
    %c0_i32_2 = arith.constant 0 : i32
    return %c0_i32, %c0_i32_0, %c0_i32_1 : i32, i32, i32
  }
  func.func @transform_13(%arg0: i32, %arg1: memref<2xi32, #tpu.memory_space<smem>>) -> (i32, i32, i32) {
    %c0_i32 = arith.constant 0 : i32
    %c0_i32_0 = arith.constant 0 : i32
    %c0_i32_1 = arith.constant 0 : i32
    %c0_i32_2 = arith.constant 0 : i32
    return %c0_i32, %c0_i32_0, %c0_i32_1 : i32, i32, i32
  }
  func.func @transform_14(%arg0: i32, %arg1: memref<2xi32, #tpu.memory_space<smem>>) -> (i32, i32, i32) {
    %c0_i32 = arith.constant 0 : i32
    %c0_i32_0 = arith.constant 0 : i32
    %c0_i32_1 = arith.constant 0 : i32
    %c0_i32_2 = arith.constant 0 : i32
    return %c0_i32, %c0_i32_0, %c0_i32_1 : i32, i32, i32
  }
  func.func @transform_15(%arg0: i32, %arg1: memref<2xi32, #tpu.memory_space<smem>>) -> (i32, i32, i32) {
    %c0_i32 = arith.constant 0 : i32
    %c0_i32_0 = arith.constant 0 : i32
    %c0_i32_1 = arith.constant 0 : i32
    %c0_i32_2 = arith.constant 0 : i32
    return %c0_i32, %c0_i32_0, %c0_i32_1 : i32, i32, i32
  }
  func.func @transform_16(%arg0: i32, %arg1: memref<2xi32, #tpu.memory_space<smem>>) -> (i32, i32, i32) {
    %c0_i32 = arith.constant 0 : i32
    %c0_i32_0 = arith.constant 0 : i32
    %c0_i32_1 = arith.constant 0 : i32
    %c0_i32_2 = arith.constant 0 : i32
    return %c0_i32, %c0_i32_0, %c0_i32_1 : i32, i32, i32
  }
  func.func @transform_17(%arg0: i32, %arg1: memref<2xi32, #tpu.memory_space<smem>>) -> (i32, i32) {
    %c0_i32 = arith.constant 0 : i32
    %c0_i32_0 = arith.constant 0 : i32
    %c0_i32_1 = arith.constant 0 : i32
    return %c0_i32, %c0_i32_0 : i32, i32
  }
  func.func @transform_18(%arg0: i32, %arg1: memref<2xi32, #tpu.memory_space<smem>>) -> (i32, i32) {
    %c0_i32 = arith.constant 0 : i32
    %c0_i32_0 = arith.constant 0 : i32
    %c0_i32_1 = arith.constant 0 : i32
    return %c0_i32, %c0_i32_0 : i32, i32
  }
  func.func @transform_19(%arg0: i32, %arg1: memref<2xi32, #tpu.memory_space<smem>>) -> (i32, i32) {
    %c0_i32 = arith.constant 0 : i32
    %c0_i32_0 = arith.constant 0 : i32
    %c0_i32_1 = arith.constant 0 : i32
    return %c0_i32, %c0_i32_0 : i32, i32
  }
  func.func @transform_20(%arg0: i32, %arg1: memref<2xi32, #tpu.memory_space<smem>>) -> (i32, i32) {
    %c0_i32 = arith.constant 0 : i32
    %c0_i32_0 = arith.constant 0 : i32
    %c0_i32_1 = arith.constant 0 : i32
    return %c0_i32, %c0_i32_0 : i32, i32
  }
  func.func @transform_21(%arg0: i32, %arg1: memref<2xi32, #tpu.memory_space<smem>>) -> (i32, i32) {
    %c0_i32 = arith.constant 0 : i32
    %c0_i32_0 = arith.constant 0 : i32
    %c0_i32_1 = arith.constant 0 : i32
    return %c0_i32, %c0_i32_0 : i32, i32
  }
  func.func @transform_22(%arg0: i32, %arg1: memref<2xi32, #tpu.memory_space<smem>>) -> (i32, i32) {
    %c0_i32 = arith.constant 0 : i32
    %c0_i32_0 = arith.constant 0 : i32
    %c0_i32_1 = arith.constant 0 : i32
    return %c0_i32, %c0_i32_0 : i32, i32
  }
  func.func @transform_23(%arg0: i32, %arg1: memref<2xi32, #tpu.memory_space<smem>>) -> (i32, i32) {
    %c0_i32 = arith.constant 0 : i32
    %c0_i32_0 = arith.constant 0 : i32
    %c0_i32_1 = arith.constant 0 : i32
    return %c0_i32, %c0_i32_0 : i32, i32
  }
  func.func @transform_24(%arg0: i32, %arg1: memref<2xi32, #tpu.memory_space<smem>>) -> (i32, i32) {
    %c0_i32 = arith.constant 0 : i32
    %c0_i32_0 = arith.constant 0 : i32
    %c0_i32_1 = arith.constant 0 : i32
    return %c0_i32, %c0_i32_0 : i32, i32
  }
  func.func @transform_25(%arg0: i32, %arg1: memref<2xi32, #tpu.memory_space<smem>>) -> (i32, i32) {
    %c0_i32 = arith.constant 0 : i32
    %c0_i32_0 = arith.constant 0 : i32
    %c0_i32_1 = arith.constant 0 : i32
    return %c0_i32, %c0_i32_0 : i32, i32
  }
  func.func @transform_26(%arg0: i32, %arg1: memref<2xi32, #tpu.memory_space<smem>>) -> (i32, i32) {
    %c0_i32 = arith.constant 0 : i32
    %c0_i32_0 = arith.constant 0 : i32
    %c0_i32_1 = arith.constant 0 : i32
    return %c0_i32, %c0_i32_0 : i32, i32
  }
  func.func @transform_27(%arg0: i32, %arg1: memref<2xi32, #tpu.memory_space<smem>>) -> (i32, i32, i32) {
    %c0_i32 = arith.constant 0 : i32
    %c0_i32_0 = arith.constant 0 : i32
    %c0_i32_1 = arith.constant 0 : i32
    return %arg0, %c0_i32, %c0_i32_0 : i32, i32, i32
  }
  func.func @transform_28(%arg0: i32, %arg1: memref<2xi32, #tpu.memory_space<smem>>) -> (i32, i32, i32) {
    %c0_i32 = arith.constant 0 : i32
    %c0_i32_0 = arith.constant 0 : i32
    %c0_i32_1 = arith.constant 0 : i32
    return %arg0, %c0_i32, %c0_i32_0 : i32, i32, i32
  }
}

</mosaic_0001>

<bundles_post_ra>
// kernel: soft_logic_transformer_forward.1
= control target key start
LH: loop header
LB: loop body
LE: loop exit
PB: predicated region body
PF: predicated region fallthrough
CT: control target
= control target key end

     0   :  { %s13949_s6 = smov 1   ;;  %s13950_s10 = smov 2   ;;  %s15966_s0 = inlined_call_operand.smem [shape: u32[30], index: -1, kind: input, shape index: {}] }
   0x1   :  { %s13993_s5 = sld [smem:[%s15966_s0]]   ;;  %s13951_s14 = smov 3  }
   0x2   :  { %s13998_s9 = sld [smem:[%s15966_s0 + %s13949_s6]]   ;;  %s13952_s18 = smov 4  }
   0x3   :  { %s14003_s13 = sld [smem:[%s15966_s0 + %s13950_s10]]   ;;  %s13953_s22 = smov 5  }
   0x4   :  { %s14008_s17 = sld [smem:[%s15966_s0 + %s13951_s14]]   ;;  %s13954_s26 = smov 6  }
   0x5   :  { %s14013_s21 = sld [smem:[%s15966_s0 + %s13952_s18]]   ;;  %s13955_s30 = smov 7  }
   0x6   :  { %s14018_s25 = sld [smem:[%s15966_s0 + %s13953_s22]]   ;;  %s13956_s4 = smov 8  }
   0x7   :  { %s14023_s29 = sld [smem:[%s15966_s0 + %s13954_s26]]   ;;  %s13957_s10 = smov 9  }
   0x8   :  { %15974 = sst [smem:[#allocation8_spill]] %s13998_s9  ;;  %s13958_s15 = smov 10  }
   0x9   :  { %15975 = sst [smem:[#allocation9_spill]] %s14003_s13  ;;  %s13959_s20 = smov 11  }
   0xa   :  { %15976 = sst [smem:[#allocation10_spill]] %s14008_s17  ;;  %s13960_s26 = smov 12  }
   0xb   :  { %15977 = sst [smem:[#allocation11_spill]] %s14013_s21  ;;  %s13961_s1 = smov 13  }
   0xc   :  { %15978 = sst [smem:[#allocation12_spill]] %s14018_s25  ;;  %s13962_s7 = smov 14  }
   0xd   :  { %15979 = sst [smem:[#allocation13_spill]] %s14023_s29  ;;  %s13964_s22 = smov 16  }
   0xe   :  { %s14028_s3 = sld [smem:[%s15966_s0 + %s13955_s30]]   ;;  %s13965_s28 = smov 17  }
   0xf   :  { %s14033_s8 = sld [smem:[%s15966_s0 + %s13956_s4]]   ;;  %s13975_s25 = smov 27  }
  0x10   :  { %s14038_s14 = sld [smem:[%s15966_s0 + %s13957_s10]]   ;;  %s13976_s21 = smov 28  }
  0x11   :  { %s14043_s19 = sld [smem:[%s15966_s0 + %s13958_s15]]   ;;  %s13963_s15 = smov 15  }
  0x12   :  { %s14048_s24 = sld [smem:[%s15966_s0 + %s13959_s20]]  }
  0x13   :  { %s14053_s30 = sld [smem:[%s15966_s0 + %s13960_s26]]  }
  0x14   :  { %15980 = sst [smem:[#allocation14_spill]] %s14028_s3 }
  0x15   :  { %15981 = sst [smem:[#allocation15_spill]] %s14033_s8 }
  0x16   :  { %15982 = sst [smem:[#allocation16_spill]] %s14038_s14 }
  0x17   :  { %s14058_s6 = sld [smem:[%s15966_s0 + %s13961_s1]]  }
  0x18   :  { %s14063_s12 = sld [smem:[%s15966_s0 + %s13962_s7]]   ;;  %s13966_s7 = smov 18  }
  0x19   :  { %s14068_s20 = sld [smem:[%s15966_s0 + %s13963_s15]]   ;;  %s13967_s15 = smov 19  }
  0x1a   :  { %s14073_s27 = sld [smem:[%s15966_s0 + %s13964_s22]]   ;;  %s13968_s22 = smov 20  }
  0x1b   :  { %s14078_s4 = sld [smem:[%s15966_s0 + %s13965_s28]]   ;;  %s13969_s28 = smov 21  }
  0x1c   :  { %s14083_s14 = sld [smem:[%s15966_s0 + %s13966_s7]]   ;;  %s13970_s7 = smov 22  }
  0x1d   :  { %s14088_s3 = sld [smem:[%s15966_s0 + %s13967_s15]]   ;;  %s13971_s15 = smov 23  }
  0x1e   :  { %s14093_s8 = sld [smem:[%s15966_s0 + %s13968_s22]]   ;;  %s13972_s22 = smov 24  }
  0x1f   :  { %s14098_s29 = sld [smem:[%s15966_s0 + %s13969_s28]]   ;;  %s13973_s28 = smov 25  }
  0x20   :  { %s14103_s16 = sld [smem:[%s15966_s0 + %s13970_s7]]   ;;  %s13974_s7 = smov 26  }
  0x21   :  { %s14108_s23 = sld [smem:[%s15966_s0 + %s13971_s15]]  }
  0x22   :  { %15983 = sst [smem:[#allocation17_spill]] %s14083_s14 }
  0x23   :  { %15984 = sst [smem:[#allocation18_spill]] %s14088_s3 }
  0x24   :  { %15985 = sst [smem:[#allocation19_spill]] %s14093_s8 }
  0x25   :  { %15986 = sst [smem:[#allocation20_spill]] %s14098_s29  ;;  %s13977_s29 = smov 29  }
  0x26   :  { %15987 = sst [smem:[#allocation21_spill]] %s14103_s16  ;;  %s65_s16 = sshll.u32 %s13993_s5, 4  ;;  %s66_s16 = int_to_ptr.vmem [resolvable:$true] %s65_s16 }
  0x27   :  { %15988 = sst [smem:[#allocation22_spill]] %s14108_s23  ;;  %p13876_p1 = scmp.lt.s32.totalorder %s66_s16, %s66_s16 }
  0x28   :  { %s14113_s1 = sld [smem:[%s15966_s0 + %s13972_s22]]  }
  0x29   :  { %s14118_s10 = sld [smem:[%s15966_s0 + %s13973_s28]]  }
  0x2a   :  { %s14123_s8 = sld [smem:[%s15966_s0 + %s13974_s7]]   ;;  %s13871_s7 = scalar_lea.vmem %s66_s16, 16 }
  0x2b   :  { %s14128_s23 = sld [smem:[%s15966_s0 + %s13975_s25]]   ;;  %p13872_p0 = scmp.ne.s32.totalorder %s66_s16, %s13871_s7 }
  0x2c   :  { %p13877_p2 = scmp.lt.s32.totalorder %s13871_s7, %s13871_s7 }
  0x2e   :  { %15989 = sst [smem:[#allocation23_spill]] %s14113_s1  ;;  %p13878_p3 = por %p13877_p2, %p13876_p1 }
  0x2f   :  { %15990 = sst [smem:[#allocation24_spill]] %s14118_s10 }
  0x30   :  { %s14133_s1 = sld [smem:[%s15966_s0 + %s13976_s21]]   ;;  %p13879_p4 = pnand %p13878_p3, %p13872_p0 }
  0x31   :  { %s14138_s10 = sld [smem:[%s15966_s0 + %s13977_s29]]  }
  0x36   :  { %15991 = sst [smem:[#allocation25_spill]] %s14133_s1 }
  0x37   :  { %13882 = shalt.err (!%p13879_p4)  }
  0x38   :  { %s13978_s11 = smov [#allocation3]  }
  0x39   :  { %68 = dma.vmem_to_smem %s66_s16, 16, %s13978_s11, [#allocation2] }
  0x3a   :  { %13927 = dma.done.wait [#allocation2], 16 }
  0x3b   :  { %13928 = vsyncadd [#allocation2], 4294967280 }
  0x3c   :  { %70 = sfence }
  0x3d   :  { %71 = vsyncpa [#allocation5], 0 }
  0x3e   :  { %73 = vsyncpa [#allocation5 + $0x1], 0  ;;  %s14141_s25 = smov 0   ;;  %s14143_s0 = smov 0  }
  0x3f   :  { %s14145_s5 = smov 0   ;;  %s14147_s15 = smov 0  }
  0x40 LB: > { %s14162_s18 = sadd.s32 4294967295, %s13947_s15   ;;  %s10926_s21 = sadd.s32 4294967294, %s13947_s15   ;;  %s13947_s15 = sphi %s14147_s15, %s16017_s15   ;;  %s13943_s5 = sphi %s14145_s5, %s16016_s5   ;;  %s13939_s0 = sphi %s14143_s0, %s16015_s0   ;;  %s13935_s25 = sphi %s14141_s25, %s16014_s25  }
  0x41   : > { %s14166_s22 = sadd.s32 1, %s13947_s15   ;;  %s724_s26 = sadd.s32 1, %s13943_s5 }
  0x42   : > { %s721_s29 = ssub.s32 %s13947_s15, %s14166_s22  ;;  %p734_p5 = scmp.ne.s32.totalorder %s13943_s5, %s13939_s0 }
  0x43   : > { %p722_p6 = scmp.eq.s32.totalorder %s721_s29, 0  ;;  %p735_p7 = scmp.eq.s32.totalorder %s14162_s18, 1 }
  0x44   : > { %p740_p8 = scmp.ne.s32.totalorder %s13939_s0, %s13935_s25  ;;  %p741_p9 = scmp.eq.s32.totalorder %s10926_s21, 1 }
  0x45   : > { %s14177_s28 = scalar_select %p722_p6, %s13943_s5, %s724_s26  }
  0x46   : > { %p14179_p10 = por %p735_p7, %p734_p5  ;;  %p14183_p11 = por %p741_p9, %p740_p8 }
  0x47   : > { %p10929_p12 = scmp.ge.s32.totalorder %s13947_s15, 1  ;;  %p878_p13 = scmp.lt.s32.totalorder %s13947_s15, 3 }
  0x49   : > { %p879_p0 = pnand %p10929_p12, %p878_p13 }
  0x4a   : > { %s15994_s9 = sld [smem:[#allocation8_spill]] (!%p879_p0)  ;;  %p988_p1 = scmp.lt.s32.totalorder (!%p879_p0), %s14162_s18, 1  ;;  %vm1033_vm0 = vcmask (!%p879_p0), 261120   ;;  %v1148_v7 = vld [vmem:[%s14043_s19] sm:$0xff] (!%p879_p0)  ;;  %v1149_v8 = vld [vmem:[%s14043_s19 + $0x8] sm:$0xff] (!%p879_p0)  ;;  %v13979_v10 = vmov (!%p879_p0), 0.0|0.0   ;;  %v1064_v30 = vlaneseq (!%p879_p0) }
  0x4b   : > { %882 = sbr.rel (%p879_p0) target bundleno = 23618 (0x5c42), region = 128  ;;  %v1232_v9 = vld [vmem:[%s14053_s30] sm:$0xff] (!%p879_p0)  ;;  %13022 = vmatprep.subr.bf16.mxu0 (!%p879_p0), %v13979_v10  ;;  %13028 = vmatprep.subr.bf16.mxu1 (!%p879_p0), %v13979_v10  ;;  %v13023_v11 = vpack.c.bf16 (!%p879_p0), %v1149_v8, %v1148_v7  ;;  %v1233_v12 = vld [vmem:[%s14053_s30 + $0x8] sm:$0xff] (!%p879_p0)  ;;  %v1150_v13 = vld [vmem:[%s14043_s19 + $0x10] sm:$0xff] (!%p879_p0)  ;;  %vm13980_vm1 = vmmov (!%p879_p0), 0   ;;  %v13981_v18 = vmov (!%p879_p0), 0.0  }
  0x4c   : > { %v1151_v14 = vld [vmem:[%s14043_s19 + $0x18] sm:$0xff] (!%p879_p0)  ;;  %v13029_v15 = vpack.c.bf16 (!%p879_p0), %v1233_v12, %v1232_v9  ;;  %v1234_v16 = vld [vmem:[%s14053_s30 + $0x10] sm:$0xff] (!%p879_p0)  ;;  %s15995_s14 = sld [smem:[#allocation17_spill]] (!%p879_p0)  ;;  %12084 = vmatprep.mubr.msk.f32.mxu0 (!%p879_p0), %vm13980_vm1, %v13981_v18  ;;  %12095 = vmatprep.mubr.msk.f32.mxu1 (!%p879_p0), %vm13980_vm1, %v13981_v18  ;;  %s15996_s3 = sld [smem:[#allocation18_spill]] (!%p879_p0)  ;;  %v14224_v31 = vshrl.u32 (!%p879_p0), %v1064_v30, 7  ;;  %v14226_v32 = vand.u32 (!%p879_p0), 127, %v1064_v30 }
  0x4d   : > { %v1235_v17 = vld [vmem:[%s14053_s30 + $0x18] sm:$0xff] (!%p879_p0)  ;;  %13024 = vmatpush3.bf16.msra.mxu0 (!%p879_p0), %v13023_v11  ;;  %v13026_v19 = vpack.c.bf16 (!%p879_p0), %v1151_v14, %v1150_v13  ;;  %vm1313_vm3 = vcmask (!%p879_p0), 64512   ;;  %v13982_v35 = vmov (!%p879_p0), 0   ;;  %v10957_v42 = vld [vmem:[%s14048_s24] ss:$0 sm:$0xff] (!%p879_p0)  ;;  %s15997_s13 = sld [smem:[#allocation9_spill]] (!%p879_p0) }
  0x4e   : > { %13030 = vmatpush3.bf16.msra.mxu1 (!%p879_p0), %v13029_v15  ;;  %13025 = vmatprep.subr.bf16.mxu0 (!%p879_p0), %v13979_v10  ;;  %v13032_v20 = vpack.c.bf16 (!%p879_p0), %v1235_v17, %v1234_v16  ;;  %vm1131_vm2 = vcmp.eq.s32.totalorder (!%p879_p0), %v14224_v31, %v14226_v32  ;;  %v14231_v33 = vadd.s32 (!%p879_p0), 16, %v14224_v31  ;;  %v14248_v38 = vadd.s32 (!%p879_p0), 8, %v14224_v31  ;;  %v10959_v44 = vld [vmem:[%s14058_s6] ss:$0 sm:$0xff] (!%p879_p0)  ;;  %s15970_s29 = smov (!%p879_p0), 96   ;;  %s15998_s17 = sld [smem:[#allocation10_spill]] (!%p879_p0) }
  0x4f   : > { %13031 = vmatprep.subr.bf16.mxu1 (!%p879_p0), %v13979_v10  ;;  %v14234_v34 = vsel (!%p879_p0), %vm1131_vm2, 1.0, %v13981_v18  ;;  %13673 = vset.pattern.permute.xlu1 (!%p879_p0), %v13982_v35  ;;  %v1068_v39 = vadd.s32 (!%p879_p0), 24, %v14224_v31  ;;  %vm1111_vm7 = vcmp.ge.s32.totalorder (!%p879_p0), %v14226_v32, 8  ;;  %vm1113_vm8 = vcmp.ge.s32.totalorder (!%p879_p0), %v14226_v32, 16  ;;  %s16013_s1 = sld [smem:[#allocation25_spill]] (!%p879_p0) }
  0x50   : > { %13674 = vset.pattern.permute.xlu0 (!%p879_p0), %v13982_v35  ;;  %v10942_v36 = vadd.s32 (!%p879_p0), 4294967280, %v14231_v33  ;;  %v10941_v40 = vadd.s32 (!%p879_p0), 4294967288, %v14248_v38  ;;  %v1112_v52 = vsel (!%p879_p0), %vm1111_vm7, 1, %v13982_v35  ;;  %v1114_v53 = vsel (!%p879_p0), %vm1113_vm8, 1, %v13982_v35 }
  0x51   : > { %13027 = vmatpush3.bf16.msra.mxu0 (!%p879_p0), %v13026_v19  ;;  %v10943_v41 = vadd.s32 (!%p879_p0), 4294967272, %v1068_v39  ;;  %vm1116_vm9 = vcmp.ge.s32.totalorder (!%p879_p0), %v14226_v32, 24  ;;  %v1115_v54 = vadd.s32 (!%p879_p0), %v1114_v53, %v1112_v52  ;;  %vm2582_vm15 = vcmask (!%p879_p0), 1043456  }
  0x52   : > { %s14191_s7 = scalar_select %p988_p1, %s14162_s18, 1  ;;  %13033 = vmatpush3.bf16.msra.mxu1 %v13032_v20  ;;  %v10939_v25 = vld [vmem:[%s15995_s14] ss:$0 sm:$0xff]  ;;  %vm1133_vm4 = vcmp.eq.s32.totalorder %v10942_v36, %v14226_v32  ;;  %vm1132_vm5 = vcmp.eq.s32.totalorder %v10941_v40, %v14226_v32  ;;  %v1117_v55 = vsel %vm1116_vm9, 1, %v13982_v35  ;;  %vm2578_vm2 = vcmask 162816  }
  0x53   : > { %v10940_v27 = vld [vmem:[%s15996_s3] ss:$0 sm:$0xff]  ;;  %v14243_v37 = vsel %vm1133_vm4, 1.0, %v13981_v18  ;;  %vm1134_vm6 = vcmp.eq.s32.totalorder %v10943_v41, %v14226_v32  ;;  %v14257_v49 = vsel %vm1132_vm5, 1.0, %v13981_v18  ;;  %v14279_v56 = vadd.s32 %v1117_v55, %v1115_v54 }
  0x54   : > { %s14194_s11 = sshll.u32 %s14191_s7, 3  ;;  %v14262_v51 = vsel %vm1134_vm6, 1.0, %v13981_v18  ;;  %s14309_s26 = scalar_lea.vmem %s15997_s13, %s14191_s7  ;;  %vm4397_vm4 = vcmask 785408   ;;  %vm5109_vm5 = vcmp.ge.s32.totalorder %v14248_v38, 12  ;;  %vm5102_vm6 = vcmp.ge.s32.totalorder %v14224_v31, 6 }
  0x55   : > { %s991_s21 = scalar_lea.vmem %s15994_s9, %s14194_s11  ;;  %vm10944_vm10 = vcmp.eq.s32.totalorder %v14279_v56, 0  ;;  %vm10945_vm11 = vcmp.eq.s32.totalorder %v14279_v56, 1  ;;  %vm10946_vm12 = vcmp.eq.s32.totalorder %v14279_v56, 2  ;;  %vm10947_vm13 = vcmp.eq.s32.totalorder %v14279_v56, 3  ;;  %s16001_s9 = sld [smem:[#allocation20_spill]] }
  0x56   : > { %v1030_v0 = vld [vmem:[%s991_s21] sm:$0xff]  ;;  %v14285_v57 = vsel %vm10944_vm10, 1.0, %v13981_v18  ;;  %v14289_v58 = vsel %vm10945_vm11, 1.0, %v13981_v18  ;;  %v14292_v60 = vsel %vm10946_vm12, 1.0, %v13981_v18  ;;  %s998_s21 = scalar_lea.vmem %s15998_s17, %s14194_s11  ;;  %vm5119_vm7 = vcmp.ge.s32.totalorder %v14231_v33, 18  ;;  %s16010_s17 = smul.u32 24, %s14191_s7 }
  0x57   : > { %v1034_v1 = vsel %vm1033_vm0, %v1030_v0, 0.0  ;;  %vm5345_vm9 = vcmask 1045504   ;;  %vm5335_vm10 = vcmask 48128  }
  0x58   : > { %1035 = vadd.xlane.f32.xlu0 %v1034_v1 }
  0xe5   : > { %v1036_v2 = vpop.xlane.xlu0 %1035 }
  0xe6   : > { %v1038_v3 = vmul.f32 0.03125, %v1036_v2 }
  0xe8   : > { %v1039_v4 = vsub.f32 %v1030_v0, %v1038_v3  ;;  %v14296_v0 = vsel %vm10947_vm13, 1.0, %v13981_v18 }
  0xea   : > { %v1040_v5 = vmul.f32 %v1039_v4, %v1039_v4 }
  0xec   : > { %v1041_v6 = vsel %vm1033_vm0, %v1040_v5, 0.0 }
  0xed   : > { %1042 = vadd.xlane.f32.xlu0 %v1041_v6  ;;  %v14312_v6 = vld [vmem:[%s14309_s26] ss:$0 sm:$0xff] }
 0x17a   : > { %v1043_v21 = vpop.xlane.xlu0 %1042 }
 0x17b   : > { %v1044_v22 = vmul.f32 0.03125, %v1043_v21 }
 0x17d   : > { %v1045_v23 = vadd.f32 1e-12, %v1044_v22 }
 0x17f   : > { %13675 = vrsqrt.f32 %v1045_v23 }
 0x189   : > { %v13676_v24 = vpop.eup %13675 }
 0x18a   : > { %v1047_v26 = vmul.f32 %v13676_v24, %v1039_v4 }
 0x18c   : > { %v1054_v28 = vmul.f32 %v10939_v25, %v1047_v26 }
 0x18e   : > { %v14218_v29 = vadd.f32 %v10940_v27, %v1054_v28 }
 0x190   : > { %12085 = vmatmul.mubr.msk.f32.vlgmr.msra.gmra.mrb[0].mxu0 %vm1033_vm0, %v14218_v29  ;;  %12096 = vmatmul.mubr.msk.f32.vlgmr.msra.gmra.mrb[0].mxu1 %vm1033_vm0, %v14218_v29 }
 0x191   : > { %12100 = vmatprep.mubr.msk.f32.mxu0 %vm1313_vm3, %v14234_v34  ;;  %12103 = vmatprep.mubr.msk.f32.mxu1 %vm1313_vm3, %v14243_v37 }
 0x263   : > { %v1228_v43 = vpop.f32.mrb[0].mxu0  ;;  %v1309_v45 = vpop.f32.mrb[0].mxu1 }
 0x264   : > { %v1229_v46 = vadd.f32 %v10957_v42, %v1228_v43  ;;  %v12086_v47 = vpop.f32.mrb[1].mxu0  ;;  %v12097_v48 = vpop.f32.mrb[1].mxu1  ;;  %v14259_v50 = vadd.f32 %v10959_v44, %v1309_v45 }
 0x266   : > { %12098 = vmatprep.subr.mxu0 %v1229_v46  ;;  %13595 = vmatprep.subr.mxu1 %v1229_v46 }
 0x267   : > { %12099 = vmatpush3.msra.mxu0 %v1229_v46  ;;  %13596 = vmatpush3.msra.mxu1 %v1229_v46 }
 0x268   : > { %12101 = vmatmul.mubr.msk.f32.vlgmr.msra.gmra.mrb[2].mxu0 %vm1313_vm3, %v14257_v49  ;;  %12106 = vmatprep.subr.msk.mxu1 %vm1033_vm0, %v14259_v50 }
 0x269   : > { %12104 = vmatmul.mubr.msk.f32.vlgmr.msra.gmra.mrb[2].mxu1 %vm1313_vm3, %v14262_v51 }
 0x26e   : > { %12107 = vmatpush3.xpose.msk.msra.mxu1 %vm1033_vm0, %v14259_v50 }
 0x26f   : > { %13034 = vmatprep.subr.bf16.mxu1 %v13979_v10 }
 0x33b   : > { %v12102_v59 = vpop.f32.mrb[2].mxu0 }
 0x33c   : > { %v1392_v61 = vpop.f32.mrb[3].mxu0  ;;  %v12105_v62 = vpop.f32.mrb[2].mxu1  ;;  %v1412_v2 = vmul.f32 %v12102_v59, %v14289_v58 }
 0x33d   : > { %v1411_v63 = vmul.f32 %v14285_v57, %v1392_v61  ;;  %v1402_v1 = vpop.f32.mrb[3].mxu1  ;;  %v1414_v4 = vmul.f32 %v12105_v62, %v14296_v0 }
 0x33e   : > { %v1413_v3 = vmul.f32 %v14292_v60, %v1402_v1 }
 0x33f   : > { %12108 = vmatprep.mubr.msk.f32.mxu1 %vm1033_vm0, %v1411_v63 }
 0x340   : > { %12109 = vmatmul.mubr.msk.f32.vlgmr.msra.gmra.mrb[4].mxu1 %vm1033_vm0, %v1412_v2 }
 0x341   : > { %12111 = vmatprep.mubr.msk.f32.mxu1 %vm1033_vm0, %v1413_v3 }
 0x344   : > { %12112 = vmatmul.mubr.msk.f32.gmra.mrb[6].mxu1 %vm1033_vm0, %v1414_v4 }
 0x345   : > { %12130 = vmatprep.mubr.msk.f32.mxu1 %vm13980_vm1, %v13981_v18 }
 0x413   : > { %v12110_v5 = vpop.f32.mrb[4].mxu1 }
 0x414   : > { %v1496_v7 = vpop.f32.mrb[5].mxu1  ;;  %v1516_v8 = vmul.f32 0.35355338, %v12110_v5 }
 0x415   : > { %v1515_v9 = vmul.f32 0.35355338, %v1496_v7 }
 0x416   : > { %v1526_v17 = vadd.f32 %v14312_v6, %v1516_v8 }
 0x417   : > { %v12113_v11 = vpop.f32.mrb[6].mxu1  ;;  %v1525_v12 = vadd.f32 %v14312_v6, %v1515_v9  ;;  %v1750_v9 = vld [vmem:[%s14063_s12] sm:$0xff] }
 0x418   : > { %v1506_v13 = vpop.f32.mrb[7].mxu1  ;;  %v1518_v14 = vmul.f32 0.35355338, %v12113_v11  ;;  %v1532_v20 = vsel %vm1313_vm3, %v1526_v17, -inf  ;;  %v1751_v11 = vld [vmem:[%s14063_s12 + $0x8] sm:$0xff] }
 0x419   : > { %v1517_v15 = vmul.f32 0.35355338, %v1506_v13  ;;  %v1529_v16 = vsel %vm1313_vm3, %v1525_v12, -inf  ;;  %v13041_v13 = vpack.c.bf16 %v1751_v11, %v1750_v9 }
 0x41a   : > { %1530 = vmax.xlane.f32.xlu1 %v1529_v16  ;;  %v1528_v22 = vadd.f32 %v14312_v6, %v1518_v14  ;;  %v1753_v14 = vld [vmem:[%s14063_s12 + $0x18] sm:$0xff]  ;;  %v1143_v16 = vmul.u32 8, %v14279_v56 }
 0x41b   : > { %v1527_v19 = vadd.f32 %v14312_v6, %v1517_v15 }
 0x41c   : > { %v1538_v23 = vsel %vm1313_vm3, %v1528_v22, -inf }
 0x41d   : > { %v1535_v21 = vsel %vm1313_vm3, %v1527_v19, -inf }
 0x41e   : > { %1533 = vmax.xlane.f32.xlu1 %v1532_v20  ;;  %1536 = vmax.xlane.f32.xlu0 %v1535_v21 }
 0x422   : > { %1539 = vmax.xlane.f32.xlu1 %v1538_v23 }
 0x4a7   : > { %v1531_v24 = vpop.xlane.xlu1 %1530 }
 0x4a8   : > { %v1541_v25 = vsub.f32 %v1525_v12, %v1531_v24  ;;  %v1752_v12 = vld [vmem:[%s14063_s12 + $0x10] sm:$0xff] }
 0x4a9   : > { %v13044_v15 = vpack.c.bf16 %v1753_v14, %v1752_v12  ;;  %v10978_v12 = vld [vmem:[%s14073_s27] ss:$0 sm:$0xff] }
 0x4aa   : > { %v1545_v26 = vmul.f32 1.442695, %v1541_v25  ;;  %v10979_v14 = vld [vmem:[%s14078_s4] ss:$0 sm:$0xff] }
 0x4ab   : > { %v1534_v27 = vpop.xlane.xlu1 %1533  ;;  %v1537_v28 = vpop.xlane.xlu0 %1536 }
 0x4ac   : > { %13677 = vpow2.f32 %v1545_v26  ;;  %v1542_v30 = vsub.f32 %v1526_v17, %v1534_v27  ;;  %v1543_v36 = vsub.f32 %v1527_v19, %v1537_v28 }
 0x4ae   : > { %v1547_v39 = vmul.f32 1.442695, %v1542_v30  ;;  %v1549_v40 = vmul.f32 1.442695, %v1543_v36 }
 0x4af   : > { %v1540_v41 = vpop.xlane.xlu1 %1539 }
 0x4b0   : > { %13679 = vpow2.f32 %v1547_v39  ;;  %v1544_v42 = vsub.f32 %v1528_v22, %v1540_v41  ;;  %v1144_v22 = vsub.s32 %v14226_v32, %v1143_v16 }
 0x4b1   : > { %13681 = vpow2.f32 %v1549_v40  ;;  %v10976_v40 = vld [vmem:[%s14068_s20] ss:$0 sm:$0xff] }
 0x4b2   : > { %v1551_v43 = vmul.f32 1.442695, %v1544_v42  ;;  %vm1145_vm14 = vcmp.eq.s32.totalorder %v1144_v22, %v14224_v31 }
 0x4b3   : > { %v14350_v30 = vsel %vm1145_vm14, 1.0, %v13981_v18 }
 0x4b4   : > { %13683 = vpow2.f32 %v1551_v43 }
 0x4b6   : > { %v13678_v44 = vpop.eup %13677 }
 0x4b7   : > { %v1553_v45 = vsel %vm1313_vm3, %v13678_v44, 0.0 }
 0x4b8   : > { %1554 = vadd.xlane.f32.xlu0 %v1553_v45 }
 0x4ba   : > { %v13680_v46 = vpop.eup %13679 }
 0x4bb   : > { %v13682_v47 = vpop.eup %13681  ;;  %v1556_v48 = vsel %vm1313_vm3, %v13680_v46, 0.0 }
 0x4bc   : > { %1557 = vadd.xlane.f32.xlu1 %v1556_v48  ;;  %v1559_v52 = vsel %vm1313_vm3, %v13682_v47, 0.0 }
 0x4bd   : > { %1560 = vadd.xlane.f32.xlu0 %v1559_v52 }
 0x4be   : > { %v13684_v53 = vpop.eup %13683 }
 0x4bf   : > { %v1562_v54 = vsel %vm1313_vm3, %v13684_v53, 0.0 }
 0x4c0   : > { %1563 = vadd.xlane.f32.xlu1 %v1562_v54  ;;  %v1063_v54 = vld [vmem:[%s998_s21] sm:$0xff]  ;;  %s15999_s21 = sld [smem:[#allocation19_spill]] }
 0x4d3   : > { %1573 = vrot.lane.b32.xlu0 %v14259_v50, %s15970_s29 }
 0x545   : > { %v1555_v55 = vpop.xlane.xlu0 %1554 }
 0x546   : > { %13685 = vrcp.f32 %v1555_v55  ;;  %v10980_v55 = vld [vmem:[%s14043_s19 + $0x20] sm:$0xff] }
 0x549   : > { %v1558_v59 = vpop.xlane.xlu1 %1557 }
 0x54a   : > { %13687 = vrcp.f32 %v1558_v59  ;;  %v1561_v61 = vpop.xlane.xlu0 %1560  ;;  %v10987_v59 = vld [vmem:[%s14053_s30 + $0x20] sm:$0xff] }
 0x54b   : > { %13689 = vrcp.f32 %v1561_v61 }
 0x54d   : > { %v1564_v62 = vpop.xlane.xlu1 %1563 }
 0x54e   : > { %13691 = vrcp.f32 %v1564_v62  ;;  %v1574_v63 = vpop.permute.xlu0 %1573  ;;  %v10988_v62 = vld [vmem:[%s14053_s30 + $0x28] sm:$0xff] }
 0x54f   : > { %12114 = vmatprep.subr.mxu0 %v1574_v63 }
 0x550   : > { %v13686_v1 = vpop.eup %13685  ;;  %12115 = vmatpush3.msra.mxu0 %v1574_v63  ;;  %v10982_v63 = vld [vmem:[%s14043_s19 + $0x30] sm:$0xff] }
 0x551   : > { %v1569_v2 = vmul.f32 %v13686_v1, %v13678_v44  ;;  %13040 = vmatprep.subr.bf16.mxu0 %v13979_v10  ;;  %v10983_v1 = vld [vmem:[%s14043_s19 + $0x38] sm:$0xff] }
 0x553   : > { %12116 = vmatprep.mubr.msk.f32.mxu0 %vm1313_vm3, %v1569_v2  ;;  %v13053_v2 = vpack.c.bf16 %v10988_v62, %v10987_v59 }
 0x554   : > { %v13688_v50 = vpop.eup %13687 }
 0x555   : > { %v13690_v3 = vpop.eup %13689  ;;  %v1570_v4 = vmul.f32 %v13688_v50, %v13680_v46  ;;  %v10989_v50 = vld [vmem:[%s14053_s30 + $0x30] sm:$0xff] }
 0x556   : > { %v1571_v5 = vmul.f32 %v13690_v3, %v13682_v47  ;;  %v10990_v3 = vld [vmem:[%s14053_s30 + $0x38] sm:$0xff] }
 0x557   : > { %12117 = vmatmul.mubr.msk.f32.vlgmr.msra.gmra.mrb[4].mxu0 %vm1313_vm3, %v1570_v4  ;;  %v13050_v4 = vpack.c.bf16 %v10983_v1, %v10982_v63 }
 0x558   : > { %v13692_v7 = vpop.eup %13691  ;;  %12119 = vmatprep.mubr.msk.f32.mxu0 %vm1313_vm3, %v1571_v5  ;;  %13042 = vmatpush3.bf16.msra.mxu0 %v13041_v13  ;;  %v13056_v5 = vpack.c.bf16 %v10990_v3, %v10989_v50 }
 0x559   : > { %v1572_v8 = vmul.f32 %v13692_v7, %v13684_v53  ;;  %13043 = vmatprep.subr.bf16.mxu0 %v13979_v10 }
 0x55b   : > { %12120 = vmatmul.mubr.msk.f32.gmra.mrb[6].mxu0 %vm1313_vm3, %v1572_v8 }
 0x55c   : > { %12141 = vmatprep.mubr.msk.f32.mxu0 %vm13980_vm1, %v13981_v18  ;;  %13045 = vmatpush3.bf16.msra.mxu0 %v13044_v15 }
 0x55d   : > { %13052 = vmatprep.subr.bf16.mxu0 %v13979_v10 }
 0x62a   : > { %v12118_v17 = vpop.f32.mrb[4].mxu0 }
 0x62b   : > { %v1674_v19 = vmul.f32 %v12118_v17, %v14289_v58  ;;  %v1654_v20 = vpop.f32.mrb[5].mxu0 }
 0x62c   : > { %v1673_v21 = vmul.f32 %v14285_v57, %v1654_v20  ;;  %v10985_v20 = vld [vmem:[%s14048_s24 + $0x1] ss:$0 sm:$0xff] }
 0x62e   : > { %v13035_v23 = vpack.c.bf16 %v1674_v19, %v1673_v21  ;;  %v12121_v24 = vpop.f32.mrb[6].mxu0  ;;  %v10992_v21 = vld [vmem:[%s14058_s6 + $0x1] ss:$0 sm:$0xff] }
 0x62f   : > { %v1676_v25 = vmul.f32 %v12121_v24, %v14296_v0  ;;  %v1664_v26 = vpop.f32.mrb[7].mxu0 }
 0x630   : > { %v1675_v27 = vmul.f32 %v14292_v60, %v1664_v26  ;;  %13036 = vmatpush3.bf16.msra.mxu1 %v13035_v23 }
 0x631   : > { %13037 = vmatprep.subr.bf16.mxu1 %v13979_v10 }
 0x632   : > { %v13038_v28 = vpack.c.bf16 %v1676_v25, %v1675_v27 }
 0x634   : > { %13039 = vmatpush3.bf16.msra.mxu1 %v13038_v28 }
 0x635   : > { %13046 = vmatprep.subr.bf16.mxu1 %v13979_v10 }
 0x637   : > { %12131 = vmatmul.mubr.msk.f32.vlgmr.msra.gmra.mrb[8].mxu1 %vm1033_vm0, %v14350_v30 }
 0x638   : > { %12152 = vmatprep.mubr.msk.f32.mxu1 %vm13980_vm1, %v13981_v18 }
 0x70a   : > { %v1746_v36 = vpop.f32.mrb[8].mxu1 }
 0x70b   : > { %v12132_v39 = vpop.f32.mrb[9].mxu1  ;;  %12142 = vmatmul.mubr.msk.f32.vlgmr.msra.gmra.mrb[8].mxu0 %vm1033_vm0, %v1746_v36 }
 0x70c   : > { %12163 = vmatprep.mubr.msk.f32.mxu0 %vm13980_vm1, %v13981_v18  ;;  %13054 = vmatpush3.bf16.msra.mxu0 %v13053_v2 }
 0x70d   : > { %13055 = vmatprep.subr.bf16.mxu0 %v13979_v10 }
 0x710   : > { %13057 = vmatpush3.bf16.msra.mxu0 %v13056_v5 }
 0x7de   : > { %v1830_v41 = vpop.f32.mrb[8].mxu0 }
 0x7df   : > { %v1831_v42 = vadd.f32 %v10976_v40, %v1830_v41  ;;  %v12143_v43 = vpop.f32.mrb[9].mxu0 }
 0x7e1   : > { %v1834_v44 = vadd.f32 %v1831_v42, %v14218_v29  ;;  %v10981_v29 = vld [vmem:[%s14043_s19 + $0x28] sm:$0xff] }
 0x7e2   : > { %v13047_v61 = vpack.c.bf16 %v10981_v29, %v10980_v55 }
 0x7e3   : > { %v1837_v45 = vsel %vm1033_vm0, %v1834_v44, 0.0 }
 0x7e4   : > { %1838 = vadd.xlane.f32.xlu1 %v1837_v45  ;;  %13048 = vmatpush3.bf16.msra.mxu1 %v13047_v61 }
 0x7e5   : > { %13049 = vmatprep.subr.bf16.mxu1 %v13979_v10 }
 0x7e8   : > { %13051 = vmatpush3.bf16.msra.mxu1 %v13050_v4 }
 0x871   : > { %v1839_v46 = vpop.xlane.xlu1 %1838 }
 0x872   : > { %v1840_v47 = vmul.f32 0.03125, %v1839_v46 }
 0x874   : > { %v1841_v48 = vsub.f32 %v1834_v44, %v1840_v47 }
 0x876   : > { %v1842_v52 = vmul.f32 %v1841_v48, %v1841_v48 }
 0x878   : > { %v1843_v53 = vsel %vm1033_vm0, %v1842_v52, 0.0 }
 0x879   : > { %1844 = vadd.xlane.f32.xlu1 %v1843_v53 }
 0x88a   : > { %1866 = vperm.xlu1 %13673, %v1063_v54  }
 0x906   : > { %v1845_v7 = vpop.xlane.xlu1 %1844 }
 0x907   : > { %v1846_v8 = vmul.f32 0.03125, %v1845_v7 }
 0x909   : > { %v1847_v9 = vadd.f32 1e-12, %v1846_v8 }
 0x90a   : > { %v14378_v16 = vpop.permute.xlu1 %1866 }
 0x90b   : > { %13693 = vrsqrt.f32 %v1847_v9 }
 0x915   : > { %v13694_v11 = vpop.eup %13693 }
 0x916   : > { %v1849_v13 = vmul.f32 %v13694_v11, %v1841_v48 }
 0x918   : > { %v1856_v15 = vmul.f32 %v10978_v12, %v1849_v13 }
 0x91a   : > { %v1863_v17 = vadd.f32 %v10979_v14, %v1856_v15 }
 0x91c   : > { %v14381_v19 = vmul.f32 %v14378_v16, %v1863_v17 }
 0x91e   : > { %12153 = vmatmul.mubr.msk.f32.vlgmr.msra.gmra.mrb[10].mxu1 %vm1033_vm0, %v14381_v19  ;;  %12164 = vmatmul.mubr.msk.f32.vlgmr.msra.gmra.mrb[10].mxu0 %vm1033_vm0, %v14381_v19 }
 0x91f   : > { %12168 = vmatprep.mubr.msk.f32.mxu1 %vm1313_vm3, %v14234_v34 }
 0x9f1   : > { %v1952_v22 = vpop.f32.mrb[10].mxu1  ;;  %v2035_v23 = vpop.f32.mrb[10].mxu0 }
 0x9f2   : > { %v1953_v24 = vadd.f32 %v10985_v20, %v1952_v22  ;;  %v14391_v25 = vadd.f32 %v10992_v21, %v2035_v23  ;;  %v12154_v26 = vpop.f32.mrb[11].mxu1  ;;  %v12165_v27 = vpop.f32.mrb[11].mxu0 }
 0x9f4   : > { %12166 = vmatprep.subr.mxu1 %v1953_v24  ;;  %12174 = vmatprep.subr.msk.mxu0 %vm1033_vm0, %v14391_v25 }
 0x9f5   : > { %12167 = vmatpush3.msra.mxu1 %v1953_v24  ;;  %12175 = vmatpush3.xpose.msk.msra.mxu0 %vm1033_vm0, %v14391_v25 }
 0x9f6   : > { %12169 = vmatmul.mubr.msk.f32.vlgmr.msra.gmra.mrb[12].mxu1 %vm1313_vm3, %v14257_v49  ;;  %13058 = vmatprep.subr.bf16.mxu0 %v13979_v10 }
 0x9f7   : > { %12171 = vmatprep.mubr.msk.f32.mxu1 %vm1313_vm3, %v14243_v37 }
 0x9fa   : > { %12172 = vmatmul.mubr.msk.f32.gmra.mrb[14].mxu1 %vm1313_vm3, %v14262_v51 }
 0xac9   : > { %v12170_v28 = vpop.f32.mrb[12].mxu1 }
 0xaca   : > { %v2105_v36 = vpop.f32.mrb[13].mxu1  ;;  %v2125_v40 = vmul.f32 %v12170_v28, %v14289_v58 }
 0xacb   : > { %v2124_v39 = vmul.f32 %v14285_v57, %v2105_v36 }
 0xacd   : > { %v12173_v41 = vpop.f32.mrb[14].mxu1  ;;  %12176 = vmatprep.mubr.msk.f32.mxu0 %vm1033_vm0, %v2124_v39 }
 0xace   : > { %v2115_v42 = vpop.f32.mrb[15].mxu1  ;;  %12177 = vmatmul.mubr.msk.f32.vlgmr.msra.gmra.mrb[12].mxu0 %vm1033_vm0, %v2125_v40  ;;  %v2127_v44 = vmul.f32 %v12173_v41, %v14296_v0 }
 0xacf   : > { %v2126_v43 = vmul.f32 %v14292_v60, %v2115_v42 }
 0xad1   : > { %12179 = vmatprep.mubr.msk.f32.mxu0 %vm1033_vm0, %v2126_v43 }
 0xad2   : > { %12180 = vmatmul.mubr.msk.f32.gmra.mrb[14].mxu0 %vm1033_vm0, %v2127_v44 }
 0xad3   : > { %12198 = vmatprep.mubr.msk.f32.mxu0 %vm13980_vm1, %v13981_v18 }
 0xba1   : > { %v12178_v45 = vpop.f32.mrb[12].mxu0 }
 0xba2   : > { %v2229_v46 = vmul.f32 0.35355338, %v12178_v45  ;;  %v2209_v47 = vpop.f32.mrb[13].mxu0 }
 0xba3   : > { %v2228_v48 = vmul.f32 0.35355338, %v2209_v47 }
 0xba4   : > { %v2233_v52 = vadd.f32 %v14312_v6, %v2229_v46 }
 0xba5   : > { %v12181_v53 = vpop.f32.mrb[14].mxu0  ;;  %v2232_v54 = vadd.f32 %v14312_v6, %v2228_v48 }
 0xba6   : > { %v2219_v55 = vpop.f32.mrb[15].mxu0  ;;  %v2239_v29 = vsel %vm1313_vm3, %v2233_v52, -inf  ;;  %v2231_v59 = vmul.f32 0.35355338, %v12181_v53  ;;  %v11008_v53 = vld [vmem:[%s14063_s12 + $0x20] sm:$0xff] }
 0xba7   : > { %v2230_v61 = vmul.f32 0.35355338, %v2219_v55  ;;  %2240 = vmax.xlane.f32.xlu1 %v2239_v29  ;;  %v2236_v62 = vsel %vm1313_vm3, %v2232_v54, -inf  ;;  %v11010_v55 = vld [vmem:[%s14063_s12 + $0x30] sm:$0xff] }
 0xba8   : > { %2237 = vmax.xlane.f32.xlu0 %v2236_v62  ;;  %v2235_v2 = vadd.f32 %v14312_v6, %v2231_v59  ;;  %v11011_v59 = vld [vmem:[%s14063_s12 + $0x38] sm:$0xff] }
 0xba9   : > { %v2234_v63 = vadd.f32 %v14312_v6, %v2230_v61  ;;  %v13068_v61 = vpack.c.bf16 %v11011_v59, %v11010_v55 }
 0xbaa   : > { %v2245_v50 = vsel %vm1313_vm3, %v2235_v2, -inf }
 0xbab   : > { %v2242_v1 = vsel %vm1313_vm3, %v2234_v63, -inf }
 0xbac   : > { %2243 = vmax.xlane.f32.xlu0 %v2242_v1 }
 0xbb0   : > { %2246 = vmax.xlane.f32.xlu0 %v2245_v50 }
 0xc34   : > { %v2241_v3 = vpop.xlane.xlu1 %2240 }
 0xc35   : > { %v2249_v4 = vsub.f32 %v2233_v52, %v2241_v3  ;;  %v2238_v5 = vpop.xlane.xlu0 %2237 }
 0xc36   : > { %v2248_v7 = vsub.f32 %v2232_v54, %v2238_v5  ;;  %v11009_v54 = vld [vmem:[%s14063_s12 + $0x28] sm:$0xff] }
 0xc37   : > { %v2254_v8 = vmul.f32 1.442695, %v2249_v4  ;;  %v13065_v29 = vpack.c.bf16 %v11009_v54, %v11008_v53  ;;  %v11028_v53 = vld [vmem:[%s14053_s30 + $0x40] sm:$0xff]  ;;  %v11029_v54 = vld [vmem:[%s14053_s30 + $0x48] sm:$0xff] }
 0xc38   : > { %v2252_v9 = vmul.f32 1.442695, %v2248_v7  ;;  %v13080_v55 = vpack.c.bf16 %v11029_v54, %v11028_v53 }
 0xc39   : > { %13695 = vpow2.f32 %v2254_v8  ;;  %v2244_v11 = vpop.xlane.xlu0 %2243 }
 0xc3a   : > { %13697 = vpow2.f32 %v2252_v9  ;;  %v2250_v12 = vsub.f32 %v2234_v63, %v2244_v11  ;;  %v2574_v9 = vld [vmem:[%s15999_s21] sm:$0xff]  ;;  %v2575_v11 = vld [vmem:[%s15999_s21 + $0x8] sm:$0xff] }
 0xc3c   : > { %v2256_v13 = vmul.f32 1.442695, %v2250_v12  ;;  %v13071_v12 = vpack.c.bf16 %v2575_v11, %v2574_v9 }
 0xc3d   : > { %v2247_v14 = vpop.xlane.xlu0 %2246 }
 0xc3e   : > { %13699 = vpow2.f32 %v2256_v13  ;;  %v2251_v15 = vsub.f32 %v2235_v2, %v2247_v14  ;;  %v2576_v13 = vld [vmem:[%s15999_s21 + $0x10] sm:$0xf] }
 0xc40   : > { %v2258_v17 = vmul.f32 1.442695, %v2251_v15 }
 0xc42   : > { %13701 = vpow2.f32 %v2258_v17 }
 0xc43   : > { %v13696_v20 = vpop.eup %13695 }
 0xc44   : > { %v13698_v21 = vpop.eup %13697  ;;  %v2263_v22 = vsel %vm1313_vm3, %v13696_v20, 0.0 }
 0xc45   : > { %2264 = vadd.xlane.f32.xlu1 %v2263_v22  ;;  %v2260_v23 = vsel %vm1313_vm3, %v13698_v21, 0.0 }
 0xc46   : > { %2261 = vadd.xlane.f32.xlu0 %v2260_v23  ;;  %v11023_v23 = vld [vmem:[%s14043_s19 + $0x50] sm:$0xff] }
 0xc48   : > { %v13700_v24 = vpop.eup %13699 }
 0xc49   : > { %v2266_v26 = vsel %vm1313_vm3, %v13700_v24, 0.0 }
 0xc4a   : > { %2267 = vadd.xlane.f32.xlu0 %v2266_v26 }
 0xc4c   : > { %v13702_v27 = vpop.eup %13701 }
 0xc4d   : > { %v2269_v28 = vsel %vm1313_vm3, %v13702_v27, 0.0 }
 0xc4e   : > { %2270 = vadd.xlane.f32.xlu1 %v2269_v28 }
 0xc60   : > { %2280 = vrot.lane.b32.xlu0 %v14391_v25, %s15970_s29  ;;  %s16000_s29 = sld [smem:[#allocation11_spill]] }
 0xc66   : > { %s1002_s3 = scalar_lea.vmem %s16000_s29, %s14194_s11 }
 0xc67   : > { %v2573_v14 = vld [vmem:[%s1002_s3] sm:$0xff]  ;;  %s16003_s3 = sld [smem:[#allocation12_spill]] }
 0xc6d   : > { %s1006_s29 = scalar_lea.vmem %s16003_s3, %s14194_s11  ;;  %s16005_s3 = sld [smem:[#allocation13_spill]] }
 0xcd2   : > { %v2265_v36 = vpop.xlane.xlu1 %2264 }
 0xcd3   : > { %13703 = vrcp.f32 %v2265_v36  ;;  %v2262_v39 = vpop.xlane.xlu0 %2261 }
 0xcd4   : > { %13705 = vrcp.f32 %v2262_v39 }
 0xcd7   : > { %v2268_v40 = vpop.xlane.xlu0 %2267 }
 0xcd8   : > { %13707 = vrcp.f32 %v2268_v40  ;;  %v11013_v40 = vld [vmem:[%s14068_s20 + $0x1] ss:$0 sm:$0xff] }
 0xcdb   : > { %v2271_v41 = vpop.xlane.xlu1 %2270  ;;  %v2281_v42 = vpop.permute.xlu0 %2280 }
 0xcdc   : > { %13709 = vrcp.f32 %v2271_v41  ;;  %12182 = vmatprep.subr.mxu1 %v2281_v42 }
 0xcdd   : > { %v13704_v43 = vpop.eup %13703  ;;  %12183 = vmatpush3.msra.mxu1 %v2281_v42 }
 0xcde   : > { %v13706_v44 = vpop.eup %13705  ;;  %13064 = vmatprep.subr.bf16.mxu1 %v13979_v10  ;;  %v2277_v45 = vmul.f32 %v13704_v43, %v13696_v20  ;;  %v11021_v20 = vld [vmem:[%s14043_s19 + $0x40] sm:$0xff] }
 0xcdf   : > { %v2276_v25 = vmul.f32 %v13706_v44, %v13698_v21  ;;  %v11022_v21 = vld [vmem:[%s14043_s19 + $0x48] sm:$0xff] }
 0xce0   : > { %v13074_v22 = vpack.c.bf16 %v11022_v21, %v11021_v20  ;;  %v11033_v21 = vld [vmem:[%s14058_s6 + $0x2] ss:$0 sm:$0xff] }
 0xce1   : > { %12184 = vmatprep.mubr.msk.f32.mxu1 %vm1313_vm3, %v2276_v25 }
 0xce2   : > { %v13708_v46 = vpop.eup %13707  ;;  %12185 = vmatmul.mubr.msk.f32.vlgmr.msra.gmra.mrb[16].mxu1 %vm1313_vm3, %v2277_v45 }
 0xce3   : > { %v2278_v47 = vmul.f32 %v13708_v46, %v13700_v24  ;;  %13066 = vmatpush3.bf16.msra.mxu1 %v13065_v29  ;;  %v11024_v24 = vld [vmem:[%s14043_s19 + $0x58] sm:$0xff]  ;;  %v11026_v29 = vld [vmem:[%s14048_s24 + $0x2] ss:$0 sm:$0xff] }
 0xce4   : > { %13067 = vmatprep.subr.bf16.mxu1 %v13979_v10  ;;  %v13077_v28 = vpack.c.bf16 %v11024_v24, %v11023_v23 }
 0xce5   : > { %12187 = vmatprep.mubr.msk.f32.mxu1 %vm1313_vm3, %v2278_v47 }
 0xce6   : > { %v13710_v48 = vpop.eup %13709 }
 0xce7   : > { %v2279_v52 = vmul.f32 %v13710_v48, %v13702_v27  ;;  %13069 = vmatpush3.bf16.msra.mxu1 %v13068_v61  ;;  %v2577_v27 = vld [vmem:[%s16001_s9] sm:$0xff]  ;;  %v11030_v61 = vld [vmem:[%s14053_s30 + $0x50] sm:$0xff]  ;;  %s16002_s9 = smov 96  }
 0xce8   : > { %13073 = vmatprep.subr.bf16.mxu1 %v13979_v10 }
 0xce9   : > { %12188 = vmatmul.mubr.msk.f32.gmra.mrb[18].mxu1 %vm1313_vm3, %v2279_v52 }
 0xcea   : > { %12209 = vmatprep.mubr.msk.f32.mxu1 %vm13980_vm1, %v13981_v18 }
 0xdb5   : > { %v12186_v62 = vpop.f32.mrb[16].mxu1 }
 0xdb6   : > { %v2381_v63 = vmul.f32 %v12186_v62, %v14289_v58  ;;  %v2361_v1 = vpop.f32.mrb[17].mxu1  ;;  %v11031_v62 = vld [vmem:[%s14053_s30 + $0x58] sm:$0xff] }
 0xdb7   : > { %v2380_v2 = vmul.f32 %v14285_v57, %v2361_v1  ;;  %v13083_v1 = vpack.c.bf16 %v11031_v62, %v11030_v61 }
 0xdb9   : > { %v13059_v50 = vpack.c.bf16 %v2381_v63, %v2380_v2 }
 0xdbb   : > { %13060 = vmatpush3.bf16.msra.mxu0 %v13059_v50 }
 0xdbc   : > { %v12189_v3 = vpop.f32.mrb[18].mxu1  ;;  %13061 = vmatprep.subr.bf16.mxu0 %v13979_v10 }
 0xdbd   : > { %v2383_v4 = vmul.f32 %v12189_v3, %v14296_v0  ;;  %v2371_v5 = vpop.f32.mrb[19].mxu1 }
 0xdbe   : > { %v2382_v7 = vmul.f32 %v14292_v60, %v2371_v5  ;;  %v11017_v5 = vld [vmem:[%s14073_s27 + $0x1] ss:$0 sm:$0xff] }
 0xdc0   : > { %v13062_v8 = vpack.c.bf16 %v2383_v4, %v2382_v7 }
 0xdc2   : > { %13063 = vmatpush3.bf16.msra.mxu0 %v13062_v8  ;;  %v11018_v8 = vld [vmem:[%s14078_s4 + $0x1] ss:$0 sm:$0xff] }
 0xdc3   : > { %13070 = vmatprep.subr.bf16.mxu0 %v13979_v10 }
 0xdc5   : > { %12199 = vmatmul.mubr.msk.f32.vlgmr.msra.gmra.mrb[16].mxu0 %vm1033_vm0, %v14350_v30 }
 0xdc6   : > { %12218 = vmatprep.mubr.msk.f32.mxu0 %vm13980_vm1, %v13981_v18  ;;  %13072 = vmatpush3.bf16.msra.mxu0 %v13071_v12 }
 0xdc7   : > { %12216 = vmatprep.subr.mxu0 %v13981_v18 }
 0xdca   : > { %12217 = vmatpush3.msk.msra.mxu0 %vm2582_vm15, %v2576_v13 }
 0xdcb   : > { %12219 = vmatmul.mubr.msk.f32.vlgmr.msra.gmra.mrb[18].mxu0 %vm2578_vm2, %v2573_v14  ;;  %13079 = vmatprep.subr.bf16.mxu0 %v13979_v10  ;;  %vm5150_vm2 = vcmp.ge.s32.totalorder %v14226_v32, 6 }
 0xdcc   : > { %12240 = vmatprep.mubr.msk.f32.mxu0 %vm13980_vm1, %v13981_v18  ;;  %13081 = vmatpush3.bf16.msra.mxu0 %v13080_v55 }
 0xdcd   : > { %13082 = vmatprep.subr.bf16.mxu0 %v13979_v10 }
 0xdd0   : > { %13084 = vmatpush3.bf16.msra.mxu0 %v13083_v1 }
 0xe98   : > { %v2450_v15 = vpop.f32.mrb[16].mxu0 }
 0xe99   : > { %v12200_v17 = vpop.f32.mrb[17].mxu0  ;;  %12210 = vmatmul.mubr.msk.f32.vlgmr.msra.gmra.mrb[20].mxu1 %vm1033_vm0, %v2450_v15 }
 0xe9a   : > { %12229 = vmatprep.mubr.msk.f32.mxu1 %vm13980_vm1, %v13981_v18  ;;  %13075 = vmatpush3.bf16.msra.mxu1 %v13074_v22 }
 0xe9b   : > { %13076 = vmatprep.subr.bf16.mxu1 %v13979_v10 }
 0xe9e   : > { %v2652_v26 = vpop.f32.mrb[18].mxu0  ;;  %13078 = vmatpush3.bf16.msra.mxu1 %v13077_v28 }
 0xe9f   : > { %v12220_v36 = vpop.f32.mrb[19].mxu0  ;;  %v14469_v39 = vadd.f32 %v2652_v26, %v2577_v27 }
 0xea1   : > { %12230 = vmatmul.mubr.msk.f32.vlgmr.msra.gmra.mrb[22].mxu1 %vm1033_vm0, %v14469_v39 }
 0xea2   : > { %12245 = vmatprep.mubr.msk.f32.mxu1 %vm1313_vm3, %v14234_v34 }
 0xf6c   : > { %v2536_v41 = vpop.f32.mrb[20].mxu1 }
 0xf6d   : > { %v2537_v42 = vadd.f32 %v11013_v40, %v2536_v41  ;;  %v12211_v43 = vpop.f32.mrb[21].mxu1 }
 0xf6f   : > { %v2540_v44 = vadd.f32 %v2537_v42, %v14381_v19 }
 0xf71   : > { %v2545_v25 = vsel %vm1033_vm0, %v2540_v44, 0.0 }
 0xf72   : > { %2546 = vadd.xlane.f32.xlu1 %v2545_v25 }
 0xf74   : > { %v2739_v59 = vpop.f32.mrb[22].mxu1 }
 0xf75   : > { %v2740_v19 = vadd.f32 %v11026_v29, %v2739_v59  ;;  %v12231_v63 = vpop.f32.mrb[23].mxu1 }
 0xf77   : > { %12243 = vmatprep.subr.mxu1 %v2740_v19 }
 0xf78   : > { %12244 = vmatpush3.msra.mxu1 %v2740_v19 }
 0xf79   : > { %12246 = vmatmul.mubr.msk.f32.vlgmr.msra.gmra.mrb[24].mxu1 %vm1313_vm3, %v14257_v49 }
 0xf7a   : > { %12248 = vmatprep.mubr.msk.f32.mxu1 %vm1313_vm3, %v14243_v37 }
 0xf7d   : > { %12249 = vmatmul.mubr.msk.f32.gmra.mrb[26].mxu1 %vm1313_vm3, %v14262_v51 }
 0xfff   : > { %v2547_v45 = vpop.xlane.xlu1 %2546 }
0x1000   : > { %v2548_v46 = vmul.f32 0.03125, %v2547_v45 }
0x1002   : > { %v2549_v47 = vsub.f32 %v2540_v44, %v2548_v46 }
0x1004   : > { %v2550_v48 = vmul.f32 %v2549_v47, %v2549_v47 }
0x1006   : > { %v2551_v52 = vsel %vm1033_vm0, %v2550_v48, 0.0 }
0x1007   : > { %2552 = vadd.xlane.f32.xlu1 %v2551_v52 }
0x104c   : > { %v12247_v13 = vpop.f32.mrb[24].mxu1 }
0x104d   : > { %v2895_v14 = vpop.f32.mrb[25].mxu1  ;;  %v2915_v26 = vmul.f32 %v12247_v13, %v14289_v58 }
0x104e   : > { %v2914_v15 = vmul.f32 %v14285_v57, %v2895_v14 }
0x1050   : > { %v12250_v17 = vpop.f32.mrb[26].mxu1 }
0x1051   : > { %v2905_v20 = vpop.f32.mrb[27].mxu1  ;;  %v2917_v27 = vmul.f32 %v12250_v17, %v14296_v0 }
0x1094   : > { %v2553_v2 = vpop.xlane.xlu1 %2552 }
0x1095   : > { %v2554_v50 = vmul.f32 0.03125, %v2553_v2 }
0x1097   : > { %v2555_v3 = vadd.f32 1e-12, %v2554_v50 }
0x1099   : > { %13711 = vrsqrt.f32 %v2555_v3 }
0x10a3   : > { %v13712_v4 = vpop.eup %13711 }
0x10a4   : > { %v2557_v7 = vmul.f32 %v13712_v4, %v2549_v47 }
0x10a6   : > { %v2564_v9 = vmul.f32 %v11017_v5, %v2557_v7 }
0x10a8   : > { %v2571_v11 = vadd.f32 %v11018_v8, %v2564_v9 }
0x10aa   : > { %v14494_v12 = vmul.f32 %v2571_v11, %v14378_v16  ;;  %v2916_v16 = vmul.f32 %v14292_v60, %v2905_v20 }
0x10ac   : > { %12241 = vmatmul.mubr.msk.f32.vlgmr.msra.gmra.mrb[20].mxu0 %vm1033_vm0, %v14494_v12 }
0x10ad   : > { %12253 = vmatprep.mubr.msk.f32.mxu0 %vm1033_vm0, %v2914_v15 }
0x117f   : > { %v2825_v22 = vpop.f32.mrb[20].mxu0 }
0x1180   : > { %v2826_v23 = vadd.f32 %v11033_v21, %v2825_v22  ;;  %v12242_v24 = vpop.f32.mrb[21].mxu0 }
0x1182   : > { %12251 = vmatprep.subr.msk.mxu0 %vm1033_vm0, %v2826_v23 }
0x1183   : > { %12252 = vmatpush3.xpose.msk.msra.mxu0 %vm1033_vm0, %v2826_v23 }
0x1184   : > { %13085 = vmatprep.subr.bf16.mxu0 %v13979_v10 }
0x1186   : > { %12254 = vmatmul.mubr.msk.f32.vlgmr.msra.gmra.mrb[22].mxu0 %vm1033_vm0, %v2915_v26 }
0x1187   : > { %12256 = vmatprep.mubr.msk.f32.mxu0 %vm1033_vm0, %v2916_v16 }
0x118a   : > { %12257 = vmatmul.mubr.msk.f32.gmra.mrb[24].mxu0 %vm1033_vm0, %v2917_v27 }
0x118b   : > { %12275 = vmatprep.mubr.msk.f32.mxu0 %vm13980_vm1, %v13981_v18 }
0x1259   : > { %v12255_v28 = vpop.f32.mrb[22].mxu0 }
0x125a   : > { %v3019_v36 = vmul.f32 0.35355338, %v12255_v28  ;;  %v2999_v40 = vpop.f32.mrb[23].mxu0 }
0x125b   : > { %v3018_v41 = vmul.f32 0.35355338, %v2999_v40 }
0x125c   : > { %v3023_v42 = vadd.f32 %v14312_v6, %v3019_v36 }
0x125d   : > { %v12258_v43 = vpop.f32.mrb[24].mxu0  ;;  %v3022_v45 = vadd.f32 %v14312_v6, %v3018_v41 }
0x125e   : > { %v3009_v44 = vpop.f32.mrb[25].mxu0  ;;  %v3029_v25 = vsel %vm1313_vm3, %v3023_v42, -inf  ;;  %v3021_v47 = vmul.f32 0.35355338, %v12258_v43  ;;  %v11050_v43 = vld [vmem:[%s14063_s12 + $0x48] sm:$0xff] }
0x125f   : > { %v3020_v46 = vmul.f32 0.35355338, %v3009_v44  ;;  %3030 = vmax.xlane.f32.xlu1 %v3029_v25  ;;  %v3026_v48 = vsel %vm1313_vm3, %v3022_v45, -inf  ;;  %v11051_v44 = vld [vmem:[%s14063_s12 + $0x50] sm:$0xff] }
0x1260   : > { %v3025_v54 = vadd.f32 %v14312_v6, %v3021_v47 }
0x1261   : > { %v3024_v52 = vadd.f32 %v14312_v6, %v3020_v46 }
0x1262   : > { %v3035_v55 = vsel %vm1313_vm3, %v3025_v54, -inf }
0x1263   : > { %3027 = vmax.xlane.f32.xlu1 %v3026_v48  ;;  %v3032_v53 = vsel %vm1313_vm3, %v3024_v52, -inf }
0x1267   : > { %3033 = vmax.xlane.f32.xlu1 %v3032_v53 }
0x126b   : > { %3036 = vmax.xlane.f32.xlu1 %v3035_v55 }
0x12ec   : > { %v3031_v29 = vpop.xlane.xlu1 %3030 }
0x12ed   : > { %v3039_v59 = vsub.f32 %v3023_v42, %v3031_v29  ;;  %v11049_v42 = vld [vmem:[%s14063_s12 + $0x40] sm:$0xff] }
0x12ee   : > { %v13092_v25 = vpack.c.bf16 %v11050_v43, %v11049_v42 }
0x12ef   : > { %v3044_v61 = vmul.f32 1.442695, %v3039_v59 }
0x12f0   : > { %v3028_v62 = vpop.xlane.xlu1 %3027 }
0x12f1   : > { %13713 = vpow2.f32 %v3044_v61  ;;  %v3038_v19 = vsub.f32 %v3022_v45, %v3028_v62  ;;  %v11052_v45 = vld [vmem:[%s14063_s12 + $0x58] sm:$0xff] }
0x12f2   : > { %v13095_v46 = vpack.c.bf16 %v11052_v45, %v11051_v44 }
0x12f3   : > { %v3042_v63 = vmul.f32 1.442695, %v3038_v19  ;;  %v11067_v19 = vld [vmem:[%s14053_s30 + $0x60] sm:$0xff] }
0x12f4   : > { %v3034_v1 = vpop.xlane.xlu1 %3033 }
0x12f5   : > { %13715 = vpow2.f32 %v3042_v63  ;;  %v3040_v2 = vsub.f32 %v3024_v52, %v3034_v1  ;;  %v11068_v63 = vld [vmem:[%s14053_s30 + $0x68] sm:$0xff] }
0x12f6   : > { %v13104_v1 = vpack.c.bf16 %v11068_v63, %v11067_v19 }
0x12f7   : > { %v3046_v5 = vmul.f32 1.442695, %v3040_v2  ;;  %v11069_v2 = vld [vmem:[%s14053_s30 + $0x70] sm:$0xff] }
0x12f8   : > { %v3037_v50 = vpop.xlane.xlu1 %3036 }
0x12f9   : > { %v3041_v3 = vsub.f32 %v3025_v54, %v3037_v50  ;;  %v11070_v50 = vld [vmem:[%s14053_s30 + $0x78] sm:$0xff] }
0x12fb   : > { %v13714_v4 = vpop.eup %13713  ;;  %v3048_v7 = vmul.f32 1.442695, %v3041_v3 }
0x12fc   : > { %v3053_v6 = vsel %vm1313_vm3, %v13714_v4, 0.0 }
0x12fd   : > { %13717 = vpow2.f32 %v3048_v7  ;;  %3054 = vadd.xlane.f32.xlu1 %v3053_v6  ;;  %v11054_v7 = vld [vmem:[%s14068_s20 + $0x2] ss:$0 sm:$0xff] }
0x12fe   : > { %13719 = vpow2.f32 %v3046_v5  ;;  %v13107_v5 = vpack.c.bf16 %v11070_v50, %v11069_v2 }
0x12ff   : > { %v13716_v8 = vpop.eup %13715 }
0x1300   : > { %v3050_v9 = vsel %vm1313_vm3, %v13716_v8, 0.0 }
0x1301   : > { %3051 = vadd.xlane.f32.xlu0 %v3050_v9 }
0x1307   : > { %v13718_v11 = vpop.eup %13717 }
0x1308   : > { %v3059_v13 = vsel %vm1313_vm3, %v13718_v11, 0.0  ;;  %v13720_v14 = vpop.eup %13719 }
0x1309   : > { %3060 = vadd.xlane.f32.xlu1 %v3059_v13  ;;  %v3056_v15 = vsel %vm1313_vm3, %v13720_v14, 0.0 }
0x130d   : > { %3057 = vadd.xlane.f32.xlu1 %v3056_v15 }
0x131e   : > { %3070 = vrot.lane.b32.xlu1 %v2826_v23, %s16002_s9 }
0x138a   : > { %v3055_v20 = vpop.xlane.xlu1 %3054 }
0x138e   : > { %v3052_v17 = vpop.xlane.xlu0 %3051 }
0x138f   : > { %13721 = vrcp.f32 %v3052_v17 }
0x1390   : > { %13723 = vrcp.f32 %v3055_v20 }
0x1396   : > { %v3061_v21 = vpop.xlane.xlu1 %3060 }
0x1397   : > { %13725 = vrcp.f32 %v3061_v21 }
0x1399   : > { %v13722_v22 = vpop.eup %13721 }
0x139a   : > { %v3058_v24 = vpop.xlane.xlu1 %3057  ;;  %v3066_v16 = vmul.f32 %v13722_v22, %v13716_v8  ;;  %v13724_v26 = vpop.eup %13723 }
0x139b   : > { %13727 = vrcp.f32 %v3058_v24  ;;  %v3067_v28 = vmul.f32 %v13724_v26, %v13714_v4  ;;  %v11060_v26 = vld [vmem:[%s14043_s19 + $0x60] sm:$0xff] }
0x139c   : > { %12261 = vmatprep.mubr.msk.f32.mxu1 %vm1313_vm3, %v3066_v16 }
0x139e   : > { %v3071_v27 = vpop.permute.xlu1 %3070 }
0x139f   : > { %12259 = vmatprep.subr.mxu1 %v3071_v27 }
0x13a0   : > { %12260 = vmatpush3.msra.mxu1 %v3071_v27  ;;  %v11061_v27 = vld [vmem:[%s14043_s19 + $0x68] sm:$0xff] }
0x13a1   : > { %12262 = vmatmul.mubr.msk.f32.vlgmr.msra.gmra.mrb[28].mxu1 %vm1313_vm3, %v3067_v28  ;;  %13091 = vmatprep.subr.bf16.mxu1 %v13979_v10  ;;  %v13726_v23 = vpop.eup %13725  ;;  %v11062_v28 = vld [vmem:[%s14043_s19 + $0x70] sm:$0xff] }
0x13a2   : > { %v3069_v41 = vmul.f32 %v13726_v23, %v13718_v11  ;;  %13093 = vmatpush3.bf16.msra.mxu1 %v13092_v25  ;;  %v13098_v23 = vpack.c.bf16 %v11061_v27, %v11060_v26  ;;  %v11058_v25 = vld [vmem:[%s14073_s27 + $0x2] ss:$0 sm:$0xff] }
0x13a3   : > { %13094 = vmatprep.subr.bf16.mxu1 %v13979_v10 }
0x13a5   : > { %v13728_v36 = vpop.eup %13727 }
0x13a6   : > { %v3068_v40 = vmul.f32 %v13728_v36, %v13720_v14  ;;  %13096 = vmatpush3.bf16.msra.mxu1 %v13095_v46  ;;  %v11072_v14 = vld [vmem:[%s14058_s6 + $0x3] ss:$0 sm:$0xff]  ;;  %v11063_v36 = vld [vmem:[%s14043_s19 + $0x78] sm:$0xff]  ;;  %v11059_v46 = vld [vmem:[%s14078_s4 + $0x2] ss:$0 sm:$0xff] }
0x13a7   : > { %13103 = vmatprep.subr.bf16.mxu1 %v13979_v10 }
0x13a8   : > { %12264 = vmatprep.mubr.msk.f32.mxu1 %vm1313_vm3, %v3068_v40  ;;  %v13101_v40 = vpack.c.bf16 %v11063_v36, %v11062_v28 }
0x13a9   : > { %12265 = vmatmul.mubr.msk.f32.gmra.mrb[30].mxu1 %vm1313_vm3, %v3069_v41 }
0x13aa   : > { %12286 = vmatprep.mubr.msk.f32.mxu1 %vm13980_vm1, %v13981_v18 }
0x1474   : > { %v12263_v47 = vpop.f32.mrb[28].mxu1 }
0x1475   : > { %v3171_v48 = vmul.f32 %v12263_v47, %v14289_v58  ;;  %v3151_v52 = vpop.f32.mrb[29].mxu1 }
0x1476   : > { %v3170_v53 = vmul.f32 %v14285_v57, %v3151_v52 }
0x1478   : > { %v13086_v54 = vpack.c.bf16 %v3171_v48, %v3170_v53 }
0x147a   : > { %13087 = vmatpush3.bf16.msra.mxu0 %v13086_v54  ;;  %v11065_v54 = vld [vmem:[%s14048_s24 + $0x3] ss:$0 sm:$0xff] }
0x147b   : > { %13088 = vmatprep.subr.bf16.mxu0 %v13979_v10 }
0x147c   : > { %v12266_v55 = vpop.f32.mrb[30].mxu1 }
0x147d   : > { %v3173_v29 = vmul.f32 %v12266_v55, %v14296_v0  ;;  %v3161_v59 = vpop.f32.mrb[31].mxu1 }
0x147e   : > { %v3172_v61 = vmul.f32 %v14292_v60, %v3161_v59 }
0x1480   : > { %v13089_v62 = vpack.c.bf16 %v3173_v29, %v3172_v61 }
0x1482   : > { %13090 = vmatpush3.bf16.msra.mxu0 %v13089_v62 }
0x1483   : > { %13097 = vmatprep.subr.bf16.mxu0 %v13979_v10 }
0x1485   : > { %12276 = vmatmul.mubr.msk.f32.vlgmr.msra.gmra.mrb[26].mxu0 %vm1033_vm0, %v14350_v30 }
0x1486   : > { %12297 = vmatprep.mubr.msk.f32.mxu0 %vm13980_vm1, %v13981_v18  ;;  %13099 = vmatpush3.bf16.msra.mxu0 %v13098_v23 }
0x1487   : > { %13100 = vmatprep.subr.bf16.mxu0 %v13979_v10 }
0x148a   : > { %13102 = vmatpush3.bf16.msra.mxu0 %v13101_v40 }
0x1558   : > { %v3240_v3 = vpop.f32.mrb[26].mxu0 }
0x1559   : > { %v12277_v4 = vpop.f32.mrb[27].mxu0  ;;  %12287 = vmatmul.mubr.msk.f32.vlgmr.msra.gmra.mrb[32].mxu1 %vm1033_vm0, %v3240_v3 }
0x155a   : > { %13105 = vmatpush3.bf16.msra.mxu1 %v13104_v1  ;;  %12308 = vmatprep.mubr.msk.f32.mxu1 %vm13980_vm1, %v13981_v18  ;;  %v13861_v4 = vld [vmem:[%s14309_s26] ss:$0 sm:$0xff]  ;;  %s16004_s26 = sld [smem:[#allocation21_spill]] }
0x155b   : > { %13106 = vmatprep.subr.bf16.mxu1 %v13979_v10 }
0x155e   : > { %13108 = vmatpush3.bf16.msra.mxu1 %v13107_v5 }
0x1561   : > { %12309 = vmatmul.mubr.msk.f32.vlgmr.msra.gmra.mrb[34].mxu1 %vm1033_vm0, %v14494_v12 }
0x162c   : > { %v3326_v6 = vpop.f32.mrb[32].mxu1 }
0x162d   : > { %v3327_v8 = vadd.f32 %v11054_v7, %v3326_v6  ;;  %v12288_v9 = vpop.f32.mrb[33].mxu1 }
0x162f   : > { %v3330_v11 = vadd.f32 %v3327_v8, %v14469_v39  ;;  %v2656_v39 = vld [vmem:[%s1006_s29] sm:$0xff]  ;;  %s13597_s29 = smul.u32 152, %s14191_s7 }
0x1631   : > { %v3335_v13 = vsel %vm1033_vm0, %v3330_v11, 0.0  ;;  %s14671_s13 = scalar_lea.vmem %s16005_s3, %s13597_s29  ;;  %s16007_s3 = sld [smem:[#allocation15_spill]] }
0x1632   : > { %3336 = vadd.xlane.f32.xlu0 %v3335_v13  ;;  %s15972_s29 = smul.u32 24, %s14191_s7  ;;  %s16012_s7 = sld [smem:[#allocation24_spill]] }
0x1634   : > { %v3533_v15 = vpop.f32.mrb[34].mxu1 }
0x1635   : > { %v14562_v17 = vadd.f32 %v11072_v14, %v3533_v15  ;;  %v12310_v20 = vpop.f32.mrb[35].mxu1 }
0x1637   : > { %12319 = vmatprep.subr.msk.mxu1 %vm1033_vm0, %v14562_v17 }
0x1638   : > { %12320 = vmatpush3.xpose.msk.msra.mxu1 %vm1033_vm0, %v14562_v17 }
0x1639   : > { %13109 = vmatprep.subr.bf16.mxu1 %v13979_v10 }
0x1648   : > { %3364 = vperm.xlu0 %13674, %v2656_v39  }
0x16bf   : > { %v3337_v12 = vpop.xlane.xlu0 %3336 }
0x16c0   : > { %v3338_v21 = vmul.f32 0.03125, %v3337_v12 }
0x16c2   : > { %v3339_v22 = vsub.f32 %v3330_v11, %v3338_v21 }
0x16c4   : > { %v3340_v24 = vmul.f32 %v3339_v22, %v3339_v22 }
0x16c6   : > { %v3341_v16 = vsel %vm1033_vm0, %v3340_v24, 0.0 }
0x16c7   : > { %3342 = vadd.xlane.f32.xlu1 %v3341_v16  ;;  %v14579_v48 = vpop.permute.xlu0 %3364 }
0x1754   : > { %v3343_v41 = vpop.xlane.xlu1 %3342 }
0x1755   : > { %v3344_v42 = vmul.f32 0.03125, %v3343_v41 }
0x1757   : > { %v3345_v43 = vadd.f32 1e-12, %v3344_v42 }
0x1759   : > { %13729 = vrsqrt.f32 %v3345_v43 }
0x1763   : > { %v13730_v44 = vpop.eup %13729 }
0x1764   : > { %v3347_v45 = vmul.f32 %v13730_v44, %v3339_v22 }
0x1766   : > { %v3354_v47 = vmul.f32 %v11058_v25, %v3347_v45 }
0x1768   : > { %v3361_v52 = vadd.f32 %v11059_v46, %v3354_v47 }
0x176a   : > { %v14582_v53 = vmul.f32 %v14579_v48, %v3361_v52 }
0x176c   : > { %12298 = vmatmul.mubr.msk.f32.vlgmr.msra.gmra.mrb[28].mxu0 %vm1033_vm0, %v14582_v53 }
0x176d   : > { %12313 = vmatprep.mubr.msk.f32.mxu0 %vm1313_vm3, %v14234_v34 }
0x183f   : > { %v3450_v55 = vpop.f32.mrb[28].mxu0 }
0x1840   : > { %v3451_v29 = vadd.f32 %v11065_v54, %v3450_v55  ;;  %v12299_v59 = vpop.f32.mrb[29].mxu0 }
0x1842   : > { %12311 = vmatprep.subr.mxu0 %v3451_v29 }
0x1843   : > { %12312 = vmatpush3.msra.mxu0 %v3451_v29 }
0x1844   : > { %12314 = vmatmul.mubr.msk.f32.vlgmr.msra.gmra.mrb[30].mxu0 %vm1313_vm3, %v14257_v49 }
0x1845   : > { %12316 = vmatprep.mubr.msk.f32.mxu0 %vm1313_vm3, %v14243_v37 }
0x1848   : > { %12317 = vmatmul.mubr.msk.f32.gmra.mrb[32].mxu0 %vm1313_vm3, %v14262_v51 }
0x1917   : > { %v12315_v61 = vpop.f32.mrb[30].mxu0 }
0x1918   : > { %v3603_v62 = vpop.f32.mrb[31].mxu0  ;;  %v3623_v19 = vmul.f32 %v12315_v61, %v14289_v58 }
0x1919   : > { %v3622_v34 = vmul.f32 %v14285_v57, %v3603_v62 }
0x191b   : > { %v12318_v63 = vpop.f32.mrb[32].mxu0  ;;  %12321 = vmatprep.mubr.msk.f32.mxu1 %vm1033_vm0, %v3622_v34 }
0x191c   : > { %v3625_v1 = vmul.f32 %v12318_v63, %v14296_v0  ;;  %v3613_v2 = vpop.f32.mrb[33].mxu0  ;;  %12322 = vmatmul.mubr.msk.f32.vlgmr.msra.gmra.mrb[36].mxu1 %vm1033_vm0, %v3623_v19 }
0x191d   : > { %v3624_v37 = vmul.f32 %v14292_v60, %v3613_v2 }
0x191f   : > { %12324 = vmatprep.mubr.msk.f32.mxu1 %vm1033_vm0, %v3624_v37 }
0x1920   : > { %12325 = vmatmul.mubr.msk.f32.gmra.mrb[38].mxu1 %vm1033_vm0, %v3625_v1 }
0x1921   : > { %12343 = vmatprep.mubr.msk.f32.mxu1 %vm13980_vm1, %v13981_v18 }
0x19ef   : > { %v12323_v49 = vpop.f32.mrb[36].mxu1 }
0x19f0   : > { %v3727_v51 = vmul.f32 0.35355338, %v12323_v49  ;;  %v3707_v50 = vpop.f32.mrb[37].mxu1 }
0x19f1   : > { %v3726_v3 = vmul.f32 0.35355338, %v3707_v50  ;;  %v11089_v50 = vld [vmem:[%s14063_s12 + $0x68] sm:$0xff] }
0x19f2   : > { %v3731_v5 = vadd.f32 %v13861_v4, %v3727_v51  ;;  %v11088_v51 = vld [vmem:[%s14063_s12 + $0x60] sm:$0xff] }
0x19f3   : > { %v12326_v7 = vpop.f32.mrb[38].mxu1  ;;  %v3730_v11 = vadd.f32 %v13861_v4, %v3726_v3  ;;  %v13116_v3 = vpack.c.bf16 %v11089_v50, %v11088_v51  ;;  %v4102_v50 = vld [vmem:[%s16004_s26 + $0x60] sm:$0xff] }
0x19f4   : > { %v3729_v6 = vmul.f32 0.35355338, %v12326_v7  ;;  %v3737_v8 = vsel %vm1313_vm3, %v3731_v5, -inf  ;;  %v3717_v9 = vpop.f32.mrb[39].mxu1 }
0x19f5   : > { %3738 = vmax.xlane.f32.xlu1 %v3737_v8  ;;  %v3728_v13 = vmul.f32 0.35355338, %v3717_v9  ;;  %v3734_v15 = vsel %vm1313_vm3, %v3730_v11, -inf }
0x19f6   : > { %v3733_v14 = vadd.f32 %v13861_v4, %v3729_v6 }
0x19f7   : > { %v3732_v39 = vadd.f32 %v13861_v4, %v3728_v13  ;;  %v11090_v4 = vld [vmem:[%s14063_s12 + $0x70] sm:$0xff] }
0x19f8   : > { %v3743_v20 = vsel %vm1313_vm3, %v3733_v14, -inf }
0x19f9   : > { %3735 = vmax.xlane.f32.xlu1 %v3734_v15  ;;  %3744 = vmax.xlane.f32.xlu0 %v3743_v20  ;;  %v3740_v12 = vsel %vm1313_vm3, %v3732_v39, -inf  ;;  %v4106_v15 = vld [vmem:[%s16004_s26 + $0x80] sm:$0xff]  ;;  %v4107_v20 = vld [vmem:[%s16004_s26 + $0x88] sm:$0xff] }
0x19fd   : > { %3741 = vmax.xlane.f32.xlu1 %v3740_v12 }
0x1a82   : > { %v3739_v21 = vpop.xlane.xlu1 %3738 }
0x1a83   : > { %v3747_v22 = vsub.f32 %v3731_v5, %v3739_v21  ;;  %v11091_v5 = vld [vmem:[%s14063_s12 + $0x78] sm:$0xff]  ;;  %v13121_v21 = vpack.c.bf16 %v4107_v20, %v4106_v15  ;;  %v4170_v20 = vld [vmem:[%s16004_s26 + $0x280] sm:$0xff] }
0x1a84   : > { %v13119_v7 = vpack.c.bf16 %v11091_v5, %v11090_v4  ;;  %v4120_v4 = vld [vmem:[%s16004_s26 + $0xf0] sm:$0xff]  ;;  %v4121_v5 = vld [vmem:[%s16004_s26 + $0xf8] sm:$0xff] }
0x1a85   : > { %v3752_v24 = vmul.f32 1.442695, %v3747_v22  ;;  %v4090_v22 = vld [vmem:[%s16004_s26] sm:$0xff] }
0x1a86   : > { %v3736_v16 = vpop.xlane.xlu1 %3735  ;;  %v3745_v26 = vpop.xlane.xlu0 %3744 }
0x1a87   : > { %13731 = vpow2.f32 %v3752_v24  ;;  %v3746_v27 = vsub.f32 %v3730_v11, %v3736_v16  ;;  %v3749_v28 = vsub.f32 %v3733_v14, %v3745_v26  ;;  %v4091_v24 = vld [vmem:[%s16004_s26 + $0x8] sm:$0xff]  ;;  %v4108_v16 = vld [vmem:[%s16004_s26 + $0x90] sm:$0xff]  ;;  %v4109_v26 = vld [vmem:[%s16004_s26 + $0x98] sm:$0xff] }
0x1a89   : > { %v3750_v23 = vmul.f32 1.442695, %v3746_v27  ;;  %v3756_v36 = vmul.f32 1.442695, %v3749_v28  ;;  %v13123_v27 = vpack.c.bf16 %v4091_v24, %v4090_v22  ;;  %v13125_v28 = vpack.c.bf16 %v4109_v26, %v4108_v16  ;;  %v4072_v22 = vld [vmem:[%s14671_s13 + $0x8] sm:$0x3f] }
0x1a8a   : > { %v3742_v40 = vpop.xlane.xlu1 %3741  ;;  %v4071_v24 = vld [vmem:[%s14671_s13] sm:$0x3f]  ;;  %v4172_v16 = vld [vmem:[%s16004_s26 + $0x290] sm:$0xff]  ;;  %v4173_v26 = vld [vmem:[%s16004_s26 + $0x298] sm:$0xff] }
0x1a8b   : > { %13733 = vpow2.f32 %v3750_v23  ;;  %v3748_v41 = vsub.f32 %v3732_v39, %v3742_v40  ;;  %v4092_v23 = vld [vmem:[%s16004_s26 + $0x10] sm:$0xff] }
0x1a8c   : > { %13735 = vpow2.f32 %v3756_v36  ;;  %v4110_v36 = vld [vmem:[%s16004_s26 + $0xa0] sm:$0xff] }
0x1a8d   : > { %v3754_v42 = vmul.f32 1.442695, %v3748_v41 }
0x1a8f   : > { %13737 = vpow2.f32 %v3754_v42  ;;  %v4094_v42 = vld [vmem:[%s16004_s26 + $0x20] sm:$0xff] }
0x1a91   : > { %v13732_v43 = vpop.eup %13731 }
0x1a92   : > { %v3761_v44 = vsel %vm1313_vm3, %v13732_v43, 0.0 }
0x1a93   : > { %3762 = vadd.xlane.f32.xlu1 %v3761_v44  ;;  %v4112_v44 = vld [vmem:[%s16004_s26 + $0xb0] sm:$0xff] }
0x1a95   : > { %v13734_v25 = vpop.eup %13733 }
0x1a96   : > { %v3758_v45 = vsel %vm1313_vm3, %v13734_v25, 0.0  ;;  %v13736_v46 = vpop.eup %13735 }
0x1a97   : > { %3759 = vadd.xlane.f32.xlu1 %v3758_v45  ;;  %v3767_v47 = vsel %vm1313_vm3, %v13736_v46, 0.0 }
0x1a99   : > { %v13738_v52 = vpop.eup %13737 }
0x1a9a   : > { %v3764_v54 = vsel %vm1313_vm3, %v13738_v52, 0.0 }
0x1a9b   : > { %3768 = vadd.xlane.f32.xlu1 %v3767_v47  ;;  %v4096_v47 = vld [vmem:[%s16004_s26 + $0x30] sm:$0xff] }
0x1a9f   : > { %3765 = vadd.xlane.f32.xlu1 %v3764_v54  ;;  %v4115_v54 = vld [vmem:[%s16004_s26 + $0xc8] sm:$0xff] }
0x1ab0   : > { %3778 = vrot.lane.b32.xlu1 %v14562_v17, %s16002_s9 }
0x1b20   : > { %v3763_v55 = vpop.xlane.xlu1 %3762 }
0x1b21   : > { %13739 = vrcp.f32 %v3763_v55 }
0x1b24   : > { %v3760_v29 = vpop.xlane.xlu1 %3759 }
0x1b25   : > { %13741 = vrcp.f32 %v3760_v29 }
0x1b28   : > { %v3769_v59 = vpop.xlane.xlu1 %3768 }
0x1b29   : > { %13743 = vrcp.f32 %v3769_v59  ;;  %v4098_v59 = vld [vmem:[%s16004_s26 + $0x40] sm:$0xff] }
0x1b2b   : > { %v13740_v62 = vpop.eup %13739 }
0x1b2c   : > { %v3766_v61 = vpop.xlane.xlu1 %3765  ;;  %v3775_v1 = vmul.f32 %v13740_v62, %v13732_v43  ;;  %v4095_v43 = vld [vmem:[%s16004_s26 + $0x28] sm:$0xff]  ;;  %v4116_v62 = vld [vmem:[%s16004_s26 + $0xd0] sm:$0xff] }
0x1b2d   : > { %13745 = vrcp.f32 %v3766_v61  ;;  %v13131_v45 = vpack.c.bf16 %v4095_v43, %v4094_v42  ;;  %v4099_v61 = vld [vmem:[%s16004_s26 + $0x48] sm:$0xff] }
0x1b2e   : > { %v4159_v42 = vld [vmem:[%s16004_s26 + $0x228] sm:$0xff] }
0x1b2f   : > { %v13742_v34 = vpop.eup %13741 }
0x1b30   : > { %v3779_v19 = vpop.permute.xlu1 %3778  ;;  %v3774_v63 = vmul.f32 %v13742_v34, %v13734_v25  ;;  %v4113_v25 = vld [vmem:[%s16004_s26 + $0xb8] sm:$0xff] }
0x1b31   : > { %12327 = vmatprep.subr.mxu0 %v3779_v19  ;;  %v4117_v34 = vld [vmem:[%s16004_s26 + $0xd8] sm:$0xff] }
0x1b32   : > { %12328 = vmatpush3.msra.mxu0 %v3779_v19  ;;  %12329 = vmatprep.mubr.msk.f32.mxu0 %vm1313_vm3, %v3774_v63  ;;  %v13139_v19 = vpack.c.bf16 %v4099_v61, %v4098_v59  ;;  %v13141_v63 = vpack.c.bf16 %v4117_v34, %v4116_v62  ;;  %v4163_v59 = vld [vmem:[%s16004_s26 + $0x248] sm:$0xff]  ;;  %v4180_v62 = vld [vmem:[%s16004_s26 + $0x2d0] sm:$0xff]  ;;  %v4181_v34 = vld [vmem:[%s16004_s26 + $0x2d8] sm:$0xff] }
0x1b33   : > { %12330 = vmatmul.mubr.msk.f32.vlgmr.msra.gmra.mrb[34].mxu0 %vm1313_vm3, %v3775_v1  ;;  %13115 = vmatprep.subr.bf16.mxu0 %v13979_v10  ;;  %v13744_v17 = vpop.eup %13743  ;;  %v4100_v1 = vld [vmem:[%s16004_s26 + $0x50] sm:$0xff] }
0x1b34   : > { %v3777_v49 = vmul.f32 %v13744_v17, %v13736_v46  ;;  %13117 = vmatpush3.bf16.msra.mxu0 %v13116_v3  ;;  %v13133_v46 = vpack.c.bf16 %v4113_v25, %v4112_v44  ;;  %v4101_v17 = vld [vmem:[%s16004_s26 + $0x58] sm:$0xff]  ;;  %v4103_v3 = vld [vmem:[%s16004_s26 + $0x68] sm:$0xff]  ;;  %v4176_v44 = vld [vmem:[%s16004_s26 + $0x2b0] sm:$0xff] }
0x1b35   : > { %13118 = vmatprep.subr.bf16.mxu0 %v13979_v10  ;;  %v4177_v25 = vld [vmem:[%s16004_s26 + $0x2b8] sm:$0xff] }
0x1b37   : > { %v13746_v2 = vpop.eup %13745 }
0x1b38   : > { %v3776_v37 = vmul.f32 %v13746_v2, %v13738_v52  ;;  %13120 = vmatpush3.bf16.msra.mxu0 %v13119_v7  ;;  %v4114_v52 = vld [vmem:[%s16004_s26 + $0xc0] sm:$0xff]  ;;  %v13147_v7 = vpack.c.bf16 %v4103_v3, %v4102_v50  ;;  %v4167_v50 = vld [vmem:[%s16004_s26 + $0x268] sm:$0xff] }
0x1b39   : > { %v13137_v29 = vpack.c.bf16 %v4115_v54, %v4114_v52  ;;  %v4118_v2 = vld [vmem:[%s16004_s26 + $0xe0] sm:$0xff]  ;;  %v4179_v54 = vld [vmem:[%s16004_s26 + $0x2c8] sm:$0xff] }
0x1b3a   : > { %12332 = vmatprep.mubr.msk.f32.mxu0 %vm1313_vm3, %v3776_v37  ;;  %v4119_v37 = vld [vmem:[%s16004_s26 + $0xe8] sm:$0xff]  ;;  %v4178_v52 = vld [vmem:[%s16004_s26 + $0x2c0] sm:$0xff] }
0x1b3b   : > { %12333 = vmatmul.mubr.msk.f32.gmra.mrb[36].mxu0 %vm1313_vm3, %v3777_v49  ;;  %v13143_v49 = vpack.c.bf16 %v4101_v17, %v4100_v1  ;;  %v13145_v51 = vpack.c.bf16 %v4119_v37, %v4118_v2  ;;  %v4165_v1 = vld [vmem:[%s16004_s26 + $0x258] sm:$0xff]  ;;  %v4182_v2 = vld [vmem:[%s16004_s26 + $0x2e0] sm:$0xff]  ;;  %v4183_v37 = vld [vmem:[%s16004_s26 + $0x2e8] sm:$0xff] }
0x1b3c   : > { %12354 = vmatprep.mubr.msk.f32.mxu0 %vm13980_vm1, %v13981_v18 }
0x1c06   : > { %v12331_v6 = vpop.f32.mrb[34].mxu0 }
0x1c07   : > { %v3879_v8 = vmul.f32 %v12331_v6, %v14289_v58  ;;  %v3859_v9 = vpop.f32.mrb[35].mxu0  ;;  %v13149_v6 = vpack.c.bf16 %v4121_v5, %v4120_v4  ;;  %v4184_v4 = vld [vmem:[%s16004_s26 + $0x2f0] sm:$0xff]  ;;  %v4185_v5 = vld [vmem:[%s16004_s26 + $0x2f8] sm:$0xff] }
0x1c08   : > { %v3878_v11 = vmul.f32 %v14285_v57, %v3859_v9  ;;  %v4105_v9 = vld [vmem:[%s16004_s26 + $0x78] sm:$0xff] }
0x1c0a   : > { %v13110_v13 = vpack.c.bf16 %v3879_v8, %v3878_v11  ;;  %v4104_v8 = vld [vmem:[%s16004_s26 + $0x70] sm:$0xff] }
0x1c0b   : > { %v13151_v11 = vpack.c.bf16 %v4105_v9, %v4104_v8  ;;  %v4169_v8 = vld [vmem:[%s16004_s26 + $0x278] sm:$0xff] }
0x1c0c   : > { %13111 = vmatpush3.bf16.msra.mxu1 %v13110_v13  ;;  %v4138_v13 = vld [vmem:[%s16004_s26 + $0x180] sm:$0xff] }
0x1c0d   : > { %13112 = vmatprep.subr.bf16.mxu1 %v13979_v10 }
0x1c0e   : > { %v12334_v14 = vpop.f32.mrb[36].mxu0 }
0x1c0f   : > { %v3881_v39 = vmul.f32 %v12334_v14, %v14296_v0  ;;  %v3869_v12 = vpop.f32.mrb[37].mxu0  ;;  %v4093_v0 = vld [vmem:[%s16004_s26 + $0x18] sm:$0xff]  ;;  %v4139_v14 = vld [vmem:[%s16004_s26 + $0x188] sm:$0xff] }
0x1c10   : > { %v3880_v58 = vmul.f32 %v14292_v60, %v3869_v12  ;;  %v4111_v60 = vld [vmem:[%s16004_s26 + $0xa8] sm:$0xff]  ;;  %v13127_v40 = vpack.c.bf16 %v4093_v0, %v4092_v23  ;;  %v13153_v15 = vpack.c.bf16 %v4139_v14, %v4138_v13  ;;  %v4157_v23 = vld [vmem:[%s16004_s26 + $0x218] sm:$0xff] }
0x1c11   : > { %v13129_v41 = vpack.c.bf16 %v4111_v60, %v4110_v36  ;;  %v4174_v36 = vld [vmem:[%s16004_s26 + $0x2a0] sm:$0xff]  ;;  %v4175_v60 = vld [vmem:[%s16004_s26 + $0x2a8] sm:$0xff] }
0x1c12   : > { %v13113_v57 = vpack.c.bf16 %v3881_v39, %v3880_v58  ;;  %v4171_v39 = vld [vmem:[%s16004_s26 + $0x288] sm:$0xff]  ;;  %13154 = vmatprep.subr.bf16.mxu0 %v13153_v15  ;;  %v4154_v58 = vld [vmem:[%s16004_s26 + $0x200] sm:$0xff] }
0x1c13   : > { %v13185_v12 = vpack.c.bf16 %v4171_v39, %v4170_v20  ;;  %v4235_v13 = vld [vmem:[%s16004_s26 + $0x488] sm:$0xff]  ;;  %v4218_v20 = vld [vmem:[%s16004_s26 + $0x400] sm:$0xff] }
0x1c14   : > { %13114 = vmatpush3.bf16.msra.mxu1 %v13113_v57  ;;  %v4076_v14 = vld [vmem:[%s14671_s13 + $0x28] sm:$0x3f] }
0x1c15   : > { %13122 = vmatprep.subr.bf16.mxu1 %v13121_v21  ;;  %v4155_v21 = vld [vmem:[%s16004_s26 + $0x208] sm:$0xff] }
0x1c16   : > { %v13187_v57 = vpack.c.bf16 %v4155_v21, %v4154_v58  ;;  %v4219_v39 = vld [vmem:[%s16004_s26 + $0x408] sm:$0xff]  ;;  %v4236_v21 = vld [vmem:[%s16004_s26 + $0x490] sm:$0xff] }
0x1c17   : > { %12344 = vmatmul.mubr.msk.f32.vlgmr.msra.gmra.mrb[40].mxu1 %vm1033_vm0, %v14350_v30  ;;  %v4097_v30 = vld [vmem:[%s16004_s26 + $0x38] sm:$0xff]  ;;  %v13251_v58 = vpack.c.bf16 %v4219_v39, %v4218_v20  ;;  %v4300_v20 = vld [vmem:[%s16004_s26 + $0x690] sm:$0xff] }
0x1c18   : > { %13124 = vmatpush3.bf16.msra.mxu1 %v13123_v27  ;;  %v13135_v55 = vpack.c.bf16 %v4097_v30, %v4096_v47  ;;  %4465 = vmatprep.mubr.f32.mxu1 %v4072_v22  ;;  %v13189_v27 = vpack.c.bf16 %v4173_v26, %v4172_v16  ;;  %v4161_v47 = vld [vmem:[%s16004_s26 + $0x238] sm:$0xff] }
0x1c19   : > { %13126 = vmatprep.subr.bf16.mxu1 %v13125_v28  ;;  %v4156_v28 = vld [vmem:[%s16004_s26 + $0x210] sm:$0xff]  ;;  %v4237_v22 = vld [vmem:[%s16004_s26 + $0x498] sm:$0xff] }
0x1c1a   : > { %v13191_v0 = vpack.c.bf16 %v4157_v23, %v4156_v28  ;;  %v4221_v16 = vld [vmem:[%s16004_s26 + $0x418] sm:$0xff]  ;;  %v4239_v28 = vld [vmem:[%s16004_s26 + $0x4a8] sm:$0xff] }
0x1c1b   : > { %v4301_v39 = vld [vmem:[%s16004_s26 + $0x698] sm:$0xff] }
0x1c1c   : > { %13128 = vmatpush3.bf16.msra.mxu1 %v13127_v40  ;;  %v13193_v40 = vpack.c.bf16 %v4175_v60, %v4174_v36  ;;  %v4223_v36 = vld [vmem:[%s16004_s26 + $0x428] sm:$0xff] }
0x1c1d   : > { %13130 = vmatprep.subr.bf16.mxu1 %v13129_v41  ;;  %v4158_v41 = vld [vmem:[%s16004_s26 + $0x220] sm:$0xff] }
0x1c1e   : > { %v13195_v43 = vpack.c.bf16 %v4159_v42, %v4158_v41  ;;  %v4241_v41 = vld [vmem:[%s16004_s26 + $0x4b8] sm:$0xff] }
0x1c20   : > { %13132 = vmatpush3.bf16.msra.mxu1 %v13131_v45  ;;  %v13197_v45 = vpack.c.bf16 %v4177_v25, %v4176_v44  ;;  %v4225_v44 = vld [vmem:[%s16004_s26 + $0x438] sm:$0xff] }
0x1c21   : > { %13134 = vmatprep.subr.bf16.mxu1 %v13133_v46  ;;  %v4160_v46 = vld [vmem:[%s16004_s26 + $0x230] sm:$0xff] }
0x1c22   : > { %v13199_v30 = vpack.c.bf16 %v4161_v47, %v4160_v46  ;;  %v4243_v46 = vld [vmem:[%s16004_s26 + $0x4c8] sm:$0xff] }
0x1c24   : > { %13136 = vmatpush3.bf16.msra.mxu1 %v13135_v55  ;;  %v13201_v55 = vpack.c.bf16 %v4179_v54, %v4178_v52  ;;  %v4227_v52 = vld [vmem:[%s16004_s26 + $0x448] sm:$0xff] }
0x1c25   : > { %13138 = vmatprep.subr.bf16.mxu1 %v13137_v29  ;;  %v4162_v29 = vld [vmem:[%s16004_s26 + $0x240] sm:$0xff] }
0x1c26   : > { %v13203_v61 = vpack.c.bf16 %v4163_v59, %v4162_v29  ;;  %v4245_v29 = vld [vmem:[%s16004_s26 + $0x4d8] sm:$0xff] }
0x1c28   : > { %13140 = vmatpush3.bf16.msra.mxu1 %v13139_v19  ;;  %v13205_v19 = vpack.c.bf16 %v4181_v34, %v4180_v62  ;;  %v4229_v62 = vld [vmem:[%s16004_s26 + $0x458] sm:$0xff] }
0x1c29   : > { %13142 = vmatprep.subr.bf16.mxu1 %v13141_v63  ;;  %v4164_v63 = vld [vmem:[%s16004_s26 + $0x250] sm:$0xff] }
0x1c2a   : > { %v13207_v17 = vpack.c.bf16 %v4165_v1, %v4164_v63  ;;  %v4247_v63 = vld [vmem:[%s16004_s26 + $0x4e8] sm:$0xff] }
0x1c2c   : > { %13144 = vmatpush3.bf16.msra.mxu1 %v13143_v49  ;;  %v13209_v49 = vpack.c.bf16 %v4183_v37, %v4182_v2  ;;  %v4231_v2 = vld [vmem:[%s16004_s26 + $0x468] sm:$0xff] }
0x1c2d   : > { %13146 = vmatprep.subr.bf16.mxu1 %v13145_v51  ;;  %v4166_v51 = vld [vmem:[%s16004_s26 + $0x260] sm:$0xff] }
0x1c2e   : > { %v13211_v3 = vpack.c.bf16 %v4167_v50, %v4166_v51  ;;  %v4249_v51 = vld [vmem:[%s16004_s26 + $0x4f8] sm:$0xff] }
0x1c30   : > { %13148 = vmatpush3.bf16.msra.mxu1 %v13147_v7  ;;  %v13213_v7 = vpack.c.bf16 %v4185_v5, %v4184_v4  ;;  %v4233_v4 = vld [vmem:[%s16004_s26 + $0x478] sm:$0xff] }
0x1c31   : > { %13150 = vmatprep.subr.bf16.mxu1 %v13149_v6  ;;  %v4168_v6 = vld [vmem:[%s16004_s26 + $0x270] sm:$0xff] }
0x1c32   : > { %v13215_v9 = vpack.c.bf16 %v4169_v8, %v4168_v6  ;;  %v4299_v6 = vld [vmem:[%s16004_s26 + $0x688] sm:$0xff] }
0x1c33   : > { %v4080_v8 = vld [vmem:[%s14671_s13 + $0x48] sm:$0x3f] }
0x1c34   : > { %13152 = vmatpush3.bf16.msra.mxu1 %v13151_v11  ;;  %v4234_v11 = vld [vmem:[%s16004_s26 + $0x480] sm:$0xff] }
0x1c35   : > { %13186 = vmatprep.subr.bf16.mxu1 %v13185_v12  ;;  %v13249_v15 = vpack.c.bf16 %v4235_v13, %v4234_v11  ;;  %v4075_v12 = vld [vmem:[%s14671_s13 + $0x20] sm:$0x3f]  ;;  %v4283_v13 = vld [vmem:[%s16004_s26 + $0x608] sm:$0xff] }
0x1c36   : > { %v4282_v11 = vld [vmem:[%s16004_s26 + $0x600] sm:$0xff] }
0x1c37   : > { %4466 = vmatmul.mubr.f32.vlgmr.msra.gmra.mrb[42].mxu1 %v4071_v24  ;;  %v13253_v24 = vpack.c.bf16 %v4237_v22, %v4236_v21  ;;  %v4285_v21 = vld [vmem:[%s16004_s26 + $0x618] sm:$0xff] }
0x1c38   : > { %13188 = vmatpush3.bf16.msra.mxu1 %v13187_v57  ;;  %4605 = vmatprep.mubr.f32.mxu1 %v4076_v14  ;;  %v4220_v57 = vld [vmem:[%s16004_s26 + $0x410] sm:$0xff]  ;;  %v4079_v14 = vld [vmem:[%s14671_s13 + $0x40] sm:$0x3f] }
0x1c39   : > { %13190 = vmatprep.subr.bf16.mxu1 %v13189_v27  ;;  %v13255_v26 = vpack.c.bf16 %v4221_v16, %v4220_v57  ;;  %v4238_v27 = vld [vmem:[%s16004_s26 + $0x4a0] sm:$0xff]  ;;  %v4303_v57 = vld [vmem:[%s16004_s26 + $0x6a8] sm:$0xff] }
0x1c3a   : > { %v13257_v23 = vpack.c.bf16 %v4239_v28, %v4238_v27  ;;  %v4287_v27 = vld [vmem:[%s16004_s26 + $0x628] sm:$0xff] }
0x1c3c   : > { %13192 = vmatpush3.bf16.msra.mxu1 %v13191_v0  ;;  %v4222_v0 = vld [vmem:[%s16004_s26 + $0x420] sm:$0xff] }
0x1c3d   : > { %13194 = vmatprep.subr.bf16.mxu1 %v13193_v40  ;;  %v13259_v60 = vpack.c.bf16 %v4223_v36, %v4222_v0  ;;  %v4240_v40 = vld [vmem:[%s16004_s26 + $0x4b0] sm:$0xff]  ;;  %v4305_v0 = vld [vmem:[%s16004_s26 + $0x6b8] sm:$0xff] }
0x1c3e   : > { %v13261_v42 = vpack.c.bf16 %v4241_v41, %v4240_v40  ;;  %v4289_v40 = vld [vmem:[%s16004_s26 + $0x638] sm:$0xff] }
0x1c40   : > { %13196 = vmatpush3.bf16.msra.mxu1 %v13195_v43  ;;  %v4224_v43 = vld [vmem:[%s16004_s26 + $0x430] sm:$0xff] }
0x1c41   : > { %13198 = vmatprep.subr.bf16.mxu1 %v13197_v45  ;;  %v13263_v25 = vpack.c.bf16 %v4225_v44, %v4224_v43  ;;  %v4242_v45 = vld [vmem:[%s16004_s26 + $0x4c0] sm:$0xff]  ;;  %v4307_v43 = vld [vmem:[%s16004_s26 + $0x6c8] sm:$0xff] }
0x1c42   : > { %v13265_v47 = vpack.c.bf16 %v4243_v46, %v4242_v45  ;;  %v4291_v45 = vld [vmem:[%s16004_s26 + $0x648] sm:$0xff] }
0x1c44   : > { %13200 = vmatpush3.bf16.msra.mxu1 %v13199_v30  ;;  %v4226_v30 = vld [vmem:[%s16004_s26 + $0x440] sm:$0xff] }
0x1c45   : > { %13202 = vmatprep.subr.bf16.mxu1 %v13201_v55  ;;  %v13267_v54 = vpack.c.bf16 %v4227_v52, %v4226_v30  ;;  %v4244_v55 = vld [vmem:[%s16004_s26 + $0x4d0] sm:$0xff]  ;;  %v4309_v30 = vld [vmem:[%s16004_s26 + $0x6d8] sm:$0xff] }
0x1c46   : > { %v13269_v59 = vpack.c.bf16 %v4245_v29, %v4244_v55  ;;  %v4293_v55 = vld [vmem:[%s16004_s26 + $0x658] sm:$0xff] }
0x1c48   : > { %13204 = vmatpush3.bf16.msra.mxu1 %v13203_v61  ;;  %v4228_v61 = vld [vmem:[%s16004_s26 + $0x450] sm:$0xff] }
0x1c49   : > { %13206 = vmatprep.subr.bf16.mxu1 %v13205_v19  ;;  %v13271_v34 = vpack.c.bf16 %v4229_v62, %v4228_v61  ;;  %v4246_v19 = vld [vmem:[%s16004_s26 + $0x4e0] sm:$0xff]  ;;  %v4311_v61 = vld [vmem:[%s16004_s26 + $0x6e8] sm:$0xff] }
0x1c4a   : > { %v13273_v1 = vpack.c.bf16 %v4247_v63, %v4246_v19  ;;  %v4295_v19 = vld [vmem:[%s16004_s26 + $0x668] sm:$0xff] }
0x1c4c   : > { %13208 = vmatpush3.bf16.msra.mxu1 %v13207_v17  ;;  %v4230_v17 = vld [vmem:[%s16004_s26 + $0x460] sm:$0xff] }
0x1c4d   : > { %13210 = vmatprep.subr.bf16.mxu1 %v13209_v49  ;;  %v13275_v37 = vpack.c.bf16 %v4231_v2, %v4230_v17  ;;  %v4248_v49 = vld [vmem:[%s16004_s26 + $0x4f0] sm:$0xff]  ;;  %v4313_v17 = vld [vmem:[%s16004_s26 + $0x6f8] sm:$0xff] }
0x1c4e   : > { %v13277_v50 = vpack.c.bf16 %v4249_v51, %v4248_v49  ;;  %v4297_v49 = vld [vmem:[%s16004_s26 + $0x678] sm:$0xff] }
0x1c50   : > { %13212 = vmatpush3.bf16.msra.mxu1 %v13211_v3  ;;  %v4232_v3 = vld [vmem:[%s16004_s26 + $0x470] sm:$0xff] }
0x1c51   : > { %13214 = vmatprep.subr.bf16.mxu1 %v13213_v7  ;;  %v13279_v5 = vpack.c.bf16 %v4233_v4, %v4232_v3  ;;  %v4298_v7 = vld [vmem:[%s16004_s26 + $0x680] sm:$0xff]  ;;  %v4363_v3 = vld [vmem:[%s16004_s26 + $0x888] sm:$0xff] }
0x1c52   : > { %v4084_v4 = vld [vmem:[%s14671_s13 + $0x68] sm:$0x3f] }
0x1c54   : > { %13216 = vmatpush3.bf16.msra.mxu1 %v13215_v9  ;;  %v13313_v9 = vpack.c.bf16 %v4299_v6, %v4298_v7  ;;  %v4346_v7 = vld [vmem:[%s16004_s26 + $0x800] sm:$0xff]  ;;  %v4347_v6 = vld [vmem:[%s16004_s26 + $0x808] sm:$0xff] }
0x1c55   : > { %13250 = vmatprep.subr.bf16.mxu1 %v13249_v15  ;;  %v13315_v15 = vpack.c.bf16 %v4283_v13, %v4282_v11  ;;  %v4364_v11 = vld [vmem:[%s16004_s26 + $0x890] sm:$0xff]  ;;  %v4365_v13 = vld [vmem:[%s16004_s26 + $0x898] sm:$0xff] }
0x1c57   : > { %4606 = vmatmul.mubr.f32.vlgmr.msra.gmra.mrb[44].mxu1 %v4075_v12  ;;  %v13317_v12 = vpack.c.bf16 %v4301_v39, %v4300_v20  ;;  %v4349_v20 = vld [vmem:[%s16004_s26 + $0x818] sm:$0xff] }
0x1c58   : > { %13252 = vmatpush3.bf16.msra.mxu1 %v13251_v58  ;;  %4745 = vmatprep.mubr.f32.mxu1 %v4080_v8  ;;  %v4284_v58 = vld [vmem:[%s16004_s26 + $0x610] sm:$0xff]  ;;  %v4083_v8 = vld [vmem:[%s14671_s13 + $0x60] sm:$0x3f] }
0x1c59   : > { %13254 = vmatprep.subr.bf16.mxu1 %v13253_v24  ;;  %v13319_v22 = vpack.c.bf16 %v4285_v21, %v4284_v58  ;;  %v4302_v24 = vld [vmem:[%s16004_s26 + $0x6a0] sm:$0xff]  ;;  %v4367_v58 = vld [vmem:[%s16004_s26 + $0x8a8] sm:$0xff] }
0x1c5a   : > { %v13321_v16 = vpack.c.bf16 %v4303_v57, %v4302_v24  ;;  %v4351_v24 = vld [vmem:[%s16004_s26 + $0x828] sm:$0xff] }
0x1c5c   : > { %13256 = vmatpush3.bf16.msra.mxu1 %v13255_v26  ;;  %v4286_v26 = vld [vmem:[%s16004_s26 + $0x620] sm:$0xff] }
0x1c5d   : > { %13258 = vmatprep.subr.bf16.mxu1 %v13257_v23  ;;  %v13323_v28 = vpack.c.bf16 %v4287_v27, %v4286_v26  ;;  %v4304_v23 = vld [vmem:[%s16004_s26 + $0x6b0] sm:$0xff]  ;;  %v4369_v26 = vld [vmem:[%s16004_s26 + $0x8b8] sm:$0xff] }
0x1c5e   : > { %v13325_v36 = vpack.c.bf16 %v4305_v0, %v4304_v23  ;;  %v4353_v23 = vld [vmem:[%s16004_s26 + $0x838] sm:$0xff] }
0x1c60   : > { %13260 = vmatpush3.bf16.msra.mxu1 %v13259_v60  ;;  %v4288_v60 = vld [vmem:[%s16004_s26 + $0x630] sm:$0xff] }
0x1c61   : > { %13262 = vmatprep.subr.bf16.mxu1 %v13261_v42  ;;  %v13327_v41 = vpack.c.bf16 %v4289_v40, %v4288_v60  ;;  %v4306_v42 = vld [vmem:[%s16004_s26 + $0x6c0] sm:$0xff]  ;;  %v4371_v60 = vld [vmem:[%s16004_s26 + $0x8c8] sm:$0xff] }
0x1c62   : > { %v13329_v44 = vpack.c.bf16 %v4307_v43, %v4306_v42  ;;  %v4355_v42 = vld [vmem:[%s16004_s26 + $0x848] sm:$0xff] }
0x1c64   : > { %13264 = vmatpush3.bf16.msra.mxu1 %v13263_v25  ;;  %v4290_v25 = vld [vmem:[%s16004_s26 + $0x640] sm:$0xff] }
0x1c65   : > { %13266 = vmatprep.subr.bf16.mxu1 %v13265_v47  ;;  %v13331_v46 = vpack.c.bf16 %v4291_v45, %v4290_v25  ;;  %v4308_v47 = vld [vmem:[%s16004_s26 + $0x6d0] sm:$0xff]  ;;  %v4373_v25 = vld [vmem:[%s16004_s26 + $0x8d8] sm:$0xff] }
0x1c66   : > { %v13333_v52 = vpack.c.bf16 %v4309_v30, %v4308_v47  ;;  %v4357_v47 = vld [vmem:[%s16004_s26 + $0x858] sm:$0xff] }
0x1c68   : > { %13268 = vmatpush3.bf16.msra.mxu1 %v13267_v54  ;;  %v4292_v54 = vld [vmem:[%s16004_s26 + $0x650] sm:$0xff] }
0x1c69   : > { %13270 = vmatprep.subr.bf16.mxu1 %v13269_v59  ;;  %v13335_v29 = vpack.c.bf16 %v4293_v55, %v4292_v54  ;;  %v4310_v59 = vld [vmem:[%s16004_s26 + $0x6e0] sm:$0xff]  ;;  %v4375_v54 = vld [vmem:[%s16004_s26 + $0x8e8] sm:$0xff] }
0x1c6a   : > { %v13337_v62 = vpack.c.bf16 %v4311_v61, %v4310_v59  ;;  %v4359_v59 = vld [vmem:[%s16004_s26 + $0x868] sm:$0xff] }
0x1c6c   : > { %13272 = vmatpush3.bf16.msra.mxu1 %v13271_v34  ;;  %v4294_v34 = vld [vmem:[%s16004_s26 + $0x660] sm:$0xff] }
0x1c6d   : > { %13274 = vmatprep.subr.bf16.mxu1 %v13273_v1  ;;  %v13339_v63 = vpack.c.bf16 %v4295_v19, %v4294_v34  ;;  %v4312_v1 = vld [vmem:[%s16004_s26 + $0x6f0] sm:$0xff]  ;;  %v4123_v34 = vld [vmem:[%s16004_s26 + $0x108] sm:$0xff] }
0x1c6e   : > { %v13341_v2 = vpack.c.bf16 %v4313_v17, %v4312_v1  ;;  %v4140_v19 = vld [vmem:[%s16004_s26 + $0x190] sm:$0xff]  ;;  %v4377_v17 = vld [vmem:[%s16004_s26 + $0x8f8] sm:$0xff] }
0x1c6f   : > { %v4376_v1 = vld [vmem:[%s16004_s26 + $0x8f0] sm:$0xff] }
0x1c70   : > { %13276 = vmatpush3.bf16.msra.mxu1 %v13275_v37  ;;  %v4296_v37 = vld [vmem:[%s16004_s26 + $0x670] sm:$0xff] }
0x1c71   : > { %13278 = vmatprep.subr.bf16.mxu1 %v13277_v50  ;;  %v13343_v51 = vpack.c.bf16 %v4297_v49, %v4296_v37  ;;  %v4362_v50 = vld [vmem:[%s16004_s26 + $0x880] sm:$0xff]  ;;  %v4360_v37 = vld [vmem:[%s16004_s26 + $0x870] sm:$0xff]  ;;  %v4361_v49 = vld [vmem:[%s16004_s26 + $0x878] sm:$0xff] }
0x1c74   : > { %13280 = vmatpush3.bf16.msra.mxu1 %v13279_v5  ;;  %v13377_v5 = vpack.c.bf16 %v4363_v3, %v4362_v50  ;;  %v13407_v50 = vpack.c.bf16 %v4361_v49, %v4360_v37  ;;  %v4204_v37 = vld [vmem:[%s16004_s26 + $0x390] sm:$0xff]  ;;  %v4205_v49 = vld [vmem:[%s16004_s26 + $0x398] sm:$0xff] }
0x1c75   : > { %13314 = vmatprep.subr.bf16.mxu1 %v13313_v9  ;;  %v13379_v9 = vpack.c.bf16 %v4347_v6, %v4346_v7  ;;  %v4074_v7 = vld [vmem:[%s14671_s13 + $0x18] sm:$0x3f] }
0x1c77   : > { %4746 = vmatmul.mubr.f32.vlgmr.msra.gmra.mrb[46].mxu1 %v4079_v14  ;;  %v13381_v14 = vpack.c.bf16 %v4365_v13, %v4364_v11  ;;  %v4088_v13 = vld [vmem:[%s14671_s13 + $0x88] sm:$0x3f] }
0x1c78   : > { %13316 = vmatpush3.bf16.msra.mxu1 %v13315_v15  ;;  %4885 = vmatprep.mubr.f32.mxu1 %v4084_v4  ;;  %v4348_v15 = vld [vmem:[%s16004_s26 + $0x810] sm:$0xff] }
0x1c79   : > { %13318 = vmatprep.subr.bf16.mxu1 %v13317_v12  ;;  %v13383_v39 = vpack.c.bf16 %v4349_v20, %v4348_v15  ;;  %v4366_v12 = vld [vmem:[%s16004_s26 + $0x8a0] sm:$0xff]  ;;  %v4124_v4 = vld [vmem:[%s16004_s26 + $0x110] sm:$0xff] }
0x1c7a   : > { %v13385_v21 = vpack.c.bf16 %v4367_v58, %v4366_v12  ;;  %v4087_v15 = vld [vmem:[%s14671_s13 + $0x80] sm:$0x3f]  ;;  %v4127_v12 = vld [vmem:[%s16004_s26 + $0x128] sm:$0xff]  ;;  %v4144_v58 = vld [vmem:[%s16004_s26 + $0x1b0] sm:$0xff] }
0x1c7c   : > { %13320 = vmatpush3.bf16.msra.mxu1 %v13319_v22  ;;  %v4350_v22 = vld [vmem:[%s16004_s26 + $0x820] sm:$0xff] }
0x1c7d   : > { %13322 = vmatprep.subr.bf16.mxu1 %v13321_v16  ;;  %v13387_v57 = vpack.c.bf16 %v4351_v24, %v4350_v22  ;;  %v4368_v16 = vld [vmem:[%s16004_s26 + $0x8b0] sm:$0xff] }
0x1c7e   : > { %v13389_v27 = vpack.c.bf16 %v4369_v26, %v4368_v16  ;;  %v4129_v16 = vld [vmem:[%s16004_s26 + $0x138] sm:$0xff]  ;;  %v4146_v26 = vld [vmem:[%s16004_s26 + $0x1c0] sm:$0xff] }
0x1c80   : > { %13324 = vmatpush3.bf16.msra.mxu1 %v13323_v28  ;;  %v4352_v28 = vld [vmem:[%s16004_s26 + $0x830] sm:$0xff] }
0x1c81   : > { %13326 = vmatprep.subr.bf16.mxu1 %v13325_v36  ;;  %v13391_v0 = vpack.c.bf16 %v4353_v23, %v4352_v28  ;;  %v4370_v36 = vld [vmem:[%s16004_s26 + $0x8c0] sm:$0xff] }
0x1c82   : > { %v13393_v40 = vpack.c.bf16 %v4371_v60, %v4370_v36  ;;  %v4131_v36 = vld [vmem:[%s16004_s26 + $0x148] sm:$0xff]  ;;  %v4148_v60 = vld [vmem:[%s16004_s26 + $0x1d0] sm:$0xff] }
0x1c84   : > { %13328 = vmatpush3.bf16.msra.mxu1 %v13327_v41  ;;  %v4354_v41 = vld [vmem:[%s16004_s26 + $0x840] sm:$0xff] }
0x1c85   : > { %13330 = vmatprep.subr.bf16.mxu1 %v13329_v44  ;;  %v13395_v43 = vpack.c.bf16 %v4355_v42, %v4354_v41  ;;  %v4372_v44 = vld [vmem:[%s16004_s26 + $0x8d0] sm:$0xff] }
0x1c86   : > { %v13397_v45 = vpack.c.bf16 %v4373_v25, %v4372_v44  ;;  %v4133_v44 = vld [vmem:[%s16004_s26 + $0x158] sm:$0xff]  ;;  %v4150_v25 = vld [vmem:[%s16004_s26 + $0x1e0] sm:$0xff] }
0x1c88   : > { %13332 = vmatpush3.bf16.msra.mxu1 %v13331_v46  ;;  %v4356_v46 = vld [vmem:[%s16004_s26 + $0x850] sm:$0xff] }
0x1c89   : > { %13334 = vmatprep.subr.bf16.mxu1 %v13333_v52  ;;  %v13399_v30 = vpack.c.bf16 %v4357_v47, %v4356_v46  ;;  %v4374_v52 = vld [vmem:[%s16004_s26 + $0x8e0] sm:$0xff] }
0x1c8a   : > { %v13401_v55 = vpack.c.bf16 %v4375_v54, %v4374_v52  ;;  %v4135_v52 = vld [vmem:[%s16004_s26 + $0x168] sm:$0xff]  ;;  %v4152_v54 = vld [vmem:[%s16004_s26 + $0x1f0] sm:$0xff] }
0x1c8c   : > { %13336 = vmatpush3.bf16.msra.mxu1 %v13335_v29  ;;  %v4358_v29 = vld [vmem:[%s16004_s26 + $0x860] sm:$0xff] }
0x1c8d   : > { %13338 = vmatprep.subr.bf16.mxu1 %v13337_v62  ;;  %v13403_v61 = vpack.c.bf16 %v4359_v59, %v4358_v29  ;;  %v4122_v62 = vld [vmem:[%s16004_s26 + $0x100] sm:$0xff] }
0x1c90   : > { %13340 = vmatpush3.bf16.msra.mxu1 %v13339_v63  ;;  %v4141_v63 = vld [vmem:[%s16004_s26 + $0x198] sm:$0xff] }
0x1c91   : > { %13342 = vmatprep.subr.bf16.mxu1 %v13341_v2  ;;  %v13405_v2 = vpack.c.bf16 %v4377_v17, %v4376_v1  ;;  %v13157_v3 = vpack.c.bf16 %v4141_v63, %v4140_v19  ;;  %v4203_v19 = vld [vmem:[%s16004_s26 + $0x388] sm:$0xff]  ;;  %v4186_v17 = vld [vmem:[%s16004_s26 + $0x300] sm:$0xff] }
0x1c94   : > { %13344 = vmatpush3.bf16.msra.mxu1 %v13343_v51  ;;  %v13155_v51 = vpack.c.bf16 %v4123_v34, %v4122_v62  ;;  %v4137_v62 = vld [vmem:[%s16004_s26 + $0x178] sm:$0xff]  ;;  %v4202_v34 = vld [vmem:[%s16004_s26 + $0x380] sm:$0xff] }
0x1c95   : > { %13378 = vmatprep.subr.bf16.mxu1 %v13377_v5  ;;  %v4125_v5 = vld [vmem:[%s16004_s26 + $0x118] sm:$0xff]  ;;  %v13217_v1 = vpack.c.bf16 %v4203_v19, %v4202_v34  ;;  %v4250_v34 = vld [vmem:[%s16004_s26 + $0x500] sm:$0xff]  ;;  %v4251_v19 = vld [vmem:[%s16004_s26 + $0x508] sm:$0xff] }
0x1c97   : > { %4886 = vmatmul.mubr.f32.vlgmr.msra.gmra.mrb[48].mxu1 %v4083_v8  ;;  %v4142_v8 = vld [vmem:[%s16004_s26 + $0x1a0] sm:$0xff] }
0x1c98   : > { %13380 = vmatpush3.bf16.msra.mxu1 %v13379_v9  ;;  %v4143_v9 = vld [vmem:[%s16004_s26 + $0x1a8] sm:$0xff]  ;;  %5025 = vmatprep.mubr.f32.mxu1 %v4088_v13  ;;  %v4190_v13 = vld [vmem:[%s16004_s26 + $0x320] sm:$0xff] }
0x1c99   : > { %13382 = vmatprep.subr.bf16.mxu1 %v13381_v14  ;;  %v13159_v14 = vpack.c.bf16 %v4125_v5, %v4124_v4  ;;  %v13161_v20 = vpack.c.bf16 %v4143_v9, %v4142_v8  ;;  %v4188_v4 = vld [vmem:[%s16004_s26 + $0x310] sm:$0xff]  ;;  %v4189_v5 = vld [vmem:[%s16004_s26 + $0x318] sm:$0xff]  ;;  %v4207_v8 = vld [vmem:[%s16004_s26 + $0x3a8] sm:$0xff] }
0x1c9a   : > { %v13223_v9 = vpack.c.bf16 %v4189_v5, %v4188_v4  ;;  %v4271_v4 = vld [vmem:[%s16004_s26 + $0x5a8] sm:$0xff] }
0x1c9c   : > { %13384 = vmatpush3.bf16.msra.mxu1 %v13383_v39  ;;  %v4126_v39 = vld [vmem:[%s16004_s26 + $0x120] sm:$0xff] }
0x1c9d   : > { %13386 = vmatprep.subr.bf16.mxu1 %v13385_v21  ;;  %v4145_v21 = vld [vmem:[%s16004_s26 + $0x1b8] sm:$0xff]  ;;  %v13163_v22 = vpack.c.bf16 %v4127_v12, %v4126_v39 }
0x1c9e   : > { %v13165_v24 = vpack.c.bf16 %v4145_v21, %v4144_v58  ;;  %v4192_v58 = vld [vmem:[%s16004_s26 + $0x330] sm:$0xff]  ;;  %v4193_v21 = vld [vmem:[%s16004_s26 + $0x338] sm:$0xff] }
0x1ca0   : > { %13388 = vmatpush3.bf16.msra.mxu1 %v13387_v57  ;;  %v4128_v57 = vld [vmem:[%s16004_s26 + $0x130] sm:$0xff] }
0x1ca1   : > { %13390 = vmatprep.subr.bf16.mxu1 %v13389_v27  ;;  %v4147_v27 = vld [vmem:[%s16004_s26 + $0x1c8] sm:$0xff]  ;;  %v13167_v28 = vpack.c.bf16 %v4129_v16, %v4128_v57  ;;  %v13231_v57 = vpack.c.bf16 %v4193_v21, %v4192_v58 }
0x1ca2   : > { %v13169_v23 = vpack.c.bf16 %v4147_v27, %v4146_v26  ;;  %v4194_v26 = vld [vmem:[%s16004_s26 + $0x340] sm:$0xff]  ;;  %v4195_v27 = vld [vmem:[%s16004_s26 + $0x348] sm:$0xff] }
0x1ca4   : > { %13392 = vmatpush3.bf16.msra.mxu1 %v13391_v0  ;;  %v4130_v0 = vld [vmem:[%s16004_s26 + $0x140] sm:$0xff] }
0x1ca5   : > { %13394 = vmatprep.subr.bf16.mxu1 %v13393_v40  ;;  %v4149_v40 = vld [vmem:[%s16004_s26 + $0x1d8] sm:$0xff]  ;;  %v13171_v41 = vpack.c.bf16 %v4131_v36, %v4130_v0  ;;  %v13235_v0 = vpack.c.bf16 %v4195_v27, %v4194_v26 }
0x1ca6   : > { %v13173_v42 = vpack.c.bf16 %v4149_v40, %v4148_v60  ;;  %v4196_v60 = vld [vmem:[%s16004_s26 + $0x350] sm:$0xff]  ;;  %v4197_v40 = vld [vmem:[%s16004_s26 + $0x358] sm:$0xff] }
0x1ca8   : > { %13396 = vmatpush3.bf16.msra.mxu1 %v13395_v43  ;;  %v4132_v43 = vld [vmem:[%s16004_s26 + $0x150] sm:$0xff] }
0x1ca9   : > { %13398 = vmatprep.subr.bf16.mxu1 %v13397_v45  ;;  %v4151_v45 = vld [vmem:[%s16004_s26 + $0x1e8] sm:$0xff]  ;;  %v13175_v46 = vpack.c.bf16 %v4133_v44, %v4132_v43  ;;  %v13239_v43 = vpack.c.bf16 %v4197_v40, %v4196_v60 }
0x1caa   : > { %v13177_v47 = vpack.c.bf16 %v4151_v45, %v4150_v25  ;;  %v4198_v25 = vld [vmem:[%s16004_s26 + $0x360] sm:$0xff]  ;;  %v4199_v45 = vld [vmem:[%s16004_s26 + $0x368] sm:$0xff] }
0x1cac   : > { %13400 = vmatpush3.bf16.msra.mxu1 %v13399_v30  ;;  %v4134_v30 = vld [vmem:[%s16004_s26 + $0x160] sm:$0xff] }
0x1cad   : > { %13402 = vmatprep.subr.bf16.mxu1 %v13401_v55  ;;  %v4153_v55 = vld [vmem:[%s16004_s26 + $0x1f8] sm:$0xff]  ;;  %v13179_v29 = vpack.c.bf16 %v4135_v52, %v4134_v30  ;;  %v13243_v30 = vpack.c.bf16 %v4199_v45, %v4198_v25 }
0x1cae   : > { %v13181_v59 = vpack.c.bf16 %v4153_v55, %v4152_v54  ;;  %v4200_v54 = vld [vmem:[%s16004_s26 + $0x370] sm:$0xff]  ;;  %v4201_v55 = vld [vmem:[%s16004_s26 + $0x378] sm:$0xff] }
0x1cb0   : > { %13404 = vmatpush3.bf16.msra.mxu1 %v13403_v61  ;;  %v4136_v61 = vld [vmem:[%s16004_s26 + $0x170] sm:$0xff] }
0x1cb1   : > { %13406 = vmatprep.subr.bf16.mxu1 %v13405_v2  ;;  %v13183_v63 = vpack.c.bf16 %v4137_v62, %v4136_v61  ;;  %v4187_v2 = vld [vmem:[%s16004_s26 + $0x308] sm:$0xff]  ;;  %v13247_v61 = vpack.c.bf16 %v4201_v55, %v4200_v54 }
0x1cb4   : > { %13408 = vmatpush3.bf16.msra.mxu1 %v13407_v50  ;;  %v13219_v50 = vpack.c.bf16 %v4187_v2, %v4186_v17  ;;  %v4077_v17 = vld [vmem:[%s14671_s13 + $0x30] sm:$0x3f]  ;;  %v13283_v2 = vpack.c.bf16 %v4251_v19, %v4250_v34  ;;  %v4333_v19 = vld [vmem:[%s16004_s26 + $0x798] sm:$0xff] }
0x1cb5   : > { %13433 = vmatprep.subr.bf16.mxu1 %v13979_v10  ;;  %v4332_v34 = vld [vmem:[%s16004_s26 + $0x790] sm:$0xff] }
0x1cb7   : > { %5026 = vmatmul.mubr.f32.vlgmr.msra.gmra.mrb[50].mxu1 %v4087_v15  ;;  %v4208_v15 = vld [vmem:[%s16004_s26 + $0x3b0] sm:$0xff] }
0x1cb8   : > { %12403 = vmatprep.mubr.msk.f32.mxu1 %vm13980_vm1, %v13981_v18 }
0x1cea   : > { %v3948_v6 = vpop.f32.mrb[40].mxu1 }
0x1ceb   : > { %v12345_v11 = vpop.f32.mrb[41].mxu1  ;;  %12355 = vmatmul.mubr.msk.f32.vlgmr.msra.gmra.mrb[38].mxu0 %vm1033_vm0, %v3948_v6  ;;  %v4206_v6 = vld [vmem:[%s16004_s26 + $0x3a0] sm:$0xff] }
0x1cec   : > { %13156 = vmatpush3.bf16.msra.mxu0 %v13155_v51  ;;  %4535 = vmatprep.mubr.f32.mxu0 %v4074_v7  ;;  %v4073_v51 = vld [vmem:[%s14671_s13 + $0x10] sm:$0x3f]  ;;  %v4078_v7 = vld [vmem:[%s14671_s13 + $0x38] sm:$0x3f]  ;;  %v13225_v11 = vpack.c.bf16 %v4207_v8, %v4206_v6  ;;  %v4254_v6 = vld [vmem:[%s16004_s26 + $0x520] sm:$0xff] }
0x1ced   : > { %13158 = vmatprep.subr.bf16.mxu0 %v13157_v3  ;;  %v13221_v3 = vpack.c.bf16 %v4205_v49, %v4204_v37  ;;  %v4252_v49 = vld [vmem:[%s16004_s26 + $0x510] sm:$0xff]  ;;  %v4255_v8 = vld [vmem:[%s16004_s26 + $0x528] sm:$0xff] }
0x1cf0   : > { %13160 = vmatpush3.bf16.msra.mxu0 %v13159_v14  ;;  %v4191_v14 = vld [vmem:[%s16004_s26 + $0x328] sm:$0xff] }
0x1cf1   : > { %13162 = vmatprep.subr.bf16.mxu0 %v13161_v20  ;;  %v4209_v20 = vld [vmem:[%s16004_s26 + $0x3b8] sm:$0xff]  ;;  %v13227_v39 = vpack.c.bf16 %v4191_v14, %v4190_v13  ;;  %v13291_v13 = vpack.c.bf16 %v4255_v8, %v4254_v6  ;;  %v4319_v6 = vld [vmem:[%s16004_s26 + $0x728] sm:$0xff]  ;;  %v4336_v8 = vld [vmem:[%s16004_s26 + $0x7b0] sm:$0xff] }
0x1cf2   : > { %v13229_v12 = vpack.c.bf16 %v4209_v20, %v4208_v15  ;;  %v4256_v15 = vld [vmem:[%s16004_s26 + $0x530] sm:$0xff]  ;;  %v4257_v20 = vld [vmem:[%s16004_s26 + $0x538] sm:$0xff] }
0x1cf3   : > { %v13295_v58 = vpack.c.bf16 %v4257_v20, %v4256_v15  ;;  %v4321_v15 = vld [vmem:[%s16004_s26 + $0x738] sm:$0xff]  ;;  %v4338_v20 = vld [vmem:[%s16004_s26 + $0x7c0] sm:$0xff] }
0x1cf4   : > { %13164 = vmatpush3.bf16.msra.mxu0 %v13163_v22  ;;  %v4210_v22 = vld [vmem:[%s16004_s26 + $0x3c0] sm:$0xff] }
0x1cf5   : > { %13166 = vmatprep.subr.bf16.mxu0 %v13165_v24  ;;  %v4211_v24 = vld [vmem:[%s16004_s26 + $0x3c8] sm:$0xff] }
0x1cf6   : > { %v13233_v16 = vpack.c.bf16 %v4211_v24, %v4210_v22  ;;  %v4258_v22 = vld [vmem:[%s16004_s26 + $0x540] sm:$0xff]  ;;  %v4259_v24 = vld [vmem:[%s16004_s26 + $0x548] sm:$0xff] }
0x1cf7   : > { %v13299_v26 = vpack.c.bf16 %v4259_v24, %v4258_v22  ;;  %v4323_v22 = vld [vmem:[%s16004_s26 + $0x748] sm:$0xff]  ;;  %v4340_v24 = vld [vmem:[%s16004_s26 + $0x7d0] sm:$0xff] }
0x1cf8   : > { %13168 = vmatpush3.bf16.msra.mxu0 %v13167_v28  ;;  %v4212_v28 = vld [vmem:[%s16004_s26 + $0x3d0] sm:$0xff] }
0x1cf9   : > { %13170 = vmatprep.subr.bf16.mxu0 %v13169_v23  ;;  %v4213_v23 = vld [vmem:[%s16004_s26 + $0x3d8] sm:$0xff] }
0x1cfa   : > { %v13237_v36 = vpack.c.bf16 %v4213_v23, %v4212_v28  ;;  %v4260_v28 = vld [vmem:[%s16004_s26 + $0x550] sm:$0xff]  ;;  %v4261_v23 = vld [vmem:[%s16004_s26 + $0x558] sm:$0xff] }
0x1cfb   : > { %v13303_v60 = vpack.c.bf16 %v4261_v23, %v4260_v28  ;;  %v4325_v28 = vld [vmem:[%s16004_s26 + $0x758] sm:$0xff]  ;;  %v4342_v23 = vld [vmem:[%s16004_s26 + $0x7e0] sm:$0xff] }
0x1cfc   : > { %13172 = vmatpush3.bf16.msra.mxu0 %v13171_v41  ;;  %v4214_v41 = vld [vmem:[%s16004_s26 + $0x3e0] sm:$0xff] }
0x1cfd   : > { %13174 = vmatprep.subr.bf16.mxu0 %v13173_v42  ;;  %v4215_v42 = vld [vmem:[%s16004_s26 + $0x3e8] sm:$0xff] }
0x1cfe   : > { %v13241_v44 = vpack.c.bf16 %v4215_v42, %v4214_v41  ;;  %v4262_v41 = vld [vmem:[%s16004_s26 + $0x560] sm:$0xff]  ;;  %v4263_v42 = vld [vmem:[%s16004_s26 + $0x568] sm:$0xff] }
0x1cff   : > { %v13307_v25 = vpack.c.bf16 %v4263_v42, %v4262_v41  ;;  %v4327_v41 = vld [vmem:[%s16004_s26 + $0x768] sm:$0xff]  ;;  %v4344_v42 = vld [vmem:[%s16004_s26 + $0x7f0] sm:$0xff] }
0x1d00   : > { %13176 = vmatpush3.bf16.msra.mxu0 %v13175_v46  ;;  %v4216_v46 = vld [vmem:[%s16004_s26 + $0x3f0] sm:$0xff] }
0x1d01   : > { %13178 = vmatprep.subr.bf16.mxu0 %v13177_v47  ;;  %v4217_v47 = vld [vmem:[%s16004_s26 + $0x3f8] sm:$0xff] }
0x1d02   : > { %v13245_v52 = vpack.c.bf16 %v4217_v47, %v4216_v46  ;;  %v4264_v46 = vld [vmem:[%s16004_s26 + $0x570] sm:$0xff]  ;;  %v4265_v47 = vld [vmem:[%s16004_s26 + $0x578] sm:$0xff] }
0x1d03   : > { %v13311_v54 = vpack.c.bf16 %v4265_v47, %v4264_v46  ;;  %v4329_v46 = vld [vmem:[%s16004_s26 + $0x778] sm:$0xff] }
0x1d04   : > { %13180 = vmatpush3.bf16.msra.mxu0 %v13179_v29  ;;  %v4266_v29 = vld [vmem:[%s16004_s26 + $0x580] sm:$0xff] }
0x1d05   : > { %13182 = vmatprep.subr.bf16.mxu0 %v13181_v59  ;;  %v4267_v59 = vld [vmem:[%s16004_s26 + $0x588] sm:$0xff] }
0x1d06   : > { %v13281_v62 = vpack.c.bf16 %v4267_v59, %v4266_v29  ;;  %v4314_v59 = vld [vmem:[%s16004_s26 + $0x700] sm:$0xff] }
0x1d08   : > { %13184 = vmatpush3.bf16.msra.mxu0 %v13183_v63  ;;  %v4268_v63 = vld [vmem:[%s16004_s26 + $0x590] sm:$0xff] }
0x1d09   : > { %13218 = vmatprep.subr.bf16.mxu0 %v13217_v1  ;;  %v4269_v1 = vld [vmem:[%s16004_s26 + $0x598] sm:$0xff] }
0x1d0a   : > { %v13285_v37 = vpack.c.bf16 %v4269_v1, %v4268_v63  ;;  %v11518_v55 = vpop.f32.mrb[42].mxu1  ;;  %v4081_v1 = vld [vmem:[%s14671_s13 + $0x50] sm:$0x3f] }
0x1d0b   : > { %4536 = vmatmul.mubr.f32.vlgmr.msra.gmra.mrb[40].mxu0 %v4073_v51  ;;  %v4253_v51 = vld [vmem:[%s16004_s26 + $0x518] sm:$0xff] }
0x1d0c   : > { %13220 = vmatpush3.bf16.msra.mxu0 %v13219_v50  ;;  %4675 = vmatprep.mubr.f32.mxu0 %v4078_v7  ;;  %v4082_v50 = vld [vmem:[%s14671_s13 + $0x58] sm:$0x3f]  ;;  %v13287_v5 = vpack.c.bf16 %v4253_v51, %v4252_v49 }
0x1d0d   : > { %13222 = vmatprep.subr.bf16.mxu0 %v13221_v3  ;;  %v4270_v3 = vld [vmem:[%s16004_s26 + $0x5a0] sm:$0xff]  ;;  %v4317_v49 = vld [vmem:[%s16004_s26 + $0x718] sm:$0xff] }
0x1d0e   : > { %v13289_v7 = vpack.c.bf16 %v4271_v4, %v4270_v3  ;;  %v4086_v51 = vld [vmem:[%s14671_s13 + $0x78] sm:$0x3f]  ;;  %v4335_v3 = vld [vmem:[%s16004_s26 + $0x7a8] sm:$0xff] }
0x1d10   : > { %13224 = vmatpush3.bf16.msra.mxu0 %v13223_v9  ;;  %v4272_v9 = vld [vmem:[%s16004_s26 + $0x5b0] sm:$0xff] }
0x1d11   : > { %13226 = vmatprep.subr.bf16.mxu0 %v13225_v11  ;;  %v4273_v11 = vld [vmem:[%s16004_s26 + $0x5b8] sm:$0xff] }
0x1d12   : > { %v13293_v14 = vpack.c.bf16 %v4273_v11, %v4272_v9  ;;  %v4337_v9 = vld [vmem:[%s16004_s26 + $0x7b8] sm:$0xff] }
0x1d14   : > { %13228 = vmatpush3.bf16.msra.mxu0 %v13227_v39  ;;  %v4274_v39 = vld [vmem:[%s16004_s26 + $0x5c0] sm:$0xff] }
0x1d15   : > { %13230 = vmatprep.subr.bf16.mxu0 %v13229_v12  ;;  %v4275_v12 = vld [vmem:[%s16004_s26 + $0x5c8] sm:$0xff] }
0x1d16   : > { %v13297_v21 = vpack.c.bf16 %v4275_v12, %v4274_v39  ;;  %v4339_v39 = vld [vmem:[%s16004_s26 + $0x7c8] sm:$0xff] }
0x1d18   : > { %13232 = vmatpush3.bf16.msra.mxu0 %v13231_v57  ;;  %v4276_v57 = vld [vmem:[%s16004_s26 + $0x5d0] sm:$0xff] }
0x1d19   : > { %13234 = vmatprep.subr.bf16.mxu0 %v13233_v16  ;;  %v4277_v16 = vld [vmem:[%s16004_s26 + $0x5d8] sm:$0xff] }
0x1d1a   : > { %v13301_v27 = vpack.c.bf16 %v4277_v16, %v4276_v57  ;;  %v4341_v57 = vld [vmem:[%s16004_s26 + $0x7d8] sm:$0xff] }
0x1d1c   : > { %13236 = vmatpush3.bf16.msra.mxu0 %v13235_v0  ;;  %v4278_v0 = vld [vmem:[%s16004_s26 + $0x5e0] sm:$0xff] }
0x1d1d   : > { %13238 = vmatprep.subr.bf16.mxu0 %v13237_v36  ;;  %v4279_v36 = vld [vmem:[%s16004_s26 + $0x5e8] sm:$0xff] }
0x1d1e   : > { %v13305_v40 = vpack.c.bf16 %v4279_v36, %v4278_v0  ;;  %v4343_v0 = vld [vmem:[%s16004_s26 + $0x7e8] sm:$0xff] }
0x1d20   : > { %13240 = vmatpush3.bf16.msra.mxu0 %v13239_v43  ;;  %v4280_v43 = vld [vmem:[%s16004_s26 + $0x5f0] sm:$0xff] }
0x1d21   : > { %13242 = vmatprep.subr.bf16.mxu0 %v13241_v44  ;;  %v4281_v44 = vld [vmem:[%s16004_s26 + $0x5f8] sm:$0xff] }
0x1d22   : > { %v13309_v45 = vpack.c.bf16 %v4281_v44, %v4280_v43  ;;  %v4345_v43 = vld [vmem:[%s16004_s26 + $0x7f8] sm:$0xff] }
0x1d24   : > { %13244 = vmatpush3.bf16.msra.mxu0 %v13243_v30  ;;  %v4330_v30 = vld [vmem:[%s16004_s26 + $0x780] sm:$0xff] }
0x1d25   : > { %13246 = vmatprep.subr.bf16.mxu0 %v13245_v52  ;;  %v4331_v52 = vld [vmem:[%s16004_s26 + $0x788] sm:$0xff] }
0x1d26   : > { %v13345_v29 = vpack.c.bf16 %v4331_v52, %v4330_v30 }
0x1d28   : > { %13248 = vmatpush3.bf16.msra.mxu0 %v13247_v61  ;;  %v4315_v61 = vld [vmem:[%s16004_s26 + $0x708] sm:$0xff] }
0x1d29   : > { %13282 = vmatprep.subr.bf16.mxu0 %v13281_v62  ;;  %v11519_v62 = vpop.f32.mrb[43].mxu1 }
0x1d2a   : > { %v14920_v63 = vadd.f32 %v11519_v62, %v11518_v55  ;;  %v11588_v47 = vpop.f32.mrb[44].mxu1  ;;  %v4378_v55 = vld [vmem:[%s16004_s26 + $0x900] sm:$0xff]  ;;  %v4380_v62 = vld [vmem:[%s16004_s26 + $0x910] sm:$0xff] }
0x1d2b   : > { %4676 = vmatmul.mubr.f32.vlgmr.msra.gmra.mrb[42].mxu0 %v4077_v17  ;;  %v13347_v17 = vpack.c.bf16 %v4315_v61, %v4314_v59  ;;  %v11589_v30 = vpop.f32.mrb[45].mxu1  ;;  %v4085_v59 = vld [vmem:[%s14671_s13 + $0x70] sm:$0x3f] }
0x1d2c   : > { %13284 = vmatpush3.bf16.msra.mxu0 %v13283_v2  ;;  %4815 = vmatprep.mubr.f32.mxu0 %v4082_v50  ;;  %v13349_v2 = vpack.c.bf16 %v4333_v19, %v4332_v34  ;;  %v4334_v50 = vld [vmem:[%s16004_s26 + $0x7a0] sm:$0xff]  ;;  %v14950_v52 = vadd.f32 %v11589_v30, %v11588_v47  ;;  %v4381_v34 = vld [vmem:[%s16004_s26 + $0x918] sm:$0xff] }
0x1d2d   : > { %13286 = vmatprep.subr.bf16.mxu0 %v13285_v37  ;;  %v4316_v37 = vld [vmem:[%s16004_s26 + $0x710] sm:$0xff]  ;;  %v13413_v19 = vpack.c.bf16 %v4381_v34, %v4380_v62 }
0x1d2e   : > { %v13351_v4 = vpack.c.bf16 %v4317_v49, %v4316_v37  ;;  %v4384_v37 = vld [vmem:[%s16004_s26 + $0x930] sm:$0xff]  ;;  %v4385_v49 = vld [vmem:[%s16004_s26 + $0x938] sm:$0xff] }
0x1d30   : > { %13288 = vmatpush3.bf16.msra.mxu0 %v13287_v5  ;;  %v13353_v5 = vpack.c.bf16 %v4335_v3, %v4334_v50  ;;  %v4386_v50 = vld [vmem:[%s16004_s26 + $0x940] sm:$0xff]  ;;  %v4387_v3 = vld [vmem:[%s16004_s26 + $0x948] sm:$0xff] }
0x1d31   : > { %13290 = vmatprep.subr.bf16.mxu0 %v13289_v7  ;;  %v4318_v7 = vld [vmem:[%s16004_s26 + $0x720] sm:$0xff] }
0x1d32   : > { %v13355_v11 = vpack.c.bf16 %v4319_v6, %v4318_v7  ;;  %v4389_v7 = vld [vmem:[%s16004_s26 + $0x958] sm:$0xff] }
0x1d34   : > { %13292 = vmatpush3.bf16.msra.mxu0 %v13291_v13  ;;  %v13357_v13 = vpack.c.bf16 %v4337_v9, %v4336_v8  ;;  %v4089_v8 = vld [vmem:[%s14671_s13 + $0x90] sm:$0x3f]  ;;  %s16006_s13 = sld [smem:[#allocation22_spill]] }
0x1d35   : > { %13294 = vmatprep.subr.bf16.mxu0 %v13293_v14  ;;  %v4320_v14 = vld [vmem:[%s16004_s26 + $0x730] sm:$0xff] }
0x1d36   : > { %v13359_v12 = vpack.c.bf16 %v4321_v15, %v4320_v14 }
0x1d38   : > { %13296 = vmatpush3.bf16.msra.mxu0 %v13295_v58  ;;  %v13361_v58 = vpack.c.bf16 %v4339_v39, %v4338_v20  ;;  %v11093_v39 = vld [vmem:[%s14068_s20 + $0x3] ss:$0 sm:$0xff] }
0x1d39   : > { %13298 = vmatprep.subr.bf16.mxu0 %v13297_v21  ;;  %v4322_v21 = vld [vmem:[%s16004_s26 + $0x740] sm:$0xff] }
0x1d3a   : > { %v13363_v16 = vpack.c.bf16 %v4323_v22, %v4322_v21 }
0x1d3c   : > { %13300 = vmatpush3.bf16.msra.mxu0 %v13299_v26  ;;  %v13365_v26 = vpack.c.bf16 %v4341_v57, %v4340_v24 }
0x1d3d   : > { %13302 = vmatprep.subr.bf16.mxu0 %v13301_v27  ;;  %v4324_v27 = vld [vmem:[%s16004_s26 + $0x750] sm:$0xff] }
0x1d3e   : > { %v13367_v36 = vpack.c.bf16 %v4325_v28, %v4324_v27 }
0x1d40   : > { %13304 = vmatpush3.bf16.msra.mxu0 %v13303_v60  ;;  %v13369_v60 = vpack.c.bf16 %v4343_v0, %v4342_v23  ;;  %v11110_v0 = vld [vmem:[%s14043_s19 + $0x90] sm:$0xff] }
0x1d41   : > { %13306 = vmatprep.subr.bf16.mxu0 %v13305_v40  ;;  %v4326_v40 = vld [vmem:[%s16004_s26 + $0x760] sm:$0xff] }
0x1d42   : > { %v13371_v44 = vpack.c.bf16 %v4327_v41, %v4326_v40 }
0x1d44   : > { %13308 = vmatpush3.bf16.msra.mxu0 %v13307_v25  ;;  %v13373_v25 = vpack.c.bf16 %v4345_v43, %v4344_v42 }
0x1d45   : > { %13310 = vmatprep.subr.bf16.mxu0 %v13309_v45  ;;  %v4328_v45 = vld [vmem:[%s16004_s26 + $0x770] sm:$0xff] }
0x1d48   : > { %13312 = vmatpush3.bf16.msra.mxu0 %v13311_v54  ;;  %v13375_v54 = vpack.c.bf16 %v4329_v46, %v4328_v45 }
0x1d49   : > { %13346 = vmatprep.subr.bf16.mxu0 %v13345_v29  ;;  %v4379_v29 = vld [vmem:[%s16004_s26 + $0x908] sm:$0xff] }
0x1d4a   : > { %v13410_v61 = vpack.c.bf16 %v4379_v29, %v4378_v55  ;;  %v11658_v9 = vpop.f32.mrb[46].mxu1 }
0x1d4b   : > { %4816 = vmatmul.mubr.f32.vlgmr.msra.gmra.mrb[44].mxu0 %v4081_v1  ;;  %v4382_v1 = vld [vmem:[%s16004_s26 + $0x920] sm:$0xff] }
0x1d4c   : > { %13348 = vmatpush3.bf16.msra.mxu0 %v13347_v17  ;;  %4955 = vmatprep.mubr.f32.mxu0 %v4086_v51  ;;  %v4383_v17 = vld [vmem:[%s16004_s26 + $0x928] sm:$0xff]  ;;  %v13419_v51 = vpack.c.bf16 %v4385_v49, %v4384_v37 }
0x1d4d   : > { %13350 = vmatprep.subr.bf16.mxu0 %v13349_v2  ;;  %v13416_v2 = vpack.c.bf16 %v4383_v17, %v4382_v1 }
0x1d50   : > { %13352 = vmatpush3.bf16.msra.mxu0 %v13351_v4  ;;  %v13422_v4 = vpack.c.bf16 %v4387_v3, %v4386_v50 }
0x1d51   : > { %13354 = vmatprep.subr.bf16.mxu0 %v13353_v5  ;;  %v4388_v5 = vld [vmem:[%s16004_s26 + $0x950] sm:$0xff] }
0x1d52   : > { %v13425_v6 = vpack.c.bf16 %v4389_v7, %v4388_v5  ;;  %v11115_v5 = vld [vmem:[%s14053_s30 + $0x80] sm:$0xff]  ;;  %v11116_v7 = vld [vmem:[%s14053_s30 + $0x88] sm:$0xff] }
0x1d54   : > { %13356 = vmatpush3.bf16.msra.mxu0 %v13355_v11  ;;  %v11659_v11 = vpop.f32.mrb[47].mxu1 }
0x1d55   : > { %13358 = vmatprep.subr.bf16.mxu0 %v13357_v13  ;;  %v11660_v13 = vadd.f32 %v11659_v11, %v11658_v9  ;;  %v11118_v9 = vld [vmem:[%s14053_s30 + $0x98] sm:$0xff] }
0x1d58   : > { %13360 = vmatpush3.bf16.msra.mxu0 %v13359_v12 }
0x1d59   : > { %13362 = vmatprep.subr.bf16.mxu0 %v13361_v58 }
0x1d5c   : > { %13364 = vmatpush3.bf16.msra.mxu0 %v13363_v16  ;;  %v11108_v16 = vld [vmem:[%s14043_s19 + $0x80] sm:$0xff] }
0x1d5d   : > { %13366 = vmatprep.subr.bf16.mxu0 %v13365_v26  ;;  %v11109_v26 = vld [vmem:[%s14043_s19 + $0x88] sm:$0xff] }
0x1d5e   : > { %v14982_v23 = vpack.c.bf16 %v11109_v26, %v11108_v16  ;;  %v5105_v16 = vsel %vm5102_vm6, 1, %v13982_v35 }
0x1d5f   : > { %vm5132_vm13 = vcmp.eq.s32.totalorder %v5105_v16, %v14279_v56 }
0x1d60   : > { %13368 = vmatpush3.bf16.msra.mxu0 %v13367_v36  ;;  %v11111_v36 = vld [vmem:[%s14043_s19 + $0x98] sm:$0xff] }
0x1d61   : > { %13370 = vmatprep.subr.bf16.mxu0 %v13369_v60  ;;  %v14988_v60 = vpack.c.bf16 %v11111_v36, %v11110_v0 }
0x1d64   : > { %13372 = vmatpush3.bf16.msra.mxu0 %v13371_v44 }
0x1d65   : > { %13374 = vmatprep.subr.bf16.mxu0 %v13373_v25 }
0x1d68   : > { %13376 = vmatpush3.bf16.msra.mxu0 %v13375_v54 }
0x1d69   : > { %13409 = vmatprep.subr.bf16.mxu0 %v13979_v10 }
0x1d6a   : > { %v11728_v14 = vpop.f32.mrb[48].mxu1 }
0x1d6b   : > { %4956 = vmatmul.mubr.f32.vlgmr.msra.gmra.mrb[46].mxu0 %v4085_v59  ;;  %v11729_v15 = vpop.f32.mrb[49].mxu1 }
0x1d6c   : > { %13411 = vmatpush3.bf16.msra.mxu0 %v13410_v61  ;;  %12381 = vmatprep.mubr.msk.f32.mxu0 %vm13980_vm1, %v13981_v18  ;;  %v11730_v20 = vadd.f32 %v11729_v15, %v11728_v14 }
0x1d6d   : > { %13412 = vmatprep.subr.bf16.mxu0 %v13979_v10 }
0x1d70   : > { %13414 = vmatpush3.bf16.msra.mxu0 %v13413_v19 }
0x1d71   : > { %13415 = vmatprep.subr.bf16.mxu0 %v13979_v10 }
0x1d74   : > { %13417 = vmatpush3.bf16.msra.mxu0 %v13416_v2 }
0x1d75   : > { %13418 = vmatprep.subr.bf16.mxu0 %v13979_v10 }
0x1d78   : > { %13420 = vmatpush3.bf16.msra.mxu0 %v13419_v51 }
0x1d79   : > { %13421 = vmatprep.subr.bf16.mxu0 %v13979_v10 }
0x1d7c   : > { %13423 = vmatpush3.bf16.msra.mxu0 %v13422_v4 }
0x1d7d   : > { %13424 = vmatprep.subr.bf16.mxu0 %v13979_v10 }
0x1d80   : > { %13426 = vmatpush3.bf16.msra.mxu0 %v13425_v6  ;;  %v13434_v6 = vpack.c.bf16 %v11116_v7, %v11115_v5 }
0x1d81   : > { %13427 = vmatprep.subr.bf16.mxu0 %v13979_v10 }
0x1d82   : > { %13435 = vmatpush3.bf16.msra.mxu1 %v13434_v6 }
0x1d83   : > { %12382 = vmatmul.mubr.msk.f32.vlgmr.msra.gmra.mrb[48].mxu0 %vm4397_vm4, %v4089_v8  ;;  %v11117_v8 = vld [vmem:[%s14053_s30 + $0x90] sm:$0xff]  ;;  %13436 = vmatprep.subr.bf16.mxu1 %v13979_v10  ;;  %vm5152_vm4 = vcmp.ge.s32.totalorder %v14226_v32, 12 }
0x1d84   : > { %12392 = vmatprep.mubr.msk.f32.mxu0 %vm13980_vm1, %v13981_v18  ;;  %13429 = vmatpush3.bf16.msra.mxu0 %v14982_v23  ;;  %v13437_v11 = vpack.c.bf16 %v11118_v9, %v11117_v8 }
0x1d85   : > { %13430 = vmatprep.subr.bf16.mxu0 %v13979_v10 }
0x1d86   : > { %13438 = vmatpush3.bf16.msra.mxu1 %v13437_v11 }
0x1d87   : > { %12417 = vmatprep.subr.mxu1 %v13981_v18 }
0x1d88   : > { %13432 = vmatpush3.bf16.msra.mxu0 %v14988_v60 }
0x1d89   : > { %12406 = vmatprep.subr.mxu0 %v13981_v18 }
0x1d8a   : > { %v11798_v24 = vpop.f32.mrb[50].mxu1 }
0x1d8b   : > { %v11799_v57 = vpop.f32.mrb[51].mxu1 }
0x1d8c   : > { %v11800_v28 = vadd.f32 %v11799_v57, %v11798_v24  ;;  %v5112_v57 = vsel %vm5109_vm5, 1, %v13982_v35  ;;  %vm5155_vm5 = vcmp.ge.s32.totalorder %v14226_v32, 18 }
0x1d8d   : > { %v5115_v26 = vadd.s32 1, %v5112_v57 }
0x1d8f   : > { %vm5133_vm14 = vcmp.eq.s32.totalorder %v5115_v26, %v14279_v56 }
0x1dbe   : > { %v4034_v12 = vpop.f32.mrb[38].mxu0 }
0x1dbf   : > { %v4035_v58 = vadd.f32 %v11093_v39, %v4034_v12  ;;  %v12356_v21 = vpop.f32.mrb[39].mxu0  ;;  %v11097_v39 = vld [vmem:[%s14073_s27 + $0x3] ss:$0 sm:$0xff] }
0x1dc1   : > { %v4038_v22 = vadd.f32 %v4035_v58, %v14582_v53  ;;  %v11099_v53 = vld [vmem:[%s16006_s13] ss:$0 sm:$0xff]  ;;  %v11098_v58 = vld [vmem:[%s14078_s4 + $0x3] ss:$0 sm:$0xff]  ;;  %s15222_s13 = scalar_lea.vmem %s16007_s3, %s15972_s29  ;;  %s16008_s3 = sld [smem:[#allocation14_spill]] }
0x1dc2   : > { %v4468_v42 = vadd.f32 %v14920_v63, %v11099_v53  ;;  %s16009_s29 = sld [smem:[#allocation16_spill]] }
0x1dc3   : > { %v4043_v27 = vsel %vm1033_vm0, %v4038_v22, 0.0 }
0x1dc4   : > { %4044 = vadd.xlane.f32.xlu0 %v4043_v27  ;;  %v5122_v27 = vsel %vm5119_vm7, 1, %v13982_v35  ;;  %vm5655_vm7 = vcmask 195584  }
0x1dc5   : > { %v5125_v0 = vadd.s32 2, %v5122_v27 }
0x1dc7   : > { %vm5134_vm15 = vcmp.eq.s32.totalorder %v5125_v0, %v14279_v56  ;;  %s1015_s14 = scalar_lea.vmem %s16008_s3, %s14194_s11 }
0x1dc8   : > { %s15309_s21 = scalar_lea.vmem %s16009_s29, %s16010_s17  ;;  %s16011_s17 = sld [smem:[#allocation23_spill]] }
0x1dc9   : > { %s11339_s29 = sshll.u32 %s14162_s18, 4 }
0x1dde   : > { %v11553_v40 = vpop.f32.mrb[40].mxu0 }
0x1ddf   : > { %v11554_v41 = vpop.f32.mrb[41].mxu0 }
0x1de0   : > { %v11555_v43 = vadd.f32 %v11554_v41, %v11553_v40  ;;  %v5128_v40 = vmul.u32 6, %v5125_v0  ;;  %v15026_v41 = vld [vmem:[%s14048_s24 + $0x4] ss:$0 sm:$0xff] }
0x1de2   : > { %v4538_v44 = vadd.f32 %v11555_v43, %v4468_v42 }
0x1de4   : > { %v4608_v25 = vadd.f32 %v14950_v52, %v4538_v44 }
0x1dfe   : > { %v11623_v45 = vpop.f32.mrb[42].mxu0 }
0x1dff   : > { %v11624_v46 = vpop.f32.mrb[43].mxu0 }
0x1e00   : > { %v11625_v47 = vadd.f32 %v11624_v46, %v11623_v45  ;;  %v5131_v45 = vsub.s32 %v14231_v33, %v5128_v40  ;;  %v11120_v46 = vld [vmem:[%s14058_s6 + $0x4] ss:$0 sm:$0xff] }
0x1e02   : > { %v4678_v30 = vadd.f32 %v11625_v47, %v4608_v25  ;;  %vm5143_vm12 = vcmp.eq.s32.totalorder %v5131_v45, %v14226_v32 }
0x1e03   : > { %v15048_v33 = vsel %vm5143_vm12, 1.0, %v13981_v18 }
0x1e04   : > { %v4748_v54 = vadd.f32 %v11660_v13, %v4678_v30 }
0x1e1e   : > { %v11693_v55 = vpop.f32.mrb[44].mxu0 }
0x1e1f   : > { %v11694_v29 = vpop.f32.mrb[45].mxu0 }
0x1e20   : > { %v11695_v59 = vadd.f32 %v11694_v29, %v11693_v55  ;;  %v15064_v55 = vsel %vm5132_vm13, 1.0, %v13981_v18 }
0x1e22   : > { %v4818_v61 = vadd.f32 %v11695_v59, %v4748_v54 }
0x1e24   : > { %v4888_v62 = vadd.f32 %v11730_v20, %v4818_v61 }
0x1e3e   : > { %v11763_v34 = vpop.f32.mrb[46].mxu0 }
0x1e3f   : > { %v11764_v19 = vpop.f32.mrb[47].mxu0 }
0x1e40   : > { %v11765_v1 = vadd.f32 %v11764_v19, %v11763_v34 }
0x1e42   : > { %v4958_v63 = vadd.f32 %v11765_v1, %v4888_v62  ;;  %v15069_v62 = vsel %vm5133_vm14, 1.0, %v13981_v18 }
0x1e44   : > { %v5028_v17 = vadd.f32 %v11800_v28, %v4958_v63  ;;  %v5127_v28 = vmul.u32 6, %v5115_v26  ;;  %v15077_v63 = vsel %vm5134_vm15, 1.0, %v13981_v18 }
0x1e46   : > { %v5130_v53 = vsub.s32 %v14248_v38, %v5127_v28 }
0x1e48   : > { %vm5142_vm11 = vcmp.eq.s32.totalorder %v5130_v53, %v14226_v32 }
0x1e49   : > { %v15040_v38 = vsel %vm5142_vm11, 1.0, %v13981_v18 }
0x1e51   : > { %v4045_v2 = vpop.xlane.xlu0 %4044 }
0x1e52   : > { %v4046_v52 = vmul.f32 0.03125, %v4045_v2 }
0x1e54   : > { %v4047_v37 = vsub.f32 %v4038_v22, %v4046_v52 }
0x1e56   : > { %v5097_v49 = vpop.f32.mrb[48].mxu0  ;;  %v4048_v51 = vmul.f32 %v4047_v37, %v4047_v37 }
0x1e57   : > { %v14995_v50 = vadd.f32 %v5097_v49, %v5028_v17  ;;  %v12383_v3 = vpop.f32.mrb[49].mxu0 }
0x1e58   : > { %v4049_v4 = vsel %vm1033_vm0, %v4048_v51, 0.0 }
0x1e59   : > { %12393 = vmatmul.mubr.msk.f32.vlgmr.msra.gmra.mrb[50].mxu0 %vm1033_vm0, %v14995_v50  ;;  %4050 = vadd.xlane.f32.xlu1 %v4049_v4 }
0x1e5a   : > { %12408 = vmatprep.mubr.msk.f32.mxu0 %vm13980_vm1, %v13981_v18 }
0x1ee6   : > { %v4051_v13 = vpop.xlane.xlu1 %4050 }
0x1ee7   : > { %v4052_v14 = vmul.f32 0.03125, %v4051_v13 }
0x1ee9   : > { %v4053_v15 = vadd.f32 1e-12, %v4052_v14 }
0x1eeb   : > { %13747 = vrsqrt.f32 %v4053_v15 }
0x1ef5   : > { %v13748_v20 = vpop.eup %13747 }
0x1ef6   : > { %v4055_v12 = vmul.f32 %v13748_v20, %v4047_v37 }
0x1ef8   : > { %v4062_v21 = vmul.f32 %v11097_v39, %v4055_v12 }
0x1efa   : > { %v4069_v22 = vadd.f32 %v11098_v58, %v4062_v21 }
0x1efc   : > { %v15011_v24 = vmul.f32 %v4069_v22, %v14579_v48  ;;  %v5126_v48 = vmul.u32 6, %v5105_v16 }
0x1efe   : > { %12404 = vmatmul.mubr.msk.f32.vlgmr.msra.gmra.mrb[52].mxu1 %vm1033_vm0, %v15011_v24  ;;  %v5129_v36 = vsub.s32 %v14224_v31, %v5126_v48 }
0x1eff   : > { %12419 = vmatprep.mubr.msk.f32.mxu1 %vm13980_vm1, %v13981_v18 }
0x1f00   : > { %vm5141_vm8 = vcmp.eq.s32.totalorder %v5129_v36, %v14226_v32 }
0x1f01   : > { %v15031_v25 = vsel %vm5141_vm8, 1.0, %v13981_v18  ;;  %vm5820_vm8 = vcmask 259072  }
0x1f2c   : > { %v5245_v42 = vpop.f32.mrb[50].mxu0 }
0x1f2d   : > { %v5246_v43 = vadd.f32 %v15026_v41, %v5245_v42  ;;  %v12394_v44 = vpop.f32.mrb[51].mxu0 }
0x1f2f   : > { %12407 = vmatpush3.msk.msra.mxu0 %vm5345_vm9, %v5246_v43 }
0x1f30   : > { %12409 = vmatmul.mubr.msk.f32.vlgmr.msra.gmra.mrb[52].mxu0 %vm5335_vm10, %v15031_v25  ;;  %12428 = vmatprep.subr.mxu0 %v13981_v18 }
0x1f31   : > { %12411 = vmatprep.mubr.msk.f32.mxu0 %vm13980_vm1, %v13981_v18 }
0x1f34   : > { %12412 = vmatmul.mubr.msk.f32.gmra.mrb[54].mxu0 %vm5335_vm10, %v15040_v38 }
0x1f35   : > { %12414 = vmatprep.mubr.msk.f32.mxu0 %vm13980_vm1, %v13981_v18 }
0x1f38   : > { %12415 = vmatmul.mubr.msk.f32.gmra.mrb[56].mxu0 %vm5335_vm10, %v15048_v33 }
0x1f39   : > { %12430 = vmatprep.mubr.msk.f32.mxu0 %vm13980_vm1, %v13981_v18 }
0x1fd1   : > { %v5331_v47 = vpop.f32.mrb[52].mxu1 }
0x1fd2   : > { %v15057_v30 = vadd.f32 %v11120_v46, %v5331_v47  ;;  %v12405_v54 = vpop.f32.mrb[53].mxu1 }
0x1fd3   : > { %v5151_v54 = vsel %vm5150_vm2, 1, %v13982_v35 }
0x1fd4   : > { %12418 = vmatpush3.xpose.msk.msra.mxu1 %vm1033_vm0, %v15057_v30 }
0x1fd5   : > { %13439 = vmatprep.subr.bf16.mxu1 %v13979_v10 }
0x2003   : > { %v5415_v29 = vpop.f32.mrb[52].mxu0 }
0x2004   : > { %v5429_v59 = vmul.f32 %v15064_v55, %v5415_v29  ;;  %v12410_v61 = vpop.f32.mrb[53].mxu0  ;;  %v5153_v29 = vsel %vm5152_vm4, 1, %v13982_v35 }
0x2005   : > { %v5156_v61 = vsel %vm5155_vm5, 1, %v13982_v35  ;;  %v11135_v35 = vld [vmem:[%s14063_s12 + $0x88] sm:$0xff] }
0x2006   : > { %12420 = vmatmul.mubr.msk.f32.vlgmr.msra.gmra.mrb[54].mxu1 %vm1033_vm0, %v5429_v59  ;;  %v5154_v59 = vadd.s32 %v5153_v29, %v5151_v54 }
0x2007   : > { %v5420_v34 = vpop.f32.mrb[54].mxu0  ;;  %12422 = vmatprep.mubr.msk.f32.mxu1 %vm13980_vm1, %v13981_v18 }
0x2008   : > { %v5430_v19 = vmul.f32 %v15069_v62, %v5420_v34  ;;  %v12413_v1 = vpop.f32.mrb[55].mxu0  ;;  %v5157_v34 = vadd.s32 %v5156_v61, %v5154_v59 }
0x200a   : > { %12423 = vmatmul.mubr.msk.f32.gmra.mrb[56].mxu1 %vm1033_vm0, %v5430_v19  ;;  %v5158_v1 = vmul.u32 6, %v5157_v34 }
0x200b   : > { %v5425_v17 = vpop.f32.mrb[56].mxu0  ;;  %12425 = vmatprep.mubr.msk.f32.mxu1 %vm13980_vm1, %v13981_v18 }
0x200c   : > { %v5431_v56 = vmul.f32 %v15077_v63, %v5425_v17  ;;  %v12416_v2 = vpop.f32.mrb[57].mxu0 }
0x200d   : > { %v5159_v2 = vsub.s32 %v14226_v32, %v5158_v1 }
0x200e   : > { %12426 = vmatmul.mubr.msk.f32.gmra.mrb[58].mxu1 %vm1033_vm0, %v5431_v56 }
0x200f   : > { %12445 = vmatprep.mubr.msk.f32.mxu1 %vm13980_vm1, %v13981_v18  ;;  %vm5160_vm6 = vcmp.eq.s32.totalorder %v5159_v2, %v14224_v31 }
0x20d9   : > { %v5510_v52 = vpop.f32.mrb[54].mxu1 }
0x20da   : > { %v5524_v37 = vmul.f32 0.35355338, %v5510_v52  ;;  %v12421_v49 = vpop.f32.mrb[55].mxu1 }
0x20dc   : > { %v5527_v51 = vsel %vm1313_vm3, %v5524_v37, -inf }
0x20dd   : > { %5528 = vmax.xlane.f32.xlu0 %v5527_v51  ;;  %v5515_v3 = vpop.f32.mrb[56].mxu1 }
0x20de   : > { %v5525_v4 = vmul.f32 0.35355338, %v5515_v3  ;;  %v12424_v5 = vpop.f32.mrb[57].mxu1 }
0x20e0   : > { %v5530_v7 = vsel %vm1313_vm3, %v5525_v4, -inf }
0x20e1   : > { %5531 = vmax.xlane.f32.xlu0 %v5530_v7  ;;  %v5520_v6 = vpop.f32.mrb[58].mxu1 }
0x20e2   : > { %v5526_v8 = vmul.f32 0.35355338, %v5520_v6  ;;  %v12427_v9 = vpop.f32.mrb[59].mxu1  ;;  %v15122_v6 = vsel %vm5160_vm6, 1.0, %v13981_v18 }
0x20e3   : > { %v11136_v9 = vld [vmem:[%s14063_s12 + $0x90] sm:$0xff] }
0x20e4   : > { %v5533_v11 = vsel %vm1313_vm3, %v5526_v8, -inf }
0x20e5   : > { %5534 = vmax.xlane.f32.xlu0 %v5533_v11  ;;  %v11137_v11 = vld [vmem:[%s14063_s12 + $0x98] sm:$0xff] }
0x20e6   : > { %v15132_v31 = vpack.c.bf16 %v11137_v11, %v11136_v9 }
0x216a   : > { %v5529_v13 = vpop.xlane.xlu0 %5528 }
0x216b   : > { %v5536_v14 = vsub.f32 %v5524_v37, %v5529_v13 }
0x216d   : > { %v5539_v15 = vmul.f32 1.442695, %v5536_v14 }
0x216e   : > { %v5532_v20 = vpop.xlane.xlu0 %5531 }
0x216f   : > { %13749 = vpow2.f32 %v5539_v15  ;;  %v5537_v39 = vsub.f32 %v5525_v4, %v5532_v20  ;;  %v11134_v4 = vld [vmem:[%s14063_s12 + $0x80] sm:$0xff] }
0x2170   : > { %v15143_v15 = vld [vmem:[%s14068_s20 + $0x4] ss:$0 sm:$0xff] }
0x2171   : > { %v5541_v12 = vmul.f32 1.442695, %v5537_v39 }
0x2172   : > { %v5535_v58 = vpop.xlane.xlu0 %5534 }
0x2173   : > { %13751 = vpow2.f32 %v5541_v12  ;;  %v5538_v21 = vsub.f32 %v5526_v8, %v5535_v58  ;;  %v15124_v8 = vpack.c.bf16 %v11135_v35, %v11134_v4 }
0x2175   : > { %v5543_v22 = vmul.f32 1.442695, %v5538_v21 }
0x2177   : > { %13753 = vpow2.f32 %v5543_v22 }
0x2179   : > { %v13750_v57 = vpop.eup %13749 }
0x217a   : > { %v5545_v16 = vsel %vm1313_vm3, %v13750_v57, 0.0 }
0x217b   : > { %5546 = vadd.xlane.f32.xlu0 %v5545_v16 }
0x217d   : > { %v13752_v26 = vpop.eup %13751 }
0x217e   : > { %v5548_v48 = vsel %vm1313_vm3, %v13752_v26, 0.0 }
0x217f   : > { %5549 = vadd.xlane.f32.xlu0 %v5548_v48 }
0x2181   : > { %v13754_v27 = vpop.eup %13753 }
0x2182   : > { %v5551_v28 = vsel %vm1313_vm3, %v13754_v27, 0.0 }
0x2183   : > { %5552 = vadd.xlane.f32.xlu0 %v5551_v28  ;;  %v11146_v28 = vld [vmem:[%s14043_s19 + $0xa8] sm:$0xff] }
0x2199   : > { %5560 = vrot.lane.b32.xlu0 %v15057_v30, %s16002_s9 }
0x2208   : > { %v5547_v0 = vpop.xlane.xlu0 %5546 }
0x2209   : > { %13755 = vrcp.f32 %v5547_v0  ;;  %v11152_v0 = vld [vmem:[%s14053_s30 + $0xa0] sm:$0xff] }
0x220c   : > { %v5550_v36 = vpop.xlane.xlu0 %5549 }
0x220d   : > { %13757 = vrcp.f32 %v5550_v36 }
0x2210   : > { %v5553_v53 = vpop.xlane.xlu0 %5552 }
0x2211   : > { %13759 = vrcp.f32 %v5553_v53  ;;  %v11153_v53 = vld [vmem:[%s14053_s30 + $0xa8] sm:$0xff] }
0x2213   : > { %v13756_v40 = vpop.eup %13755 }
0x2214   : > { %v5557_v42 = vmul.f32 %v13756_v40, %v13750_v57  ;;  %v15094_v43 = vpop.permute.xlu0 %5560  ;;  %v15155_v40 = vpack.c.bf16 %v11153_v53, %v11152_v0 }
0x2215   : > { %12429 = vmatpush3.msra.mxu0 %v15094_v43 }
0x2216   : > { %12431 = vmatmul.mubr.msk.f32.vlgmr.msra.gmra.mrb[58].mxu0 %vm1313_vm3, %v5557_v42  ;;  %13448 = vmatprep.subr.bf16.mxu0 %v13979_v10  ;;  %v11147_v42 = vld [vmem:[%s14043_s19 + $0xb0] sm:$0xff] }
0x2217   : > { %v13758_v44 = vpop.eup %13757  ;;  %12433 = vmatprep.mubr.msk.f32.mxu0 %vm13980_vm1, %v13981_v18 }
0x2218   : > { %v5558_v45 = vmul.f32 %v13758_v44, %v13752_v26  ;;  %v11148_v44 = vld [vmem:[%s14043_s19 + $0xb8] sm:$0xff] }
0x221a   : > { %12434 = vmatmul.mubr.msk.f32.gmra.mrb[60].mxu0 %vm1313_vm3, %v5558_v45  ;;  %v11154_v45 = vld [vmem:[%s14053_s30 + $0xb0] sm:$0xff] }
0x221b   : > { %v13760_v46 = vpop.eup %13759  ;;  %12436 = vmatprep.mubr.msk.f32.mxu0 %vm13980_vm1, %v13981_v18 }
0x221c   : > { %v5559_v47 = vmul.f32 %v13760_v46, %v13754_v27  ;;  %v11145_v27 = vld [vmem:[%s14043_s19 + $0xa0] sm:$0xff]  ;;  %v15164_v46 = vpack.c.bf16 %v11148_v44, %v11147_v42 }
0x221d   : > { %v15152_v36 = vpack.c.bf16 %v11146_v28, %v11145_v27 }
0x221e   : > { %12437 = vmatmul.mubr.msk.f32.gmra.mrb[62].mxu0 %vm1313_vm3, %v5559_v47  ;;  %v11155_v47 = vld [vmem:[%s14053_s30 + $0xb8] sm:$0xff] }
0x221f   : > { %12467 = vmatprep.mubr.msk.f32.mxu0 %vm13980_vm1, %v13981_v18  ;;  %13450 = vmatpush3.bf16.msra.mxu0 %v15152_v36  ;;  %v15167_v54 = vpack.c.bf16 %v11155_v47, %v11154_v45 }
0x2220   : > { %13451 = vmatprep.subr.bf16.mxu0 %v13979_v10 }
0x2223   : > { %13453 = vmatpush3.bf16.msra.mxu0 %v15164_v46 }
0x2224   : > { %12481 = vmatprep.subr.mxu0 %v13981_v18 }
0x22e9   : > { %v5638_v19 = vpop.f32.mrb[58].mxu0 }
0x22ea   : > { %v12432_v17 = vpop.f32.mrb[59].mxu0  ;;  %v5652_v52 = vmul.f32 %v15064_v55, %v5638_v19  ;;  %v15174_v19 = vld [vmem:[%s14073_s27 + $0x4] ss:$0 sm:$0xff] }
0x22eb   : > { %v15177_v17 = vld [vmem:[%s14078_s4 + $0x4] ss:$0 sm:$0xff] }
0x22ed   : > { %v5643_v56 = vpop.f32.mrb[60].mxu0 }
0x22ee   : > { %v5653_v37 = vmul.f32 %v15069_v62, %v5643_v56  ;;  %v12435_v49 = vpop.f32.mrb[61].mxu0 }
0x22f0   : > { %v13440_v51 = vpack.c.bf16 %v5653_v37, %v5652_v52  ;;  %v15192_v52 = vld [vmem:[%s14048_s24 + $0x5] ss:$0 sm:$0xff] }
0x22f1   : > { %v5648_v3 = vpop.f32.mrb[62].mxu0  ;;  %v15195_v37 = vld [vmem:[%s14058_s6 + $0x5] ss:$0 sm:$0xff] }
0x22f2   : > { %v12438_v5 = vpop.f32.mrb[63].mxu0  ;;  %13441 = vmatpush3.bf16.msra.mxu1 %v13440_v51  ;;  %v5654_v7 = vmul.f32 %v15077_v63, %v5648_v3 }
0x22f3   : > { %12443 = vmatprep.subr.mxu1 %v13981_v18 }
0x22f6   : > { %12444 = vmatpush3.msra.mxu1 %v5654_v7  ;;  %v5848_v7 = vld [vmem:[%s15222_s13] sm:$0x3f] }
0x22f7   : > { %12446 = vmatmul.mubr.msk.f32.vlgmr.msra.gmra.mrb[60].mxu1 %vm5655_vm7, %v15122_v6  ;;  %13442 = vmatprep.subr.bf16.mxu1 %v13979_v10 }
0x22f8   : > { %13444 = vmatpush3.bf16.msra.mxu1 %v15124_v8  ;;  %12456 = vmatprep.mubr.msk.f32.mxu1 %vm13980_vm1, %v13981_v18 }
0x22f9   : > { %13445 = vmatprep.subr.bf16.mxu1 %v13979_v10 }
0x22fc   : > { %13447 = vmatpush3.bf16.msra.mxu1 %v15132_v31 }
0x22fd   : > { %13454 = vmatprep.subr.bf16.mxu1 %v13979_v10 }
0x23ca   : > { %v5725_v13 = vpop.f32.mrb[60].mxu1 }
0x23cb   : > { %v12447_v14 = vpop.f32.mrb[61].mxu1  ;;  %12457 = vmatmul.mubr.msk.f32.vlgmr.msra.gmra.mrb[62].mxu1 %vm1033_vm0, %v5725_v13 }
0x23cc   : > { %12478 = vmatprep.mubr.msk.f32.mxu1 %vm13980_vm1, %v13981_v18  ;;  %13456 = vmatpush3.bf16.msra.mxu1 %v15155_v40 }
0x23cd   : > { %13457 = vmatprep.subr.bf16.mxu1 %v13979_v10 }
0x23d0   : > { %13459 = vmatpush3.bf16.msra.mxu1 %v15167_v54 }
0x23d1   : > { %12492 = vmatprep.subr.mxu1 %v13981_v18 }
0x249e   : > { %v5811_v20 = vpop.f32.mrb[62].mxu1 }
0x249f   : > { %v5812_v39 = vadd.f32 %v15143_v15, %v5811_v20  ;;  %v12458_v12 = vpop.f32.mrb[63].mxu1 }
0x24a1   : > { %v5815_v58 = vadd.f32 %v5812_v39, %v14995_v50 }
0x24a3   : > { %v5821_v21 = vsel %vm5820_vm8, %v5815_v58, 0.0 }
0x24a4   : > { %5822 = vadd.xlane.f32.xlu1 %v5821_v21 }
0x2531   : > { %v5823_v22 = vpop.xlane.xlu1 %5822 }
0x2532   : > { %v5824_v57 = vmul.f32 0.03125, %v5823_v22 }
0x2534   : > { %v5825_v16 = vsub.f32 %v5815_v58, %v5824_v57 }
0x2536   : > { %v5826_v26 = vmul.f32 %v5825_v16, %v5825_v16 }
0x2538   : > { %v5827_v48 = vsel %vm5820_vm8, %v5826_v26, 0.0 }
0x2539   : > { %5828 = vadd.xlane.f32.xlu1 %v5827_v48 }
0x25c6   : > { %v5829_v29 = vpop.xlane.xlu1 %5828 }
0x25c7   : > { %v5830_v59 = vmul.f32 0.03125, %v5829_v29 }
0x25c9   : > { %v5831_v61 = vadd.f32 1e-12, %v5830_v59 }
0x25cb   : > { %13761 = vrsqrt.f32 %v5831_v61 }
0x25d5   : > { %v13762_v34 = vpop.eup %13761 }
0x25d6   : > { %v5833_v1 = vmul.f32 %v13762_v34, %v5825_v16 }
0x25d8   : > { %v5840_v56 = vmul.f32 %v15174_v19, %v5833_v1 }
0x25da   : > { %v15181_v2 = vadd.f32 %v15177_v17, %v5840_v56 }
0x25dc   : > { %12468 = vmatmul.mubr.msk.f32.vlgmr.msra.gmra.mrb[64].mxu0 %vm1033_vm0, %v15181_v2  ;;  %12479 = vmatmul.mubr.msk.f32.vlgmr.msra.gmra.mrb[64].mxu1 %vm1033_vm0, %v15181_v2 }
0x25dd   : > { %12483 = vmatprep.mubr.msk.f32.mxu0 %vm13980_vm1, %v13981_v18  ;;  %12494 = vmatprep.mubr.msk.f32.mxu1 %vm13980_vm1, %v13981_v18 }
0x26af   : > { %v5931_v49 = vpop.f32.mrb[64].mxu0  ;;  %v6014_v51 = vpop.f32.mrb[64].mxu1 }
0x26b0   : > { %v5932_v3 = vadd.f32 %v15192_v52, %v5931_v49  ;;  %v15199_v4 = vadd.f32 %v15195_v37, %v6014_v51  ;;  %v12469_v35 = vpop.f32.mrb[65].mxu0  ;;  %v12480_v5 = vpop.f32.mrb[65].mxu1 }
0x26b2   : > { %12482 = vmatpush3.msk.msra.mxu0 %vm5345_vm9, %v5932_v3  ;;  %12493 = vmatpush3.xpose.msk.msra.mxu1 %vm1033_vm0, %v15199_v4 }
0x26b3   : > { %12484 = vmatmul.mubr.msk.f32.vlgmr.msra.gmra.mrb[66].mxu0 %vm5335_vm10, %v15031_v25  ;;  %12503 = vmatprep.subr.mxu0 %v13981_v18 }
0x26b4   : > { %12486 = vmatprep.mubr.msk.f32.mxu0 %vm13980_vm1, %v13981_v18  ;;  %12514 = vmatprep.subr.mxu1 %v13981_v18 }
0x26b5   : > { %12504 = vmatpush3.msk.msra.mxu0 %vm5345_vm9, %v5848_v7 }
0x26b6   : > { %13460 = vmatprep.subr.bf16.mxu0 %v13979_v10 }
0x26b7   : > { %12487 = vmatmul.mubr.msk.f32.gmra.mrb[68].mxu0 %vm5335_vm10, %v15040_v38 }
0x26b8   : > { %12489 = vmatprep.mubr.msk.f32.mxu0 %vm13980_vm1, %v13981_v18 }
0x26bb   : > { %12490 = vmatmul.mubr.msk.f32.gmra.mrb[70].mxu0 %vm5335_vm10, %v15048_v33 }
0x26bc   : > { %12505 = vmatprep.mubr.msk.f32.mxu0 %vm13980_vm1, %v13981_v18 }
0x26bf   : > { %12506 = vmatmul.mubr.msk.f32.vlgmr.msra.gmra.mrb[72].mxu0 %vm5335_vm10, %v15031_v25 }
0x26c0   : > { %12508 = vmatprep.mubr.msk.f32.mxu0 %vm13980_vm1, %v13981_v18 }
0x26c3   : > { %12509 = vmatmul.mubr.msk.f32.gmra.mrb[74].mxu0 %vm5335_vm10, %v15040_v38 }
0x26c4   : > { %12511 = vmatprep.mubr.msk.f32.mxu0 %vm13980_vm1, %v13981_v18 }
0x26c7   : > { %12512 = vmatmul.mubr.msk.f32.gmra.mrb[76].mxu0 %vm5335_vm10, %v15048_v33 }
0x26c8   : > { %12531 = vmatprep.mubr.msk.f32.mxu0 %vm13980_vm1, %v13981_v18 }
0x2786   : > { %v6087_v9 = vpop.f32.mrb[66].mxu0 }
0x2787   : > { %v6101_v11 = vmul.f32 %v15064_v55, %v6087_v9  ;;  %v12485_v13 = vpop.f32.mrb[67].mxu0 }
0x2789   : > { %12495 = vmatmul.mubr.msk.f32.vlgmr.msra.gmra.mrb[66].mxu1 %vm1033_vm0, %v6101_v11 }
0x278a   : > { %v6092_v14 = vpop.f32.mrb[68].mxu0  ;;  %12497 = vmatprep.mubr.msk.f32.mxu1 %vm13980_vm1, %v13981_v18 }
0x278b   : > { %v6102_v20 = vmul.f32 %v15069_v62, %v6092_v14  ;;  %v12488_v39 = vpop.f32.mrb[69].mxu0 }
0x278d   : > { %12498 = vmatmul.mubr.msk.f32.gmra.mrb[68].mxu1 %vm1033_vm0, %v6102_v20 }
0x278e   : > { %v6097_v12 = vpop.f32.mrb[70].mxu0  ;;  %12500 = vmatprep.mubr.msk.f32.mxu1 %vm13980_vm1, %v13981_v18 }
0x278f   : > { %v6103_v58 = vmul.f32 %v15077_v63, %v6097_v12  ;;  %v12491_v21 = vpop.f32.mrb[71].mxu0 }
0x2791   : > { %12501 = vmatmul.mubr.msk.f32.gmra.mrb[70].mxu1 %vm1033_vm0, %v6103_v58 }
0x2792   : > { %12516 = vmatprep.mubr.msk.f32.mxu1 %vm13980_vm1, %v13981_v18  ;;  %v6268_v22 = vpop.f32.mrb[72].mxu0 }
0x2793   : > { %v12507_v57 = vpop.f32.mrb[73].mxu0 }
0x2796   : > { %v6273_v16 = vpop.f32.mrb[74].mxu0 }
0x2797   : > { %v12510_v26 = vpop.f32.mrb[75].mxu0 }
0x279a   : > { %v6278_v48 = vpop.f32.mrb[76].mxu0 }
0x279b   : > { %v12513_v27 = vpop.f32.mrb[77].mxu0 }
0x285c   : > { %v6182_v28 = vpop.f32.mrb[66].mxu1 }
0x285d   : > { %v6196_v0 = vmul.f32 0.35355338, %v6182_v28  ;;  %v12496_v53 = vpop.f32.mrb[67].mxu1 }
0x285f   : > { %v6282_v42 = vadd.f32 %v6268_v22, %v6196_v0 }
0x2860   : > { %v6187_v44 = vpop.f32.mrb[68].mxu1 }
0x2861   : > { %v6197_v45 = vmul.f32 0.35355338, %v6187_v44  ;;  %v12499_v47 = vpop.f32.mrb[69].mxu1  ;;  %v6285_v29 = vsel %vm5335_vm10, %v6282_v42, -inf }
0x2862   : > { %6286 = vmax.xlane.f32.xlu1 %v6285_v29  ;;  %v11177_v47 = vld [vmem:[%s14063_s12 + $0xa8] sm:$0xff]  ;;  %v11178_v29 = vld [vmem:[%s14063_s12 + $0xb0] sm:$0xff] }
0x2863   : > { %v6283_v59 = vadd.f32 %v6273_v16, %v6197_v45  ;;  %v11176_v45 = vld [vmem:[%s14063_s12 + $0xa0] sm:$0xff] }
0x2864   : > { %v6192_v61 = vpop.f32.mrb[70].mxu1 }
0x2865   : > { %v6198_v34 = vmul.f32 0.35355338, %v6192_v61  ;;  %v12502_v1 = vpop.f32.mrb[71].mxu1  ;;  %v6288_v56 = vsel %vm5335_vm10, %v6283_v59, -inf  ;;  %v11179_v61 = vld [vmem:[%s14063_s12 + $0xb8] sm:$0xff] }
0x2866   : > { %6289 = vmax.xlane.f32.xlu0 %v6288_v56 }
0x2867   : > { %v6284_v49 = vadd.f32 %v6278_v48, %v6198_v34  ;;  %v15277_v34 = vpack.c.bf16 %v11179_v61, %v11178_v29  ;;  %v15316_v29 = vld [vmem:[%s14073_s27 + $0x5] ss:$0 sm:$0xff] }
0x2869   : > { %v6291_v51 = vsel %vm5335_vm10, %v6284_v49, -inf }
0x286a   : > { %6292 = vmax.xlane.f32.xlu1 %v6291_v51 }
0x28ef   : > { %v6287_v3 = vpop.xlane.xlu1 %6286 }
0x28f0   : > { %v6294_v35 = vsub.f32 %v6282_v42, %v6287_v3 }
0x28f2   : > { %v6297_v5 = vmul.f32 1.442695, %v6294_v35 }
0x28f3   : > { %v6290_v7 = vpop.xlane.xlu0 %6289 }
0x28f4   : > { %13763 = vpow2.f32 %v6297_v5  ;;  %v6295_v9 = vsub.f32 %v6283_v59, %v6290_v7  ;;  %v15273_v59 = vpack.c.bf16 %v11177_v47, %v11176_v45 }
0x28f6   : > { %v6299_v11 = vmul.f32 1.442695, %v6295_v9 }
0x28f7   : > { %v6293_v13 = vpop.xlane.xlu1 %6292 }
0x28f8   : > { %13765 = vpow2.f32 %v6299_v11  ;;  %v6296_v14 = vsub.f32 %v6284_v49, %v6293_v13 }
0x28fa   : > { %v6301_v20 = vmul.f32 1.442695, %v6296_v14 }
0x28fc   : > { %13767 = vpow2.f32 %v6301_v20  ;;  %v15299_v20 = vld [vmem:[%s14068_s20 + $0x5] ss:$0 sm:$0xff] }
0x28fe   : > { %v13764_v39 = vpop.eup %13763 }
0x28ff   : > { %v6303_v12 = vsel %vm5335_vm10, %v13764_v39, 0.0 }
0x2900   : > { %6304 = vadd.xlane.f32.xlu1 %v6303_v12 }
0x2902   : > { %v13766_v58 = vpop.eup %13765 }
0x2903   : > { %v6306_v21 = vsel %vm5335_vm10, %v13766_v58, 0.0 }
0x2904   : > { %6307 = vadd.xlane.f32.xlu1 %v6306_v21 }
0x2906   : > { %v13768_v22 = vpop.eup %13767 }
0x2907   : > { %v6309_v57 = vsel %vm5335_vm10, %v13768_v22, 0.0 }
0x2908   : > { %6310 = vadd.xlane.f32.xlu1 %v6309_v57  ;;  %v5101_v57 = vld [vmem:[%s1015_s14] sm:$0x3f]  ;;  %s10545_s14 = sld [smem:[#allocation3 + %s14162_s18]]  ;;  %s13984_s18 = smov [#allocation4]  }
0x2919   : > { %6318 = vrot.lane.b32.xlu1 %v15199_v4, %s16002_s9 }
0x298d   : > { %v6305_v16 = vpop.xlane.xlu1 %6304 }
0x298e   : > { %13769 = vrcp.f32 %v6305_v16  ;;  %v6608_v16 = vld [vmem:[%s15309_s21] sm:$0x3f] }
0x2991   : > { %v6308_v26 = vpop.xlane.xlu1 %6307 }
0x2992   : > { %13771 = vrcp.f32 %v6308_v26  ;;  %v6615_v26 = vsub.f32 1.0, %v6608_v16 }
0x2995   : > { %v6311_v48 = vpop.xlane.xlu1 %6310 }
0x2996   : > { %13773 = vrcp.f32 %v6311_v48 }
0x2998   : > { %v13770_v27 = vpop.eup %13769 }
0x2999   : > { %v6315_v28 = vmul.f32 %v13770_v27, %v13764_v39  ;;  %v6319_v0 = vpop.permute.xlu1 %6318 }
0x299a   : > { %12515 = vmatpush3.msk.msra.mxu1 %vm5345_vm9, %v6319_v0 }
0x299b   : > { %12517 = vmatmul.mubr.msk.f32.vlgmr.msra.gmra.mrb[72].mxu1 %vm5335_vm10, %v6315_v28  ;;  %13463 = vmatprep.subr.bf16.mxu1 %v13979_v10 }
0x299c   : > { %v13772_v4 = vpop.eup %13771  ;;  %12519 = vmatprep.mubr.msk.f32.mxu1 %vm13980_vm1, %v13981_v18  ;;  %13465 = vmatpush3.bf16.msra.mxu1 %v15273_v59 }
0x299d   : > { %v6316_v53 = vmul.f32 %v13772_v4, %v13766_v58  ;;  %13466 = vmatprep.subr.bf16.mxu1 %v13979_v10 }
0x299f   : > { %12520 = vmatmul.mubr.msk.f32.gmra.mrb[74].mxu1 %vm5335_vm10, %v6316_v53 }
0x29a0   : > { %v13774_v42 = vpop.eup %13773  ;;  %12522 = vmatprep.mubr.msk.f32.mxu1 %vm13980_vm1, %v13981_v18  ;;  %13468 = vmatpush3.bf16.msra.mxu1 %v15277_v34 }
0x29a1   : > { %v6317_v44 = vmul.f32 %v13774_v42, %v13768_v22  ;;  %12556 = vmatprep.subr.mxu1 %v13981_v18 }
0x29a3   : > { %12523 = vmatmul.mubr.msk.f32.gmra.mrb[76].mxu1 %vm5335_vm10, %v6317_v44 }
0x29a4   : > { %12542 = vmatprep.mubr.msk.f32.mxu1 %vm13980_vm1, %v13981_v18 }
0x2a6e   : > { %v6397_v1 = vpop.f32.mrb[72].mxu1 }
0x2a6f   : > { %v12518_v56 = vpop.f32.mrb[73].mxu1  ;;  %v6411_v51 = vmul.f32 %v15064_v55, %v6397_v1  ;;  %v15319_v1 = vld [vmem:[%s14078_s4 + $0x5] ss:$0 sm:$0xff] }
0x2a72   : > { %v6402_v49 = vpop.f32.mrb[74].mxu1 }
0x2a73   : > { %v6412_v3 = vmul.f32 %v15069_v62, %v6402_v49  ;;  %v12521_v35 = vpop.f32.mrb[75].mxu1 }
0x2a75   : > { %v13461_v5 = vpack.c.bf16 %v6412_v3, %v6411_v51 }
0x2a76   : > { %v6407_v7 = vpop.f32.mrb[76].mxu1 }
0x2a77   : > { %v12524_v9 = vpop.f32.mrb[77].mxu1  ;;  %13462 = vmatpush3.bf16.msra.mxu0 %v13461_v5  ;;  %v6413_v11 = vmul.f32 %v15077_v63, %v6407_v7 }
0x2a78   : > { %12529 = vmatprep.subr.mxu0 %v13981_v18 }
0x2a7b   : > { %12530 = vmatpush3.msra.mxu0 %v6413_v11 }
0x2a7c   : > { %12532 = vmatmul.mubr.msk.f32.vlgmr.msra.gmra.mrb[78].mxu0 %vm5655_vm7, %v15122_v6  ;;  %13469 = vmatprep.subr.bf16.mxu0 %v13979_v10 }
0x2a7d   : > { %13471 = vmatpush3.bf16.msra.mxu0 %v14982_v23  ;;  %12553 = vmatprep.mubr.msk.f32.mxu0 %vm13980_vm1, %v13981_v18 }
0x2a7e   : > { %13472 = vmatprep.subr.bf16.mxu0 %v13979_v10 }
0x2a81   : > { %13474 = vmatpush3.bf16.msra.mxu0 %v14988_v60 }
0x2a82   : > { %12567 = vmatprep.subr.mxu0 %v13981_v18 }
0x2b4f   : > { %v6480_v13 = vpop.f32.mrb[78].mxu0 }
0x2b50   : > { %v12533_v14 = vpop.f32.mrb[79].mxu0  ;;  %12543 = vmatmul.mubr.msk.f32.vlgmr.msra.gmra.mrb[78].mxu1 %vm1033_vm0, %v6480_v13 }
0x2b51   : > { %12558 = vmatprep.mubr.msk.f32.mxu1 %vm13980_vm1, %v13981_v18 }
0x2c23   : > { %v6566_v39 = vpop.f32.mrb[78].mxu1 }
0x2c24   : > { %v6567_v12 = vadd.f32 %v15299_v20, %v6566_v39  ;;  %v12544_v58 = vpop.f32.mrb[79].mxu1 }
0x2c26   : > { %v6570_v21 = vadd.f32 %v6567_v12, %v15181_v2 }
0x2c28   : > { %v6575_v22 = vsel %vm5820_vm8, %v6570_v21, 0.0 }
0x2c29   : > { %6576 = vadd.xlane.f32.xlu0 %v6575_v22 }
0x2c3f   : > { %6604 = vperm.xlu0 %13674, %v5101_v57  }
0x2c43   : > { %6611 = vperm.xlu0 %13674, %v6608_v16  }
0x2c47   : > { %6618 = vperm.xlu0 %13674, %v6615_v26  }
0x2cb6   : > { %v6577_v48 = vpop.xlane.xlu0 %6576 }
0x2cb7   : > { %v6578_v27 = vmul.f32 0.03125, %v6577_v48 }
0x2cb9   : > { %v6579_v28 = vsub.f32 %v6570_v21, %v6578_v27 }
0x2cbb   : > { %v6580_v2 = vmul.f32 %v6579_v28, %v6579_v28 }
0x2cbd   : > { %v6581_v0 = vsel %vm5820_vm8, %v6580_v2, 0.0 }
0x2cbe   : > { %6582 = vadd.xlane.f32.xlu1 %v6581_v0  ;;  %v15313_v44 = vpop.permute.xlu0 %6604 }
0x2cc2   : > { %v6612_v47 = vpop.permute.xlu0 %6611 }
0x2cc6   : > { %v6619_v51 = vpop.permute.xlu0 %6618 }
0x2cc7   : > { %v6621_v35 = vmul.f32 %v6619_v51, %v14995_v50 }
0x2d4b   : > { %v6583_v4 = vpop.xlane.xlu1 %6582 }
0x2d4c   : > { %v6584_v53 = vmul.f32 0.03125, %v6583_v4 }
0x2d4e   : > { %v6585_v42 = vadd.f32 1e-12, %v6584_v53 }
0x2d50   : > { %13775 = vrsqrt.f32 %v6585_v42 }
0x2d5a   : > { %v13776_v45 = vpop.eup %13775 }
0x2d5b   : > { %v6587_v61 = vmul.f32 %v13776_v45, %v6579_v28 }
0x2d5d   : > { %v6594_v56 = vmul.f32 %v15316_v29, %v6587_v61 }
0x2d5f   : > { %v6601_v49 = vadd.f32 %v15319_v1, %v6594_v56 }
0x2d61   : > { %v6607_v3 = vmul.f32 %v15313_v44, %v6601_v49 }
0x2d63   : > { %v6614_v5 = vmul.f32 %v6612_v47, %v6607_v3 }
0x2d65   : > { %v15325_v7 = vadd.f32 %v6621_v35, %v6614_v5 }
0x2d67   : > { %12554 = vmatmul.mubr.msk.f32.vlgmr.msra.gmra.mrb[80].mxu0 %vm1033_vm0, %v15325_v7 }
0x2d68   : > { %12568 = vmatpush3.xpose.msk.msra.mxu0 %vm1033_vm0, %v15057_v30  ;;  %12569 = vmatprep.mubr.msk.f32.mxu0 %vm13980_vm1, %v13981_v18 }
0x2d69   : > { %13475 = vmatprep.subr.bf16.mxu0 %v13979_v10 }
0x2e3a   : > { %v6692_v9 = vpop.f32.mrb[80].mxu0 }
0x2e3b   : > { %v6693_v11 = vadd.f32 %v15026_v41, %v6692_v9  ;;  %v12555_v13 = vpop.f32.mrb[81].mxu0 }
0x2e3d   : > { %12557 = vmatpush3.msk.msra.mxu1 %vm5345_vm9, %v6693_v11 }
0x2e3e   : > { %12559 = vmatmul.mubr.msk.f32.vlgmr.msra.gmra.mrb[80].mxu1 %vm5335_vm10, %v15031_v25  ;;  %12578 = vmatprep.subr.mxu1 %v13981_v18 }
0x2e3f   : > { %12579 = vmatpush3.msra.mxu1 %v15094_v43  ;;  %12561 = vmatprep.mubr.msk.f32.mxu1 %vm13980_vm1, %v13981_v18 }
0x2e40   : > { %13484 = vmatprep.subr.bf16.mxu1 %v13979_v10 }
0x2e42   : > { %12562 = vmatmul.mubr.msk.f32.gmra.mrb[82].mxu1 %vm5335_vm10, %v15040_v38 }
0x2e43   : > { %12564 = vmatprep.mubr.msk.f32.mxu1 %vm13980_vm1, %v13981_v18 }
0x2e46   : > { %12565 = vmatmul.mubr.msk.f32.gmra.mrb[84].mxu1 %vm5335_vm10, %v15048_v33 }
0x2e47   : > { %12580 = vmatprep.mubr.msk.f32.mxu1 %vm13980_vm1, %v13981_v18 }
0x2f11   : > { %v6765_v50 = vpop.f32.mrb[80].mxu1 }
0x2f12   : > { %v6779_v41 = vmul.f32 %v15064_v55, %v6765_v50  ;;  %v12560_v14 = vpop.f32.mrb[81].mxu1 }
0x2f14   : > { %12570 = vmatmul.mubr.msk.f32.vlgmr.msra.gmra.mrb[82].mxu0 %vm1033_vm0, %v6779_v41 }
0x2f15   : > { %v6770_v39 = vpop.f32.mrb[82].mxu1  ;;  %12572 = vmatprep.mubr.msk.f32.mxu0 %vm13980_vm1, %v13981_v18 }
0x2f16   : > { %v6780_v12 = vmul.f32 %v15069_v62, %v6770_v39  ;;  %v12563_v58 = vpop.f32.mrb[83].mxu1 }
0x2f18   : > { %12573 = vmatmul.mubr.msk.f32.gmra.mrb[84].mxu0 %vm1033_vm0, %v6780_v12 }
0x2f19   : > { %v6775_v21 = vpop.f32.mrb[84].mxu1  ;;  %12575 = vmatprep.mubr.msk.f32.mxu0 %vm13980_vm1, %v13981_v18 }
0x2f1a   : > { %v6781_v22 = vmul.f32 %v15077_v63, %v6775_v21  ;;  %v12566_v57 = vpop.f32.mrb[85].mxu1 }
0x2f1c   : > { %12576 = vmatmul.mubr.msk.f32.gmra.mrb[86].mxu0 %vm1033_vm0, %v6781_v22 }
0x2f1d   : > { %12595 = vmatprep.mubr.msk.f32.mxu0 %vm13980_vm1, %v13981_v18 }
0x2fe7   : > { %v6857_v16 = vpop.f32.mrb[82].mxu0 }
0x2fe8   : > { %v6871_v26 = vmul.f32 0.35355338, %v6857_v16  ;;  %v12571_v48 = vpop.f32.mrb[83].mxu0 }
0x2fea   : > { %v6874_v27 = vsel %vm1313_vm3, %v6871_v26, -inf }
0x2feb   : > { %6875 = vmax.xlane.f32.xlu0 %v6874_v27  ;;  %v6862_v28 = vpop.f32.mrb[84].mxu0 }
0x2fec   : > { %v6872_v2 = vmul.f32 0.35355338, %v6862_v28  ;;  %v12574_v0 = vpop.f32.mrb[85].mxu0 }
0x2fee   : > { %v6877_v4 = vsel %vm1313_vm3, %v6872_v2, -inf }
0x2fef   : > { %6878 = vmax.xlane.f32.xlu1 %v6877_v4  ;;  %v6867_v53 = vpop.f32.mrb[86].mxu0 }
0x2ff0   : > { %v6873_v42 = vmul.f32 0.35355338, %v6867_v53  ;;  %v12577_v45 = vpop.f32.mrb[87].mxu0 }
0x2ff2   : > { %v6880_v47 = vsel %vm1313_vm3, %v6873_v42, -inf }
0x2ff3   : > { %6881 = vmax.xlane.f32.xlu1 %v6880_v47 }
0x3078   : > { %v6876_v61 = vpop.xlane.xlu0 %6875 }
0x3079   : > { %v6883_v56 = vsub.f32 %v6871_v26, %v6876_v61 }
0x307b   : > { %v6886_v49 = vmul.f32 1.442695, %v6883_v56 }
0x307c   : > { %v6879_v51 = vpop.xlane.xlu1 %6878 }
0x307d   : > { %13777 = vpow2.f32 %v6886_v49  ;;  %v6884_v3 = vsub.f32 %v6872_v2, %v6879_v51 }
0x307f   : > { %v6888_v35 = vmul.f32 1.442695, %v6884_v3 }
0x3080   : > { %v6882_v5 = vpop.xlane.xlu1 %6881 }
0x3081   : > { %13779 = vpow2.f32 %v6888_v35  ;;  %v6885_v9 = vsub.f32 %v6873_v42, %v6882_v5 }
0x3083   : > { %v6890_v11 = vmul.f32 1.442695, %v6885_v9 }
0x3085   : > { %13781 = vpow2.f32 %v6890_v11 }
0x3087   : > { %v13778_v13 = vpop.eup %13777 }
0x3088   : > { %v6892_v50 = vsel %vm1313_vm3, %v13778_v13, 0.0 }
0x3089   : > { %6893 = vadd.xlane.f32.xlu1 %v6892_v50 }
0x308b   : > { %v13780_v41 = vpop.eup %13779 }
0x308c   : > { %v6895_v14 = vsel %vm1313_vm3, %v13780_v41, 0.0 }
0x308d   : > { %6896 = vadd.xlane.f32.xlu1 %v6895_v14 }
0x308f   : > { %v13782_v39 = vpop.eup %13781 }
0x3090   : > { %v6898_v12 = vsel %vm1313_vm3, %v13782_v39, 0.0 }
0x3091   : > { %6899 = vadd.xlane.f32.xlu1 %v6898_v12 }
0x3116   : > { %v6894_v58 = vpop.xlane.xlu1 %6893 }
0x3117   : > { %13783 = vrcp.f32 %v6894_v58 }
0x311a   : > { %v6897_v21 = vpop.xlane.xlu1 %6896 }
0x311b   : > { %13785 = vrcp.f32 %v6897_v21 }
0x311e   : > { %v6900_v22 = vpop.xlane.xlu1 %6899 }
0x311f   : > { %13787 = vrcp.f32 %v6900_v22 }
0x3121   : > { %v13784_v57 = vpop.eup %13783 }
0x3122   : > { %v6904_v16 = vmul.f32 %v13784_v57, %v13778_v13 }
0x3124   : > { %12581 = vmatmul.mubr.msk.f32.vlgmr.msra.gmra.mrb[86].mxu1 %vm1313_vm3, %v6904_v16 }
0x3125   : > { %v13786_v26 = vpop.eup %13785  ;;  %12583 = vmatprep.mubr.msk.f32.mxu1 %vm13980_vm1, %v13981_v18  ;;  %13486 = vmatpush3.bf16.msra.mxu1 %v15152_v36 }
0x3126   : > { %v6905_v48 = vmul.f32 %v13786_v26, %v13780_v41  ;;  %13487 = vmatprep.subr.bf16.mxu1 %v13979_v10 }
0x3128   : > { %12584 = vmatmul.mubr.msk.f32.gmra.mrb[88].mxu1 %vm1313_vm3, %v6905_v48 }
0x3129   : > { %v13788_v27 = vpop.eup %13787  ;;  %12586 = vmatprep.mubr.msk.f32.mxu1 %vm13980_vm1, %v13981_v18  ;;  %13489 = vmatpush3.bf16.msra.mxu1 %v15164_v46 }
0x312a   : > { %v6906_v28 = vmul.f32 %v13788_v27, %v13782_v39  ;;  %12631 = vmatprep.subr.mxu1 %v13981_v18 }
0x312c   : > { %12587 = vmatmul.mubr.msk.f32.gmra.mrb[90].mxu1 %vm1313_vm3, %v6906_v28 }
0x312d   : > { %12617 = vmatprep.mubr.msk.f32.mxu1 %vm13980_vm1, %v13981_v18 }
0x31f7   : > { %v6982_v2 = vpop.f32.mrb[86].mxu1 }
0x31f8   : > { %v12582_v0 = vpop.f32.mrb[87].mxu1  ;;  %v6996_v53 = vmul.f32 %v15064_v55, %v6982_v2 }
0x31fb   : > { %v6987_v4 = vpop.f32.mrb[88].mxu1 }
0x31fc   : > { %v6997_v42 = vmul.f32 %v15069_v62, %v6987_v4  ;;  %v12585_v45 = vpop.f32.mrb[89].mxu1 }
0x31fe   : > { %v13476_v47 = vpack.c.bf16 %v6997_v42, %v6996_v53 }
0x31ff   : > { %v6992_v61 = vpop.f32.mrb[90].mxu1 }
0x3200   : > { %v12588_v56 = vpop.f32.mrb[91].mxu1  ;;  %13477 = vmatpush3.bf16.msra.mxu0 %v13476_v47  ;;  %v6998_v49 = vmul.f32 %v15077_v63, %v6992_v61 }
0x3201   : > { %12593 = vmatprep.subr.mxu0 %v13981_v18 }
0x3204   : > { %12594 = vmatpush3.msra.mxu0 %v6998_v49 }
0x3205   : > { %12596 = vmatmul.mubr.msk.f32.vlgmr.msra.gmra.mrb[88].mxu0 %vm5655_vm7, %v15122_v6  ;;  %13478 = vmatprep.subr.bf16.mxu0 %v13979_v10 }
0x3206   : > { %13480 = vmatpush3.bf16.msra.mxu0 %v15124_v8  ;;  %12606 = vmatprep.mubr.msk.f32.mxu0 %vm13980_vm1, %v13981_v18 }
0x3207   : > { %13481 = vmatprep.subr.bf16.mxu0 %v13979_v10 }
0x320a   : > { %13483 = vmatpush3.bf16.msra.mxu0 %v15132_v31 }
0x320b   : > { %13490 = vmatprep.subr.bf16.mxu0 %v13979_v10 }
0x32d8   : > { %v7065_v51 = vpop.f32.mrb[88].mxu0 }
0x32d9   : > { %v12597_v3 = vpop.f32.mrb[89].mxu0  ;;  %12607 = vmatmul.mubr.msk.f32.vlgmr.msra.gmra.mrb[90].mxu0 %vm1033_vm0, %v7065_v51 }
0x32da   : > { %13492 = vmatpush3.bf16.msra.mxu0 %v15155_v40  ;;  %12628 = vmatprep.mubr.msk.f32.mxu0 %vm13980_vm1, %v13981_v18 }
0x32db   : > { %13493 = vmatprep.subr.bf16.mxu0 %v13979_v10 }
0x32de   : > { %13495 = vmatpush3.bf16.msra.mxu0 %v15167_v54 }
0x32df   : > { %12642 = vmatprep.subr.mxu0 %v13981_v18 }
0x33ac   : > { %v7138_v35 = vpop.f32.mrb[90].mxu0 }
0x33ad   : > { %v7139_v5 = vadd.f32 %v15143_v15, %v7138_v35  ;;  %v12608_v9 = vpop.f32.mrb[91].mxu0 }
0x33af   : > { %v7142_v11 = vadd.f32 %v7139_v5, %v15325_v7 }
0x33b1   : > { %v7143_v13 = vsel %vm5820_vm8, %v7142_v11, 0.0 }
0x33b2   : > { %7144 = vadd.xlane.f32.xlu1 %v7143_v13 }
0x343f   : > { %v7145_v50 = vpop.xlane.xlu1 %7144 }
0x3440   : > { %v7146_v41 = vmul.f32 0.03125, %v7145_v50 }
0x3442   : > { %v7147_v14 = vsub.f32 %v7142_v11, %v7146_v41 }
0x3444   : > { %v7148_v39 = vmul.f32 %v7147_v14, %v7147_v14 }
0x3446   : > { %v7149_v12 = vsel %vm5820_vm8, %v7148_v39, 0.0 }
0x3447   : > { %7150 = vadd.xlane.f32.xlu1 %v7149_v12 }
0x34d4   : > { %v7151_v58 = vpop.xlane.xlu1 %7150 }
0x34d5   : > { %v7152_v21 = vmul.f32 0.03125, %v7151_v58 }
0x34d7   : > { %v7153_v22 = vadd.f32 1e-12, %v7152_v21 }
0x34d9   : > { %13789 = vrsqrt.f32 %v7153_v22 }
0x34e3   : > { %v13790_v57 = vpop.eup %13789 }
0x34e4   : > { %v7155_v16 = vmul.f32 %v13790_v57, %v7147_v14 }
0x34e6   : > { %v7156_v15 = vmul.f32 %v15174_v19, %v7155_v16 }
0x34e8   : > { %v15408_v26 = vadd.f32 %v15177_v17, %v7156_v15 }
0x34ea   : > { %12618 = vmatmul.mubr.msk.f32.vlgmr.msra.gmra.mrb[92].mxu1 %vm1033_vm0, %v15408_v26  ;;  %12629 = vmatmul.mubr.msk.f32.vlgmr.msra.gmra.mrb[92].mxu0 %vm1033_vm0, %v15408_v26 }
0x34eb   : > { %12633 = vmatprep.mubr.msk.f32.mxu1 %vm13980_vm1, %v13981_v18  ;;  %12644 = vmatprep.mubr.msk.f32.mxu0 %vm13980_vm1, %v13981_v18 }
0x35bd   : > { %v7229_v48 = vpop.f32.mrb[92].mxu1  ;;  %v7299_v27 = vpop.f32.mrb[92].mxu0 }
0x35be   : > { %v7230_v19 = vadd.f32 %v15192_v52, %v7229_v48  ;;  %v15420_v17 = vadd.f32 %v15195_v37, %v7299_v27  ;;  %v12619_v28 = vpop.f32.mrb[93].mxu1  ;;  %v12630_v2 = vpop.f32.mrb[93].mxu0  ;;  %v11201_v52 = vld [vmem:[%s15222_s13 + $0x8] sm:$0x3f] }
0x35c0   : > { %12632 = vmatpush3.msk.msra.mxu1 %vm5345_vm9, %v7230_v19  ;;  %12643 = vmatpush3.xpose.msk.msra.mxu0 %vm1033_vm0, %v15420_v17 }
0x35c1   : > { %12634 = vmatmul.mubr.msk.f32.vlgmr.msra.gmra.mrb[94].mxu1 %vm5335_vm10, %v15031_v25  ;;  %12653 = vmatprep.subr.mxu1 %v13981_v18 }
0x35c2   : > { %12636 = vmatprep.mubr.msk.f32.mxu1 %vm13980_vm1, %v13981_v18  ;;  %12664 = vmatprep.subr.mxu0 %v13981_v18 }
0x35c3   : > { %12654 = vmatpush3.msk.msra.mxu1 %vm5345_vm9, %v11201_v52 }
0x35c4   : > { %13496 = vmatprep.subr.bf16.mxu1 %v13979_v10 }
0x35c5   : > { %12637 = vmatmul.mubr.msk.f32.gmra.mrb[96].mxu1 %vm5335_vm10, %v15040_v38 }
0x35c6   : > { %12639 = vmatprep.mubr.msk.f32.mxu1 %vm13980_vm1, %v13981_v18 }
0x35c9   : > { %12640 = vmatmul.mubr.msk.f32.gmra.mrb[98].mxu1 %vm5335_vm10, %v15048_v33 }
0x35ca   : > { %12655 = vmatprep.mubr.msk.f32.mxu1 %vm13980_vm1, %v13981_v18 }
0x35cd   : > { %12656 = vmatmul.mubr.msk.f32.vlgmr.msra.gmra.mrb[100].mxu1 %vm5335_vm10, %v15031_v25 }
0x35ce   : > { %12658 = vmatprep.mubr.msk.f32.mxu1 %vm13980_vm1, %v13981_v18 }
0x35d1   : > { %12659 = vmatmul.mubr.msk.f32.gmra.mrb[102].mxu1 %vm5335_vm10, %v15040_v38 }
0x35d2   : > { %12661 = vmatprep.mubr.msk.f32.mxu1 %vm13980_vm1, %v13981_v18 }
0x35d5   : > { %12662 = vmatmul.mubr.msk.f32.gmra.mrb[104].mxu1 %vm5335_vm10, %v15048_v33 }
0x35d6   : > { %12681 = vmatprep.mubr.msk.f32.mxu1 %vm13980_vm1, %v13981_v18 }
0x3694   : > { %v7372_v37 = vpop.f32.mrb[94].mxu1 }
0x3695   : > { %v7386_v0 = vmul.f32 %v15064_v55, %v7372_v37  ;;  %v12635_v4 = vpop.f32.mrb[95].mxu1 }
0x3697   : > { %12645 = vmatmul.mubr.msk.f32.vlgmr.msra.gmra.mrb[94].mxu0 %vm1033_vm0, %v7386_v0 }
0x3698   : > { %v7377_v53 = vpop.f32.mrb[96].mxu1  ;;  %12647 = vmatprep.mubr.msk.f32.mxu0 %vm13980_vm1, %v13981_v18 }
0x3699   : > { %v7387_v42 = vmul.f32 %v15069_v62, %v7377_v53  ;;  %v12638_v45 = vpop.f32.mrb[97].mxu1 }
0x369b   : > { %12648 = vmatmul.mubr.msk.f32.gmra.mrb[96].mxu0 %vm1033_vm0, %v7387_v42 }
0x369c   : > { %v7382_v47 = vpop.f32.mrb[98].mxu1  ;;  %12650 = vmatprep.mubr.msk.f32.mxu0 %vm13980_vm1, %v13981_v18 }
0x369d   : > { %v7388_v61 = vmul.f32 %v15077_v63, %v7382_v47  ;;  %v12641_v56 = vpop.f32.mrb[99].mxu1 }
0x369f   : > { %12651 = vmatmul.mubr.msk.f32.gmra.mrb[98].mxu0 %vm1033_vm0, %v7388_v61 }
0x36a0   : > { %12666 = vmatprep.mubr.msk.f32.mxu0 %vm13980_vm1, %v13981_v18  ;;  %v7553_v49 = vpop.f32.mrb[100].mxu1 }
0x36a1   : > { %v12657_v51 = vpop.f32.mrb[101].mxu1 }
0x36a4   : > { %v7558_v3 = vpop.f32.mrb[102].mxu1 }
0x36a5   : > { %v12660_v35 = vpop.f32.mrb[103].mxu1 }
0x36a8   : > { %v7563_v5 = vpop.f32.mrb[104].mxu1 }
0x36a9   : > { %v12663_v9 = vpop.f32.mrb[105].mxu1 }
0x376a   : > { %v7467_v11 = vpop.f32.mrb[94].mxu0 }
0x376b   : > { %v7481_v13 = vmul.f32 0.35355338, %v7467_v11  ;;  %v12646_v50 = vpop.f32.mrb[95].mxu0 }
0x376d   : > { %v7567_v41 = vadd.f32 %v7553_v49, %v7481_v13 }
0x376e   : > { %v7472_v14 = vpop.f32.mrb[96].mxu0 }
0x376f   : > { %v7482_v39 = vmul.f32 0.35355338, %v7472_v14  ;;  %v12649_v12 = vpop.f32.mrb[97].mxu0  ;;  %v7570_v58 = vsel %vm5335_vm10, %v7567_v41, -inf }
0x3770   : > { %7571 = vmax.xlane.f32.xlu0 %v7570_v58 }
0x3771   : > { %v7568_v21 = vadd.f32 %v7558_v3, %v7482_v39  ;;  %v15473_v3 = vld [vmem:[%s15309_s21 + $0x8] sm:$0x3f] }
0x3772   : > { %v7477_v22 = vpop.f32.mrb[98].mxu0  ;;  %v7867_v35 = vsub.f32 1.0, %v15473_v3 }
0x3773   : > { %v7483_v57 = vmul.f32 0.35355338, %v7477_v22  ;;  %v7573_v16 = vsel %vm5335_vm10, %v7568_v21, -inf  ;;  %v12652_v15 = vpop.f32.mrb[99].mxu0 }
0x3774   : > { %7574 = vmax.xlane.f32.xlu1 %v7573_v16 }
0x3775   : > { %v7569_v48 = vadd.f32 %v7563_v5, %v7483_v57 }
0x3777   : > { %v7576_v27 = vsel %vm5335_vm10, %v7569_v48, -inf }
0x3778   : > { %7577 = vmax.xlane.f32.xlu0 %v7576_v27 }
0x37fd   : > { %v7572_v19 = vpop.xlane.xlu0 %7571 }
0x37fe   : > { %v7579_v28 = vsub.f32 %v7567_v41, %v7572_v19 }
0x3800   : > { %v7582_v2 = vmul.f32 1.442695, %v7579_v28 }
0x3801   : > { %v7575_v52 = vpop.xlane.xlu1 %7574 }
0x3802   : > { %13791 = vpow2.f32 %v7582_v2  ;;  %v7580_v37 = vsub.f32 %v7568_v21, %v7575_v52 }
0x3804   : > { %v7584_v0 = vmul.f32 1.442695, %v7580_v37 }
0x3805   : > { %v7578_v4 = vpop.xlane.xlu0 %7577 }
0x3806   : > { %13793 = vpow2.f32 %v7584_v0  ;;  %v7581_v53 = vsub.f32 %v7569_v48, %v7578_v4 }
0x3808   : > { %v7586_v42 = vmul.f32 1.442695, %v7581_v53 }
0x380a   : > { %13795 = vpow2.f32 %v7586_v42 }
0x380c   : > { %v13792_v45 = vpop.eup %13791 }
0x380d   : > { %v7588_v47 = vsel %vm5335_vm10, %v13792_v45, 0.0 }
0x380e   : > { %7589 = vadd.xlane.f32.xlu1 %v7588_v47 }
0x3810   : > { %v13794_v61 = vpop.eup %13793 }
0x3811   : > { %v7591_v56 = vsel %vm5335_vm10, %v13794_v61, 0.0 }
0x3812   : > { %7592 = vadd.xlane.f32.xlu0 %v7591_v56 }
0x3814   : > { %v13796_v49 = vpop.eup %13795 }
0x3815   : > { %v7594_v51 = vsel %vm5335_vm10, %v13796_v49, 0.0 }
0x3816   : > { %7595 = vadd.xlane.f32.xlu1 %v7594_v51 }
0x3828   : > { %7603 = vrot.lane.b32.xlu0 %v15420_v17, %s16002_s9 }
0x382c   : > { %7870 = vperm.xlu0 %13674, %v7867_v35  }
0x389b   : > { %v7590_v5 = vpop.xlane.xlu1 %7589 }
0x389c   : > { %13797 = vrcp.f32 %v7590_v5 }
0x389f   : > { %v7593_v9 = vpop.xlane.xlu0 %7592 }
0x38a0   : > { %13799 = vrcp.f32 %v7593_v9 }
0x38a3   : > { %v7596_v11 = vpop.xlane.xlu1 %7595  ;;  %v7604_v13 = vpop.permute.xlu0 %7603 }
0x38a4   : > { %13801 = vrcp.f32 %v7596_v11  ;;  %12665 = vmatpush3.msk.msra.mxu0 %vm5345_vm9, %v7604_v13 }
0x38a5   : > { %13499 = vmatprep.subr.bf16.mxu0 %v13979_v10 }
0x38a6   : > { %v13798_v50 = vpop.eup %13797 }
0x38a7   : > { %v7600_v41 = vmul.f32 %v13798_v50, %v13792_v45 }
0x38a9   : > { %12667 = vmatmul.mubr.msk.f32.vlgmr.msra.gmra.mrb[100].mxu0 %vm5335_vm10, %v7600_v41 }
0x38aa   : > { %v13800_v14 = vpop.eup %13799  ;;  %12669 = vmatprep.mubr.msk.f32.mxu0 %vm13980_vm1, %v13981_v18  ;;  %13501 = vmatpush3.bf16.msra.mxu0 %v15273_v59 }
0x38ab   : > { %v7601_v17 = vmul.f32 %v13800_v14, %v13794_v61  ;;  %13502 = vmatprep.subr.bf16.mxu0 %v13979_v10  ;;  %v7871_v9 = vpop.permute.xlu0 %7870 }
0x38ac   : > { %v7873_v50 = vmul.f32 %v7871_v9, %v15325_v7 }
0x38ad   : > { %12670 = vmatmul.mubr.msk.f32.gmra.mrb[102].mxu0 %vm5335_vm10, %v7601_v17 }
0x38ae   : > { %v13802_v39 = vpop.eup %13801  ;;  %12672 = vmatprep.mubr.msk.f32.mxu0 %vm13980_vm1, %v13981_v18  ;;  %13504 = vmatpush3.bf16.msra.mxu0 %v15277_v34 }
0x38af   : > { %v7602_v12 = vmul.f32 %v13802_v39, %v13796_v49  ;;  %12706 = vmatprep.subr.mxu0 %v13981_v18 }
0x38b1   : > { %12673 = vmatmul.mubr.msk.f32.gmra.mrb[104].mxu0 %vm5335_vm10, %v7602_v12 }
0x38b2   : > { %12692 = vmatprep.mubr.msk.f32.mxu0 %vm13980_vm1, %v13981_v18 }
0x397c   : > { %v7682_v58 = vpop.f32.mrb[100].mxu0 }
0x397d   : > { %v12668_v21 = vpop.f32.mrb[101].mxu0  ;;  %v7696_v57 = vmul.f32 %v15064_v55, %v7682_v58 }
0x3980   : > { %v7687_v22 = vpop.f32.mrb[102].mxu0 }
0x3981   : > { %v7697_v16 = vmul.f32 %v15069_v62, %v7687_v22  ;;  %v12671_v15 = vpop.f32.mrb[103].mxu0 }
0x3983   : > { %v13497_v48 = vpack.c.bf16 %v7697_v16, %v7696_v57 }
0x3984   : > { %v7692_v27 = vpop.f32.mrb[104].mxu0 }
0x3985   : > { %v12674_v19 = vpop.f32.mrb[105].mxu0  ;;  %13498 = vmatpush3.bf16.msra.mxu1 %v13497_v48  ;;  %v7698_v28 = vmul.f32 %v15077_v63, %v7692_v27 }
0x3986   : > { %12679 = vmatprep.subr.mxu1 %v13981_v18 }
0x3989   : > { %12680 = vmatpush3.msra.mxu1 %v7698_v28 }
0x398a   : > { %12682 = vmatmul.mubr.msk.f32.vlgmr.msra.gmra.mrb[106].mxu1 %vm5655_vm7, %v15122_v6  ;;  %13505 = vmatprep.subr.bf16.mxu1 %v13979_v10 }
0x398b   : > { %13507 = vmatpush3.bf16.msra.mxu1 %v14982_v23  ;;  %12703 = vmatprep.mubr.msk.f32.mxu1 %vm13980_vm1, %v13981_v18 }
0x398c   : > { %13508 = vmatprep.subr.bf16.mxu1 %v13979_v10 }
0x398f   : > { %13510 = vmatpush3.bf16.msra.mxu1 %v14988_v60 }
0x3990   : > { %12717 = vmatprep.subr.mxu1 %v13981_v18 }
0x3a5d   : > { %v7765_v2 = vpop.f32.mrb[106].mxu1 }
0x3a5e   : > { %v12683_v52 = vpop.f32.mrb[107].mxu1  ;;  %12693 = vmatmul.mubr.msk.f32.vlgmr.msra.gmra.mrb[106].mxu0 %vm1033_vm0, %v7765_v2 }
0x3a5f   : > { %12708 = vmatprep.mubr.msk.f32.mxu0 %vm13980_vm1, %v13981_v18 }
0x3b31   : > { %v7838_v37 = vpop.f32.mrb[106].mxu0 }
0x3b32   : > { %v7839_v0 = vadd.f32 %v15299_v20, %v7838_v37  ;;  %v12694_v23 = vpop.f32.mrb[107].mxu0 }
0x3b34   : > { %v7842_v4 = vadd.f32 %v7839_v0, %v15408_v26 }
0x3b36   : > { %v7843_v53 = vsel %vm5820_vm8, %v7842_v4, 0.0 }
0x3b37   : > { %7844 = vadd.xlane.f32.xlu1 %v7843_v53 }
0x3bc4   : > { %v7845_v42 = vpop.xlane.xlu1 %7844 }
0x3bc5   : > { %v7846_v60 = vmul.f32 0.03125, %v7845_v42 }
0x3bc7   : > { %v7847_v45 = vsub.f32 %v7842_v4, %v7846_v60 }
0x3bc9   : > { %v7848_v47 = vmul.f32 %v7847_v45, %v7847_v45 }
0x3bcb   : > { %v7849_v61 = vsel %vm5820_vm8, %v7848_v47, 0.0 }
0x3bcc   : > { %7850 = vadd.xlane.f32.xlu1 %v7849_v61 }
0x3bdd   : > { %7863 = vperm.xlu1 %13673, %v15473_v3  }
0x3c59   : > { %v7851_v56 = vpop.xlane.xlu1 %7850 }
0x3c5a   : > { %v7852_v49 = vmul.f32 0.03125, %v7851_v56 }
0x3c5c   : > { %v7853_v51 = vadd.f32 1e-12, %v7852_v49 }
0x3c5d   : > { %v7864_v13 = vpop.permute.xlu1 %7863 }
0x3c5e   : > { %13803 = vrsqrt.f32 %v7853_v51 }
0x3c68   : > { %v13804_v20 = vpop.eup %13803 }
0x3c69   : > { %v7855_v35 = vmul.f32 %v13804_v20, %v7847_v45 }
0x3c6b   : > { %v7856_v26 = vmul.f32 %v15316_v29, %v7855_v35 }
0x3c6d   : > { %v7857_v5 = vadd.f32 %v15319_v1, %v7856_v26  ;;  %v13862_v1 = vld [vmem:[%s14048_s24 + $0x4] ss:$0 sm:$0xff] }
0x3c6f   : > { %v7858_v11 = vmul.f32 %v7857_v5, %v15313_v44 }
0x3c71   : > { %v7866_v41 = vmul.f32 %v7864_v13, %v7858_v11 }
0x3c73   : > { %v15518_v14 = vadd.f32 %v7873_v50, %v7866_v41 }
0x3c75   : > { %12704 = vmatmul.mubr.msk.f32.vlgmr.msra.gmra.mrb[108].mxu1 %vm1033_vm0, %v15518_v14 }
0x3c76   : > { %12718 = vmatpush3.xpose.msk.msra.mxu1 %vm1033_vm0, %v15057_v30  ;;  %12719 = vmatprep.mubr.msk.f32.mxu1 %vm13980_vm1, %v13981_v18 }
0x3c77   : > { %13511 = vmatprep.subr.bf16.mxu1 %v13979_v10 }
0x3d48   : > { %v7944_v29 = vpop.f32.mrb[108].mxu1 }
0x3d49   : > { %v7945_v3 = vadd.f32 %v13862_v1, %v7944_v29  ;;  %v12705_v17 = vpop.f32.mrb[109].mxu1 }
0x3d4b   : > { %12707 = vmatpush3.msk.msra.mxu0 %vm5345_vm9, %v7945_v3 }
0x3d4c   : > { %12709 = vmatmul.mubr.msk.f32.vlgmr.msra.gmra.mrb[108].mxu0 %vm5335_vm10, %v15031_v25  ;;  %12728 = vmatprep.subr.mxu0 %v13981_v18 }
0x3d4d   : > { %12729 = vmatpush3.msra.mxu0 %v15094_v43  ;;  %12711 = vmatprep.mubr.msk.f32.mxu0 %vm13980_vm1, %v13981_v18 }
0x3d4e   : > { %13520 = vmatprep.subr.bf16.mxu0 %v13979_v10 }
0x3d50   : > { %12712 = vmatmul.mubr.msk.f32.gmra.mrb[110].mxu0 %vm5335_vm10, %v15040_v38 }
0x3d51   : > { %12714 = vmatprep.mubr.msk.f32.mxu0 %vm13980_vm1, %v13981_v18 }
0x3d54   : > { %12715 = vmatmul.mubr.msk.f32.gmra.mrb[112].mxu0 %vm5335_vm10, %v15048_v33 }
0x3d55   : > { %12730 = vmatprep.mubr.msk.f32.mxu0 %vm13980_vm1, %v13981_v18 }
0x3e1f   : > { %v8017_v30 = vpop.f32.mrb[108].mxu0 }
0x3e20   : > { %v8031_v43 = vmul.f32 %v15064_v55, %v8017_v30  ;;  %v12710_v7 = vpop.f32.mrb[109].mxu0 }
0x3e22   : > { %12720 = vmatmul.mubr.msk.f32.vlgmr.msra.gmra.mrb[110].mxu1 %vm1033_vm0, %v8031_v43 }
0x3e23   : > { %v8022_v39 = vpop.f32.mrb[110].mxu0  ;;  %12722 = vmatprep.mubr.msk.f32.mxu1 %vm13980_vm1, %v13981_v18 }
0x3e24   : > { %v8032_v12 = vmul.f32 %v15069_v62, %v8022_v39  ;;  %v12713_v58 = vpop.f32.mrb[111].mxu0 }
0x3e26   : > { %12723 = vmatmul.mubr.msk.f32.gmra.mrb[112].mxu1 %vm1033_vm0, %v8032_v12 }
0x3e27   : > { %v8027_v21 = vpop.f32.mrb[112].mxu0  ;;  %12725 = vmatprep.mubr.msk.f32.mxu1 %vm13980_vm1, %v13981_v18 }
0x3e28   : > { %v8033_v22 = vmul.f32 %v15077_v63, %v8027_v21  ;;  %v12716_v57 = vpop.f32.mrb[113].mxu0 }
0x3e2a   : > { %12726 = vmatmul.mubr.msk.f32.gmra.mrb[114].mxu1 %vm1033_vm0, %v8033_v22 }
0x3e2b   : > { %12745 = vmatprep.mubr.msk.f32.mxu1 %vm13980_vm1, %v13981_v18 }
0x3ef5   : > { %v8109_v16 = vpop.f32.mrb[110].mxu1 }
0x3ef6   : > { %v8123_v15 = vmul.f32 0.35355338, %v8109_v16  ;;  %v12721_v48 = vpop.f32.mrb[111].mxu1 }
0x3ef8   : > { %v8126_v27 = vsel %vm1313_vm3, %v8123_v15, -inf }
0x3ef9   : > { %8127 = vmax.xlane.f32.xlu0 %v8126_v27  ;;  %v8114_v19 = vpop.f32.mrb[112].mxu1  ;;  %v13863_v27 = vld [vmem:[%s14068_s20 + $0x4] ss:$0 sm:$0xff] }
0x3efa   : > { %v8124_v28 = vmul.f32 0.35355338, %v8114_v19  ;;  %v12724_v2 = vpop.f32.mrb[113].mxu1 }
0x3efc   : > { %v8129_v52 = vsel %vm1313_vm3, %v8124_v28, -inf }
0x3efd   : > { %8130 = vmax.xlane.f32.xlu1 %v8129_v52  ;;  %v8119_v37 = vpop.f32.mrb[114].mxu1 }
0x3efe   : > { %v8125_v0 = vmul.f32 0.35355338, %v8119_v37  ;;  %v12727_v23 = vpop.f32.mrb[115].mxu1 }
0x3f00   : > { %v8132_v4 = vsel %vm1313_vm3, %v8125_v0, -inf }
0x3f01   : > { %8133 = vmax.xlane.f32.xlu0 %v8132_v4 }
0x3f86   : > { %v8128_v53 = vpop.xlane.xlu0 %8127 }
0x3f87   : > { %v8135_v42 = vsub.f32 %v8123_v15, %v8128_v53 }
0x3f89   : > { %v8138_v60 = vmul.f32 1.442695, %v8135_v42 }
0x3f8a   : > { %v8131_v45 = vpop.xlane.xlu1 %8130 }
0x3f8b   : > { %13805 = vpow2.f32 %v8138_v60  ;;  %v8136_v47 = vsub.f32 %v8124_v28, %v8131_v45  ;;  %v13864_v45 = vld [vmem:[%s14073_s27 + $0x4] ss:$0 sm:$0xff] }
0x3f8d   : > { %v8140_v61 = vmul.f32 1.442695, %v8136_v47 }
0x3f8e   : > { %v8134_v56 = vpop.xlane.xlu0 %8133 }
0x3f8f   : > { %13807 = vpow2.f32 %v8140_v61  ;;  %v8137_v49 = vsub.f32 %v8125_v0, %v8134_v56  ;;  %v13865_v61 = vld [vmem:[%s14078_s4 + $0x4] ss:$0 sm:$0xff] }
0x3f91   : > { %v8142_v51 = vmul.f32 1.442695, %v8137_v49 }
0x3f93   : > { %13809 = vpow2.f32 %v8142_v51 }
0x3f95   : > { %v13806_v20 = vpop.eup %13805 }
0x3f96   : > { %v8144_v35 = vsel %vm1313_vm3, %v13806_v20, 0.0 }
0x3f97   : > { %8145 = vadd.xlane.f32.xlu0 %v8144_v35 }
0x3f99   : > { %v13808_v26 = vpop.eup %13807 }
0x3f9a   : > { %v8147_v5 = vsel %vm1313_vm3, %v13808_v26, 0.0 }
0x3f9b   : > { %8148 = vadd.xlane.f32.xlu1 %v8147_v5 }
0x3f9d   : > { %v13810_v9 = vpop.eup %13809 }
0x3f9e   : > { %v8150_v11 = vsel %vm1313_vm3, %v13810_v9, 0.0 }
0x3f9f   : > { %8151 = vadd.xlane.f32.xlu0 %v8150_v11 }
0x4024   : > { %v8146_v13 = vpop.xlane.xlu0 %8145 }
0x4025   : > { %13811 = vrcp.f32 %v8146_v13  ;;  %v11237_v13 = vld [vmem:[%s15222_s13 + $0x10] sm:$0x3f] }
0x4028   : > { %v8149_v50 = vpop.xlane.xlu1 %8148 }
0x4029   : > { %13813 = vrcp.f32 %v8149_v50 }
0x402c   : > { %v8152_v41 = vpop.xlane.xlu0 %8151 }
0x402d   : > { %13815 = vrcp.f32 %v8152_v41 }
0x402f   : > { %v13812_v29 = vpop.eup %13811 }
0x4030   : > { %v8156_v1 = vmul.f32 %v13812_v29, %v13806_v20  ;;  %v13866_v20 = vld [vmem:[%s14048_s24 + $0x5] ss:$0 sm:$0xff] }
0x4032   : > { %12731 = vmatmul.mubr.msk.f32.vlgmr.msra.gmra.mrb[114].mxu0 %vm1313_vm3, %v8156_v1 }
0x4033   : > { %v13814_v3 = vpop.eup %13813  ;;  %12733 = vmatprep.mubr.msk.f32.mxu0 %vm13980_vm1, %v13981_v18  ;;  %13522 = vmatpush3.bf16.msra.mxu0 %v15152_v36 }
0x4034   : > { %v8157_v17 = vmul.f32 %v13814_v3, %v13808_v26  ;;  %13523 = vmatprep.subr.bf16.mxu0 %v13979_v10  ;;  %v13867_v26 = vld [vmem:[%s14058_s6 + $0x5] ss:$0 sm:$0xff] }
0x4036   : > { %12734 = vmatmul.mubr.msk.f32.gmra.mrb[116].mxu0 %vm1313_vm3, %v8157_v17 }
0x4037   : > { %v13816_v30 = vpop.eup %13815  ;;  %12736 = vmatprep.mubr.msk.f32.mxu0 %vm13980_vm1, %v13981_v18  ;;  %13525 = vmatpush3.bf16.msra.mxu0 %v15164_v46 }
0x4038   : > { %v8158_v43 = vmul.f32 %v13816_v30, %v13810_v9  ;;  %12781 = vmatprep.subr.mxu0 %v13981_v18 }
0x403a   : > { %12737 = vmatmul.mubr.msk.f32.gmra.mrb[118].mxu0 %vm1313_vm3, %v8158_v43 }
0x403b   : > { %12767 = vmatprep.mubr.msk.f32.mxu0 %vm13980_vm1, %v13981_v18 }
0x4105   : > { %v8234_v36 = vpop.f32.mrb[114].mxu0 }
0x4106   : > { %v12732_v7 = vpop.f32.mrb[115].mxu0  ;;  %v8248_v12 = vmul.f32 %v15064_v55, %v8234_v36 }
0x4109   : > { %v8239_v39 = vpop.f32.mrb[116].mxu0 }
0x410a   : > { %v8249_v58 = vmul.f32 %v15069_v62, %v8239_v39  ;;  %v12735_v21 = vpop.f32.mrb[117].mxu0 }
0x410c   : > { %v13512_v22 = vpack.c.bf16 %v8249_v58, %v8248_v12 }
0x410d   : > { %v8244_v57 = vpop.f32.mrb[118].mxu0 }
0x410e   : > { %v12738_v16 = vpop.f32.mrb[119].mxu0  ;;  %13513 = vmatpush3.bf16.msra.mxu1 %v13512_v22  ;;  %v8250_v46 = vmul.f32 %v15077_v63, %v8244_v57 }
0x410f   : > { %12743 = vmatprep.subr.mxu1 %v13981_v18 }
0x4112   : > { %12744 = vmatpush3.msra.mxu1 %v8250_v46 }
0x4113   : > { %12746 = vmatmul.mubr.msk.f32.vlgmr.msra.gmra.mrb[116].mxu1 %vm5655_vm7, %v15122_v6  ;;  %13514 = vmatprep.subr.bf16.mxu1 %v13979_v10 }
0x4114   : > { %13516 = vmatpush3.bf16.msra.mxu1 %v15124_v8  ;;  %12756 = vmatprep.mubr.msk.f32.mxu1 %vm13980_vm1, %v13981_v18 }
0x4115   : > { %13517 = vmatprep.subr.bf16.mxu1 %v13979_v10 }
0x4118   : > { %13519 = vmatpush3.bf16.msra.mxu1 %v15132_v31 }
0x4119   : > { %13526 = vmatprep.subr.bf16.mxu1 %v13979_v10 }
0x41e6   : > { %v8317_v15 = vpop.f32.mrb[116].mxu1 }
0x41e7   : > { %v12747_v48 = vpop.f32.mrb[117].mxu1  ;;  %12757 = vmatmul.mubr.msk.f32.vlgmr.msra.gmra.mrb[118].mxu1 %vm1033_vm0, %v8317_v15 }
0x41e8   : > { %13528 = vmatpush3.bf16.msra.mxu1 %v15155_v40  ;;  %12778 = vmatprep.mubr.msk.f32.mxu1 %vm13980_vm1, %v13981_v18 }
0x41e9   : > { %13529 = vmatprep.subr.bf16.mxu1 %v13979_v10 }
0x41ec   : > { %13531 = vmatpush3.bf16.msra.mxu1 %v15167_v54 }
0x41ed   : > { %12792 = vmatprep.subr.mxu1 %v13981_v18 }
0x42ba   : > { %v8390_v8 = vpop.f32.mrb[118].mxu1 }
0x42bb   : > { %v8391_v31 = vadd.f32 %v13863_v27, %v8390_v8  ;;  %v12758_v19 = vpop.f32.mrb[119].mxu1 }
0x42bd   : > { %v8394_v28 = vadd.f32 %v8391_v31, %v15518_v14 }
0x42bf   : > { %v8395_v2 = vsel %vm5820_vm8, %v8394_v28, 0.0 }
0x42c0   : > { %8396 = vadd.xlane.f32.xlu1 %v8395_v2 }
0x434d   : > { %v8397_v40 = vpop.xlane.xlu1 %8396 }
0x434e   : > { %v8398_v52 = vmul.f32 0.03125, %v8397_v40 }
0x4350   : > { %v8399_v37 = vsub.f32 %v8394_v28, %v8398_v52 }
0x4352   : > { %v8400_v0 = vmul.f32 %v8399_v37, %v8399_v37 }
0x4354   : > { %v8401_v23 = vsel %vm5820_vm8, %v8400_v0, 0.0 }
0x4355   : > { %8402 = vadd.xlane.f32.xlu0 %v8401_v23 }
0x43e2   : > { %v8403_v54 = vpop.xlane.xlu0 %8402 }
0x43e3   : > { %v8404_v4 = vmul.f32 0.03125, %v8403_v54 }
0x43e5   : > { %v8405_v53 = vadd.f32 1e-12, %v8404_v4 }
0x43e7   : > { %13817 = vrsqrt.f32 %v8405_v53 }
0x43f1   : > { %v13818_v42 = vpop.eup %13817 }
0x43f2   : > { %v8407_v60 = vmul.f32 %v13818_v42, %v8399_v37 }
0x43f4   : > { %v8408_v47 = vmul.f32 %v13864_v45, %v8407_v60 }
0x43f6   : > { %v15601_v56 = vadd.f32 %v13865_v61, %v8408_v47 }
0x43f8   : > { %12768 = vmatmul.mubr.msk.f32.vlgmr.msra.gmra.mrb[120].mxu0 %vm1033_vm0, %v15601_v56  ;;  %12779 = vmatmul.mubr.msk.f32.vlgmr.msra.gmra.mrb[120].mxu1 %vm1033_vm0, %v15601_v56 }
0x43f9   : > { %12783 = vmatprep.mubr.msk.f32.mxu0 %vm13980_vm1, %v13981_v18  ;;  %12794 = vmatprep.mubr.msk.f32.mxu1 %vm13980_vm1, %v13981_v18 }
0x44cb   : > { %v8481_v49 = vpop.f32.mrb[120].mxu0  ;;  %v8551_v51 = vpop.f32.mrb[120].mxu1 }
0x44cc   : > { %v8482_v35 = vadd.f32 %v13866_v20, %v8481_v49  ;;  %v15613_v5 = vadd.f32 %v13867_v26, %v8551_v51  ;;  %v12769_v9 = vpop.f32.mrb[121].mxu0  ;;  %v12780_v11 = vpop.f32.mrb[121].mxu1 }
0x44cd   : > { %v15666_v11 = vld [vmem:[%s15309_s21 + $0x10] sm:$0x3f]  ;;  %s1029_s21 = scalar_lea.vmem %s16013_s1, %s14194_s11  ;;  %s15928_s11 = scalar_lea.hbm %s14138_s10, %s11339_s29 }
0x44ce   : > { %12782 = vmatpush3.msk.msra.mxu0 %vm5345_vm9, %v8482_v35  ;;  %12793 = vmatpush3.xpose.msk.msra.mxu1 %vm1033_vm0, %v15613_v5 }
0x44cf   : > { %12784 = vmatmul.mubr.msk.f32.vlgmr.msra.gmra.mrb[122].mxu0 %vm5335_vm10, %v15031_v25  ;;  %12803 = vmatprep.subr.mxu0 %v13981_v18 }
0x44d0   : > { %12786 = vmatprep.mubr.msk.f32.mxu0 %vm13980_vm1, %v13981_v18  ;;  %12814 = vmatprep.subr.mxu1 %v13981_v18 }
0x44d1   : > { %12804 = vmatpush3.msk.msra.mxu0 %vm5345_vm9, %v11237_v13  ;;  %v9119_v13 = vsub.f32 1.0, %v15666_v11 }
0x44d2   : > { %13532 = vmatprep.subr.bf16.mxu0 %v13979_v10 }
0x44d3   : > { %12787 = vmatmul.mubr.msk.f32.gmra.mrb[124].mxu0 %vm5335_vm10, %v15040_v38 }
0x44d4   : > { %12789 = vmatprep.mubr.msk.f32.mxu0 %vm13980_vm1, %v13981_v18 }
0x44d7   : > { %12790 = vmatmul.mubr.msk.f32.gmra.mrb[126].mxu0 %vm5335_vm10, %v15048_v33 }
0x44d8   : > { %12805 = vmatprep.mubr.msk.f32.mxu0 %vm13980_vm1, %v13981_v18 }
0x44db   : > { %12806 = vmatmul.mubr.msk.f32.vlgmr.msra.gmra.mrb[128].mxu0 %vm5335_vm10, %v15031_v25 }
0x44dc   : > { %12808 = vmatprep.mubr.msk.f32.mxu0 %vm13980_vm1, %v13981_v18 }
0x44df   : > { %12809 = vmatmul.mubr.msk.f32.gmra.mrb[130].mxu0 %vm5335_vm10, %v15040_v38 }
0x44e0   : > { %12811 = vmatprep.mubr.msk.f32.mxu0 %vm13980_vm1, %v13981_v18 }
0x44e3   : > { %12812 = vmatmul.mubr.msk.f32.gmra.mrb[132].mxu0 %vm5335_vm10, %v15048_v33 }
0x44e4   : > { %12831 = vmatprep.mubr.msk.f32.mxu0 %vm13980_vm1, %v13981_v18 }
0x45a2   : > { %v8624_v50 = vpop.f32.mrb[122].mxu0 }
0x45a3   : > { %v8638_v41 = vmul.f32 %v15064_v55, %v8624_v50  ;;  %v12785_v29 = vpop.f32.mrb[123].mxu0 }
0x45a5   : > { %12795 = vmatmul.mubr.msk.f32.vlgmr.msra.gmra.mrb[122].mxu1 %vm1033_vm0, %v8638_v41 }
0x45a6   : > { %v8629_v1 = vpop.f32.mrb[124].mxu0  ;;  %12797 = vmatprep.mubr.msk.f32.mxu1 %vm13980_vm1, %v13981_v18 }
0x45a7   : > { %v8639_v3 = vmul.f32 %v15069_v62, %v8629_v1  ;;  %v12788_v17 = vpop.f32.mrb[125].mxu0 }
0x45a9   : > { %12798 = vmatmul.mubr.msk.f32.gmra.mrb[124].mxu1 %vm1033_vm0, %v8639_v3 }
0x45aa   : > { %v8634_v30 = vpop.f32.mrb[126].mxu0  ;;  %12800 = vmatprep.mubr.msk.f32.mxu1 %vm13980_vm1, %v13981_v18 }
0x45ab   : > { %v8640_v43 = vmul.f32 %v15077_v63, %v8634_v30  ;;  %v12791_v36 = vpop.f32.mrb[127].mxu0 }
0x45ad   : > { %12801 = vmatmul.mubr.msk.f32.gmra.mrb[126].mxu1 %vm1033_vm0, %v8640_v43 }
0x45ae   : > { %12816 = vmatprep.mubr.msk.f32.mxu1 %vm13980_vm1, %v13981_v18  ;;  %v8805_v7 = vpop.f32.mrb[128].mxu0 }
0x45af   : > { %v12807_v39 = vpop.f32.mrb[129].mxu0 }
0x45b2   : > { %v8810_v12 = vpop.f32.mrb[130].mxu0 }
0x45b3   : > { %v12810_v58 = vpop.f32.mrb[131].mxu0 }
0x45b6   : > { %v8815_v21 = vpop.f32.mrb[132].mxu0 }
0x45b7   : > { %v12813_v22 = vpop.f32.mrb[133].mxu0 }
0x4678   : > { %v8719_v57 = vpop.f32.mrb[122].mxu1 }
0x4679   : > { %v8733_v16 = vmul.f32 0.35355338, %v8719_v57  ;;  %v12796_v46 = vpop.f32.mrb[123].mxu1 }
0x467a   : > { %v11266_v46 = vld [vmem:[%s14053_s30 + $0xc0] sm:$0xff] }
0x467b   : > { %v8819_v15 = vadd.f32 %v8805_v7, %v8733_v16 }
0x467c   : > { %v8724_v48 = vpop.f32.mrb[124].mxu1 }
0x467d   : > { %v8734_v8 = vmul.f32 0.35355338, %v8724_v48  ;;  %v12799_v27 = vpop.f32.mrb[125].mxu1  ;;  %v8822_v31 = vsel %vm5335_vm10, %v8819_v15, -inf }
0x467e   : > { %8823 = vmax.xlane.f32.xlu1 %v8822_v31  ;;  %v11269_v27 = vld [vmem:[%s14053_s30 + $0xd8] sm:$0xff] }
0x467f   : > { %v8820_v19 = vadd.f32 %v8810_v12, %v8734_v8  ;;  %v11268_v8 = vld [vmem:[%s14053_s30 + $0xd0] sm:$0xff] }
0x4680   : > { %v8729_v28 = vpop.f32.mrb[126].mxu1 }
0x4681   : > { %v8735_v2 = vmul.f32 0.35355338, %v8729_v28  ;;  %v12802_v40 = vpop.f32.mrb[127].mxu1  ;;  %v8825_v52 = vsel %vm5335_vm10, %v8820_v19, -inf  ;;  %v13551_v28 = vpack.c.bf16 %v11269_v27, %v11268_v8 }
0x4682   : > { %8826 = vmax.xlane.f32.xlu0 %v8825_v52  ;;  %v13868_v40 = vld [vmem:[%s14068_s20 + $0x5] ss:$0 sm:$0xff] }
0x4683   : > { %v8821_v37 = vadd.f32 %v8815_v21, %v8735_v2 }
0x4685   : > { %v8828_v0 = vsel %vm5335_vm10, %v8821_v37, -inf }
0x4686   : > { %8829 = vmax.xlane.f32.xlu1 %v8828_v0 }
0x470b   : > { %v8824_v23 = vpop.xlane.xlu1 %8823 }
0x470c   : > { %v8831_v54 = vsub.f32 %v8819_v15, %v8824_v23  ;;  %v11267_v15 = vld [vmem:[%s14053_s30 + $0xc8] sm:$0xff] }
0x470d   : > { %v13548_v48 = vpack.c.bf16 %v11267_v15, %v11266_v46 }
0x470e   : > { %v8834_v4 = vmul.f32 1.442695, %v8831_v54  ;;  %v11271_v54 = vld [vmem:[%s14058_s6 + $0x6] ss:$0 sm:$0xff] }
0x470f   : > { %v8827_v53 = vpop.xlane.xlu0 %8826 }
0x4710   : > { %13819 = vpow2.f32 %v8834_v4  ;;  %v8832_v42 = vsub.f32 %v8820_v19, %v8827_v53 }
0x4712   : > { %v8836_v60 = vmul.f32 1.442695, %v8832_v42 }
0x4713   : > { %v8830_v45 = vpop.xlane.xlu1 %8829 }
0x4714   : > { %13821 = vpow2.f32 %v8836_v60  ;;  %v8833_v47 = vsub.f32 %v8821_v37, %v8830_v45 }
0x4716   : > { %v8838_v61 = vmul.f32 1.442695, %v8833_v47 }
0x4718   : > { %13823 = vpow2.f32 %v8838_v61 }
0x471a   : > { %v13820_v49 = vpop.eup %13819 }
0x471b   : > { %v8840_v51 = vsel %vm5335_vm10, %v13820_v49, 0.0 }
0x471c   : > { %8841 = vadd.xlane.f32.xlu0 %v8840_v51  ;;  %v11260_v51 = vld [vmem:[%s14043_s19 + $0xc8] sm:$0xff] }
0x471e   : > { %v13822_v20 = vpop.eup %13821 }
0x471f   : > { %v8843_v35 = vsel %vm5335_vm10, %v13822_v20, 0.0 }
0x4720   : > { %8844 = vadd.xlane.f32.xlu1 %v8843_v35  ;;  %v11261_v35 = vld [vmem:[%s14043_s19 + $0xd0] sm:$0xff] }
0x4722   : > { %v13824_v26 = vpop.eup %13823 }
0x4723   : > { %v8846_v9 = vsel %vm5335_vm10, %v13824_v26, 0.0 }
0x4724   : > { %8847 = vadd.xlane.f32.xlu0 %v8846_v9 }
0x4731   : > { %8855 = vrot.lane.b32.xlu1 %v15613_v5, %s16002_s9 }
0x4735   : > { %9122 = vperm.xlu1 %13673, %v9119_v13  }
0x47a9   : > { %v8842_v50 = vpop.xlane.xlu0 %8841 }
0x47aa   : > { %13825 = vrcp.f32 %v8842_v50 }
0x47ad   : > { %v8845_v41 = vpop.xlane.xlu1 %8844 }
0x47ae   : > { %13827 = vrcp.f32 %v8845_v41 }
0x47b1   : > { %v8848_v29 = vpop.xlane.xlu0 %8847  ;;  %v8856_v1 = vpop.permute.xlu1 %8855 }
0x47b2   : > { %13829 = vrcp.f32 %v8848_v29  ;;  %12815 = vmatpush3.msk.msra.mxu1 %vm5345_vm9, %v8856_v1  ;;  %v13869_v1 = vld [vmem:[%s14073_s27 + $0x5] ss:$0 sm:$0xff] }
0x47b3   : > { %13535 = vmatprep.subr.bf16.mxu1 %v13979_v10 }
0x47b4   : > { %v13826_v3 = vpop.eup %13825 }
0x47b5   : > { %v8852_v17 = vmul.f32 %v13826_v3, %v13820_v49  ;;  %v11259_v49 = vld [vmem:[%s14043_s19 + $0xc0] sm:$0xff] }
0x47b7   : > { %12817 = vmatmul.mubr.msk.f32.vlgmr.msra.gmra.mrb[128].mxu1 %vm5335_vm10, %v8852_v17  ;;  %v13870_v17 = vld [vmem:[%s14078_s4 + $0x5] ss:$0 sm:$0xff] }
0x47b8   : > { %v13828_v30 = vpop.eup %13827  ;;  %12819 = vmatprep.mubr.msk.f32.mxu1 %vm13980_vm1, %v13981_v18  ;;  %13537 = vmatpush3.bf16.msra.mxu1 %v15273_v59 }
0x47b9   : > { %v8853_v5 = vmul.f32 %v13828_v30, %v13822_v20  ;;  %13538 = vmatprep.subr.bf16.mxu1 %v13979_v10  ;;  %v13542_v20 = vpack.c.bf16 %v11260_v51, %v11259_v49 }
0x47bb   : > { %12820 = vmatmul.mubr.msk.f32.gmra.mrb[130].mxu1 %vm5335_vm10, %v8853_v5  ;;  %v9123_v5 = vpop.permute.xlu1 %9122 }
0x47bc   : > { %v13830_v43 = vpop.eup %13829  ;;  %12822 = vmatprep.mubr.msk.f32.mxu1 %vm13980_vm1, %v13981_v18  ;;  %13540 = vmatpush3.bf16.msra.mxu1 %v15277_v34 }
0x47bd   : > { %v8854_v36 = vmul.f32 %v13830_v43, %v13824_v26  ;;  %13547 = vmatprep.subr.bf16.mxu1 %v13979_v10  ;;  %v11262_v26 = vld [vmem:[%s14043_s19 + $0xd8] sm:$0xff] }
0x47be   : > { %v13545_v9 = vpack.c.bf16 %v11262_v26, %v11261_v35 }
0x47bf   : > { %12823 = vmatmul.mubr.msk.f32.gmra.mrb[132].mxu1 %vm5335_vm10, %v8854_v36 }
0x47c0   : > { %12842 = vmatprep.mubr.msk.f32.mxu1 %vm13980_vm1, %v13981_v18 }
0x488a   : > { %v8934_v59 = vpop.f32.mrb[128].mxu1 }
0x488b   : > { %v12818_v7 = vpop.f32.mrb[129].mxu1  ;;  %v8948_v12 = vmul.f32 %v15064_v55, %v8934_v59  ;;  %v9125_v59 = vmul.f32 %v9123_v5, %v15518_v14 }
0x488e   : > { %v8939_v39 = vpop.f32.mrb[130].mxu1 }
0x488f   : > { %v8949_v58 = vmul.f32 %v15069_v62, %v8939_v39  ;;  %v12821_v34 = vpop.f32.mrb[131].mxu1 }
0x4891   : > { %v13533_v21 = vpack.c.bf16 %v8949_v58, %v8948_v12  ;;  %v11264_v12 = vld [vmem:[%s14048_s24 + $0x6] ss:$0 sm:$0xff] }
0x4892   : > { %v8944_v22 = vpop.f32.mrb[132].mxu1 }
0x4893   : > { %v12824_v57 = vpop.f32.mrb[133].mxu1  ;;  %13534 = vmatpush3.bf16.msra.mxu0 %v13533_v21  ;;  %v8950_v16 = vmul.f32 %v15077_v63, %v8944_v22 }
0x4894   : > { %12829 = vmatprep.subr.mxu0 %v13981_v18 }
0x4897   : > { %12830 = vmatpush3.msra.mxu0 %v8950_v16 }
0x4898   : > { %12832 = vmatmul.mubr.msk.f32.vlgmr.msra.gmra.mrb[134].mxu0 %vm5655_vm7, %v15122_v6  ;;  %13541 = vmatprep.subr.bf16.mxu0 %v13979_v10 }
0x4899   : > { %12853 = vmatprep.mubr.msk.f32.mxu0 %vm13980_vm1, %v13981_v18  ;;  %13543 = vmatpush3.bf16.msra.mxu0 %v13542_v20 }
0x489a   : > { %13544 = vmatprep.subr.bf16.mxu0 %v13979_v10 }
0x489d   : > { %13546 = vmatpush3.bf16.msra.mxu0 %v13545_v9 }
0x489e   : > { %12867 = vmatprep.subr.mxu0 %v13981_v18 }
0x496b   : > { %v9017_v31 = vpop.f32.mrb[134].mxu0 }
0x496c   : > { %v12833_v19 = vpop.f32.mrb[135].mxu0  ;;  %12843 = vmatmul.mubr.msk.f32.vlgmr.msra.gmra.mrb[134].mxu1 %vm1033_vm0, %v9017_v31 }
0x496d   : > { %13549 = vmatpush3.bf16.msra.mxu1 %v13548_v48  ;;  %12864 = vmatprep.mubr.msk.f32.mxu1 %vm13980_vm1, %v13981_v18 }
0x496e   : > { %13550 = vmatprep.subr.bf16.mxu1 %v13979_v10 }
0x4971   : > { %13552 = vmatpush3.bf16.msra.mxu1 %v13551_v28 }
0x4972   : > { %12878 = vmatprep.subr.mxu1 %v13981_v18 }
0x4974   : > { %12865 = vmatmul.mubr.msk.f32.vlgmr.msra.gmra.mrb[136].mxu1 %vm1033_vm0, %v15011_v24 }
0x4975   : > { %12880 = vmatprep.mubr.msk.f32.mxu1 %vm13980_vm1, %v13981_v18 }
0x4a3f   : > { %v9090_v2 = vpop.f32.mrb[134].mxu1 }
0x4a40   : > { %v9091_v52 = vadd.f32 %v13868_v40, %v9090_v2  ;;  %v12844_v37 = vpop.f32.mrb[135].mxu1 }
0x4a42   : > { %v9094_v0 = vadd.f32 %v9091_v52, %v15601_v56 }
0x4a44   : > { %v9095_v23 = vsel %vm5820_vm8, %v9094_v0, 0.0 }
0x4a45   : > { %9096 = vadd.xlane.f32.xlu0 %v9095_v23 }
0x4a47   : > { %v9292_v4 = vpop.f32.mrb[136].mxu1 }
0x4a48   : > { %v15712_v53 = vadd.f32 %v11271_v54, %v9292_v4  ;;  %v12866_v42 = vpop.f32.mrb[137].mxu1 }
0x4a4a   : > { %12879 = vmatpush3.xpose.msk.msra.mxu1 %vm1033_vm0, %v15712_v53 }
0x4a4b   : > { %13553 = vmatprep.subr.bf16.mxu1 %v13979_v10 }
0x4ad2   : > { %v9097_v60 = vpop.xlane.xlu0 %9096 }
0x4ad3   : > { %v9098_v45 = vmul.f32 0.03125, %v9097_v60 }
0x4ad5   : > { %v9099_v56 = vsub.f32 %v9094_v0, %v9098_v45 }
0x4ad7   : > { %v9100_v47 = vmul.f32 %v9099_v56, %v9099_v56 }
0x4ad9   : > { %v9101_v61 = vsel %vm5820_vm8, %v9100_v47, 0.0 }
0x4ada   : > { %9102 = vadd.xlane.f32.xlu0 %v9101_v61 }
0x4af0   : > { %9115 = vperm.xlu0 %13674, %v15666_v11  }
0x4b67   : > { %v9103_v13 = vpop.xlane.xlu0 %9102 }
0x4b68   : > { %v9104_v50 = vmul.f32 0.03125, %v9103_v13 }
0x4b6a   : > { %v9105_v41 = vadd.f32 1e-12, %v9104_v50 }
0x4b6c   : > { %13831 = vrsqrt.f32 %v9105_v41 }
0x4b6f   : > { %v9116_v36 = vpop.permute.xlu0 %9115 }
0x4b76   : > { %v13832_v11 = vpop.eup %13831 }
0x4b77   : > { %v9107_v29 = vmul.f32 %v13832_v11, %v9099_v56 }
0x4b79   : > { %v9108_v3 = vmul.f32 %v13869_v1, %v9107_v29 }
0x4b7b   : > { %v9109_v30 = vadd.f32 %v13870_v17, %v9108_v3 }
0x4b7d   : > { %v9110_v43 = vmul.f32 %v9109_v30, %v15313_v44 }
0x4b7f   : > { %v9118_v7 = vmul.f32 %v9116_v36, %v9110_v43 }
0x4b81   : > { %v15729_v39 = vadd.f32 %v9125_v59, %v9118_v7  ;;  %v11285_v59 = vld [vmem:[%s14063_s12 + $0xc0] sm:$0xff]  ;;  %v11286_v7 = vld [vmem:[%s14063_s12 + $0xc8] sm:$0xff] }
0x4b83   : > { %12854 = vmatmul.mubr.msk.f32.vlgmr.msra.gmra.mrb[136].mxu0 %vm1033_vm0, %v15729_v39 }
0x4b84   : > { %12869 = vmatprep.mubr.msk.f32.mxu0 %vm13980_vm1, %v13981_v18 }
0x4c56   : > { %v9209_v58 = vpop.f32.mrb[136].mxu0 }
0x4c57   : > { %v9210_v34 = vadd.f32 %v11264_v12, %v9209_v58  ;;  %v12855_v21 = vpop.f32.mrb[137].mxu0  ;;  %v11287_v12 = vld [vmem:[%s14063_s12 + $0xd0] sm:$0xff]  ;;  %v13557_v58 = vpack.c.bf16 %v11286_v7, %v11285_v59  ;;  %v11301_v59 = vld [vmem:[%s14048_s24 + $0x7] ss:$0 sm:$0xff] }
0x4c59   : > { %12868 = vmatpush3.msk.msra.mxu0 %vm5345_vm9, %v9210_v34  ;;  %v11288_v34 = vld [vmem:[%s14063_s12 + $0xd8] sm:$0xff] }
0x4c5a   : > { %12870 = vmatmul.mubr.msk.f32.vlgmr.msra.gmra.mrb[138].mxu0 %vm5335_vm10, %v15031_v25  ;;  %12889 = vmatprep.subr.mxu0 %v13981_v18  ;;  %v13560_v21 = vpack.c.bf16 %v11288_v34, %v11287_v12 }
0x4c5b   : > { %12872 = vmatprep.mubr.msk.f32.mxu0 %vm13980_vm1, %v13981_v18 }
0x4c5e   : > { %12873 = vmatmul.mubr.msk.f32.gmra.mrb[140].mxu0 %vm5335_vm10, %v15040_v38 }
0x4c5f   : > { %12875 = vmatprep.mubr.msk.f32.mxu0 %vm13980_vm1, %v13981_v18 }
0x4c62   : > { %12876 = vmatmul.mubr.msk.f32.gmra.mrb[142].mxu0 %vm5335_vm10, %v15048_v33 }
0x4c63   : > { %12891 = vmatprep.mubr.msk.f32.mxu0 %vm13980_vm1, %v13981_v18 }
0x4d2d   : > { %v9365_v44 = vpop.f32.mrb[138].mxu0 }
0x4d2e   : > { %v9379_v14 = vmul.f32 %v15064_v55, %v9365_v44  ;;  %v12871_v22 = vpop.f32.mrb[139].mxu0 }
0x4d30   : > { %12881 = vmatmul.mubr.msk.f32.vlgmr.msra.gmra.mrb[138].mxu1 %vm1033_vm0, %v9379_v14 }
0x4d31   : > { %v9370_v57 = vpop.f32.mrb[140].mxu0  ;;  %12883 = vmatprep.mubr.msk.f32.mxu1 %vm13980_vm1, %v13981_v18 }
0x4d32   : > { %v9380_v16 = vmul.f32 %v15069_v62, %v9370_v57  ;;  %v12874_v46 = vpop.f32.mrb[141].mxu0 }
0x4d34   : > { %12884 = vmatmul.mubr.msk.f32.gmra.mrb[140].mxu1 %vm1033_vm0, %v9380_v16 }
0x4d35   : > { %v9375_v15 = vpop.f32.mrb[142].mxu0  ;;  %12886 = vmatprep.mubr.msk.f32.mxu1 %vm13980_vm1, %v13981_v18 }
0x4d36   : > { %v9381_v48 = vmul.f32 %v15077_v63, %v9375_v15  ;;  %v12877_v8 = vpop.f32.mrb[143].mxu0 }
0x4d38   : > { %12887 = vmatmul.mubr.msk.f32.gmra.mrb[142].mxu1 %vm1033_vm0, %v9381_v48 }
0x4d39   : > { %12906 = vmatprep.mubr.msk.f32.mxu1 %vm13980_vm1, %v13981_v18 }
0x4e03   : > { %v9460_v27 = vpop.f32.mrb[138].mxu1 }
0x4e04   : > { %v9474_v31 = vmul.f32 0.35355338, %v9460_v27  ;;  %v12882_v19 = vpop.f32.mrb[139].mxu1 }
0x4e05   : > { %v11304_v19 = vld [vmem:[%s14053_s30 + $0xe8] sm:$0xff] }
0x4e06   : > { %v9477_v28 = vsel %vm1313_vm3, %v9474_v31, -inf }
0x4e07   : > { %9478 = vmax.xlane.f32.xlu1 %v9477_v28  ;;  %v9465_v2 = vpop.f32.mrb[140].mxu1 }
0x4e08   : > { %v9475_v40 = vmul.f32 0.35355338, %v9465_v2  ;;  %v12885_v52 = vpop.f32.mrb[141].mxu1  ;;  %v11305_v2 = vld [vmem:[%s14053_s30 + $0xf0] sm:$0xff] }
0x4e0a   : > { %v9480_v37 = vsel %vm1313_vm3, %v9475_v40, -inf }
0x4e0b   : > { %9481 = vmax.xlane.f32.xlu0 %v9480_v37  ;;  %v9470_v0 = vpop.f32.mrb[142].mxu1 }
0x4e0c   : > { %v9476_v23 = vmul.f32 0.35355338, %v9470_v0  ;;  %v12888_v54 = vpop.f32.mrb[143].mxu1 }
0x4e0e   : > { %v9483_v4 = vsel %vm1313_vm3, %v9476_v23, -inf }
0x4e0f   : > { %9484 = vmax.xlane.f32.xlu1 %v9483_v4 }
0x4e94   : > { %v9479_v42 = vpop.xlane.xlu1 %9478 }
0x4e95   : > { %v9486_v60 = vsub.f32 %v9474_v31, %v9479_v42  ;;  %v11303_v31 = vld [vmem:[%s14053_s30 + $0xe0] sm:$0xff] }
0x4e96   : > { %v13569_v28 = vpack.c.bf16 %v11304_v19, %v11303_v31 }
0x4e97   : > { %v9489_v45 = vmul.f32 1.442695, %v9486_v60 }
0x4e98   : > { %v9482_v56 = vpop.xlane.xlu0 %9481 }
0x4e99   : > { %13833 = vpow2.f32 %v9489_v45  ;;  %v9487_v47 = vsub.f32 %v9475_v40, %v9482_v56  ;;  %v11306_v40 = vld [vmem:[%s14053_s30 + $0xf8] sm:$0xff]  ;;  %v11308_v56 = vld [vmem:[%s14058_s6 + $0x7] ss:$0 sm:$0xff] }
0x4e9a   : > { %v13572_v0 = vpack.c.bf16 %v11306_v40, %v11305_v2 }
0x4e9b   : > { %v9491_v61 = vmul.f32 1.442695, %v9487_v47 }
0x4e9c   : > { %v9485_v49 = vpop.xlane.xlu1 %9484 }
0x4e9d   : > { %13835 = vpow2.f32 %v9491_v61  ;;  %v9488_v51 = vsub.f32 %v9476_v23, %v9485_v49  ;;  %v11290_v23 = vld [vmem:[%s14068_s20 + $0x6] ss:$0 sm:$0xff] }
0x4e9f   : > { %v9493_v20 = vmul.f32 1.442695, %v9488_v51 }
0x4ea1   : > { %13837 = vpow2.f32 %v9493_v20 }
0x4ea3   : > { %v13834_v35 = vpop.eup %13833 }
0x4ea4   : > { %v9495_v26 = vsel %vm1313_vm3, %v13834_v35, 0.0 }
0x4ea5   : > { %9496 = vadd.xlane.f32.xlu1 %v9495_v26  ;;  %v11296_v26 = vld [vmem:[%s14043_s19 + $0xe0] sm:$0xff] }
0x4ea7   : > { %v13836_v9 = vpop.eup %13835 }
0x4ea8   : > { %v9498_v13 = vsel %vm1313_vm3, %v13836_v9, 0.0 }
0x4ea9   : > { %9499 = vadd.xlane.f32.xlu0 %v9498_v13 }
0x4eab   : > { %v13838_v50 = vpop.eup %13837 }
0x4eac   : > { %v9501_v41 = vsel %vm1313_vm3, %v13838_v50, 0.0 }
0x4ead   : > { %9502 = vadd.xlane.f32.xlu1 %v9501_v41  ;;  %v11299_v41 = vld [vmem:[%s14043_s19 + $0xf8] sm:$0xff] }
0x4ebf   : > { %9510 = vrot.lane.b32.xlu0 %v15712_v53, %s16002_s9 }
0x4f32   : > { %v9497_v11 = vpop.xlane.xlu1 %9496 }
0x4f33   : > { %13839 = vrcp.f32 %v9497_v11 }
0x4f36   : > { %v9500_v29 = vpop.xlane.xlu0 %9499 }
0x4f37   : > { %13841 = vrcp.f32 %v9500_v29 }
0x4f3a   : > { %v9511_v1 = vpop.permute.xlu0 %9510  ;;  %v9503_v3 = vpop.xlane.xlu1 %9502 }
0x4f3b   : > { %13843 = vrcp.f32 %v9503_v3  ;;  %12890 = vmatpush3.msra.mxu0 %v9511_v1 }
0x4f3c   : > { %13556 = vmatprep.subr.bf16.mxu0 %v13979_v10 }
0x4f3d   : > { %v13840_v17 = vpop.eup %13839 }
0x4f3e   : > { %v9507_v30 = vmul.f32 %v13840_v17, %v13834_v35 }
0x4f40   : > { %12892 = vmatmul.mubr.msk.f32.vlgmr.msra.gmra.mrb[144].mxu0 %vm1313_vm3, %v9507_v30  ;;  %v11294_v30 = vld [vmem:[%s14073_s27 + $0x6] ss:$0 sm:$0xff] }
0x4f41   : > { %v13842_v5 = vpop.eup %13841  ;;  %12894 = vmatprep.mubr.msk.f32.mxu0 %vm13980_vm1, %v13981_v18  ;;  %13558 = vmatpush3.bf16.msra.mxu0 %v13557_v58 }
0x4f42   : > { %v9508_v53 = vmul.f32 %v13842_v5, %v13836_v9  ;;  %13559 = vmatprep.subr.bf16.mxu0 %v13979_v10  ;;  %v11297_v9 = vld [vmem:[%s14043_s19 + $0xe8] sm:$0xff] }
0x4f43   : > { %v13563_v13 = vpack.c.bf16 %v11297_v9, %v11296_v26 }
0x4f44   : > { %12895 = vmatmul.mubr.msk.f32.gmra.mrb[146].mxu0 %vm1313_vm3, %v9508_v53  ;;  %v11295_v53 = vld [vmem:[%s14078_s4 + $0x6] ss:$0 sm:$0xff] }
0x4f45   : > { %v13844_v43 = vpop.eup %13843  ;;  %12897 = vmatprep.mubr.msk.f32.mxu0 %vm13980_vm1, %v13981_v18  ;;  %13561 = vmatpush3.bf16.msra.mxu0 %v13560_v21 }
0x4f46   : > { %v9509_v36 = vmul.f32 %v13844_v43, %v13838_v50  ;;  %13568 = vmatprep.subr.bf16.mxu0 %v13979_v10  ;;  %v11298_v50 = vld [vmem:[%s14043_s19 + $0xf0] sm:$0xff] }
0x4f47   : > { %v13566_v11 = vpack.c.bf16 %v11299_v41, %v11298_v50 }
0x4f48   : > { %12898 = vmatmul.mubr.msk.f32.gmra.mrb[148].mxu0 %vm1313_vm3, %v9509_v36 }
0x4f49   : > { %12917 = vmatprep.mubr.msk.f32.mxu0 %vm13980_vm1, %v13981_v18 }
0x5013   : > { %v9588_v44 = vpop.f32.mrb[144].mxu0 }
0x5014   : > { %v12893_v14 = vpop.f32.mrb[145].mxu0  ;;  %v9602_v57 = vmul.f32 %v15064_v55, %v9588_v44 }
0x5017   : > { %v9593_v22 = vpop.f32.mrb[146].mxu0 }
0x5018   : > { %v9603_v16 = vmul.f32 %v15069_v62, %v9593_v22  ;;  %v12896_v46 = vpop.f32.mrb[147].mxu0 }
0x501a   : > { %v13554_v15 = vpack.c.bf16 %v9603_v16, %v9602_v57 }
0x501b   : > { %v9598_v48 = vpop.f32.mrb[148].mxu0 }
0x501c   : > { %v12899_v8 = vpop.f32.mrb[149].mxu0  ;;  %13555 = vmatpush3.bf16.msra.mxu1 %v13554_v15  ;;  %v9604_v27 = vmul.f32 %v15077_v63, %v9598_v48 }
0x501d   : > { %12904 = vmatprep.subr.mxu1 %v13981_v18 }
0x5020   : > { %12905 = vmatpush3.msra.mxu1 %v9604_v27 }
0x5021   : > { %12907 = vmatmul.mubr.msk.f32.vlgmr.msra.gmra.mrb[144].mxu1 %vm5655_vm7, %v15122_v6  ;;  %13562 = vmatprep.subr.bf16.mxu1 %v13979_v10 }
0x5022   : > { %12928 = vmatprep.mubr.msk.f32.mxu1 %vm13980_vm1, %v13981_v18  ;;  %13564 = vmatpush3.bf16.msra.mxu1 %v13563_v13 }
0x5023   : > { %13565 = vmatprep.subr.bf16.mxu1 %v13979_v10 }
0x5026   : > { %13567 = vmatpush3.bf16.msra.mxu1 %v13566_v11 }
0x5027   : > { %12942 = vmatprep.subr.mxu1 %v13981_v18 }
0x50f4   : > { %v9671_v52 = vpop.f32.mrb[144].mxu1 }
0x50f5   : > { %v12908_v37 = vpop.f32.mrb[145].mxu1  ;;  %12918 = vmatmul.mubr.msk.f32.vlgmr.msra.gmra.mrb[150].mxu0 %vm1033_vm0, %v9671_v52 }
0x50f6   : > { %13570 = vmatpush3.bf16.msra.mxu0 %v13569_v28  ;;  %12939 = vmatprep.mubr.msk.f32.mxu0 %vm13980_vm1, %v13981_v18 }
0x50f7   : > { %13571 = vmatprep.subr.bf16.mxu0 %v13979_v10 }
0x50fa   : > { %13573 = vmatpush3.bf16.msra.mxu0 %v13572_v0 }
0x50fb   : > { %12953 = vmatprep.subr.mxu0 %v13981_v18 }
0x50fd   : > { %12940 = vmatmul.mubr.msk.f32.vlgmr.msra.gmra.mrb[152].mxu0 %vm1033_vm0, %v15011_v24 }
0x50fe   : > { %12955 = vmatprep.mubr.msk.f32.mxu0 %vm13980_vm1, %v13981_v18 }
0x51c8   : > { %v9757_v54 = vpop.f32.mrb[150].mxu0 }
0x51c9   : > { %v9758_v4 = vadd.f32 %v11290_v23, %v9757_v54  ;;  %v12919_v42 = vpop.f32.mrb[151].mxu0 }
0x51cb   : > { %v9761_v60 = vadd.f32 %v9758_v4, %v15729_v39 }
0x51cd   : > { %v9766_v45 = vsel %vm5820_vm8, %v9761_v60, 0.0 }
0x51ce   : > { %9767 = vadd.xlane.f32.xlu1 %v9766_v45 }
0x51d0   : > { %v9958_v47 = vpop.f32.mrb[152].mxu0 }
0x51d1   : > { %v15812_v61 = vadd.f32 %v11308_v56, %v9958_v47  ;;  %v12941_v24 = vpop.f32.mrb[153].mxu0 }
0x51d3   : > { %12954 = vmatpush3.xpose.msk.msra.mxu0 %vm1033_vm0, %v15812_v61 }
0x51d4   : > { %13574 = vmatprep.subr.bf16.mxu0 %v13979_v10 }
0x525b   : > { %v9768_v49 = vpop.xlane.xlu1 %9767 }
0x525c   : > { %v9769_v51 = vmul.f32 0.03125, %v9768_v49 }
0x525e   : > { %v9770_v20 = vsub.f32 %v9761_v60, %v9769_v51 }
0x5260   : > { %v9771_v39 = vmul.f32 %v9770_v20, %v9770_v20 }
0x5262   : > { %v9772_v35 = vsel %vm5820_vm8, %v9771_v39, 0.0 }
0x5263   : > { %9773 = vadd.xlane.f32.xlu1 %v9772_v35 }
0x52f0   : > { %v9774_v29 = vpop.xlane.xlu1 %9773 }
0x52f1   : > { %v9775_v1 = vmul.f32 0.03125, %v9774_v29 }
0x52f3   : > { %v9776_v3 = vadd.f32 1e-12, %v9775_v1 }
0x52f5   : > { %13845 = vrsqrt.f32 %v9776_v3  ;;  %v11322_v3 = vld [vmem:[%s14063_s12 + $0xe0] sm:$0xff] }
0x52ff   : > { %v13846_v17 = vpop.eup %13845 }
0x5300   : > { %v9778_v5 = vmul.f32 %v13846_v17, %v9770_v20  ;;  %v11323_v17 = vld [vmem:[%s14063_s12 + $0xe8] sm:$0xff] }
0x5302   : > { %v9785_v43 = vmul.f32 %v11294_v30, %v9778_v5  ;;  %v11324_v30 = vld [vmem:[%s14063_s12 + $0xf0] sm:$0xff]  ;;  %v13578_v5 = vpack.c.bf16 %v11323_v17, %v11322_v3 }
0x5304   : > { %v15826_v36 = vadd.f32 %v11295_v53, %v9785_v43  ;;  %v11325_v53 = vld [vmem:[%s14063_s12 + $0xf8] sm:$0xff] }
0x5305   : > { %v13581_v43 = vpack.c.bf16 %v11325_v53, %v11324_v30 }
0x5306   : > { %12929 = vmatmul.mubr.msk.f32.vlgmr.msra.gmra.mrb[146].mxu1 %vm1033_vm0, %v15826_v36 }
0x5307   : > { %12944 = vmatprep.mubr.msk.f32.mxu1 %vm13980_vm1, %v13981_v18 }
0x53d9   : > { %v9875_v7 = vpop.f32.mrb[146].mxu1 }
0x53da   : > { %v9876_v12 = vadd.f32 %v11301_v59, %v9875_v7  ;;  %v12930_v58 = vpop.f32.mrb[147].mxu1 }
0x53dc   : > { %12943 = vmatpush3.msk.msra.mxu1 %vm5345_vm9, %v9876_v12 }
0x53dd   : > { %12945 = vmatmul.mubr.msk.f32.vlgmr.msra.gmra.mrb[148].mxu1 %vm5335_vm10, %v15031_v25  ;;  %12964 = vmatprep.subr.mxu1 %v13981_v18 }
0x53de   : > { %12947 = vmatprep.mubr.msk.f32.mxu1 %vm13980_vm1, %v13981_v18 }
0x53e1   : > { %12948 = vmatmul.mubr.msk.f32.gmra.mrb[150].mxu1 %vm5335_vm10, %v15040_v38 }
0x53e2   : > { %12950 = vmatprep.mubr.msk.f32.mxu1 %vm13980_vm1, %v13981_v18 }
0x53e5   : > { %12951 = vmatmul.mubr.msk.f32.gmra.mrb[152].mxu1 %vm5335_vm10, %v15048_v33 }
0x53e6   : > { %12966 = vmatprep.mubr.msk.f32.mxu1 %vm13980_vm1, %v13981_v18 }
0x54b0   : > { %v10031_v34 = vpop.f32.mrb[148].mxu1 }
0x54b1   : > { %v10045_v25 = vmul.f32 %v15064_v55, %v10031_v34  ;;  %v12946_v21 = vpop.f32.mrb[149].mxu1 }
0x54b3   : > { %12956 = vmatmul.mubr.msk.f32.vlgmr.msra.gmra.mrb[154].mxu0 %vm1033_vm0, %v10045_v25 }
0x54b4   : > { %v10036_v44 = vpop.f32.mrb[150].mxu1  ;;  %12958 = vmatprep.mubr.msk.f32.mxu0 %vm13980_vm1, %v13981_v18 }
0x54b5   : > { %v10046_v38 = vmul.f32 %v15069_v62, %v10036_v44  ;;  %v12949_v14 = vpop.f32.mrb[151].mxu1 }
0x54b7   : > { %12959 = vmatmul.mubr.msk.f32.gmra.mrb[156].mxu0 %vm1033_vm0, %v10046_v38 }
0x54b8   : > { %v10041_v22 = vpop.f32.mrb[152].mxu1  ;;  %12961 = vmatprep.mubr.msk.f32.mxu0 %vm13980_vm1, %v13981_v18 }
0x54b9   : > { %v10047_v33 = vmul.f32 %v15077_v63, %v10041_v22  ;;  %v12952_v57 = vpop.f32.mrb[153].mxu1  ;;  %v11327_v22 = vld [vmem:[%s14068_s20 + $0x7] ss:$0 sm:$0xff] }
0x54bb   : > { %12962 = vmatmul.mubr.msk.f32.gmra.mrb[158].mxu0 %vm1033_vm0, %v10047_v33 }
0x54bc   : > { %12981 = vmatprep.mubr.msk.f32.mxu0 %vm13980_vm1, %v13981_v18 }
0x5586   : > { %v10126_v16 = vpop.f32.mrb[154].mxu0 }
0x5587   : > { %v10140_v46 = vmul.f32 0.35355338, %v10126_v16  ;;  %v12957_v15 = vpop.f32.mrb[155].mxu0 }
0x5589   : > { %v10143_v48 = vsel %vm1313_vm3, %v10140_v46, -inf }
0x558a   : > { %10144 = vmax.xlane.f32.xlu1 %v10143_v48  ;;  %v10131_v8 = vpop.f32.mrb[156].mxu0 }
0x558b   : > { %v10141_v27 = vmul.f32 0.35355338, %v10131_v8  ;;  %v12960_v31 = vpop.f32.mrb[157].mxu0 }
0x558c   : > { %v10459_v31 = vld [vmem:[%s16011_s17] sm:$0xff] }
0x558d   : > { %v10146_v19 = vsel %vm1313_vm3, %v10141_v27, -inf }
0x558e   : > { %10147 = vmax.xlane.f32.xlu1 %v10146_v19  ;;  %v10136_v28 = vpop.f32.mrb[158].mxu0  ;;  %v10460_v19 = vld [vmem:[%s16011_s17 + $0x8] sm:$0xff] }
0x558f   : > { %v10142_v2 = vmul.f32 0.35355338, %v10136_v28  ;;  %v12963_v40 = vpop.f32.mrb[159].mxu0  ;;  %v13584_v28 = vpack.c.bf16 %v10460_v19, %v10459_v31 }
0x5591   : > { %v10149_v52 = vsel %vm1313_vm3, %v10142_v2, -inf }
0x5592   : > { %10150 = vmax.xlane.f32.xlu1 %v10149_v52 }
0x5617   : > { %v10145_v37 = vpop.xlane.xlu1 %10144 }
0x5618   : > { %v10152_v0 = vsub.f32 %v10140_v46, %v10145_v37 }
0x561a   : > { %v10155_v23 = vmul.f32 1.442695, %v10152_v0 }
0x561b   : > { %v10148_v54 = vpop.xlane.xlu1 %10147 }
0x561c   : > { %13847 = vpow2.f32 %v10155_v23  ;;  %v10153_v4 = vsub.f32 %v10141_v27, %v10148_v54  ;;  %v10546_v23 = vstv %s10545_s14 }
0x561e   : > { %v10157_v42 = vmul.f32 1.442695, %v10153_v4  ;;  %v11331_v4 = vld [vmem:[%s14073_s27 + $0x7] ss:$0 sm:$0xff] }
0x561f   : > { %v10151_v60 = vpop.xlane.xlu1 %10150 }
0x5620   : > { %13849 = vpow2.f32 %v10157_v42  ;;  %v10154_v45 = vsub.f32 %v10142_v2, %v10151_v60  ;;  %v10462_v2 = vld [vmem:[%s16011_s17 + $0x18] sm:$0xff]  ;;  %v11332_v60 = vld [vmem:[%s14078_s4 + $0x7] ss:$0 sm:$0xff] }
0x5622   : > { %v10159_v56 = vmul.f32 1.442695, %v10154_v45 }
0x5624   : > { %13851 = vpow2.f32 %v10159_v56 }
0x5626   : > { %v13848_v47 = vpop.eup %13847 }
0x5627   : > { %v10161_v24 = vsel %vm1313_vm3, %v13848_v47, 0.0 }
0x5628   : > { %10162 = vadd.xlane.f32.xlu1 %v10161_v24  ;;  %v10625_v24 = vld [vmem:[%s14123_s8] sm:$0xff] }
0x562a   : > { %v13850_v49 = vpop.eup %13849 }
0x562b   : > { %v10164_v51 = vsel %vm1313_vm3, %v13850_v49, 0.0 }
0x562c   : > { %10165 = vadd.xlane.f32.xlu0 %v10164_v51 }
0x562e   : > { %v13852_v20 = vpop.eup %13851 }
0x562f   : > { %v10167_v39 = vsel %vm1313_vm3, %v13852_v20, 0.0 }
0x5630   : > { %10168 = vadd.xlane.f32.xlu1 %v10167_v39 }
0x5641   : > { %10176 = vrot.lane.b32.xlu1 %v15812_v61, %s16002_s9  ;;  %s986_s9 = sand.u32 1, %s13939_s0  }
0x5642   : > { %s987_s13 = scalar_lea.vmem [#allocation4], %s986_s9  ;;  %s10710_s14 = scalar_lea.sflag [#allocation5], %s986_s9 }
0x5643   : > { %s10725_s3 = sshll.u32 %s987_s13, 4  ;;  %s15930_s3 = int_to_ptr.vmem [resolvable:$true] %s10725_s3 }
0x56b5   : > { %v10163_v35 = vpop.xlane.xlu1 %10162 }
0x56b6   : > { %13853 = vrcp.f32 %v10163_v35  ;;  %v11333_v35 = vld [vmem:[%s16012_s7] ss:$0 sm:$0xff]  ;;  %s13883_s7 = scalar_lea.vmem %s15930_s3, 16 }
0x56b7   : > { %p13884_p2 = scmp.ne.s32.totalorder %s15930_s3, %s13883_s7 }
0x56b9   : > { %v10166_v26 = vpop.xlane.xlu0 %10165  ;;  %p13885_p3 = pnand %p13884_p2, %p14179_p10 }
0x56ba   : > { %13855 = vrcp.f32 %v10166_v26 }
0x56bb   : > { %p13886_p4 = pneg %p13885_p3 }
0x56bd   : > { %v10169_v9 = vpop.xlane.xlu1 %10168 }
0x56be   : > { %13857 = vrcp.f32 %v10169_v9 }
0x56c0   : > { %v13854_v13 = vpop.eup %13853 }
0x56c1   : > { %v10173_v50 = vmul.f32 %v13854_v13, %v13848_v47  ;;  %v10177_v41 = vpop.permute.xlu1 %10176 }
0x56c2   : > { %12965 = vmatpush3.msra.mxu1 %v10177_v41 }
0x56c3   : > { %12967 = vmatmul.mubr.msk.f32.vlgmr.msra.gmra.mrb[154].mxu1 %vm1313_vm3, %v10173_v50  ;;  %13577 = vmatprep.subr.bf16.mxu1 %v13979_v10 }
0x56c4   : > { %v13856_v11 = vpop.eup %13855  ;;  %12969 = vmatprep.mubr.msk.f32.mxu1 %vm13980_vm1, %v13981_v18  ;;  %13579 = vmatpush3.bf16.msra.mxu1 %v13578_v5 }
0x56c5   : > { %v10174_v61 = vmul.f32 %v13856_v11, %v13850_v49  ;;  %13580 = vmatprep.subr.bf16.mxu1 %v13979_v10  ;;  %v10626_v49 = vld [vmem:[%s14123_s8 + $0x8] sm:$0xff] }
0x56c6   : > { %v13590_v51 = vpack.c.bf16 %v10626_v49, %v10625_v24 }
0x56c7   : > { %12970 = vmatmul.mubr.msk.f32.gmra.mrb[156].mxu1 %vm1313_vm3, %v10174_v61 }
0x56c8   : > { %v13858_v29 = vpop.eup %13857  ;;  %12972 = vmatprep.mubr.msk.f32.mxu1 %vm13980_vm1, %v13981_v18  ;;  %13582 = vmatpush3.bf16.msra.mxu1 %v13581_v43 }
0x56c9   : > { %v10175_v1 = vmul.f32 %v13858_v29, %v13852_v20  ;;  %13006 = vmatprep.subr.mxu1 %v13981_v18  ;;  %v10628_v20 = vld [vmem:[%s14123_s8 + $0x18] sm:$0xff] }
0x56cb   : > { %12973 = vmatmul.mubr.msk.f32.gmra.mrb[158].mxu1 %vm1313_vm3, %v10175_v1  ;;  %vm10547_vm3 = vcmp.eq.s32.totalorder %v14226_v32, %v10546_v23  ;;  %v10627_v32 = vld [vmem:[%s14123_s8 + $0x10] sm:$0xff] }
0x56cc   : > { %12992 = vmatprep.mubr.msk.f32.mxu1 %vm13980_vm1, %v13981_v18  ;;  %v11335_v47 = vsel %vm10547_vm3, 1.0, %v13981_v18  ;;  %v13593_v39 = vpack.c.bf16 %v10628_v20, %v10627_v32 }
0x5796   : > { %v10254_v59 = vpop.f32.mrb[154].mxu1 }
0x5797   : > { %v12968_v7 = vpop.f32.mrb[155].mxu1  ;;  %v10268_v58 = vmul.f32 %v15064_v55, %v10254_v59 }
0x579a   : > { %v10259_v12 = vpop.f32.mrb[156].mxu1 }
0x579b   : > { %v10269_v34 = vmul.f32 %v15069_v62, %v10259_v12  ;;  %v12971_v25 = vpop.f32.mrb[157].mxu1 }
0x579d   : > { %v13575_v21 = vpack.c.bf16 %v10269_v34, %v10268_v58 }
0x579e   : > { %v10264_v44 = vpop.f32.mrb[158].mxu1 }
0x579f   : > { %v12974_v38 = vpop.f32.mrb[159].mxu1  ;;  %13576 = vmatpush3.bf16.msra.mxu0 %v13575_v21  ;;  %v10270_v14 = vmul.f32 %v15077_v63, %v10264_v44 }
0x57a0   : > { %12979 = vmatprep.subr.mxu0 %v13981_v18 }
0x57a3   : > { %12980 = vmatpush3.msra.mxu0 %v10270_v14 }
0x57a4   : > { %12982 = vmatmul.mubr.msk.f32.vlgmr.msra.gmra.mrb[160].mxu0 %vm5655_vm7, %v15122_v6  ;;  %13583 = vmatprep.subr.bf16.mxu0 %v13979_v10 }
0x57a5   : > { %13003 = vmatprep.mubr.msk.f32.mxu0 %vm13980_vm1, %v13981_v18  ;;  %13585 = vmatpush3.bf16.msra.mxu0 %v13584_v28 }
0x57a6   : > { %13586 = vmatprep.subr.bf16.mxu0 %v13979_v10 }
0x5877   : > { %v10337_v55 = vpop.f32.mrb[160].mxu0 }
0x5878   : > { %12993 = vmatmul.mubr.msk.f32.vlgmr.msra.gmra.mrb[160].mxu1 %vm1033_vm0, %v10337_v55  ;;  %v12983_v62 = vpop.f32.mrb[161].mxu0 }
0x5879   : > { %13008 = vmatprep.mubr.msk.f32.mxu1 %vm13980_vm1, %v13981_v18 }
0x594b   : > { %v10423_v63 = vpop.f32.mrb[160].mxu1 }
0x594c   : > { %v10424_v33 = vadd.f32 %v11327_v22, %v10423_v63  ;;  %v12994_v57 = vpop.f32.mrb[161].mxu1 }
0x594e   : > { %v10427_v6 = vadd.f32 %v10424_v33, %v15826_v36  ;;  %v10461_v36 = vld [vmem:[%s16011_s17 + $0x10] sm:$0xff] }
0x594f   : > { %v13587_v40 = vpack.c.bf16 %v10462_v2, %v10461_v36 }
0x5950   : > { %v10432_v16 = vsel %vm5820_vm8, %v10427_v6, 0.0 }
0x5951   : > { %10433 = vadd.xlane.f32.xlu1 %v10432_v16  ;;  %13588 = vmatpush3.bf16.msra.mxu0 %v13587_v40 }
0x5952   : > { %13589 = vmatprep.subr.bf16.mxu0 %v13979_v10 }
0x59de   : > { %v10434_v46 = vpop.xlane.xlu1 %10433 }
0x59df   : > { %v10435_v15 = vmul.f32 0.03125, %v10434_v46 }
0x59e1   : > { %v10436_v48 = vsub.f32 %v10427_v6, %v10435_v15 }
0x59e3   : > { %v10437_v8 = vmul.f32 %v10436_v48, %v10436_v48 }
0x59e5   : > { %v10438_v27 = vsel %vm5820_vm8, %v10437_v8, 0.0 }
0x59e6   : > { %10439 = vadd.xlane.f32.xlu0 %v10438_v27 }
0x5a73   : > { %v10440_v52 = vpop.xlane.xlu0 %10439 }
0x5a74   : > { %v10441_v37 = vmul.f32 0.03125, %v10440_v52 }
0x5a76   : > { %v10442_v0 = vadd.f32 1e-12, %v10441_v37 }
0x5a78   : > { %13859 = vrsqrt.f32 %v10442_v0 }
0x5a82   : > { %v13860_v54 = vpop.eup %13859 }
0x5a83   : > { %v10444_v42 = vmul.f32 %v13860_v54, %v10436_v48 }
0x5a85   : > { %v10451_v45 = vmul.f32 %v11331_v4, %v10444_v42 }
0x5a87   : > { %v10458_v56 = vadd.f32 %v11332_v60, %v10451_v45 }
0x5a89   : > { %13004 = vmatmul.mubr.msk.f32.vlgmr.msra.gmra.mrb[162].mxu0 %vm1033_vm0, %v10458_v56  ;;  %13007 = vmatpush3.msk.msra.mxu1 %vm5345_vm9, %v10458_v56  ;;  %vm10543_vm9 = vcmask 128000  }
0x5a8a   : > { %13009 = vmatmul.mubr.msk.f32.vlgmr.msra.gmra.mrb[162].mxu1 %vm5335_vm10, %v11335_v47  ;;  %13019 = vmatprep.mubr.msk.f32.mxu0 %vm13980_vm1, %v13981_v18  ;;  %vm10703_vm1 = vcmask 73728  }
0x5a8b   : > { %13591 = vmatpush3.bf16.msra.mxu0 %v13590_v51 }
0x5a8c   : > { %13592 = vmatprep.subr.bf16.mxu0 %v13979_v10  ;;  %v10629_v10 = vld [vmem:[%s14128_s23] sm:$0x1] }
0x5a8f   : > { %13594 = vmatpush3.bf16.msra.mxu0 %v13593_v39 }
0x5b5c   : > { %v10539_v26 = vpop.f32.mrb[162].mxu0 }
0x5b5d   : > { %v10540_v9 = vadd.f32 %v11333_v35, %v10539_v26  ;;  %v13005_v18 = vpop.f32.mrb[163].mxu0  ;;  %v10621_v13 = vpop.f32.mrb[162].mxu1 }
0x5b5e   : > { %v13010_v50 = vpop.f32.mrb[163].mxu1  ;;  %13020 = vmatmul.mubr.msk.f32.vlgmr.msra.gmra.mrb[164].mxu0 %vm1033_vm0, %v10621_v13 }
0x5b5f   : > { %10544 = vst.msk [vmem:[%s1029_s21] sm:$0x3f] %vm10543_vm9, %v10540_v9  ;;  %s13887_s21 = sshll.u32 %s13984_s18, 4  ;;  %s13888_s21 = int_to_ptr.vmem [resolvable:$false] %s13887_s21 }
0x5b60   : > { %s13889_s1 = scalar_lea.vmem %s13888_s21, 32  ;;  %p13890_p5 = scmp.lt.s32.totalorder %s15930_s3, %s13888_s21 }
0x5b61   : > { %p13891_p6 = scmp.lt.s32.totalorder %s13889_s1, %s13883_s7 }
0x5b63   : > { %p13892_p7 = por %p13891_p6, %p13890_p5 }
0x5b65   : > { %p13893_p8 = pnand %p13892_p7, %p13886_p4 }
0x5c31   : > { %v10699_v41 = vpop.f32.mrb[164].mxu0 }
0x5c32   : > { %v10700_v11 = vadd.f32 %v10699_v41, %v10629_v10  ;;  %v13021_v61 = vpop.f32.mrb[165].mxu0 }
0x5c34   : > { %10704 = vst.msk [vmem:[%s987_s13] sm:$0x1] %vm10703_vm1, %v10700_v11 }
0x5c35   : > { %13896 = shalt.err (!%p13893_p8)
}
0x5c36   : > { %s13897_s9 = scalar_lea.hbm %s15928_s11, 16  ;;  %s13901_s29 = scalar_lea.hbm %s14138_s10, 32 }
0x5c37   : > { %p13898_p9 = scmp.ne.s32.totalorder %s15928_s11, %s13897_s9  ;;  %p13902_p0 = scmp.lt.u32.totalorder %s15928_s11, %s14138_s10 }
0x5c38   : > { %p13903_p1 = scmp.lt.u32.totalorder %s13901_s29, %s13897_s9  ;;  %p13905_p3 = scmp.lt.u32.totalorder %s13897_s9, %s15928_s11 }
0x5c39   : > { %p13899_p12 = pnand %p13898_p9, %p14179_p10 }
0x5c3a   : > { %p13904_p2 = por %p13903_p1, %p13902_p0 }
0x5c3b   : > { %p13900_p13 = pneg %p13899_p12 }
0x5c3c   : > { %p13906_p5 = por %p13905_p3, %p13904_p2 }
0x5c3e   : > { %p13907_p4 = pnand %p13906_p5, %p13900_p13 }
0x5c40   : > { %13910 = shalt.err (!%p13907_p4)
}
0x5c41   : > { %13599 = dma.vmem_to_hbm [thread:$0]  (%p14179_p10), %s15930_s3, 16, %s15928_s11, %s10710_s14  }
0x5c42 PF: > { %p13605_p6 = scmp.ge.s32.totalorder %s13947_s15, 2  ;;  %s10744_s1 = sand.u32 1, %s13935_s25  }
0x5c43   : > { %s10745_s13 = scalar_lea.sflag [#allocation5], %s10744_s1 }
0x5c44   : > { %p13602_p7 = pnand %p13605_p6, %p14183_p11 }
0x5c46   : > { %13930 = dma.done.wait (!%p13602_p7), %s10745_s13, 16  }
0x5c47   : > { %13932 = vsyncadd (!%p13602_p7), %s10745_s13, 4294967280  ;;  %p76_p8 = scmp.ge.s32.totalorder %s14166_s22, 4   ;;  %s16014_s25 = smov %s13939_s0 }
0x5c48   : > { %s16015_s0 = smov %s13943_s5  ;;  %s16016_s5 = smov %s14177_s28 }
0x5c49   : > { %s16017_s15 = smov %s14166_s22  ;;  %78 = sbr.rel (!%p76_p8) target bundleno = 64 (0x40), region = 288 }
0x5c50   :  { %10749 = vsyncpa [#allocation5], 1 }
0x5c51   :  { %10751 = vsyncpa [#allocation5 + $0x1], 1 }

</bundles_post_ra>
